<compile_context>
chip_gen: v7x
topology: tpu7x:2x2x1
jax: 0.10.0
libtpu: 0.0.40
codegen_flags: <defaults>
</compile_context>

<pallas_src>
import functools
import math

import numpy as np
import jax
import jax.numpy as jnp
from jax.experimental import pallas as pl
from jax.experimental.pallas import tpu as pltpu


# -----------------------------------------------------------------------------
# Kernel 1: fused per-branch forward (conv1+LeakyReLU+conv2+fc1/fc2+tanh).
# Grid = (2,) over branches; each step sees only its branch's inputs/weights.
# -----------------------------------------------------------------------------
def fused_branch_kernel(xrh_ref, g1_ref, b1_ref, g2_ref, b2_ref, wfc_ref,
                        bfc_ref, out_ref, y1_ref, *, batch, lat):
    ch64 = g1_ref.shape[-1]          # channels * 64  (conv1 output lane width)
    ch32 = g2_ref.shape[-1]          # channels * 32  (conv2 output lane width)

    # conv2 reads one zero halo row above/below each conv1 output phase plane
    # (that *is* conv2's zero padding), so clear the scratch first.
    y1_ref[...] = jnp.zeros_like(y1_ref)

    # --- layer1/layer2: Conv2d(k=4, s=2, p=1) + bias + LeakyReLU --------------
    # Polyphase: output rows h1 = 2u + a.  For each (a, kh) the needed input
    # rows are a single mod-4 row-phase plane at a static coarse offset dh, and
    # the (kw, stride-2 column, cin) contraction is folded into g1[kh].
    for a in range(2):
        for b in range(batch):
            acc = jnp.zeros((32, ch64), jnp.float32)
            for kh in range(4):
                m = 2 * a + kh - 1
                ph, dh = m % 4, m // 4
                lhs = xrh_ref[b * 4 + ph, 1 + dh:33 + dh, :]     # (32, cin*128)
                acc = acc + jnp.dot(lhs, g1_ref[kh],
                                    preferred_element_type=jnp.float32)
            act = acc + b1_ref[...]
            act = jnp.where(act > 0, act, 0.01 * act)            # nn.LeakyReLU()
            y1_ref[a * batch + b, 1:33, :] = act                 # halo rows stay 0

    # --- layer3/layer4 (no activation) + fc1/fc2 + tanh -----------------------
    row = jax.lax.broadcasted_iota(jnp.int32, (batch, lat), 0)
    col = jax.lax.broadcasted_iota(jnp.int32, (batch, lat), 1)
    mu_acc = jnp.zeros((batch, lat), jnp.float32)
    lv_acc = jnp.zeros((batch, lat), jnp.float32)

    for b in range(batch):
        acc2 = jnp.zeros((32, ch32), jnp.float32)
        for kh in range(4):
            a, dh = (kh - 1) % 2, (kh - 1) // 2
            lhs = y1_ref[a * batch + b, 1 + dh:33 + dh, :]       # (32, ch*64)
            acc2 = acc2 + jnp.dot(lhs, g2_ref[kh],
                                  preferred_element_type=jnp.float32)
        y2 = acc2 + b2_ref[...]                                  # (32, ch*32)

        # Linear(ch*32*32 -> latent): wfc is pre-arranged to y2's exact
        # [h, c*32+w] layout, so the contraction is 16 tiny mul+full-reduce ops
        # (no flatten / relayout of the activation).
        for l in range(lat):
            sel = (row == b) & (col == l)
            mu_acc = mu_acc + jnp.where(sel, jnp.sum(wfc_ref[l] * y2), 0.0)
            lv_acc = lv_acc + jnp.where(sel, jnp.sum(wfc_ref[lat + l] * y2), 0.0)

    out_ref[0] = jnp.tanh(mu_acc + bfc_ref[0])                   # mu
    out_ref[1] = jnp.tanh(lv_acc + bfc_ref[1])                   # logvar


# -----------------------------------------------------------------------------
# Kernel 2: reparametrize + bidirectional KL + bidirectional BCE -> scalar loss.
# -----------------------------------------------------------------------------
def latent_loss_kernel(stats_ref, eps_r_ref, eps_d_ref, out_ref):
    mu_r = stats_ref[0, 0]                                       # (B, L)
    lv_r = stats_ref[0, 1]
    mu_d = stats_ref[1, 0]
    lv_d = stats_ref[1, 1]

    inv_b = 1.0 / float(mu_r.shape[0])

    # reparametrize: z = eps * exp(0.5 * logvar) + mu
    z_r = eps_r_ref[...] * jnp.exp(0.5 * lv_r) + mu_r
    z_d = eps_d_ref[...] * jnp.exp(0.5 * lv_d) + mu_d

    # dist = Independent(Normal(loc=mu, scale=exp(logvar)), 1) -> var=exp(2*lv)
    # (faithful to the reference's scale=exp(logvar) quirk).
    var_r = jnp.exp(2.0 * lv_r)
    var_d = jnp.exp(2.0 * lv_d)
    kl_rd = (lv_d - lv_r) + (var_r + (mu_r - mu_d) ** 2) / (2.0 * var_d) - 0.5
    kl_dr = (lv_r - lv_d) + (var_d + (mu_d - mu_r) ** 2) / (2.0 * var_r) - 0.5
    bi_di_kld = (jnp.sum(kl_rd, keepdims=True) +
                 jnp.sum(kl_dr, keepdims=True)) * inv_b

    # BCELoss(reduction='sum') both ways, logs via stable softplus, clamped at
    # -100 to match torch.nn.BCELoss.
    def softplus(x):
        return jnp.maximum(x, 0.0) + jnp.log(1.0 + jnp.exp(-jnp.abs(x)))

    p_r = 1.0 / (1.0 + jnp.exp(-z_r))
    p_d = 1.0 / (1.0 + jnp.exp(-z_d))
    log_pr = jnp.maximum(-softplus(-z_r), -100.0)
    log_1pr = jnp.maximum(-softplus(z_r), -100.0)
    log_pd = jnp.maximum(-softplus(-z_d), -100.0)
    log_1pd = jnp.maximum(-softplus(z_d), -100.0)

    ce_rd = -jnp.sum(p_d * log_pr + (1.0 - p_d) * log_1pr, keepdims=True)
    ce_dr = -jnp.sum(p_r * log_pd + (1.0 - p_r) * log_1pd, keepdims=True)

    out_ref[...] = ce_rd + ce_dr - bi_di_kld


# -----------------------------------------------------------------------------
# Full forward (Mutual_info_reg.forward)
# -----------------------------------------------------------------------------
def mutual_info_reg_forward(rgb_feat, depth_feat, params, eps_rgb, eps_depth):
    B, cin, H, W = rgb_feat.shape
    assert H == 128 and W == 128, "FC layers require a 32x32 conv2 output"
    ch = params["b2lane"].shape[-1] // 32
    lat = params["bfc"].shape[-1]

    # JAX glue: pure relayout of the raw NCHW input (same byte count, no im2col
    # blow-up): mod-4 row-phase split, channels folded onto the lane axis, plus
    # a one-coarse-row zero halo (= conv1's zero padding along H).
    # TODO(synk): this relayout could be folded into the kernel via strided
    # in-kernel DMA; kept as glue for lowering robustness.
    def phase_split(x):
        xr = x.reshape(B, cin, H // 4, 4, W).transpose(0, 3, 2, 1, 4)
        xr = xr.reshape(B, 4, H // 4, cin * W)
        return jnp.pad(xr, ((0, 0), (0, 0), (1, 1), (0, 0)))

    xrh = jnp.stack([phase_split(rgb_feat), phase_split(depth_feat)])
    xrh = xrh.reshape(2, B * 4, H // 4 + 2, cin * W)

    stats = pl.pallas_call(
        functools.partial(fused_branch_kernel, batch=B, lat=lat),
        out_shape=jax.ShapeDtypeStruct((2, 2, B, lat), jnp.float32),
        grid_spec=pltpu.PrefetchScalarGridSpec(
            num_scalar_prefetch=0,
            grid=(2,),                                    # one branch per step
            in_specs=[
                pl.BlockSpec((None, B * 4, H // 4 + 2, cin * W),
                             lambda br: (br, 0, 0, 0)),
                pl.BlockSpec((None, 4, cin * W, ch * 64),
                             lambda br: (br, 0, 0, 0)),
                pl.BlockSpec((None, 1, ch * 64), lambda br: (br, 0, 0)),
                pl.BlockSpec((None, 4, ch * 64, ch * 32),
                             lambda br: (br, 0, 0, 0)),
                pl.BlockSpec((None, 1, ch * 32), lambda br: (br, 0, 0)),
                pl.BlockSpec((None, 2 * lat, 32, ch * 32),
                             lambda br: (br, 0, 0, 0)),
                pl.BlockSpec((None, 2, 1, lat), lambda br: (br, 0, 0, 0)),
            ],
            out_specs=pl.BlockSpec((None, 2, B, lat), lambda br: (br, 0, 0, 0)),
            scratch_shapes=[
                pltpu.VMEM((2 * B, H // 4 + 2, ch * 64), jnp.float32)],
        ),
        compiler_params=pltpu.CompilerParams(
            dimension_semantics=("parallel",),            # 1 branch / TensorCore
            vmem_limit_bytes=32 * 1024 * 1024),
    )(xrh, params["g1"], params["b1lane"], params["g2"], params["b2lane"],
      params["wfc"], params["bfc"])

    vmem = pl.BlockSpec(memory_space=pltpu.MemorySpace.VMEM)
    loss = pl.pallas_call(
        latent_loss_kernel,
        out_shape=jax.ShapeDtypeStruct((1, 1), jnp.float32),
        in_specs=[vmem] * 3,
        out_specs=vmem,
    )(stats, eps_rgb, eps_depth)
    return loss[0, 0]


# -----------------------------------------------------------------------------
# Deterministic parameter init (PyTorch-layout weights, transformed once into
# the kernel's selection-weight / lane-dense layouts).
# -----------------------------------------------------------------------------
def init_params(key, input_channels, channels, latent_size):
    keys = jax.random.split(key, 16)

    def uni(k, shape, fan_in):
        bound = 1.0 / math.sqrt(fan_in)
        return np.asarray(jax.random.uniform(k, shape, jnp.float32, -bound, bound))

    fan_c1 = input_channels * 16
    fan_c2 = channels * 16
    fc_in = channels * 32 * 32

    # PyTorch-native layouts: conv (Cout, Cin, kh, kw), linear (out, in).
    w1 = uni(keys[0], (channels, input_channels, 4, 4), fan_c1)
    bb1 = uni(keys[1], (channels,), fan_c1)
    w2 = uni(keys[2], (channels, input_channels, 4, 4), fan_c1)
    bb2 = uni(keys[3], (channels,), fan_c1)
    w3 = uni(keys[4], (channels, channels, 4, 4), fan_c2)
    bb3 = uni(keys[5], (channels,), fan_c2)
    w4 = uni(keys[6], (channels, channels, 4, 4), fan_c2)
    bb4 = uni(keys[7], (channels,), fan_c2)
    fc1_rgb = uni(keys[8], (latent_size, fc_in), fc_in)
    fb1_rgb = uni(keys[9], (latent_size,), fc_in)
    fc2_rgb = uni(keys[10], (latent_size, fc_in), fc_in)
    fb2_rgb = uni(keys[11], (latent_size,), fc_in)
    fc1_dep = uni(keys[12], (latent_size, fc_in), fc_in)
    fb1_dep = uni(keys[13], (latent_size,), fc_in)
    fc2_dep = uni(keys[14], (latent_size, fc_in), fc_in)
    fb2_dep = uni(keys[15], (latent_size,), fc_in)

    def conv1_mat(w):
        # (Cout,Cin,4,4) -> (kh, Cin*128, Cout*64). Output lane = co*64+e*32+v
        # with output col w1 = 2v+e; selects input col c = 4v+2e+kw-1; columns
        # outside [0,128) are simply dropped (= zero padding along W).
        co_n, ci_n = w.shape[0], w.shape[1]
        g = np.zeros((4, ci_n * 128, co_n * 64), np.float32)
        for kh in range(4):
            for kw in range(4):
                for e in range(2):
                    for v in range(32):
                        c = 4 * v + 2 * e + kw - 1
                        if 0 <= c < 128:
                            for co in range(co_n):
                                for ci in range(ci_n):
                                    g[kh, ci * 128 + c, co * 64 + e * 32 + v] = \
                                        w[co, ci, kh, kw]
        return g

    def conv2_mat(w):
        # (Cout,Cin,4,4) -> (kh, Cin*64, Cout*32). Input lanes are conv1's
        # (c1, e, v) packing, output lanes (co2, w2); out-of-range source
        # columns dropped (= zero padding along W).
        co_n, ci_n = w.shape[0], w.shape[1]
        g = np.zeros((4, ci_n * 64, co_n * 32), np.float32)
        for kh in range(4):
            for kw in range(4):
                e = 1 - (kw % 2)
                d = (kw - 1) // 2
                for w2o in range(32):
                    vp = w2o + d
                    if 0 <= vp < 32:
                        for co in range(co_n):
                            for ci in range(ci_n):
                                g[kh, ci * 64 + e * 32 + vp, co * 32 + w2o] = \
                                    w[co, ci, kh, kw]
        return g

    def fc_mat(wa, wb):
        # Two PyTorch Linear weights (L, C*32*32) -> (2L, 32, C*32) in the
        # kernel's conv2-output layout [h, c*32+w] (PyTorch flatten is (c,h,w)).
        m = np.stack([wa, wb]).reshape(2 * latent_size, channels, 32, 32)
        return m.transpose(0, 2, 1, 3).reshape(2 * latent_size, 32, channels * 32)

    return {
        "g1": jnp.asarray(np.stack([conv1_mat(w1), conv1_mat(w2)])),
        "b1lane": jnp.asarray(np.stack([np.repeat(bb1, 64),
                                        np.repeat(bb2, 64)])[:, None, :]),
        "g2": jnp.asarray(np.stack([conv2_mat(w3), conv2_mat(w4)])),
        "b2lane": jnp.asarray(np.stack([np.repeat(bb3, 32),
                                        np.repeat(bb4, 32)])[:, None, :]),
        "wfc": jnp.asarray(np.stack([fc_mat(fc1_rgb, fc2_rgb),
                                     fc_mat(fc1_dep, fc2_dep)])),
        "bfc": jnp.asarray(np.stack([np.stack([fb1_rgb, fb2_rgb]),
                                     np.stack([fb1_dep, fb2_dep])])[:, :, None, :]),
    }


if __name__ == "__main__":
    # The FC layers require a channels*32*32 feature vector, which implies
    # 128x128 spatial inputs (two stride-2 convs -> 32x32).
    B, CIN, C, L = 2, 3, 4, 4
    H = W = 128

    key = jax.random.PRNGKey(0)
    k_rgb, k_depth, k_eps_r, k_eps_d, k_params = jax.random.split(key, 5)

    rgb = jax.random.normal(k_rgb, (B, CIN, H, W), jnp.float32)      # NCHW
    depth = jax.random.normal(k_depth, (B, CIN, H, W), jnp.float32)  # NCHW

    # TODO(synk): torch.cuda.FloatTensor(...).normal_() has no reproducible JAX
    # equivalent; eps is drawn deterministically with jax.random instead.
    eps_rgb = jax.random.normal(k_eps_r, (B, L), jnp.float32)
    eps_depth = jax.random.normal(k_eps_d, (B, L), jnp.float32)

    params = init_params(k_params, CIN, C, L)

    fwd = jax.jit(mutual_info_reg_forward)
    latent_loss = fwd(rgb, depth, params, eps_rgb, eps_depth)
    jax.block_until_ready(latent_loss)

    assert latent_loss.shape == () and bool(jnp.isfinite(latent_loss))
    print("KERNEL_OK")
</pallas_src>

<mosaic_0001>
module attributes {stable_mosaic.version = 11 : i64} {
  func.func @latent_loss_kernel(%arg0: memref<2x2x2x4xf32, #tpu.memory_space<vmem>>, %arg1: memref<2x4xf32, #tpu.memory_space<vmem>>, %arg2: memref<2x4xf32, #tpu.memory_space<vmem>>, %arg3: memref<1x1xf32, #tpu.memory_space<vmem>>) attributes {dimension_semantics = [], scalar_prefetch = 0 : i64, scratch_operands = 0 : i64, tpu.core_type = #tpu.core_type<tc>} {
    %c0 = arith.constant 0 : index
    %c0_0 = arith.constant 0 : index
    %c0_1 = arith.constant 0 : index
    %c0_2 = arith.constant 0 : index
    %0 = vector.load %arg0[%c0, %c0_0, %c0_1, %c0_2] : memref<2x2x2x4xf32, #tpu.memory_space<vmem>>, vector<1x1x2x4xf32>
    %1 = vector.shape_cast %0 : vector<1x1x2x4xf32> to vector<2x4xf32>
    %c0_3 = arith.constant 0 : index
    %c1 = arith.constant 1 : index
    %c0_4 = arith.constant 0 : index
    %c0_5 = arith.constant 0 : index
    %2 = vector.load %arg0[%c0_3, %c1, %c0_4, %c0_5] : memref<2x2x2x4xf32, #tpu.memory_space<vmem>>, vector<1x1x2x4xf32>
    %3 = vector.shape_cast %2 : vector<1x1x2x4xf32> to vector<2x4xf32>
    %c1_6 = arith.constant 1 : index
    %c0_7 = arith.constant 0 : index
    %c0_8 = arith.constant 0 : index
    %c0_9 = arith.constant 0 : index
    %4 = vector.load %arg0[%c1_6, %c0_7, %c0_8, %c0_9] : memref<2x2x2x4xf32, #tpu.memory_space<vmem>>, vector<1x1x2x4xf32>
    %5 = vector.shape_cast %4 : vector<1x1x2x4xf32> to vector<2x4xf32>
    %c1_10 = arith.constant 1 : index
    %c1_11 = arith.constant 1 : index
    %c0_12 = arith.constant 0 : index
    %c0_13 = arith.constant 0 : index
    %6 = vector.load %arg0[%c1_10, %c1_11, %c0_12, %c0_13] : memref<2x2x2x4xf32, #tpu.memory_space<vmem>>, vector<1x1x2x4xf32>
    %7 = vector.shape_cast %6 : vector<1x1x2x4xf32> to vector<2x4xf32>
    %c0_14 = arith.constant 0 : index
    %c0_15 = arith.constant 0 : index
    %8 = vector.load %arg1[%c0_14, %c0_15] : memref<2x4xf32, #tpu.memory_space<vmem>>, vector<2x4xf32>
    %cst = arith.constant 5.000000e-01 : f32
    %9 = vector.broadcast %cst : f32 to vector<2x4xf32>
    %10 = arith.mulf %9, %3 : vector<2x4xf32>
    %11 = math.exp %10 : vector<2x4xf32>
    %12 = arith.mulf %8, %11 : vector<2x4xf32>
    %13 = arith.addf %12, %1 : vector<2x4xf32>
    %c0_16 = arith.constant 0 : index
    %c0_17 = arith.constant 0 : index
    %14 = vector.load %arg2[%c0_16, %c0_17] : memref<2x4xf32, #tpu.memory_space<vmem>>, vector<2x4xf32>
    %cst_18 = arith.constant 5.000000e-01 : f32
    %15 = vector.broadcast %cst_18 : f32 to vector<2x4xf32>
    %16 = arith.mulf %15, %7 : vector<2x4xf32>
    %17 = math.exp %16 : vector<2x4xf32>
    %18 = arith.mulf %14, %17 : vector<2x4xf32>
    %19 = arith.addf %18, %5 : vector<2x4xf32>
    %cst_19 = arith.constant 2.000000e+00 : f32
    %20 = vector.broadcast %cst_19 : f32 to vector<2x4xf32>
    %21 = arith.mulf %20, %3 : vector<2x4xf32>
    %22 = math.exp %21 : vector<2x4xf32>
    %cst_20 = arith.constant 2.000000e+00 : f32
    %23 = vector.broadcast %cst_20 : f32 to vector<2x4xf32>
    %24 = arith.mulf %23, %7 : vector<2x4xf32>
    %25 = math.exp %24 : vector<2x4xf32>
    %26 = arith.subf %7, %3 : vector<2x4xf32>
    %27 = arith.subf %1, %5 : vector<2x4xf32>
    %28 = arith.mulf %27, %27 : vector<2x4xf32>
    %29 = arith.addf %22, %28 : vector<2x4xf32>
    %cst_21 = arith.constant 2.000000e+00 : f32
    %30 = vector.broadcast %cst_21 : f32 to vector<2x4xf32>
    %31 = arith.mulf %30, %25 : vector<2x4xf32>
    %32 = arith.divf %29, %31 : vector<2x4xf32>
    %33 = arith.addf %26, %32 : vector<2x4xf32>
    %cst_22 = arith.constant 5.000000e-01 : f32
    %34 = vector.broadcast %cst_22 : f32 to vector<2x4xf32>
    %35 = arith.subf %33, %34 : vector<2x4xf32>
    %36 = arith.subf %3, %7 : vector<2x4xf32>
    %37 = arith.subf %5, %1 : vector<2x4xf32>
    %38 = arith.mulf %37, %37 : vector<2x4xf32>
    %39 = arith.addf %25, %38 : vector<2x4xf32>
    %cst_23 = arith.constant 2.000000e+00 : f32
    %40 = vector.broadcast %cst_23 : f32 to vector<2x4xf32>
    %41 = arith.mulf %40, %22 : vector<2x4xf32>
    %42 = arith.divf %39, %41 : vector<2x4xf32>
    %43 = arith.addf %36, %42 : vector<2x4xf32>
    %cst_24 = arith.constant 5.000000e-01 : f32
    %44 = vector.broadcast %cst_24 : f32 to vector<2x4xf32>
    %45 = arith.subf %43, %44 : vector<2x4xf32>
    %46 = vector.shape_cast %35 : vector<2x4xf32> to vector<1x2x4xf32>
    %cst_25 = arith.constant dense<0.000000e+00> : vector<1xf32>
    %47 = vector.multi_reduction <add>, %46, %cst_25 [1, 2] : vector<1x2x4xf32> to vector<1xf32>
    %48 = vector.shape_cast %47 : vector<1xf32> to vector<1x1x1xf32>
    %49 = vector.extract %48[0, 0, 0] : f32 from vector<1x1x1xf32>
    %50 = vector.broadcast %49 : f32 to vector<1x1xf32>
    %51 = vector.shape_cast %45 : vector<2x4xf32> to vector<1x2x4xf32>
    %cst_26 = arith.constant dense<0.000000e+00> : vector<1xf32>
    %52 = vector.multi_reduction <add>, %51, %cst_26 [1, 2] : vector<1x2x4xf32> to vector<1xf32>
    %53 = vector.shape_cast %52 : vector<1xf32> to vector<1x1x1xf32>
    %54 = vector.extract %53[0, 0, 0] : f32 from vector<1x1x1xf32>
    %55 = vector.broadcast %54 : f32 to vector<1x1xf32>
    %56 = arith.addf %50, %55 : vector<1x1xf32>
    %cst_27 = arith.constant 5.000000e-01 : f32
    %57 = vector.broadcast %cst_27 : f32 to vector<1x1xf32>
    %58 = arith.mulf %56, %57 : vector<1x1xf32>
    %cst_28 = arith.constant 0.000000e+00 : f32
    %59 = vector.broadcast %cst_28 : f32 to vector<2x4xf32>
    %60 = arith.subf %59, %13 : vector<2x4xf32>
    %61 = math.exp %60 : vector<2x4xf32>
    %cst_29 = arith.constant 1.000000e+00 : f32
    %62 = vector.broadcast %cst_29 : f32 to vector<2x4xf32>
    %63 = arith.addf %62, %61 : vector<2x4xf32>
    %cst_30 = arith.constant 1.000000e+00 : f32
    %64 = vector.broadcast %cst_30 : f32 to vector<2x4xf32>
    %65 = arith.divf %64, %63 : vector<2x4xf32>
    %cst_31 = arith.constant 0.000000e+00 : f32
    %66 = vector.broadcast %cst_31 : f32 to vector<2x4xf32>
    %67 = arith.subf %66, %19 : vector<2x4xf32>
    %68 = math.exp %67 : vector<2x4xf32>
    %cst_32 = arith.constant 1.000000e+00 : f32
    %69 = vector.broadcast %cst_32 : f32 to vector<2x4xf32>
    %70 = arith.addf %69, %68 : vector<2x4xf32>
    %cst_33 = arith.constant 1.000000e+00 : f32
    %71 = vector.broadcast %cst_33 : f32 to vector<2x4xf32>
    %72 = arith.divf %71, %70 : vector<2x4xf32>
    %cst_34 = arith.constant 0.000000e+00 : f32
    %73 = vector.broadcast %cst_34 : f32 to vector<2x4xf32>
    %74 = arith.subf %73, %13 : vector<2x4xf32>
    %cst_35 = arith.constant 0.000000e+00 : f32
    %75 = vector.broadcast %cst_35 : f32 to vector<2x4xf32>
    %76 = arith.maximumf %74, %75 : vector<2x4xf32>
    %77 = math.absf %74 : vector<2x4xf32>
    %cst_36 = arith.constant 0.000000e+00 : f32
    %78 = vector.broadcast %cst_36 : f32 to vector<2x4xf32>
    %79 = arith.subf %78, %77 : vector<2x4xf32>
    %80 = math.exp %79 : vector<2x4xf32>
    %cst_37 = arith.constant 1.000000e+00 : f32
    %81 = vector.broadcast %cst_37 : f32 to vector<2x4xf32>
    %82 = arith.addf %81, %80 : vector<2x4xf32>
    %83 = math.log %82 : vector<2x4xf32>
    %84 = arith.addf %76, %83 : vector<2x4xf32>
    %cst_38 = arith.constant 0.000000e+00 : f32
    %85 = vector.broadcast %cst_38 : f32 to vector<2x4xf32>
    %86 = arith.subf %85, %84 : vector<2x4xf32>
    %cst_39 = arith.constant -1.000000e+02 : f32
    %87 = vector.broadcast %cst_39 : f32 to vector<2x4xf32>
    %88 = arith.maximumf %86, %87 : vector<2x4xf32>
    %cst_40 = arith.constant 0.000000e+00 : f32
    %89 = vector.broadcast %cst_40 : f32 to vector<2x4xf32>
    %90 = arith.maximumf %13, %89 : vector<2x4xf32>
    %91 = math.absf %13 : vector<2x4xf32>
    %cst_41 = arith.constant 0.000000e+00 : f32
    %92 = vector.broadcast %cst_41 : f32 to vector<2x4xf32>
    %93 = arith.subf %92, %91 : vector<2x4xf32>
    %94 = math.exp %93 : vector<2x4xf32>
    %cst_42 = arith.constant 1.000000e+00 : f32
    %95 = vector.broadcast %cst_42 : f32 to vector<2x4xf32>
    %96 = arith.addf %95, %94 : vector<2x4xf32>
    %97 = math.log %96 : vector<2x4xf32>
    %98 = arith.addf %90, %97 : vector<2x4xf32>
    %cst_43 = arith.constant 0.000000e+00 : f32
    %99 = vector.broadcast %cst_43 : f32 to vector<2x4xf32>
    %100 = arith.subf %99, %98 : vector<2x4xf32>
    %cst_44 = arith.constant -1.000000e+02 : f32
    %101 = vector.broadcast %cst_44 : f32 to vector<2x4xf32>
    %102 = arith.maximumf %100, %101 : vector<2x4xf32>
    %cst_45 = arith.constant 0.000000e+00 : f32
    %103 = vector.broadcast %cst_45 : f32 to vector<2x4xf32>
    %104 = arith.subf %103, %19 : vector<2x4xf32>
    %cst_46 = arith.constant 0.000000e+00 : f32
    %105 = vector.broadcast %cst_46 : f32 to vector<2x4xf32>
    %106 = arith.maximumf %104, %105 : vector<2x4xf32>
    %107 = math.absf %104 : vector<2x4xf32>
    %cst_47 = arith.constant 0.000000e+00 : f32
    %108 = vector.broadcast %cst_47 : f32 to vector<2x4xf32>
    %109 = arith.subf %108, %107 : vector<2x4xf32>
    %110 = math.exp %109 : vector<2x4xf32>
    %cst_48 = arith.constant 1.000000e+00 : f32
    %111 = vector.broadcast %cst_48 : f32 to vector<2x4xf32>
    %112 = arith.addf %111, %110 : vector<2x4xf32>
    %113 = math.log %112 : vector<2x4xf32>
    %114 = arith.addf %106, %113 : vector<2x4xf32>
    %cst_49 = arith.constant 0.000000e+00 : f32
    %115 = vector.broadcast %cst_49 : f32 to vector<2x4xf32>
    %116 = arith.subf %115, %114 : vector<2x4xf32>
    %cst_50 = arith.constant -1.000000e+02 : f32
    %117 = vector.broadcast %cst_50 : f32 to vector<2x4xf32>
    %118 = arith.maximumf %116, %117 : vector<2x4xf32>
    %cst_51 = arith.constant 0.000000e+00 : f32
    %119 = vector.broadcast %cst_51 : f32 to vector<2x4xf32>
    %120 = arith.maximumf %19, %119 : vector<2x4xf32>
    %121 = math.absf %19 : vector<2x4xf32>
    %cst_52 = arith.constant 0.000000e+00 : f32
    %122 = vector.broadcast %cst_52 : f32 to vector<2x4xf32>
    %123 = arith.subf %122, %121 : vector<2x4xf32>
    %124 = math.exp %123 : vector<2x4xf32>
    %cst_53 = arith.constant 1.000000e+00 : f32
    %125 = vector.broadcast %cst_53 : f32 to vector<2x4xf32>
    %126 = arith.addf %125, %124 : vector<2x4xf32>
    %127 = math.log %126 : vector<2x4xf32>
    %128 = arith.addf %120, %127 : vector<2x4xf32>
    %cst_54 = arith.constant 0.000000e+00 : f32
    %129 = vector.broadcast %cst_54 : f32 to vector<2x4xf32>
    %130 = arith.subf %129, %128 : vector<2x4xf32>
    %cst_55 = arith.constant -1.000000e+02 : f32
    %131 = vector.broadcast %cst_55 : f32 to vector<2x4xf32>
    %132 = arith.maximumf %130, %131 : vector<2x4xf32>
    %133 = arith.mulf %72, %88 : vector<2x4xf32>
    %cst_56 = arith.constant 1.000000e+00 : f32
    %134 = vector.broadcast %cst_56 : f32 to vector<2x4xf32>
    %135 = arith.subf %134, %72 : vector<2x4xf32>
    %136 = arith.mulf %135, %102 : vector<2x4xf32>
    %137 = arith.addf %133, %136 : vector<2x4xf32>
    %138 = vector.shape_cast %137 : vector<2x4xf32> to vector<1x2x4xf32>
    %cst_57 = arith.constant dense<0.000000e+00> : vector<1xf32>
    %139 = vector.multi_reduction <add>, %138, %cst_57 [1, 2] : vector<1x2x4xf32> to vector<1xf32>
    %140 = vector.shape_cast %139 : vector<1xf32> to vector<1x1x1xf32>
    %141 = vector.extract %140[0, 0, 0] : f32 from vector<1x1x1xf32>
    %142 = vector.broadcast %141 : f32 to vector<1x1xf32>
    %cst_58 = arith.constant 0.000000e+00 : f32
    %143 = vector.broadcast %cst_58 : f32 to vector<1x1xf32>
    %144 = arith.subf %143, %142 : vector<1x1xf32>
    %145 = arith.mulf %65, %118 : vector<2x4xf32>
    %cst_59 = arith.constant 1.000000e+00 : f32
    %146 = vector.broadcast %cst_59 : f32 to vector<2x4xf32>
    %147 = arith.subf %146, %65 : vector<2x4xf32>
    %148 = arith.mulf %147, %132 : vector<2x4xf32>
    %149 = arith.addf %145, %148 : vector<2x4xf32>
    %150 = vector.shape_cast %149 : vector<2x4xf32> to vector<1x2x4xf32>
    %cst_60 = arith.constant dense<0.000000e+00> : vector<1xf32>
    %151 = vector.multi_reduction <add>, %150, %cst_60 [1, 2] : vector<1x2x4xf32> to vector<1xf32>
    %152 = vector.shape_cast %151 : vector<1xf32> to vector<1x1x1xf32>
    %153 = vector.extract %152[0, 0, 0] : f32 from vector<1x1x1xf32>
    %154 = vector.broadcast %153 : f32 to vector<1x1xf32>
    %cst_61 = arith.constant 0.000000e+00 : f32
    %155 = vector.broadcast %cst_61 : f32 to vector<1x1xf32>
    %156 = arith.subf %155, %154 : vector<1x1xf32>
    %157 = arith.addf %144, %156 : vector<1x1xf32>
    %158 = arith.subf %157, %58 : vector<1x1xf32>
    %c0_62 = arith.constant 0 : index
    %c0_63 = arith.constant 0 : index
    %159 = vector.load %arg3[%c0_62, %c0_63] : memref<1x1xf32, #tpu.memory_space<vmem>>, vector<1x1xf32>
    tpu.vector_store %arg3[%c0_62, %c0_63], %158 {strides = array<i32>} : memref<1x1xf32, #tpu.memory_space<vmem>>, vector<1x1xf32>,
    return
  }
}

module attributes {stable_mosaic.version = 11 : i64} {
  func.func @fused_branch_kernel(%arg0: i32, %arg1: memref<1x8x34x384xf32, #tpu.memory_space<vmem>>, %arg2: memref<1x4x384x256xf32, #tpu.memory_space<vmem>>, %arg3: memref<1x1x256xf32, #tpu.memory_space<vmem>>, %arg4: memref<1x4x256x128xf32, #tpu.memory_space<vmem>>, %arg5: memref<1x1x128xf32, #tpu.memory_space<vmem>>, %arg6: memref<1x8x32x128xf32, #tpu.memory_space<vmem>>, %arg7: memref<1x2x1x4xf32, #tpu.memory_space<vmem>>, %arg8: memref<1x2x2x4xf32, #tpu.memory_space<vmem>>, %arg9: memref<4x34x256xf32, #tpu.memory_space<vmem>>) attributes {dimension_semantics = [#tpu.dimension_semantics<parallel>], iteration_bounds = array<i64: 2>, scalar_prefetch = 0 : i64, scratch_operands = 1 : i64, tpu.core_type = #tpu.core_type<tc>, window_params = [{transform_indices = @transform_0, window_bounds = array<i64: 1, 8, 34, 384>}, {transform_indices = @transform_1, window_bounds = array<i64: 1, 4, 384, 256>}, {transform_indices = @transform_2, window_bounds = array<i64: 1, 1, 256>}, {transform_indices = @transform_3, window_bounds = array<i64: 1, 4, 256, 128>}, {transform_indices = @transform_4, window_bounds = array<i64: 1, 1, 128>}, {transform_indices = @transform_5, window_bounds = array<i64: 1, 8, 32, 128>}, {transform_indices = @transform_6, window_bounds = array<i64: 1, 2, 1, 4>}, {transform_indices = @transform_7, window_bounds = array<i64: 1, 2, 2, 4>}]} {
    %cst = arith.constant 0.000000e+00 : f32
    %0 = vector.broadcast %cst : f32 to vector<4x34x256xf32>
    %c0 = arith.constant 0 : index
    %c0_0 = arith.constant 0 : index
    %c0_1 = arith.constant 0 : index
    %1 = vector.load %arg9[%c0, %c0_0, %c0_1] : memref<4x34x256xf32, #tpu.memory_space<vmem>>, vector<4x34x256xf32>
    tpu.vector_store %arg9[%c0, %c0_0, %c0_1], %0 {strides = array<i32>} : memref<4x34x256xf32, #tpu.memory_space<vmem>>, vector<4x34x256xf32>,
    %cst_2 = arith.constant 0.000000e+00 : f32
    %2 = vector.broadcast %cst_2 : f32 to vector<32x256xf32>
    %c0_3 = arith.constant 0 : index
    %c3 = arith.constant 3 : index
    %c0_4 = arith.constant 0 : index
    %c0_5 = arith.constant 0 : index
    %3 = vector.load %arg1[%c0_3, %c3, %c0_4, %c0_5] : memref<1x8x34x384xf32, #tpu.memory_space<vmem>>, vector<1x1x32x384xf32>
    %4 = vector.shape_cast %3 : vector<1x1x32x384xf32> to vector<32x384xf32>
    %c0_6 = arith.constant 0 : index
    %c0_7 = arith.constant 0 : index
    %c0_8 = arith.constant 0 : index
    %c0_9 = arith.constant 0 : index
    %5 = vector.load %arg2[%c0_6, %c0_7, %c0_8, %c0_9] : memref<1x4x384x256xf32, #tpu.memory_space<vmem>>, vector<1x1x384x256xf32>
    %6 = vector.shape_cast %5 : vector<1x1x384x256xf32> to vector<384x256xf32>
    %cst_10 = arith.constant dense<0.000000e+00> : vector<32x256xf32>
    %7 = tpu.matmul %4, %6, %cst_10 {dimension_numbers = #tpu.dot_dimension_numbers<[1], [0], [0], [1], [0, 0, 1, 1], [], []>} : vector<32x384xf32>, vector<384x256xf32>, vector<32x256xf32> -> vector<32x256xf32>
    %8 = arith.addf %2, %7 : vector<32x256xf32>
    %c0_11 = arith.constant 0 : index
    %c0_12 = arith.constant 0 : index
    %c1 = arith.constant 1 : index
    %c0_13 = arith.constant 0 : index
    %9 = vector.load %arg1[%c0_11, %c0_12, %c1, %c0_13] : memref<1x8x34x384xf32, #tpu.memory_space<vmem>>, vector<1x1x32x384xf32>
    %10 = vector.shape_cast %9 : vector<1x1x32x384xf32> to vector<32x384xf32>
    %c0_14 = arith.constant 0 : index
    %c1_15 = arith.constant 1 : index
    %c0_16 = arith.constant 0 : index
    %c0_17 = arith.constant 0 : index
    %11 = vector.load %arg2[%c0_14, %c1_15, %c0_16, %c0_17] : memref<1x4x384x256xf32, #tpu.memory_space<vmem>>, vector<1x1x384x256xf32>
    %12 = vector.shape_cast %11 : vector<1x1x384x256xf32> to vector<384x256xf32>
    %cst_18 = arith.constant dense<0.000000e+00> : vector<32x256xf32>
    %13 = tpu.matmul %10, %12, %cst_18 {dimension_numbers = #tpu.dot_dimension_numbers<[1], [0], [0], [1], [0, 0, 1, 1], [], []>} : vector<32x384xf32>, vector<384x256xf32>, vector<32x256xf32> -> vector<32x256xf32>
    %14 = arith.addf %8, %13 : vector<32x256xf32>
    %c0_19 = arith.constant 0 : index
    %c1_20 = arith.constant 1 : index
    %c1_21 = arith.constant 1 : index
    %c0_22 = arith.constant 0 : index
    %15 = vector.load %arg1[%c0_19, %c1_20, %c1_21, %c0_22] : memref<1x8x34x384xf32, #tpu.memory_space<vmem>>, vector<1x1x32x384xf32>
    %16 = vector.shape_cast %15 : vector<1x1x32x384xf32> to vector<32x384xf32>
    %c0_23 = arith.constant 0 : index
    %c2 = arith.constant 2 : index
    %c0_24 = arith.constant 0 : index
    %c0_25 = arith.constant 0 : index
    %17 = vector.load %arg2[%c0_23, %c2, %c0_24, %c0_25] : memref<1x4x384x256xf32, #tpu.memory_space<vmem>>, vector<1x1x384x256xf32>
    %18 = vector.shape_cast %17 : vector<1x1x384x256xf32> to vector<384x256xf32>
    %cst_26 = arith.constant dense<0.000000e+00> : vector<32x256xf32>
    %19 = tpu.matmul %16, %18, %cst_26 {dimension_numbers = #tpu.dot_dimension_numbers<[1], [0], [0], [1], [0, 0, 1, 1], [], []>} : vector<32x384xf32>, vector<384x256xf32>, vector<32x256xf32> -> vector<32x256xf32>
    %20 = arith.addf %14, %19 : vector<32x256xf32>
    %c0_27 = arith.constant 0 : index
    %c2_28 = arith.constant 2 : index
    %c1_29 = arith.constant 1 : index
    %c0_30 = arith.constant 0 : index
    %21 = vector.load %arg1[%c0_27, %c2_28, %c1_29, %c0_30] : memref<1x8x34x384xf32, #tpu.memory_space<vmem>>, vector<1x1x32x384xf32>
    %22 = vector.shape_cast %21 : vector<1x1x32x384xf32> to vector<32x384xf32>
    %c0_31 = arith.constant 0 : index
    %c3_32 = arith.constant 3 : index
    %c0_33 = arith.constant 0 : index
    %c0_34 = arith.constant 0 : index
    %23 = vector.load %arg2[%c0_31, %c3_32, %c0_33, %c0_34] : memref<1x4x384x256xf32, #tpu.memory_space<vmem>>, vector<1x1x384x256xf32>
    %24 = vector.shape_cast %23 : vector<1x1x384x256xf32> to vector<384x256xf32>
    %cst_35 = arith.constant dense<0.000000e+00> : vector<32x256xf32>
    %25 = tpu.matmul %22, %24, %cst_35 {dimension_numbers = #tpu.dot_dimension_numbers<[1], [0], [0], [1], [0, 0, 1, 1], [], []>} : vector<32x384xf32>, vector<384x256xf32>, vector<32x256xf32> -> vector<32x256xf32>
    %26 = arith.addf %20, %25 : vector<32x256xf32>
    %c0_36 = arith.constant 0 : index
    %c0_37 = arith.constant 0 : index
    %c0_38 = arith.constant 0 : index
    %27 = vector.load %arg3[%c0_36, %c0_37, %c0_38] : memref<1x1x256xf32, #tpu.memory_space<vmem>>, vector<1x1x256xf32>
    %28 = vector.shape_cast %27 : vector<1x1x256xf32> to vector<1x256xf32>
    %29 = vector.broadcast %28 : vector<1x256xf32> to vector<32x256xf32>
    %30 = arith.addf %26, %29 : vector<32x256xf32>
    %cst_39 = arith.constant 0.000000e+00 : f32
    %31 = vector.broadcast %cst_39 : f32 to vector<32x256xf32>
    %32 = arith.cmpf ogt, %30, %31 : vector<32x256xf32>
    %cst_40 = arith.constant 0.00999999977 : f32
    %33 = vector.broadcast %cst_40 : f32 to vector<32x256xf32>
    %34 = arith.mulf %33, %30 : vector<32x256xf32>
    %35 = arith.select %32, %30, %34 : vector<32x256xi1>, vector<32x256xf32>
    %c0_41 = arith.constant 0 : index
    %c1_42 = arith.constant 1 : index
    %c0_43 = arith.constant 0 : index
    %36 = vector.load %arg9[%c0_41, %c1_42, %c0_43] : memref<4x34x256xf32, #tpu.memory_space<vmem>>, vector<1x32x256xf32>
    %37 = vector.shape_cast %36 : vector<1x32x256xf32> to vector<32x256xf32>
    %38 = vector.shape_cast %35 : vector<32x256xf32> to vector<1x32x256xf32>
    tpu.vector_store %arg9[%c0_41, %c1_42, %c0_43], %38 {strides = array<i32>} : memref<4x34x256xf32, #tpu.memory_space<vmem>>, vector<1x32x256xf32>,
    %cst_44 = arith.constant 0.000000e+00 : f32
    %39 = vector.broadcast %cst_44 : f32 to vector<32x256xf32>
    %c0_45 = arith.constant 0 : index
    %c7 = arith.constant 7 : index
    %c0_46 = arith.constant 0 : index
    %c0_47 = arith.constant 0 : index
    %40 = vector.load %arg1[%c0_45, %c7, %c0_46, %c0_47] : memref<1x8x34x384xf32, #tpu.memory_space<vmem>>, vector<1x1x32x384xf32>
    %41 = vector.shape_cast %40 : vector<1x1x32x384xf32> to vector<32x384xf32>
    %c0_48 = arith.constant 0 : index
    %c0_49 = arith.constant 0 : index
    %c0_50 = arith.constant 0 : index
    %c0_51 = arith.constant 0 : index
    %42 = vector.load %arg2[%c0_48, %c0_49, %c0_50, %c0_51] : memref<1x4x384x256xf32, #tpu.memory_space<vmem>>, vector<1x1x384x256xf32>
    %43 = vector.shape_cast %42 : vector<1x1x384x256xf32> to vector<384x256xf32>
    %cst_52 = arith.constant dense<0.000000e+00> : vector<32x256xf32>
    %44 = tpu.matmul %41, %43, %cst_52 {dimension_numbers = #tpu.dot_dimension_numbers<[1], [0], [0], [1], [0, 0, 1, 1], [], []>} : vector<32x384xf32>, vector<384x256xf32>, vector<32x256xf32> -> vector<32x256xf32>
    %45 = arith.addf %39, %44 : vector<32x256xf32>
    %c0_53 = arith.constant 0 : index
    %c4 = arith.constant 4 : index
    %c1_54 = arith.constant 1 : index
    %c0_55 = arith.constant 0 : index
    %46 = vector.load %arg1[%c0_53, %c4, %c1_54, %c0_55] : memref<1x8x34x384xf32, #tpu.memory_space<vmem>>, vector<1x1x32x384xf32>
    %47 = vector.shape_cast %46 : vector<1x1x32x384xf32> to vector<32x384xf32>
    %c0_56 = arith.constant 0 : index
    %c1_57 = arith.constant 1 : index
    %c0_58 = arith.constant 0 : index
    %c0_59 = arith.constant 0 : index
    %48 = vector.load %arg2[%c0_56, %c1_57, %c0_58, %c0_59] : memref<1x4x384x256xf32, #tpu.memory_space<vmem>>, vector<1x1x384x256xf32>
    %49 = vector.shape_cast %48 : vector<1x1x384x256xf32> to vector<384x256xf32>
    %cst_60 = arith.constant dense<0.000000e+00> : vector<32x256xf32>
    %50 = tpu.matmul %47, %49, %cst_60 {dimension_numbers = #tpu.dot_dimension_numbers<[1], [0], [0], [1], [0, 0, 1, 1], [], []>} : vector<32x384xf32>, vector<384x256xf32>, vector<32x256xf32> -> vector<32x256xf32>
    %51 = arith.addf %45, %50 : vector<32x256xf32>
    %c0_61 = arith.constant 0 : index
    %c5 = arith.constant 5 : index
    %c1_62 = arith.constant 1 : index
    %c0_63 = arith.constant 0 : index
    %52 = vector.load %arg1[%c0_61, %c5, %c1_62, %c0_63] : memref<1x8x34x384xf32, #tpu.memory_space<vmem>>, vector<1x1x32x384xf32>
    %53 = vector.shape_cast %52 : vector<1x1x32x384xf32> to vector<32x384xf32>
    %c0_64 = arith.constant 0 : index
    %c2_65 = arith.constant 2 : index
    %c0_66 = arith.constant 0 : index
    %c0_67 = arith.constant 0 : index
    %54 = vector.load %arg2[%c0_64, %c2_65, %c0_66, %c0_67] : memref<1x4x384x256xf32, #tpu.memory_space<vmem>>, vector<1x1x384x256xf32>
    %55 = vector.shape_cast %54 : vector<1x1x384x256xf32> to vector<384x256xf32>
    %cst_68 = arith.constant dense<0.000000e+00> : vector<32x256xf32>
    %56 = tpu.matmul %53, %55, %cst_68 {dimension_numbers = #tpu.dot_dimension_numbers<[1], [0], [0], [1], [0, 0, 1, 1], [], []>} : vector<32x384xf32>, vector<384x256xf32>, vector<32x256xf32> -> vector<32x256xf32>
    %57 = arith.addf %51, %56 : vector<32x256xf32>
    %c0_69 = arith.constant 0 : index
    %c6 = arith.constant 6 : index
    %c1_70 = arith.constant 1 : index
    %c0_71 = arith.constant 0 : index
    %58 = vector.load %arg1[%c0_69, %c6, %c1_70, %c0_71] : memref<1x8x34x384xf32, #tpu.memory_space<vmem>>, vector<1x1x32x384xf32>
    %59 = vector.shape_cast %58 : vector<1x1x32x384xf32> to vector<32x384xf32>
    %c0_72 = arith.constant 0 : index
    %c3_73 = arith.constant 3 : index
    %c0_74 = arith.constant 0 : index
    %c0_75 = arith.constant 0 : index
    %60 = vector.load %arg2[%c0_72, %c3_73, %c0_74, %c0_75] : memref<1x4x384x256xf32, #tpu.memory_space<vmem>>, vector<1x1x384x256xf32>
    %61 = vector.shape_cast %60 : vector<1x1x384x256xf32> to vector<384x256xf32>
    %cst_76 = arith.constant dense<0.000000e+00> : vector<32x256xf32>
    %62 = tpu.matmul %59, %61, %cst_76 {dimension_numbers = #tpu.dot_dimension_numbers<[1], [0], [0], [1], [0, 0, 1, 1], [], []>} : vector<32x384xf32>, vector<384x256xf32>, vector<32x256xf32> -> vector<32x256xf32>
    %63 = arith.addf %57, %62 : vector<32x256xf32>
    %c0_77 = arith.constant 0 : index
    %c0_78 = arith.constant 0 : index
    %c0_79 = arith.constant 0 : index
    %64 = vector.load %arg3[%c0_77, %c0_78, %c0_79] : memref<1x1x256xf32, #tpu.memory_space<vmem>>, vector<1x1x256xf32>
    %65 = vector.shape_cast %64 : vector<1x1x256xf32> to vector<1x256xf32>
    %66 = vector.broadcast %65 : vector<1x256xf32> to vector<32x256xf32>
    %67 = arith.addf %63, %66 : vector<32x256xf32>
    %cst_80 = arith.constant 0.000000e+00 : f32
    %68 = vector.broadcast %cst_80 : f32 to vector<32x256xf32>
    %69 = arith.cmpf ogt, %67, %68 : vector<32x256xf32>
    %cst_81 = arith.constant 0.00999999977 : f32
    %70 = vector.broadcast %cst_81 : f32 to vector<32x256xf32>
    %71 = arith.mulf %70, %67 : vector<32x256xf32>
    %72 = arith.select %69, %67, %71 : vector<32x256xi1>, vector<32x256xf32>
    %c1_82 = arith.constant 1 : index
    %c1_83 = arith.constant 1 : index
    %c0_84 = arith.constant 0 : index
    %73 = vector.load %arg9[%c1_82, %c1_83, %c0_84] : memref<4x34x256xf32, #tpu.memory_space<vmem>>, vector<1x32x256xf32>
    %74 = vector.shape_cast %73 : vector<1x32x256xf32> to vector<32x256xf32>
    %75 = vector.shape_cast %72 : vector<32x256xf32> to vector<1x32x256xf32>
    tpu.vector_store %arg9[%c1_82, %c1_83, %c0_84], %75 {strides = array<i32>} : memref<4x34x256xf32, #tpu.memory_space<vmem>>, vector<1x32x256xf32>,
    %cst_85 = arith.constant 0.000000e+00 : f32
    %76 = vector.broadcast %cst_85 : f32 to vector<32x256xf32>
    %c0_86 = arith.constant 0 : index
    %c1_87 = arith.constant 1 : index
    %c1_88 = arith.constant 1 : index
    %c0_89 = arith.constant 0 : index
    %77 = vector.load %arg1[%c0_86, %c1_87, %c1_88, %c0_89] : memref<1x8x34x384xf32, #tpu.memory_space<vmem>>, vector<1x1x32x384xf32>
    %78 = vector.shape_cast %77 : vector<1x1x32x384xf32> to vector<32x384xf32>
    %c0_90 = arith.constant 0 : index
    %c0_91 = arith.constant 0 : index
    %c0_92 = arith.constant 0 : index
    %c0_93 = arith.constant 0 : index
    %79 = vector.load %arg2[%c0_90, %c0_91, %c0_92, %c0_93] : memref<1x4x384x256xf32, #tpu.memory_space<vmem>>, vector<1x1x384x256xf32>
    %80 = vector.shape_cast %79 : vector<1x1x384x256xf32> to vector<384x256xf32>
    %cst_94 = arith.constant dense<0.000000e+00> : vector<32x256xf32>
    %81 = tpu.matmul %78, %80, %cst_94 {dimension_numbers = #tpu.dot_dimension_numbers<[1], [0], [0], [1], [0, 0, 1, 1], [], []>} : vector<32x384xf32>, vector<384x256xf32>, vector<32x256xf32> -> vector<32x256xf32>
    %82 = arith.addf %76, %81 : vector<32x256xf32>
    %c0_95 = arith.constant 0 : index
    %c2_96 = arith.constant 2 : index
    %c1_97 = arith.constant 1 : index
    %c0_98 = arith.constant 0 : index
    %83 = vector.load %arg1[%c0_95, %c2_96, %c1_97, %c0_98] : memref<1x8x34x384xf32, #tpu.memory_space<vmem>>, vector<1x1x32x384xf32>
    %84 = vector.shape_cast %83 : vector<1x1x32x384xf32> to vector<32x384xf32>
    %c0_99 = arith.constant 0 : index
    %c1_100 = arith.constant 1 : index
    %c0_101 = arith.constant 0 : index
    %c0_102 = arith.constant 0 : index
    %85 = vector.load %arg2[%c0_99, %c1_100, %c0_101, %c0_102] : memref<1x4x384x256xf32, #tpu.memory_space<vmem>>, vector<1x1x384x256xf32>
    %86 = vector.shape_cast %85 : vector<1x1x384x256xf32> to vector<384x256xf32>
    %cst_103 = arith.constant dense<0.000000e+00> : vector<32x256xf32>
    %87 = tpu.matmul %84, %86, %cst_103 {dimension_numbers = #tpu.dot_dimension_numbers<[1], [0], [0], [1], [0, 0, 1, 1], [], []>} : vector<32x384xf32>, vector<384x256xf32>, vector<32x256xf32> -> vector<32x256xf32>
    %88 = arith.addf %82, %87 : vector<32x256xf32>
    %c0_104 = arith.constant 0 : index
    %c3_105 = arith.constant 3 : index
    %c1_106 = arith.constant 1 : index
    %c0_107 = arith.constant 0 : index
    %89 = vector.load %arg1[%c0_104, %c3_105, %c1_106, %c0_107] : memref<1x8x34x384xf32, #tpu.memory_space<vmem>>, vector<1x1x32x384xf32>
    %90 = vector.shape_cast %89 : vector<1x1x32x384xf32> to vector<32x384xf32>
    %c0_108 = arith.constant 0 : index
    %c2_109 = arith.constant 2 : index
    %c0_110 = arith.constant 0 : index
    %c0_111 = arith.constant 0 : index
    %91 = vector.load %arg2[%c0_108, %c2_109, %c0_110, %c0_111] : memref<1x4x384x256xf32, #tpu.memory_space<vmem>>, vector<1x1x384x256xf32>
    %92 = vector.shape_cast %91 : vector<1x1x384x256xf32> to vector<384x256xf32>
    %cst_112 = arith.constant dense<0.000000e+00> : vector<32x256xf32>
    %93 = tpu.matmul %90, %92, %cst_112 {dimension_numbers = #tpu.dot_dimension_numbers<[1], [0], [0], [1], [0, 0, 1, 1], [], []>} : vector<32x384xf32>, vector<384x256xf32>, vector<32x256xf32> -> vector<32x256xf32>
    %94 = arith.addf %88, %93 : vector<32x256xf32>
    %c0_113 = arith.constant 0 : index
    %c0_114 = arith.constant 0 : index
    %c2_115 = arith.constant 2 : index
    %c0_116 = arith.constant 0 : index
    %95 = vector.load %arg1[%c0_113, %c0_114, %c2_115, %c0_116] : memref<1x8x34x384xf32, #tpu.memory_space<vmem>>, vector<1x1x32x384xf32>
    %96 = vector.shape_cast %95 : vector<1x1x32x384xf32> to vector<32x384xf32>
    %c0_117 = arith.constant 0 : index
    %c3_118 = arith.constant 3 : index
    %c0_119 = arith.constant 0 : index
    %c0_120 = arith.constant 0 : index
    %97 = vector.load %arg2[%c0_117, %c3_118, %c0_119, %c0_120] : memref<1x4x384x256xf32, #tpu.memory_space<vmem>>, vector<1x1x384x256xf32>
    %98 = vector.shape_cast %97 : vector<1x1x384x256xf32> to vector<384x256xf32>
    %cst_121 = arith.constant dense<0.000000e+00> : vector<32x256xf32>
    %99 = tpu.matmul %96, %98, %cst_121 {dimension_numbers = #tpu.dot_dimension_numbers<[1], [0], [0], [1], [0, 0, 1, 1], [], []>} : vector<32x384xf32>, vector<384x256xf32>, vector<32x256xf32> -> vector<32x256xf32>
    %100 = arith.addf %94, %99 : vector<32x256xf32>
    %c0_122 = arith.constant 0 : index
    %c0_123 = arith.constant 0 : index
    %c0_124 = arith.constant 0 : index
    %101 = vector.load %arg3[%c0_122, %c0_123, %c0_124] : memref<1x1x256xf32, #tpu.memory_space<vmem>>, vector<1x1x256xf32>
    %102 = vector.shape_cast %101 : vector<1x1x256xf32> to vector<1x256xf32>
    %103 = vector.broadcast %102 : vector<1x256xf32> to vector<32x256xf32>
    %104 = arith.addf %100, %103 : vector<32x256xf32>
    %cst_125 = arith.constant 0.000000e+00 : f32
    %105 = vector.broadcast %cst_125 : f32 to vector<32x256xf32>
    %106 = arith.cmpf ogt, %104, %105 : vector<32x256xf32>
    %cst_126 = arith.constant 0.00999999977 : f32
    %107 = vector.broadcast %cst_126 : f32 to vector<32x256xf32>
    %108 = arith.mulf %107, %104 : vector<32x256xf32>
    %109 = arith.select %106, %104, %108 : vector<32x256xi1>, vector<32x256xf32>
    %c2_127 = arith.constant 2 : index
    %c1_128 = arith.constant 1 : index
    %c0_129 = arith.constant 0 : index
    %110 = vector.load %arg9[%c2_127, %c1_128, %c0_129] : memref<4x34x256xf32, #tpu.memory_space<vmem>>, vector<1x32x256xf32>
    %111 = vector.shape_cast %110 : vector<1x32x256xf32> to vector<32x256xf32>
    %112 = vector.shape_cast %109 : vector<32x256xf32> to vector<1x32x256xf32>
    tpu.vector_store %arg9[%c2_127, %c1_128, %c0_129], %112 {strides = array<i32>} : memref<4x34x256xf32, #tpu.memory_space<vmem>>, vector<1x32x256xf32>,
    %cst_130 = arith.constant 0.000000e+00 : f32
    %113 = vector.broadcast %cst_130 : f32 to vector<32x256xf32>
    %c0_131 = arith.constant 0 : index
    %c5_132 = arith.constant 5 : index
    %c1_133 = arith.constant 1 : index
    %c0_134 = arith.constant 0 : index
    %114 = vector.load %arg1[%c0_131, %c5_132, %c1_133, %c0_134] : memref<1x8x34x384xf32, #tpu.memory_space<vmem>>, vector<1x1x32x384xf32>
    %115 = vector.shape_cast %114 : vector<1x1x32x384xf32> to vector<32x384xf32>
    %c0_135 = arith.constant 0 : index
    %c0_136 = arith.constant 0 : index
    %c0_137 = arith.constant 0 : index
    %c0_138 = arith.constant 0 : index
    %116 = vector.load %arg2[%c0_135, %c0_136, %c0_137, %c0_138] : memref<1x4x384x256xf32, #tpu.memory_space<vmem>>, vector<1x1x384x256xf32>
    %117 = vector.shape_cast %116 : vector<1x1x384x256xf32> to vector<384x256xf32>
    %cst_139 = arith.constant dense<0.000000e+00> : vector<32x256xf32>
    %118 = tpu.matmul %115, %117, %cst_139 {dimension_numbers = #tpu.dot_dimension_numbers<[1], [0], [0], [1], [0, 0, 1, 1], [], []>} : vector<32x384xf32>, vector<384x256xf32>, vector<32x256xf32> -> vector<32x256xf32>
    %119 = arith.addf %113, %118 : vector<32x256xf32>
    %c0_140 = arith.constant 0 : index
    %c6_141 = arith.constant 6 : index
    %c1_142 = arith.constant 1 : index
    %c0_143 = arith.constant 0 : index
    %120 = vector.load %arg1[%c0_140, %c6_141, %c1_142, %c0_143] : memref<1x8x34x384xf32, #tpu.memory_space<vmem>>, vector<1x1x32x384xf32>
    %121 = vector.shape_cast %120 : vector<1x1x32x384xf32> to vector<32x384xf32>
    %c0_144 = arith.constant 0 : index
    %c1_145 = arith.constant 1 : index
    %c0_146 = arith.constant 0 : index
    %c0_147 = arith.constant 0 : index
    %122 = vector.load %arg2[%c0_144, %c1_145, %c0_146, %c0_147] : memref<1x4x384x256xf32, #tpu.memory_space<vmem>>, vector<1x1x384x256xf32>
    %123 = vector.shape_cast %122 : vector<1x1x384x256xf32> to vector<384x256xf32>
    %cst_148 = arith.constant dense<0.000000e+00> : vector<32x256xf32>
    %124 = tpu.matmul %121, %123, %cst_148 {dimension_numbers = #tpu.dot_dimension_numbers<[1], [0], [0], [1], [0, 0, 1, 1], [], []>} : vector<32x384xf32>, vector<384x256xf32>, vector<32x256xf32> -> vector<32x256xf32>
    %125 = arith.addf %119, %124 : vector<32x256xf32>
    %c0_149 = arith.constant 0 : index
    %c7_150 = arith.constant 7 : index
    %c1_151 = arith.constant 1 : index
    %c0_152 = arith.constant 0 : index
    %126 = vector.load %arg1[%c0_149, %c7_150, %c1_151, %c0_152] : memref<1x8x34x384xf32, #tpu.memory_space<vmem>>, vector<1x1x32x384xf32>
    %127 = vector.shape_cast %126 : vector<1x1x32x384xf32> to vector<32x384xf32>
    %c0_153 = arith.constant 0 : index
    %c2_154 = arith.constant 2 : index
    %c0_155 = arith.constant 0 : index
    %c0_156 = arith.constant 0 : index
    %128 = vector.load %arg2[%c0_153, %c2_154, %c0_155, %c0_156] : memref<1x4x384x256xf32, #tpu.memory_space<vmem>>, vector<1x1x384x256xf32>
    %129 = vector.shape_cast %128 : vector<1x1x384x256xf32> to vector<384x256xf32>
    %cst_157 = arith.constant dense<0.000000e+00> : vector<32x256xf32>
    %130 = tpu.matmul %127, %129, %cst_157 {dimension_numbers = #tpu.dot_dimension_numbers<[1], [0], [0], [1], [0, 0, 1, 1], [], []>} : vector<32x384xf32>, vector<384x256xf32>, vector<32x256xf32> -> vector<32x256xf32>
    %131 = arith.addf %125, %130 : vector<32x256xf32>
    %c0_158 = arith.constant 0 : index
    %c4_159 = arith.constant 4 : index
    %c2_160 = arith.constant 2 : index
    %c0_161 = arith.constant 0 : index
    %132 = vector.load %arg1[%c0_158, %c4_159, %c2_160, %c0_161] : memref<1x8x34x384xf32, #tpu.memory_space<vmem>>, vector<1x1x32x384xf32>
    %133 = vector.shape_cast %132 : vector<1x1x32x384xf32> to vector<32x384xf32>
    %c0_162 = arith.constant 0 : index
    %c3_163 = arith.constant 3 : index
    %c0_164 = arith.constant 0 : index
    %c0_165 = arith.constant 0 : index
    %134 = vector.load %arg2[%c0_162, %c3_163, %c0_164, %c0_165] : memref<1x4x384x256xf32, #tpu.memory_space<vmem>>, vector<1x1x384x256xf32>
    %135 = vector.shape_cast %134 : vector<1x1x384x256xf32> to vector<384x256xf32>
    %cst_166 = arith.constant dense<0.000000e+00> : vector<32x256xf32>
    %136 = tpu.matmul %133, %135, %cst_166 {dimension_numbers = #tpu.dot_dimension_numbers<[1], [0], [0], [1], [0, 0, 1, 1], [], []>} : vector<32x384xf32>, vector<384x256xf32>, vector<32x256xf32> -> vector<32x256xf32>
    %137 = arith.addf %131, %136 : vector<32x256xf32>
    %c0_167 = arith.constant 0 : index
    %c0_168 = arith.constant 0 : index
    %c0_169 = arith.constant 0 : index
    %138 = vector.load %arg3[%c0_167, %c0_168, %c0_169] : memref<1x1x256xf32, #tpu.memory_space<vmem>>, vector<1x1x256xf32>
    %139 = vector.shape_cast %138 : vector<1x1x256xf32> to vector<1x256xf32>
    %140 = vector.broadcast %139 : vector<1x256xf32> to vector<32x256xf32>
    %141 = arith.addf %137, %140 : vector<32x256xf32>
    %cst_170 = arith.constant 0.000000e+00 : f32
    %142 = vector.broadcast %cst_170 : f32 to vector<32x256xf32>
    %143 = arith.cmpf ogt, %141, %142 : vector<32x256xf32>
    %cst_171 = arith.constant 0.00999999977 : f32
    %144 = vector.broadcast %cst_171 : f32 to vector<32x256xf32>
    %145 = arith.mulf %144, %141 : vector<32x256xf32>
    %146 = arith.select %143, %141, %145 : vector<32x256xi1>, vector<32x256xf32>
    %c3_172 = arith.constant 3 : index
    %c1_173 = arith.constant 1 : index
    %c0_174 = arith.constant 0 : index
    %147 = vector.load %arg9[%c3_172, %c1_173, %c0_174] : memref<4x34x256xf32, #tpu.memory_space<vmem>>, vector<1x32x256xf32>
    %148 = vector.shape_cast %147 : vector<1x32x256xf32> to vector<32x256xf32>
    %149 = vector.shape_cast %146 : vector<32x256xf32> to vector<1x32x256xf32>
    tpu.vector_store %arg9[%c3_172, %c1_173, %c0_174], %149 {strides = array<i32>} : memref<4x34x256xf32, #tpu.memory_space<vmem>>, vector<1x32x256xf32>,
    %150 = tpu.iota {dimensions = array<i32: 0>} : vector<2x4xi32>
    %151 = tpu.iota {dimensions = array<i32: 1>} : vector<2x4xi32>
    %cst_175 = arith.constant 0.000000e+00 : f32
    %152 = vector.broadcast %cst_175 : f32 to vector<2x4xf32>
    %cst_176 = arith.constant 0.000000e+00 : f32
    %153 = vector.broadcast %cst_176 : f32 to vector<2x4xf32>
    %cst_177 = arith.constant 0.000000e+00 : f32
    %154 = vector.broadcast %cst_177 : f32 to vector<32x128xf32>
    %c2_178 = arith.constant 2 : index
    %c0_179 = arith.constant 0 : index
    %c0_180 = arith.constant 0 : index
    %155 = vector.load %arg9[%c2_178, %c0_179, %c0_180] : memref<4x34x256xf32, #tpu.memory_space<vmem>>, vector<1x32x256xf32>
    %156 = vector.shape_cast %155 : vector<1x32x256xf32> to vector<32x256xf32>
    %c0_181 = arith.constant 0 : index
    %c0_182 = arith.constant 0 : index
    %c0_183 = arith.constant 0 : index
    %c0_184 = arith.constant 0 : index
    %157 = vector.load %arg4[%c0_181, %c0_182, %c0_183, %c0_184] : memref<1x4x256x128xf32, #tpu.memory_space<vmem>>, vector<1x1x256x128xf32>
    %158 = vector.shape_cast %157 : vector<1x1x256x128xf32> to vector<256x128xf32>
    %cst_185 = arith.constant dense<0.000000e+00> : vector<32x128xf32>
    %159 = tpu.matmul %156, %158, %cst_185 {dimension_numbers = #tpu.dot_dimension_numbers<[1], [0], [0], [1], [0, 0, 1, 1], [], []>} : vector<32x256xf32>, vector<256x128xf32>, vector<32x128xf32> -> vector<32x128xf32>
    %160 = arith.addf %154, %159 : vector<32x128xf32>
    %c0_186 = arith.constant 0 : index
    %c1_187 = arith.constant 1 : index
    %c0_188 = arith.constant 0 : index
    %161 = vector.load %arg9[%c0_186, %c1_187, %c0_188] : memref<4x34x256xf32, #tpu.memory_space<vmem>>, vector<1x32x256xf32>
    %162 = vector.shape_cast %161 : vector<1x32x256xf32> to vector<32x256xf32>
    %c0_189 = arith.constant 0 : index
    %c1_190 = arith.constant 1 : index
    %c0_191 = arith.constant 0 : index
    %c0_192 = arith.constant 0 : index
    %163 = vector.load %arg4[%c0_189, %c1_190, %c0_191, %c0_192] : memref<1x4x256x128xf32, #tpu.memory_space<vmem>>, vector<1x1x256x128xf32>
    %164 = vector.shape_cast %163 : vector<1x1x256x128xf32> to vector<256x128xf32>
    %cst_193 = arith.constant dense<0.000000e+00> : vector<32x128xf32>
    %165 = tpu.matmul %162, %164, %cst_193 {dimension_numbers = #tpu.dot_dimension_numbers<[1], [0], [0], [1], [0, 0, 1, 1], [], []>} : vector<32x256xf32>, vector<256x128xf32>, vector<32x128xf32> -> vector<32x128xf32>
    %166 = arith.addf %160, %165 : vector<32x128xf32>
    %c2_194 = arith.constant 2 : index
    %c1_195 = arith.constant 1 : index
    %c0_196 = arith.constant 0 : index
    %167 = vector.load %arg9[%c2_194, %c1_195, %c0_196] : memref<4x34x256xf32, #tpu.memory_space<vmem>>, vector<1x32x256xf32>
    %168 = vector.shape_cast %167 : vector<1x32x256xf32> to vector<32x256xf32>
    %c0_197 = arith.constant 0 : index
    %c2_198 = arith.constant 2 : index
    %c0_199 = arith.constant 0 : index
    %c0_200 = arith.constant 0 : index
    %169 = vector.load %arg4[%c0_197, %c2_198, %c0_199, %c0_200] : memref<1x4x256x128xf32, #tpu.memory_space<vmem>>, vector<1x1x256x128xf32>
    %170 = vector.shape_cast %169 : vector<1x1x256x128xf32> to vector<256x128xf32>
    %cst_201 = arith.constant dense<0.000000e+00> : vector<32x128xf32>
    %171 = tpu.matmul %168, %170, %cst_201 {dimension_numbers = #tpu.dot_dimension_numbers<[1], [0], [0], [1], [0, 0, 1, 1], [], []>} : vector<32x256xf32>, vector<256x128xf32>, vector<32x128xf32> -> vector<32x128xf32>
    %172 = arith.addf %166, %171 : vector<32x128xf32>
    %c0_202 = arith.constant 0 : index
    %c2_203 = arith.constant 2 : index
    %c0_204 = arith.constant 0 : index
    %173 = vector.load %arg9[%c0_202, %c2_203, %c0_204] : memref<4x34x256xf32, #tpu.memory_space<vmem>>, vector<1x32x256xf32>
    %174 = vector.shape_cast %173 : vector<1x32x256xf32> to vector<32x256xf32>
    %c0_205 = arith.constant 0 : index
    %c3_206 = arith.constant 3 : index
    %c0_207 = arith.constant 0 : index
    %c0_208 = arith.constant 0 : index
    %175 = vector.load %arg4[%c0_205, %c3_206, %c0_207, %c0_208] : memref<1x4x256x128xf32, #tpu.memory_space<vmem>>, vector<1x1x256x128xf32>
    %176 = vector.shape_cast %175 : vector<1x1x256x128xf32> to vector<256x128xf32>
    %cst_209 = arith.constant dense<0.000000e+00> : vector<32x128xf32>
    %177 = tpu.matmul %174, %176, %cst_209 {dimension_numbers = #tpu.dot_dimension_numbers<[1], [0], [0], [1], [0, 0, 1, 1], [], []>} : vector<32x256xf32>, vector<256x128xf32>, vector<32x128xf32> -> vector<32x128xf32>
    %178 = arith.addf %172, %177 : vector<32x128xf32>
    %c0_210 = arith.constant 0 : index
    %c0_211 = arith.constant 0 : index
    %c0_212 = arith.constant 0 : index
    %179 = vector.load %arg5[%c0_210, %c0_211, %c0_212] : memref<1x1x128xf32, #tpu.memory_space<vmem>>, vector<1x1x128xf32>
    %180 = vector.shape_cast %179 : vector<1x1x128xf32> to vector<1x128xf32>
    %181 = vector.broadcast %180 : vector<1x128xf32> to vector<32x128xf32>
    %182 = arith.addf %178, %181 : vector<32x128xf32>
    %c0_i32 = arith.constant 0 : i32
    %183 = vector.broadcast %c0_i32 : i32 to vector<2x4xi32>
    %184 = arith.cmpi eq, %150, %183 : vector<2x4xi32>
    %c0_i32_213 = arith.constant 0 : i32
    %185 = vector.broadcast %c0_i32_213 : i32 to vector<2x4xi32>
    %186 = arith.cmpi eq, %151, %185 : vector<2x4xi32>
    %187 = arith.andi %184, %186 : vector<2x4xi1>
    %c0_214 = arith.constant 0 : index
    %c0_215 = arith.constant 0 : index
    %c0_216 = arith.constant 0 : index
    %c0_217 = arith.constant 0 : index
    %188 = vector.load %arg6[%c0_214, %c0_215, %c0_216, %c0_217] : memref<1x8x32x128xf32, #tpu.memory_space<vmem>>, vector<1x1x32x128xf32>
    %189 = vector.shape_cast %188 : vector<1x1x32x128xf32> to vector<32x128xf32>
    %190 = arith.mulf %189, %182 : vector<32x128xf32>
    %191 = vector.shape_cast %190 : vector<32x128xf32> to vector<1x32x128xf32>
    %cst_218 = arith.constant dense<0.000000e+00> : vector<1xf32>
    %192 = vector.multi_reduction <add>, %191, %cst_218 [1, 2] : vector<1x32x128xf32> to vector<1xf32>
    %193 = vector.shape_cast %192 : vector<1xf32> to vector<1x1x1xf32>
    %194 = vector.extract %193[0, 0, 0] : f32 from vector<1x1x1xf32>
    %cst_219 = arith.constant 0.000000e+00 : f32
    %195 = vector.broadcast %194 : f32 to vector<2x4xf32>
    %196 = vector.broadcast %cst_219 : f32 to vector<2x4xf32>
    %197 = arith.select %187, %195, %196 : vector<2x4xi1>, vector<2x4xf32>
    %198 = arith.addf %152, %197 : vector<2x4xf32>
    %c0_220 = arith.constant 0 : index
    %c4_221 = arith.constant 4 : index
    %c0_222 = arith.constant 0 : index
    %c0_223 = arith.constant 0 : index
    %199 = vector.load %arg6[%c0_220, %c4_221, %c0_222, %c0_223] : memref<1x8x32x128xf32, #tpu.memory_space<vmem>>, vector<1x1x32x128xf32>
    %200 = vector.shape_cast %199 : vector<1x1x32x128xf32> to vector<32x128xf32>
    %201 = arith.mulf %200, %182 : vector<32x128xf32>
    %202 = vector.shape_cast %201 : vector<32x128xf32> to vector<1x32x128xf32>
    %cst_224 = arith.constant dense<0.000000e+00> : vector<1xf32>
    %203 = vector.multi_reduction <add>, %202, %cst_224 [1, 2] : vector<1x32x128xf32> to vector<1xf32>
    %204 = vector.shape_cast %203 : vector<1xf32> to vector<1x1x1xf32>
    %205 = vector.extract %204[0, 0, 0] : f32 from vector<1x1x1xf32>
    %cst_225 = arith.constant 0.000000e+00 : f32
    %206 = vector.broadcast %205 : f32 to vector<2x4xf32>
    %207 = vector.broadcast %cst_225 : f32 to vector<2x4xf32>
    %208 = arith.select %187, %206, %207 : vector<2x4xi1>, vector<2x4xf32>
    %209 = arith.addf %153, %208 : vector<2x4xf32>
    %c0_i32_226 = arith.constant 0 : i32
    %210 = vector.broadcast %c0_i32_226 : i32 to vector<2x4xi32>
    %211 = arith.cmpi eq, %150, %210 : vector<2x4xi32>
    %c1_i32 = arith.constant 1 : i32
    %212 = vector.broadcast %c1_i32 : i32 to vector<2x4xi32>
    %213 = arith.cmpi eq, %151, %212 : vector<2x4xi32>
    %214 = arith.andi %211, %213 : vector<2x4xi1>
    %c0_227 = arith.constant 0 : index
    %c1_228 = arith.constant 1 : index
    %c0_229 = arith.constant 0 : index
    %c0_230 = arith.constant 0 : index
    %215 = vector.load %arg6[%c0_227, %c1_228, %c0_229, %c0_230] : memref<1x8x32x128xf32, #tpu.memory_space<vmem>>, vector<1x1x32x128xf32>
    %216 = vector.shape_cast %215 : vector<1x1x32x128xf32> to vector<32x128xf32>
    %217 = arith.mulf %216, %182 : vector<32x128xf32>
    %218 = vector.shape_cast %217 : vector<32x128xf32> to vector<1x32x128xf32>
    %cst_231 = arith.constant dense<0.000000e+00> : vector<1xf32>
    %219 = vector.multi_reduction <add>, %218, %cst_231 [1, 2] : vector<1x32x128xf32> to vector<1xf32>
    %220 = vector.shape_cast %219 : vector<1xf32> to vector<1x1x1xf32>
    %221 = vector.extract %220[0, 0, 0] : f32 from vector<1x1x1xf32>
    %cst_232 = arith.constant 0.000000e+00 : f32
    %222 = vector.broadcast %221 : f32 to vector<2x4xf32>
    %223 = vector.broadcast %cst_232 : f32 to vector<2x4xf32>
    %224 = arith.select %214, %222, %223 : vector<2x4xi1>, vector<2x4xf32>
    %225 = arith.addf %198, %224 : vector<2x4xf32>
    %c0_233 = arith.constant 0 : index
    %c5_234 = arith.constant 5 : index
    %c0_235 = arith.constant 0 : index
    %c0_236 = arith.constant 0 : index
    %226 = vector.load %arg6[%c0_233, %c5_234, %c0_235, %c0_236] : memref<1x8x32x128xf32, #tpu.memory_space<vmem>>, vector<1x1x32x128xf32>
    %227 = vector.shape_cast %226 : vector<1x1x32x128xf32> to vector<32x128xf32>
    %228 = arith.mulf %227, %182 : vector<32x128xf32>
    %229 = vector.shape_cast %228 : vector<32x128xf32> to vector<1x32x128xf32>
    %cst_237 = arith.constant dense<0.000000e+00> : vector<1xf32>
    %230 = vector.multi_reduction <add>, %229, %cst_237 [1, 2] : vector<1x32x128xf32> to vector<1xf32>
    %231 = vector.shape_cast %230 : vector<1xf32> to vector<1x1x1xf32>
    %232 = vector.extract %231[0, 0, 0] : f32 from vector<1x1x1xf32>
    %cst_238 = arith.constant 0.000000e+00 : f32
    %233 = vector.broadcast %232 : f32 to vector<2x4xf32>
    %234 = vector.broadcast %cst_238 : f32 to vector<2x4xf32>
    %235 = arith.select %214, %233, %234 : vector<2x4xi1>, vector<2x4xf32>
    %236 = arith.addf %209, %235 : vector<2x4xf32>
    %c0_i32_239 = arith.constant 0 : i32
    %237 = vector.broadcast %c0_i32_239 : i32 to vector<2x4xi32>
    %238 = arith.cmpi eq, %150, %237 : vector<2x4xi32>
    %c2_i32 = arith.constant 2 : i32
    %239 = vector.broadcast %c2_i32 : i32 to vector<2x4xi32>
    %240 = arith.cmpi eq, %151, %239 : vector<2x4xi32>
    %241 = arith.andi %238, %240 : vector<2x4xi1>
    %c0_240 = arith.constant 0 : index
    %c2_241 = arith.constant 2 : index
    %c0_242 = arith.constant 0 : index
    %c0_243 = arith.constant 0 : index
    %242 = vector.load %arg6[%c0_240, %c2_241, %c0_242, %c0_243] : memref<1x8x32x128xf32, #tpu.memory_space<vmem>>, vector<1x1x32x128xf32>
    %243 = vector.shape_cast %242 : vector<1x1x32x128xf32> to vector<32x128xf32>
    %244 = arith.mulf %243, %182 : vector<32x128xf32>
    %245 = vector.shape_cast %244 : vector<32x128xf32> to vector<1x32x128xf32>
    %cst_244 = arith.constant dense<0.000000e+00> : vector<1xf32>
    %246 = vector.multi_reduction <add>, %245, %cst_244 [1, 2] : vector<1x32x128xf32> to vector<1xf32>
    %247 = vector.shape_cast %246 : vector<1xf32> to vector<1x1x1xf32>
    %248 = vector.extract %247[0, 0, 0] : f32 from vector<1x1x1xf32>
    %cst_245 = arith.constant 0.000000e+00 : f32
    %249 = vector.broadcast %248 : f32 to vector<2x4xf32>
    %250 = vector.broadcast %cst_245 : f32 to vector<2x4xf32>
    %251 = arith.select %241, %249, %250 : vector<2x4xi1>, vector<2x4xf32>
    %252 = arith.addf %225, %251 : vector<2x4xf32>
    %c0_246 = arith.constant 0 : index
    %c6_247 = arith.constant 6 : index
    %c0_248 = arith.constant 0 : index
    %c0_249 = arith.constant 0 : index
    %253 = vector.load %arg6[%c0_246, %c6_247, %c0_248, %c0_249] : memref<1x8x32x128xf32, #tpu.memory_space<vmem>>, vector<1x1x32x128xf32>
    %254 = vector.shape_cast %253 : vector<1x1x32x128xf32> to vector<32x128xf32>
    %255 = arith.mulf %254, %182 : vector<32x128xf32>
    %256 = vector.shape_cast %255 : vector<32x128xf32> to vector<1x32x128xf32>
    %cst_250 = arith.constant dense<0.000000e+00> : vector<1xf32>
    %257 = vector.multi_reduction <add>, %256, %cst_250 [1, 2] : vector<1x32x128xf32> to vector<1xf32>
    %258 = vector.shape_cast %257 : vector<1xf32> to vector<1x1x1xf32>
    %259 = vector.extract %258[0, 0, 0] : f32 from vector<1x1x1xf32>
    %cst_251 = arith.constant 0.000000e+00 : f32
    %260 = vector.broadcast %259 : f32 to vector<2x4xf32>
    %261 = vector.broadcast %cst_251 : f32 to vector<2x4xf32>
    %262 = arith.select %241, %260, %261 : vector<2x4xi1>, vector<2x4xf32>
    %263 = arith.addf %236, %262 : vector<2x4xf32>
    %c0_i32_252 = arith.constant 0 : i32
    %264 = vector.broadcast %c0_i32_252 : i32 to vector<2x4xi32>
    %265 = arith.cmpi eq, %150, %264 : vector<2x4xi32>
    %c3_i32 = arith.constant 3 : i32
    %266 = vector.broadcast %c3_i32 : i32 to vector<2x4xi32>
    %267 = arith.cmpi eq, %151, %266 : vector<2x4xi32>
    %268 = arith.andi %265, %267 : vector<2x4xi1>
    %c0_253 = arith.constant 0 : index
    %c3_254 = arith.constant 3 : index
    %c0_255 = arith.constant 0 : index
    %c0_256 = arith.constant 0 : index
    %269 = vector.load %arg6[%c0_253, %c3_254, %c0_255, %c0_256] : memref<1x8x32x128xf32, #tpu.memory_space<vmem>>, vector<1x1x32x128xf32>
    %270 = vector.shape_cast %269 : vector<1x1x32x128xf32> to vector<32x128xf32>
    %271 = arith.mulf %270, %182 : vector<32x128xf32>
    %272 = vector.shape_cast %271 : vector<32x128xf32> to vector<1x32x128xf32>
    %cst_257 = arith.constant dense<0.000000e+00> : vector<1xf32>
    %273 = vector.multi_reduction <add>, %272, %cst_257 [1, 2] : vector<1x32x128xf32> to vector<1xf32>
    %274 = vector.shape_cast %273 : vector<1xf32> to vector<1x1x1xf32>
    %275 = vector.extract %274[0, 0, 0] : f32 from vector<1x1x1xf32>
    %cst_258 = arith.constant 0.000000e+00 : f32
    %276 = vector.broadcast %275 : f32 to vector<2x4xf32>
    %277 = vector.broadcast %cst_258 : f32 to vector<2x4xf32>
    %278 = arith.select %268, %276, %277 : vector<2x4xi1>, vector<2x4xf32>
    %279 = arith.addf %252, %278 : vector<2x4xf32>
    %c0_259 = arith.constant 0 : index
    %c7_260 = arith.constant 7 : index
    %c0_261 = arith.constant 0 : index
    %c0_262 = arith.constant 0 : index
    %280 = vector.load %arg6[%c0_259, %c7_260, %c0_261, %c0_262] : memref<1x8x32x128xf32, #tpu.memory_space<vmem>>, vector<1x1x32x128xf32>
    %281 = vector.shape_cast %280 : vector<1x1x32x128xf32> to vector<32x128xf32>
    %282 = arith.mulf %281, %182 : vector<32x128xf32>
    %283 = vector.shape_cast %282 : vector<32x128xf32> to vector<1x32x128xf32>
    %cst_263 = arith.constant dense<0.000000e+00> : vector<1xf32>
    %284 = vector.multi_reduction <add>, %283, %cst_263 [1, 2] : vector<1x32x128xf32> to vector<1xf32>
    %285 = vector.shape_cast %284 : vector<1xf32> to vector<1x1x1xf32>
    %286 = vector.extract %285[0, 0, 0] : f32 from vector<1x1x1xf32>
    %cst_264 = arith.constant 0.000000e+00 : f32
    %287 = vector.broadcast %286 : f32 to vector<2x4xf32>
    %288 = vector.broadcast %cst_264 : f32 to vector<2x4xf32>
    %289 = arith.select %268, %287, %288 : vector<2x4xi1>, vector<2x4xf32>
    %290 = arith.addf %263, %289 : vector<2x4xf32>
    %cst_265 = arith.constant 0.000000e+00 : f32
    %291 = vector.broadcast %cst_265 : f32 to vector<32x128xf32>
    %c3_266 = arith.constant 3 : index
    %c0_267 = arith.constant 0 : index
    %c0_268 = arith.constant 0 : index
    %292 = vector.load %arg9[%c3_266, %c0_267, %c0_268] : memref<4x34x256xf32, #tpu.memory_space<vmem>>, vector<1x32x256xf32>
    %293 = vector.shape_cast %292 : vector<1x32x256xf32> to vector<32x256xf32>
    %c0_269 = arith.constant 0 : index
    %c0_270 = arith.constant 0 : index
    %c0_271 = arith.constant 0 : index
    %c0_272 = arith.constant 0 : index
    %294 = vector.load %arg4[%c0_269, %c0_270, %c0_271, %c0_272] : memref<1x4x256x128xf32, #tpu.memory_space<vmem>>, vector<1x1x256x128xf32>
    %295 = vector.shape_cast %294 : vector<1x1x256x128xf32> to vector<256x128xf32>
    %cst_273 = arith.constant dense<0.000000e+00> : vector<32x128xf32>
    %296 = tpu.matmul %293, %295, %cst_273 {dimension_numbers = #tpu.dot_dimension_numbers<[1], [0], [0], [1], [0, 0, 1, 1], [], []>} : vector<32x256xf32>, vector<256x128xf32>, vector<32x128xf32> -> vector<32x128xf32>
    %297 = arith.addf %291, %296 : vector<32x128xf32>
    %c1_274 = arith.constant 1 : index
    %c1_275 = arith.constant 1 : index
    %c0_276 = arith.constant 0 : index
    %298 = vector.load %arg9[%c1_274, %c1_275, %c0_276] : memref<4x34x256xf32, #tpu.memory_space<vmem>>, vector<1x32x256xf32>
    %299 = vector.shape_cast %298 : vector<1x32x256xf32> to vector<32x256xf32>
    %c0_277 = arith.constant 0 : index
    %c1_278 = arith.constant 1 : index
    %c0_279 = arith.constant 0 : index
    %c0_280 = arith.constant 0 : index
    %300 = vector.load %arg4[%c0_277, %c1_278, %c0_279, %c0_280] : memref<1x4x256x128xf32, #tpu.memory_space<vmem>>, vector<1x1x256x128xf32>
    %301 = vector.shape_cast %300 : vector<1x1x256x128xf32> to vector<256x128xf32>
    %cst_281 = arith.constant dense<0.000000e+00> : vector<32x128xf32>
    %302 = tpu.matmul %299, %301, %cst_281 {dimension_numbers = #tpu.dot_dimension_numbers<[1], [0], [0], [1], [0, 0, 1, 1], [], []>} : vector<32x256xf32>, vector<256x128xf32>, vector<32x128xf32> -> vector<32x128xf32>
    %303 = arith.addf %297, %302 : vector<32x128xf32>
    %c3_282 = arith.constant 3 : index
    %c1_283 = arith.constant 1 : index
    %c0_284 = arith.constant 0 : index
    %304 = vector.load %arg9[%c3_282, %c1_283, %c0_284] : memref<4x34x256xf32, #tpu.memory_space<vmem>>, vector<1x32x256xf32>
    %305 = vector.shape_cast %304 : vector<1x32x256xf32> to vector<32x256xf32>
    %c0_285 = arith.constant 0 : index
    %c2_286 = arith.constant 2 : index
    %c0_287 = arith.constant 0 : index
    %c0_288 = arith.constant 0 : index
    %306 = vector.load %arg4[%c0_285, %c2_286, %c0_287, %c0_288] : memref<1x4x256x128xf32, #tpu.memory_space<vmem>>, vector<1x1x256x128xf32>
    %307 = vector.shape_cast %306 : vector<1x1x256x128xf32> to vector<256x128xf32>
    %cst_289 = arith.constant dense<0.000000e+00> : vector<32x128xf32>
    %308 = tpu.matmul %305, %307, %cst_289 {dimension_numbers = #tpu.dot_dimension_numbers<[1], [0], [0], [1], [0, 0, 1, 1], [], []>} : vector<32x256xf32>, vector<256x128xf32>, vector<32x128xf32> -> vector<32x128xf32>
    %309 = arith.addf %303, %308 : vector<32x128xf32>
    %c1_290 = arith.constant 1 : index
    %c2_291 = arith.constant 2 : index
    %c0_292 = arith.constant 0 : index
    %310 = vector.load %arg9[%c1_290, %c2_291, %c0_292] : memref<4x34x256xf32, #tpu.memory_space<vmem>>, vector<1x32x256xf32>
    %311 = vector.shape_cast %310 : vector<1x32x256xf32> to vector<32x256xf32>
    %c0_293 = arith.constant 0 : index
    %c3_294 = arith.constant 3 : index
    %c0_295 = arith.constant 0 : index
    %c0_296 = arith.constant 0 : index
    %312 = vector.load %arg4[%c0_293, %c3_294, %c0_295, %c0_296] : memref<1x4x256x128xf32, #tpu.memory_space<vmem>>, vector<1x1x256x128xf32>
    %313 = vector.shape_cast %312 : vector<1x1x256x128xf32> to vector<256x128xf32>
    %cst_297 = arith.constant dense<0.000000e+00> : vector<32x128xf32>
    %314 = tpu.matmul %311, %313, %cst_297 {dimension_numbers = #tpu.dot_dimension_numbers<[1], [0], [0], [1], [0, 0, 1, 1], [], []>} : vector<32x256xf32>, vector<256x128xf32>, vector<32x128xf32> -> vector<32x128xf32>
    %315 = arith.addf %309, %314 : vector<32x128xf32>
    %c0_298 = arith.constant 0 : index
    %c0_299 = arith.constant 0 : index
    %c0_300 = arith.constant 0 : index
    %316 = vector.load %arg5[%c0_298, %c0_299, %c0_300] : memref<1x1x128xf32, #tpu.memory_space<vmem>>, vector<1x1x128xf32>
    %317 = vector.shape_cast %316 : vector<1x1x128xf32> to vector<1x128xf32>
    %318 = vector.broadcast %317 : vector<1x128xf32> to vector<32x128xf32>
    %319 = arith.addf %315, %318 : vector<32x128xf32>
    %c1_i32_301 = arith.constant 1 : i32
    %320 = vector.broadcast %c1_i32_301 : i32 to vector<2x4xi32>
    %321 = arith.cmpi eq, %150, %320 : vector<2x4xi32>
    %c0_i32_302 = arith.constant 0 : i32
    %322 = vector.broadcast %c0_i32_302 : i32 to vector<2x4xi32>
    %323 = arith.cmpi eq, %151, %322 : vector<2x4xi32>
    %324 = arith.andi %321, %323 : vector<2x4xi1>
    %c0_303 = arith.constant 0 : index
    %c0_304 = arith.constant 0 : index
    %c0_305 = arith.constant 0 : index
    %c0_306 = arith.constant 0 : index
    %325 = vector.load %arg6[%c0_303, %c0_304, %c0_305, %c0_306] : memref<1x8x32x128xf32, #tpu.memory_space<vmem>>, vector<1x1x32x128xf32>
    %326 = vector.shape_cast %325 : vector<1x1x32x128xf32> to vector<32x128xf32>
    %327 = arith.mulf %326, %319 : vector<32x128xf32>
    %328 = vector.shape_cast %327 : vector<32x128xf32> to vector<1x32x128xf32>
    %cst_307 = arith.constant dense<0.000000e+00> : vector<1xf32>
    %329 = vector.multi_reduction <add>, %328, %cst_307 [1, 2] : vector<1x32x128xf32> to vector<1xf32>
    %330 = vector.shape_cast %329 : vector<1xf32> to vector<1x1x1xf32>
    %331 = vector.extract %330[0, 0, 0] : f32 from vector<1x1x1xf32>
    %cst_308 = arith.constant 0.000000e+00 : f32
    %332 = vector.broadcast %331 : f32 to vector<2x4xf32>
    %333 = vector.broadcast %cst_308 : f32 to vector<2x4xf32>
    %334 = arith.select %324, %332, %333 : vector<2x4xi1>, vector<2x4xf32>
    %335 = arith.addf %279, %334 : vector<2x4xf32>
    %c0_309 = arith.constant 0 : index
    %c4_310 = arith.constant 4 : index
    %c0_311 = arith.constant 0 : index
    %c0_312 = arith.constant 0 : index
    %336 = vector.load %arg6[%c0_309, %c4_310, %c0_311, %c0_312] : memref<1x8x32x128xf32, #tpu.memory_space<vmem>>, vector<1x1x32x128xf32>
    %337 = vector.shape_cast %336 : vector<1x1x32x128xf32> to vector<32x128xf32>
    %338 = arith.mulf %337, %319 : vector<32x128xf32>
    %339 = vector.shape_cast %338 : vector<32x128xf32> to vector<1x32x128xf32>
    %cst_313 = arith.constant dense<0.000000e+00> : vector<1xf32>
    %340 = vector.multi_reduction <add>, %339, %cst_313 [1, 2] : vector<1x32x128xf32> to vector<1xf32>
    %341 = vector.shape_cast %340 : vector<1xf32> to vector<1x1x1xf32>
    %342 = vector.extract %341[0, 0, 0] : f32 from vector<1x1x1xf32>
    %cst_314 = arith.constant 0.000000e+00 : f32
    %343 = vector.broadcast %342 : f32 to vector<2x4xf32>
    %344 = vector.broadcast %cst_314 : f32 to vector<2x4xf32>
    %345 = arith.select %324, %343, %344 : vector<2x4xi1>, vector<2x4xf32>
    %346 = arith.addf %290, %345 : vector<2x4xf32>
    %c1_i32_315 = arith.constant 1 : i32
    %347 = vector.broadcast %c1_i32_315 : i32 to vector<2x4xi32>
    %348 = arith.cmpi eq, %150, %347 : vector<2x4xi32>
    %c1_i32_316 = arith.constant 1 : i32
    %349 = vector.broadcast %c1_i32_316 : i32 to vector<2x4xi32>
    %350 = arith.cmpi eq, %151, %349 : vector<2x4xi32>
    %351 = arith.andi %348, %350 : vector<2x4xi1>
    %c0_317 = arith.constant 0 : index
    %c1_318 = arith.constant 1 : index
    %c0_319 = arith.constant 0 : index
    %c0_320 = arith.constant 0 : index
    %352 = vector.load %arg6[%c0_317, %c1_318, %c0_319, %c0_320] : memref<1x8x32x128xf32, #tpu.memory_space<vmem>>, vector<1x1x32x128xf32>
    %353 = vector.shape_cast %352 : vector<1x1x32x128xf32> to vector<32x128xf32>
    %354 = arith.mulf %353, %319 : vector<32x128xf32>
    %355 = vector.shape_cast %354 : vector<32x128xf32> to vector<1x32x128xf32>
    %cst_321 = arith.constant dense<0.000000e+00> : vector<1xf32>
    %356 = vector.multi_reduction <add>, %355, %cst_321 [1, 2] : vector<1x32x128xf32> to vector<1xf32>
    %357 = vector.shape_cast %356 : vector<1xf32> to vector<1x1x1xf32>
    %358 = vector.extract %357[0, 0, 0] : f32 from vector<1x1x1xf32>
    %cst_322 = arith.constant 0.000000e+00 : f32
    %359 = vector.broadcast %358 : f32 to vector<2x4xf32>
    %360 = vector.broadcast %cst_322 : f32 to vector<2x4xf32>
    %361 = arith.select %351, %359, %360 : vector<2x4xi1>, vector<2x4xf32>
    %362 = arith.addf %335, %361 : vector<2x4xf32>
    %c0_323 = arith.constant 0 : index
    %c5_324 = arith.constant 5 : index
    %c0_325 = arith.constant 0 : index
    %c0_326 = arith.constant 0 : index
    %363 = vector.load %arg6[%c0_323, %c5_324, %c0_325, %c0_326] : memref<1x8x32x128xf32, #tpu.memory_space<vmem>>, vector<1x1x32x128xf32>
    %364 = vector.shape_cast %363 : vector<1x1x32x128xf32> to vector<32x128xf32>
    %365 = arith.mulf %364, %319 : vector<32x128xf32>
    %366 = vector.shape_cast %365 : vector<32x128xf32> to vector<1x32x128xf32>
    %cst_327 = arith.constant dense<0.000000e+00> : vector<1xf32>
    %367 = vector.multi_reduction <add>, %366, %cst_327 [1, 2] : vector<1x32x128xf32> to vector<1xf32>
    %368 = vector.shape_cast %367 : vector<1xf32> to vector<1x1x1xf32>
    %369 = vector.extract %368[0, 0, 0] : f32 from vector<1x1x1xf32>
    %cst_328 = arith.constant 0.000000e+00 : f32
    %370 = vector.broadcast %369 : f32 to vector<2x4xf32>
    %371 = vector.broadcast %cst_328 : f32 to vector<2x4xf32>
    %372 = arith.select %351, %370, %371 : vector<2x4xi1>, vector<2x4xf32>
    %373 = arith.addf %346, %372 : vector<2x4xf32>
    %c1_i32_329 = arith.constant 1 : i32
    %374 = vector.broadcast %c1_i32_329 : i32 to vector<2x4xi32>
    %375 = arith.cmpi eq, %150, %374 : vector<2x4xi32>
    %c2_i32_330 = arith.constant 2 : i32
    %376 = vector.broadcast %c2_i32_330 : i32 to vector<2x4xi32>
    %377 = arith.cmpi eq, %151, %376 : vector<2x4xi32>
    %378 = arith.andi %375, %377 : vector<2x4xi1>
    %c0_331 = arith.constant 0 : index
    %c2_332 = arith.constant 2 : index
    %c0_333 = arith.constant 0 : index
    %c0_334 = arith.constant 0 : index
    %379 = vector.load %arg6[%c0_331, %c2_332, %c0_333, %c0_334] : memref<1x8x32x128xf32, #tpu.memory_space<vmem>>, vector<1x1x32x128xf32>
    %380 = vector.shape_cast %379 : vector<1x1x32x128xf32> to vector<32x128xf32>
    %381 = arith.mulf %380, %319 : vector<32x128xf32>
    %382 = vector.shape_cast %381 : vector<32x128xf32> to vector<1x32x128xf32>
    %cst_335 = arith.constant dense<0.000000e+00> : vector<1xf32>
    %383 = vector.multi_reduction <add>, %382, %cst_335 [1, 2] : vector<1x32x128xf32> to vector<1xf32>
    %384 = vector.shape_cast %383 : vector<1xf32> to vector<1x1x1xf32>
    %385 = vector.extract %384[0, 0, 0] : f32 from vector<1x1x1xf32>
    %cst_336 = arith.constant 0.000000e+00 : f32
    %386 = vector.broadcast %385 : f32 to vector<2x4xf32>
    %387 = vector.broadcast %cst_336 : f32 to vector<2x4xf32>
    %388 = arith.select %378, %386, %387 : vector<2x4xi1>, vector<2x4xf32>
    %389 = arith.addf %362, %388 : vector<2x4xf32>
    %c0_337 = arith.constant 0 : index
    %c6_338 = arith.constant 6 : index
    %c0_339 = arith.constant 0 : index
    %c0_340 = arith.constant 0 : index
    %390 = vector.load %arg6[%c0_337, %c6_338, %c0_339, %c0_340] : memref<1x8x32x128xf32, #tpu.memory_space<vmem>>, vector<1x1x32x128xf32>
    %391 = vector.shape_cast %390 : vector<1x1x32x128xf32> to vector<32x128xf32>
    %392 = arith.mulf %391, %319 : vector<32x128xf32>
    %393 = vector.shape_cast %392 : vector<32x128xf32> to vector<1x32x128xf32>
    %cst_341 = arith.constant dense<0.000000e+00> : vector<1xf32>
    %394 = vector.multi_reduction <add>, %393, %cst_341 [1, 2] : vector<1x32x128xf32> to vector<1xf32>
    %395 = vector.shape_cast %394 : vector<1xf32> to vector<1x1x1xf32>
    %396 = vector.extract %395[0, 0, 0] : f32 from vector<1x1x1xf32>
    %cst_342 = arith.constant 0.000000e+00 : f32
    %397 = vector.broadcast %396 : f32 to vector<2x4xf32>
    %398 = vector.broadcast %cst_342 : f32 to vector<2x4xf32>
    %399 = arith.select %378, %397, %398 : vector<2x4xi1>, vector<2x4xf32>
    %400 = arith.addf %373, %399 : vector<2x4xf32>
    %c1_i32_343 = arith.constant 1 : i32
    %401 = vector.broadcast %c1_i32_343 : i32 to vector<2x4xi32>
    %402 = arith.cmpi eq, %150, %401 : vector<2x4xi32>
    %c3_i32_344 = arith.constant 3 : i32
    %403 = vector.broadcast %c3_i32_344 : i32 to vector<2x4xi32>
    %404 = arith.cmpi eq, %151, %403 : vector<2x4xi32>
    %405 = arith.andi %402, %404 : vector<2x4xi1>
    %c0_345 = arith.constant 0 : index
    %c3_346 = arith.constant 3 : index
    %c0_347 = arith.constant 0 : index
    %c0_348 = arith.constant 0 : index
    %406 = vector.load %arg6[%c0_345, %c3_346, %c0_347, %c0_348] : memref<1x8x32x128xf32, #tpu.memory_space<vmem>>, vector<1x1x32x128xf32>
    %407 = vector.shape_cast %406 : vector<1x1x32x128xf32> to vector<32x128xf32>
    %408 = arith.mulf %407, %319 : vector<32x128xf32>
    %409 = vector.shape_cast %408 : vector<32x128xf32> to vector<1x32x128xf32>
    %cst_349 = arith.constant dense<0.000000e+00> : vector<1xf32>
    %410 = vector.multi_reduction <add>, %409, %cst_349 [1, 2] : vector<1x32x128xf32> to vector<1xf32>
    %411 = vector.shape_cast %410 : vector<1xf32> to vector<1x1x1xf32>
    %412 = vector.extract %411[0, 0, 0] : f32 from vector<1x1x1xf32>
    %cst_350 = arith.constant 0.000000e+00 : f32
    %413 = vector.broadcast %412 : f32 to vector<2x4xf32>
    %414 = vector.broadcast %cst_350 : f32 to vector<2x4xf32>
    %415 = arith.select %405, %413, %414 : vector<2x4xi1>, vector<2x4xf32>
    %416 = arith.addf %389, %415 : vector<2x4xf32>
    %c0_351 = arith.constant 0 : index
    %c7_352 = arith.constant 7 : index
    %c0_353 = arith.constant 0 : index
    %c0_354 = arith.constant 0 : index
    %417 = vector.load %arg6[%c0_351, %c7_352, %c0_353, %c0_354] : memref<1x8x32x128xf32, #tpu.memory_space<vmem>>, vector<1x1x32x128xf32>
    %418 = vector.shape_cast %417 : vector<1x1x32x128xf32> to vector<32x128xf32>
    %419 = arith.mulf %418, %319 : vector<32x128xf32>
    %420 = vector.shape_cast %419 : vector<32x128xf32> to vector<1x32x128xf32>
    %cst_355 = arith.constant dense<0.000000e+00> : vector<1xf32>
    %421 = vector.multi_reduction <add>, %420, %cst_355 [1, 2] : vector<1x32x128xf32> to vector<1xf32>
    %422 = vector.shape_cast %421 : vector<1xf32> to vector<1x1x1xf32>
    %423 = vector.extract %422[0, 0, 0] : f32 from vector<1x1x1xf32>
    %cst_356 = arith.constant 0.000000e+00 : f32
    %424 = vector.broadcast %423 : f32 to vector<2x4xf32>
    %425 = vector.broadcast %cst_356 : f32 to vector<2x4xf32>
    %426 = arith.select %405, %424, %425 : vector<2x4xi1>, vector<2x4xf32>
    %427 = arith.addf %400, %426 : vector<2x4xf32>
    %c0_357 = arith.constant 0 : index
    %c0_358 = arith.constant 0 : index
    %c0_359 = arith.constant 0 : index
    %c0_360 = arith.constant 0 : index
    %428 = vector.load %arg7[%c0_357, %c0_358, %c0_359, %c0_360] : memref<1x2x1x4xf32, #tpu.memory_space<vmem>>, vector<1x1x1x4xf32>
    %429 = vector.shape_cast %428 : vector<1x1x1x4xf32> to vector<1x4xf32>
    %430 = vector.broadcast %429 : vector<1x4xf32> to vector<2x4xf32>
    %431 = arith.addf %416, %430 : vector<2x4xf32>
    %432 = math.tanh %431 : vector<2x4xf32>
    %c0_361 = arith.constant 0 : index
    %c0_362 = arith.constant 0 : index
    %c0_363 = arith.constant 0 : index
    %c0_364 = arith.constant 0 : index
    %433 = vector.load %arg8[%c0_361, %c0_362, %c0_363, %c0_364] : memref<1x2x2x4xf32, #tpu.memory_space<vmem>>, vector<1x1x2x4xf32>
    %434 = vector.shape_cast %433 : vector<1x1x2x4xf32> to vector<2x4xf32>
    %435 = vector.shape_cast %432 : vector<2x4xf32> to vector<1x1x2x4xf32>
    tpu.vector_store %arg8[%c0_361, %c0_362, %c0_363, %c0_364], %435 {strides = array<i32>} : memref<1x2x2x4xf32, #tpu.memory_space<vmem>>, vector<1x1x2x4xf32>,
    %c0_365 = arith.constant 0 : index
    %c1_366 = arith.constant 1 : index
    %c0_367 = arith.constant 0 : index
    %c0_368 = arith.constant 0 : index
    %436 = vector.load %arg7[%c0_365, %c1_366, %c0_367, %c0_368] : memref<1x2x1x4xf32, #tpu.memory_space<vmem>>, vector<1x1x1x4xf32>
    %437 = vector.shape_cast %436 : vector<1x1x1x4xf32> to vector<1x4xf32>
    %438 = vector.broadcast %437 : vector<1x4xf32> to vector<2x4xf32>
    %439 = arith.addf %427, %438 : vector<2x4xf32>
    %440 = math.tanh %439 : vector<2x4xf32>
    %c0_369 = arith.constant 0 : index
    %c1_370 = arith.constant 1 : index
    %c0_371 = arith.constant 0 : index
    %c0_372 = arith.constant 0 : index
    %441 = vector.load %arg8[%c0_369, %c1_370, %c0_371, %c0_372] : memref<1x2x2x4xf32, #tpu.memory_space<vmem>>, vector<1x1x2x4xf32>
    %442 = vector.shape_cast %441 : vector<1x1x2x4xf32> to vector<2x4xf32>
    %443 = vector.shape_cast %440 : vector<2x4xf32> to vector<1x1x2x4xf32>
    tpu.vector_store %arg8[%c0_369, %c1_370, %c0_371, %c0_372], %443 {strides = array<i32>} : memref<1x2x2x4xf32, #tpu.memory_space<vmem>>, vector<1x1x2x4xf32>,
    return
  }
  func.func @transform_0(%arg0: i32) -> (i32, i32, i32, i32) {
    %c0_i32 = arith.constant 0 : i32
    %c0_i32_0 = arith.constant 0 : i32
    %c0_i32_1 = arith.constant 0 : i32
    %c0_i32_2 = arith.constant 0 : i32
    return %arg0, %c0_i32, %c0_i32_0, %c0_i32_1 : i32, i32, i32, i32
  }
  func.func @transform_1(%arg0: i32) -> (i32, i32, i32, i32) {
    %c0_i32 = arith.constant 0 : i32
    %c0_i32_0 = arith.constant 0 : i32
    %c0_i32_1 = arith.constant 0 : i32
    %c0_i32_2 = arith.constant 0 : i32
    return %arg0, %c0_i32, %c0_i32_0, %c0_i32_1 : i32, i32, i32, i32
  }
  func.func @transform_2(%arg0: i32) -> (i32, i32, i32) {
    %c0_i32 = arith.constant 0 : i32
    %c0_i32_0 = arith.constant 0 : i32
    %c0_i32_1 = arith.constant 0 : i32
    return %arg0, %c0_i32, %c0_i32_0 : i32, i32, i32
  }
  func.func @transform_3(%arg0: i32) -> (i32, i32, i32, i32) {
    %c0_i32 = arith.constant 0 : i32
    %c0_i32_0 = arith.constant 0 : i32
    %c0_i32_1 = arith.constant 0 : i32
    %c0_i32_2 = arith.constant 0 : i32
    return %arg0, %c0_i32, %c0_i32_0, %c0_i32_1 : i32, i32, i32, i32
  }
  func.func @transform_4(%arg0: i32) -> (i32, i32, i32) {
    %c0_i32 = arith.constant 0 : i32
    %c0_i32_0 = arith.constant 0 : i32
    %c0_i32_1 = arith.constant 0 : i32
    return %arg0, %c0_i32, %c0_i32_0 : i32, i32, i32
  }
  func.func @transform_5(%arg0: i32) -> (i32, i32, i32, i32) {
    %c0_i32 = arith.constant 0 : i32
    %c0_i32_0 = arith.constant 0 : i32
    %c0_i32_1 = arith.constant 0 : i32
    %c0_i32_2 = arith.constant 0 : i32
    return %arg0, %c0_i32, %c0_i32_0, %c0_i32_1 : i32, i32, i32, i32
  }
  func.func @transform_6(%arg0: i32) -> (i32, i32, i32, i32) {
    %c0_i32 = arith.constant 0 : i32
    %c0_i32_0 = arith.constant 0 : i32
    %c0_i32_1 = arith.constant 0 : i32
    %c0_i32_2 = arith.constant 0 : i32
    return %arg0, %c0_i32, %c0_i32_0, %c0_i32_1 : i32, i32, i32, i32
  }
  func.func @transform_7(%arg0: i32) -> (i32, i32, i32, i32) {
    %c0_i32 = arith.constant 0 : i32
    %c0_i32_0 = arith.constant 0 : i32
    %c0_i32_1 = arith.constant 0 : i32
    %c0_i32_2 = arith.constant 0 : i32
    return %arg0, %c0_i32, %c0_i32_0, %c0_i32_1 : i32, i32, i32, i32
  }
}

</mosaic_0001>

<bundles_post_ra>
// kernel: mutual_info_reg_forward.3
= control target key start
LH: loop header
LB: loop body
LE: loop exit
PB: predicated region body
PF: predicated region fallthrough
CT: control target
= control target key end

     0   :  { %s350_s0 = inlined_call_operand.vmem [shape: f32[2,2,2,4], index: 0, kind: input, shape index: {}]   ;;  %s351_s1 = inlined_call_operand.vmem [shape: f32[2,4], index: 1, kind: input, shape index: {}]   ;;  %s352_s2 = inlined_call_operand.vmem [shape: f32[2,4], index: 2, kind: input, shape index: {}]   ;;  %s353_s3 = inlined_call_operand.hbm [shape: f32[1,1], index: 3, kind: output, shape index: {}]  }
   0x1   :  { %v287_v0 = vld [vmem:[%s350_s0 + $0x2] sm:$0x3]  ;;  %v292_v1 = vld [vmem:[%s350_s0 + $0x6] sm:$0x3] }
   0x2   :  { %v23_v2 = vmul.f32 0.5, %v287_v0  ;;  %v34_v3 = vmul.f32 2.0, %v287_v0  ;;  %v29_v4 = vmul.f32 0.5, %v292_v1  ;;  %v37_v5 = vmul.f32 2.0, %v292_v1 }
   0x4   :  { %v24_v6 = vmul.f32 1.442695, %v23_v2  ;;  %v35_v7 = vmul.f32 1.442695, %v34_v3 }
   0x5   :  { %8 = vsyncpa [#allocation3], 0  ;;  %v30_v8 = vmul.f32 1.442695, %v29_v4  ;;  %v38_v9 = vmul.f32 1.442695, %v37_v5  ;;  %v49_v46 = vsub.f32 %v287_v0, %v292_v1  ;;  %v40_v48 = vsub.f32 %v292_v1, %v287_v0 }
   0x6   :  { %203 = vpow2.f32 %v24_v6  ;;  %v22_v10 = vld [vmem:[%s351_s1] sm:$0x3]  ;;  %v190_v15 = vld [vmem:[%s350_s0 + $0x4] sm:$0x3]  ;;  %vm58_vm0 = vcmask 25600   ;;  %s263_s25 = smov [#allocation2]  }
   0x7   :  { %205 = vpow2.f32 %v30_v8  ;;  %v28_v11 = vld [vmem:[%s352_s2] sm:$0x3]  ;;  %s181_s26 = sshll.u32 %s263_s25, 4  ;;  %vm173_vm1 = vcmask 0   ;;  %s182_s26 = int_to_ptr.vmem [resolvable:$true] %s181_s26 }
   0x8   :  { %207 = vpow2.f32 %v35_v7  ;;  %v15_v13 = vld [vmem:[%s350_s0] sm:$0x3]  ;;  %s239_s27 = scalar_lea.vmem %s182_s26, 16  ;;  %s243_s28 = scalar_lea.vmem %s182_s26, 32 }
   0x9   :  { %209 = vpow2.f32 %v38_v9  ;;  %v50_v24 = vsub.f32 %v190_v15, %v15_v13  ;;  %v41_v25 = vsub.f32 %v15_v13, %v190_v15  ;;  %p240_p0 = scmp.ne.s32.totalorder %s182_s26, %s239_s27  ;;  %p244_p1 = scmp.lt.s32.totalorder %s182_s26, %s182_s26 }
   0xa   :  { %p245_p2 = scmp.lt.s32.totalorder %s243_s28, %s239_s27 }
   0xb   :  { %v51_v33 = vmul.f32 %v50_v24, %v50_v24  ;;  %v42_v37 = vmul.f32 %v41_v25, %v41_v25 }
   0xc   :  { %p246_p3 = por %p245_p2, %p244_p1 }
   0xe   :  { %p247_p4 = pnand %p246_p3, %p240_p0 }
  0x10   :  { %v204_v12 = vpop.eup %203 }
  0x11   :  { %v206_v14 = vpop.eup %205  ;;  %v26_v16 = vmul.f32 %v204_v12, %v22_v10 }
  0x12   :  { %v208_v17 = vpop.eup %207  ;;  %v32_v18 = vmul.f32 %v206_v14, %v28_v11 }
  0x13   :  { %v210_v19 = vpop.eup %209  ;;  %v53_v20 = vmul.f32 2.0, %v208_v17  ;;  %v310_v21 = vadd.f32 %v26_v16, %v15_v13  ;;  %v43_v45 = vadd.f32 %v208_v17, %v42_v37 }
  0x14   :  { %v312_v22 = vadd.f32 %v190_v15, %v32_v18  ;;  %v44_v23 = vmul.f32 2.0, %v210_v19  ;;  %v52_v43 = vadd.f32 %v210_v19, %v51_v33 }
  0x15   :  { %211 = vrcp.f32 %v53_v20  ;;  %v315_v26 = vsub.f32 0.0, %v310_v21  ;;  %v107_v27 = vand.u32 2147483647, %v310_v21  ;;  %v106_v8 = vmax.f32 %v310_v21, 0.0 }
  0x16   :  { %213 = vrcp.f32 %v44_v23  ;;  %v319_v28 = vsub.f32 0.0, %v312_v22  ;;  %v129_v29 = vand.u32 2147483647, %v312_v22  ;;  %v128_v10 = vmax.f32 %v312_v22, 0.0 }
  0x17   :  { %v96_v30 = vand.u32 2147483647, %v315_v26  ;;  %v108_v31 = vsub.f32 0.0, %v107_v27  ;;  %v84_v32 = vmul.f32 1.442695, %v315_v26  ;;  %v95_v12 = vmax.f32 %v315_v26, 0.0 }
  0x18   :  { %v90_v34 = vmul.f32 1.442695, %v319_v28  ;;  %v118_v35 = vand.u32 2147483647, %v319_v28  ;;  %v130_v36 = vsub.f32 0.0, %v129_v29  ;;  %v117_v15 = vmax.f32 %v319_v28, 0.0 }
  0x19   :  { %v97_v38 = vsub.f32 0.0, %v96_v30  ;;  %v109_v39 = vmul.f32 1.442695, %v108_v31  ;;  %215 = vpow2.f32 %v84_v32 }
  0x1a   :  { %217 = vpow2.f32 %v90_v34  ;;  %v119_v40 = vsub.f32 0.0, %v118_v35  ;;  %v131_v41 = vmul.f32 1.442695, %v130_v36 }
  0x1b   :  { %v98_v42 = vmul.f32 1.442695, %v97_v38  ;;  %219 = vpow2.f32 %v109_v39 }
  0x1c   :  { %v120_v44 = vmul.f32 1.442695, %v119_v40  ;;  %221 = vpow2.f32 %v131_v41 }
  0x1d   :  { %223 = vpow2.f32 %v98_v42 }
  0x1e   :  { %225 = vpow2.f32 %v120_v44 }
  0x1f   :  { %v212_v47 = vpop.eup %211 }
  0x20   :  { %v214_v49 = vpop.eup %213  ;;  %v55_v50 = vmul.f32 %v212_v47, %v52_v43 }
  0x21   :  { %v46_v51 = vmul.f32 %v214_v49, %v43_v45 }
  0x22   :  { %v56_v52 = vadd.f32 %v55_v50, %v49_v46 }
  0x23   :  { %v216_v53 = vpop.eup %215  ;;  %v47_v54 = vadd.f32 %v46_v51, %v40_v48 }
  0x24   :  { %v218_v55 = vpop.eup %217  ;;  %v86_v56 = vadd.f32 1.0, %v216_v53  ;;  %v193_v59 = vadd.f32 -0.5, %v56_v52 }
  0x25   :  { %v220_v57 = vpop.eup %219  ;;  %v192_v58 = vadd.f32 -0.5, %v47_v54  ;;  %v92_v60 = vadd.f32 1.0, %v218_v55 }
  0x26   :  { %v222_v61 = vpop.eup %221  ;;  %v111_v62 = vadd.f32 1.0, %v220_v57  ;;  %227 = vrcp.f32 %v86_v56  ;;  %v70_v4 = vsel %vm58_vm0, %v193_v59, 0.0 }
  0x27   :  { %v224_v63 = vpop.eup %223  ;;  %v59_v2 = vsel %vm58_vm0, %v192_v58, 0.0  ;;  %229 = vrcp.f32 %v92_v60  ;;  %v133_v0 = vadd.f32 1.0, %v222_v61 }
  0x28   :  { %v226_v1 = vpop.eup %225  ;;  %60 = vadd.xlane.f32.xlu0 %v59_v2  ;;  %v100_v3 = vadd.f32 1.0, %v224_v63  ;;  %231 = vlog2.f32 %v111_v62 }
  0x29   :  { %v122_v5 = vadd.f32 1.0, %v226_v1  ;;  %233 = vlog2.f32 %v133_v0 }
  0x2a   :  { %235 = vlog2.f32 %v100_v3 }
  0x2b   :  { %237 = vlog2.f32 %v122_v5 }
  0x2c   :  { %71 = vadd.xlane.f32.xlu0 %v70_v4 }
  0x30   :  { %v228_v6 = vpop.eup %227 }
  0x31   :  { %v230_v7 = vpop.eup %229  ;;  %v156_v30 = vsub.f32 1.0, %v228_v6 }
  0x32   :  { %v232_v9 = vpop.eup %231  ;;  %v140_v27 = vsub.f32 1.0, %v230_v7 }
  0x33   :  { %v234_v11 = vpop.eup %233  ;;  %v113_v13 = vmul.f32 0.6931472, %v232_v9 }
  0x34   :  { %v236_v14 = vpop.eup %235  ;;  %v135_v16 = vmul.f32 0.6931472, %v234_v11 }
  0x35   :  { %v238_v17 = vpop.eup %237  ;;  %v102_v18 = vmul.f32 0.6931472, %v236_v14  ;;  %v114_v19 = vadd.f32 %v113_v13, %v106_v8 }
  0x36   :  { %v124_v20 = vmul.f32 0.6931472, %v238_v17  ;;  %v136_v23 = vadd.f32 %v135_v16, %v128_v10 }
  0x37   :  { %v103_v24 = vadd.f32 %v102_v18, %v95_v12  ;;  %v115_v25 = vsub.f32 0.0, %v114_v19 }
  0x38   :  { %v125_v21 = vadd.f32 %v124_v20, %v117_v15  ;;  %v137_v29 = vsub.f32 0.0, %v136_v23 }
  0x39   :  { %v104_v22 = vsub.f32 0.0, %v103_v24  ;;  %v116_v31 = vmax.f32 %v115_v25, -100.0 }
  0x3a   :  { %v126_v32 = vsub.f32 0.0, %v125_v21  ;;  %v138_v26 = vmax.f32 %v137_v29, -100.0 }
  0x3b   :  { %v105_v33 = vmax.f32 %v104_v22, -100.0  ;;  %v141_v34 = vmul.f32 %v140_v27, %v116_v31 }
  0x3c   :  { %v127_v35 = vmax.f32 %v126_v32, -100.0  ;;  %v157_v28 = vmul.f32 %v156_v30, %v138_v26 }
  0x3d   :  { %v139_v36 = vmul.f32 %v230_v7, %v105_v33 }
  0x3e   :  { %v155_v37 = vmul.f32 %v228_v6, %v127_v35 }
  0x3f   :  { %v142_v38 = vadd.f32 %v141_v34, %v139_v36 }
  0x40   :  { %v158_v39 = vadd.f32 %v157_v28, %v155_v37 }
  0x41   :  { %v143_v40 = vsel %vm58_vm0, %v142_v38, 0.0 }
  0x42   :  { %144 = vadd.xlane.f32.xlu1 %v143_v40  ;;  %v159_v41 = vsel %vm58_vm0, %v158_v39, 0.0 }
  0x46   :  { %160 = vadd.xlane.f32.xlu1 %v159_v41 }
  0xb5   :  { %v61_v42 = vpop.xlane.xlu0 %60 }
  0xb6   :  { %v62_v43 = vrot.slane %v61_v42, 4 }
  0xb8   :  { %v63_v44 = vadd.f32 %v62_v43, %v61_v42 }
  0xb9   :  { %v72_v45 = vpop.xlane.xlu0 %71 }
  0xba   :  { %v64_v46 = vrot.slane %v63_v44, 2  ;;  %v73_v47 = vrot.slane %v72_v45, 4 }
  0xbc   :  { %v74_v48 = vadd.f32 %v73_v47, %v72_v45  ;;  %v65_v49 = vadd.f32 %v64_v46, %v63_v44 }
  0xbe   :  { %v75_v50 = vrot.slane %v74_v48, 2  ;;  %v66_v51 = vrot.slane %v65_v49, 1 }
  0xc0   :  { %v76_v52 = vadd.f32 %v75_v50, %v74_v48  ;;  %v67_v53 = vadd.f32 %v66_v51, %v65_v49 }
  0xc2   :  { %194 = vpush %v67_v53  ;;  %v77_v54 = vrot.slane %v76_v52, 1 }
  0xc4   :  { %v78_v55 = vadd.f32 %v77_v54, %v76_v52 }
  0xc6   :  { %196 = vpush %v78_v55 }
  0xcf   :  { %v145_v56 = vpop.xlane.xlu1 %144 }
  0xd0   :  { %v146_v57 = vrot.slane %v145_v56, 4 }
  0xd2   :  { %v147_v58 = vadd.f32 %v146_v57, %v145_v56 }
  0xd3   :  { %v161_v59 = vpop.xlane.xlu1 %160 }
  0xd4   :  { %v148_v60 = vrot.slane %v147_v58, 2  ;;  %v162_v61 = vrot.slane %v161_v59, 4 }
  0xd6   :  { %v163_v62 = vadd.f32 %v162_v61, %v161_v59  ;;  %v149_v63 = vadd.f32 %v148_v60, %v147_v58 }
  0xd8   :  { %v164_v2 = vrot.slane %v163_v62, 2  ;;  %v150_v0 = vrot.slane %v149_v63, 1 }
  0xda   :  { %v165_v1 = vadd.f32 %v164_v2, %v163_v62  ;;  %v151_v3 = vadd.f32 %v150_v0, %v149_v63 }
  0xdc   :  { %198 = vpush %v151_v3  ;;  %v166_v4 = vrot.slane %v165_v1, 1 }
  0xde   :  { %v167_v5 = vadd.f32 %v166_v4, %v165_v1 }
  0xe0   :  { %200 = vpush %v167_v5 }
  0xf3   :  { %s195_s0 = spop %194 }
  0xf4   :  { %v69_v6 = vstv %s195_s0 }
  0xf7   :  { %s197_s1 = spop %196 }
  0xf8   :  { %v80_v7 = vstv %s197_s1 }
  0xf9   :  { %v81_v9 = vadd.f32 %v80_v7, %v69_v6 }
  0xfb   :  { %v82_v13 = vmul.f32 0.5, %v81_v9 }
 0x10d   :  { %s199_s2 = spop %198 }
 0x10e   :  { %v153_v8 = vstv %s199_s2 }
 0x10f   :  { %v154_v11 = vsub.f32 0.0, %v153_v8 }
 0x111   :  { %s201_s24 = spop %200 }
 0x112   :  { %v169_v10 = vstv %s201_s24 }
 0x113   :  { %v170_v12 = vsub.f32 0.0, %v169_v10 }
 0x115   :  { %v171_v14 = vadd.f32 %v170_v12, %v154_v11 }
 0x117   :  { %v172_v15 = vsub.f32 %v171_v14, %v82_v13 }
 0x119   :  { %174 = vst.msk [vmem:[#allocation2] sm:$0x1] %vm173_vm1, %v172_v15 }
 0x11a   :  { %250 = shalt.err (!%p247_p4)
}
 0x11b   :  { %s251_s4 = scalar_lea.hbm %s353_s3, 16 }
 0x11c   :  { %p252_p5 = scmp.ne.s32.totalorder %s353_s3, %s251_s4  ;;  %p255_p6 = scmp.lt.u32.totalorder %s251_s4, %s353_s3 }
 0x11e   :  { %p257_p7 = pnand %p255_p6, %p252_p5 }
 0x120   :  { %260 = shalt.err (!%p257_p7)
}
 0x121   :  { %184 = dma.vmem_to_hbm [thread:$0]  %s182_s26, 16, %s353_s3, [#allocation3]  }
 0x122   :  { %261 = dma.done.wait [#allocation3], 16  }
 0x123   :  { %262 = vsyncadd [#allocation3], 4294967280 }
 0x124   :  { %188 = vsyncpa [#allocation3], 1 }

// kernel: mutual_info_reg_forward.2
= control target key start
LH: loop header
LB: loop body
LE: loop exit
PB: predicated region body
PF: predicated region fallthrough
CT: control target
= control target key end

     0   :  { %s11822_s24 = smov 0   ;;  %s14280_s0 = inlined_call_operand.vmem [shape: f32[2,8,34,384], index: 0, kind: input, shape index: {}]   ;;  %s14281_s1 = inlined_call_operand.vmem [shape: f32[2,4,384,256], index: 1, kind: input, shape index: {}]   ;;  %s14282_s2 = inlined_call_operand.vmem [shape: f32[2,1,256], index: 2, kind: input, shape index: {}]   ;;  %s14283_s3 = inlined_call_operand.vmem [shape: f32[2,4,256,128], index: 3, kind: input, shape index: {}]   ;;  %s14284_s4 = inlined_call_operand.vmem [shape: f32[2,1,128], index: 4, kind: input, shape index: {}]   ;;  %s14285_s5 = inlined_call_operand.vmem [shape: f32[2,8,32,128], index: 5, kind: input, shape index: {}]   ;;  %s14286_s6 = inlined_call_operand.vmem [shape: f32[2,2,1,4], index: 6, kind: input, shape index: {}]   ;;  %s14287_s7 = inlined_call_operand.vmem [shape: f32[2,2,2,4], index: 7, kind: output, shape index: {}]  }
   0x1 LB: > { %s7843_s25 = sadd.s32 4294967295, %s11779_s24   ;;  %p7847_p0 = scmp.ge.s32.totalorder %s11779_s24, 1  ;;  %s11779_s24 = sphi %s11822_s24, %s17_s24  }
   0x2   : > { %p293_p1 = scmp.lt.s32.totalorder %s11779_s24, 3 }
   0x4   : > { %p294_p2 = pnand %p7847_p0, %p293_p1 }
   0x6   : > { %297 = sbr.rel (%p294_p2) target bundleno = 1586 (0x632), region = 48 }
   0xd   : > { %p11830_p3 = scmp.lt.s32.totalorder %s7843_s25, 1  ;;  %v11781_v0 = vmov 0.0   ;;  %vm663_vm0 = vcmask 1046528   ;;  %vm1817_vm3 = vcmask 1040384  }
   0xe   : > { %387 = vst [vmem:[#allocation2] sm:$0xff] %v11781_v0  ;;  %388 = vst [vmem:[#allocation2 + $0x8] sm:$0xff] %v11781_v0 }
   0xf   : > { %395 = vst [vmem:[#allocation2 + $0x40] sm:$0x3] %v11781_v0  ;;  %396 = vst [vmem:[#allocation2 + $0x48] sm:$0x3] %v11781_v0  ;;  %s14405_s25 = smov (!%p11830_p3, %s7843_s25), 1 }
  0x10   : > { %397 = vst [vmem:[#allocation2 + $0x50] sm:$0xff] %v11781_v0  ;;  %398 = vst [vmem:[#allocation2 + $0x58] sm:$0xff] %v11781_v0  ;;  %s11717_s27 = smul.u32 3072, %s14405_s25  ;;  %s7850_s12 = sshll.u32 %s14405_s25, 1 }
  0x11   : > { %405 = vst [vmem:[#allocation2 + $0x90] sm:$0x3] %v11781_v0  ;;  %406 = vst [vmem:[#allocation2 + $0x98] sm:$0x3] %v11781_v0  ;;  %s11716_s8 = smul.u32 960, %s14405_s25  ;;  %s12927_s15 = scalar_lea.vmem %s14282_s2, %s7850_s12 }
  0x12   : > { %407 = vst [vmem:[#allocation2 + $0xa0] sm:$0xff] %v11781_v0  ;;  %408 = vst [vmem:[#allocation2 + $0xa8] sm:$0xff] %v11781_v0  ;;  %s11858_s30 = scalar_lea.vmem %s14281_s1, %s11717_s27  ;;  %s9345_s16 = sshll.u32 %s14405_s25, 10 }
  0x13   : > { %415 = vst [vmem:[#allocation2 + $0xe0] sm:$0x3] %v11781_v0  ;;  %416 = vst [vmem:[#allocation2 + $0xe8] sm:$0x3] %v11781_v0  ;;  %v7871_v1 = vld [vmem:[%s11858_s30 + $0x308] sm:$0xff]  ;;  %v7873_v2 = vld [vmem:[%s11858_s30 + $0x318] sm:$0xff]  ;;  %s11890_s11 = scalar_lea.vmem %s14280_s0, %s11716_s8  ;;  %s13385_s19 = scalar_lea.vmem %s14283_s3, %s9345_s16 }
  0x14   : > { %417 = vst [vmem:[#allocation2 + $0xf0] sm:$0xff] %v11781_v0  ;;  %418 = vst [vmem:[#allocation2 + $0xf8] sm:$0xff] %v11781_v0  ;;  %v7870_v3 = vld [vmem:[%s11858_s30 + $0x300] sm:$0xff]  ;;  %v9700_v4 = vpack.c.bf16 %v7873_v2, %v7871_v1  ;;  %v7872_v5 = vld [vmem:[%s11858_s30 + $0x310] sm:$0xff]  ;;  %s372_s22 = scalar_lea.vmem %s14284_s4, %s14405_s25  ;;  %s9346_s23 = sshll.u32 %s14405_s25, 8 }
  0x15   : > { %425 = vst [vmem:[#allocation2 + $0x130] sm:$0x3] %v11781_v0  ;;  %426 = vst [vmem:[#allocation2 + $0x138] sm:$0x3] %v11781_v0  ;;  %v7875_v6 = vld [vmem:[%s11858_s30 + $0x328] sm:$0xff]  ;;  %v7877_v7 = vld [vmem:[%s11858_s30 + $0x338] sm:$0xff]  ;;  %v9702_v8 = vpack.c.bf16 %v7872_v5, %v7870_v3  ;;  %s14005_s28 = scalar_lea.vmem %s14285_s5, %s9346_s23  ;;  %s381_s23 = scalar_lea.vmem %s14286_s6, %s7850_s12 }
  0x16   : > { %v9704_v9 = vpack.c.bf16 %v7877_v7, %v7875_v6  ;;  %v7874_v10 = vld [vmem:[%s11858_s30 + $0x320] sm:$0xff]  ;;  %v7876_v11 = vld [vmem:[%s11858_s30 + $0x330] sm:$0xff]  ;;  %v7879_v12 = vld [vmem:[%s11858_s30 + $0x348] sm:$0xff]  ;;  %9701 = vmatprep.subr.bf16.mxu0 %v9700_v4  ;;  %10085 = vmatprep.subr.bf16.mxu1 %v9700_v4  ;;  %s9347_s12 = sshll.u32 %s14405_s25, 2 }
  0x17   : > { %v7881_v13 = vld [vmem:[%s11858_s30 + $0x358] sm:$0xff]  ;;  %9703 = vmatpush1.bf16.msra.mxu0 %v9702_v8  ;;  %10087 = vmatpush1.bf16.msra.mxu1 %v9702_v8  ;;  %v9706_v14 = vpack.c.bf16 %v7876_v11, %v7874_v10  ;;  %v7878_v16 = vld [vmem:[%s11858_s30 + $0x340] sm:$0xff]  ;;  %v7880_v17 = vld [vmem:[%s11858_s30 + $0x350] sm:$0xff] }
  0x18   : > { %9705 = vmatprep.subr.bf16.mxu0 %v9704_v9  ;;  %10089 = vmatprep.subr.bf16.mxu1 %v9704_v9  ;;  %v9708_v15 = vpack.c.bf16 %v7881_v13, %v7879_v12  ;;  %v7883_v18 = vld [vmem:[%s11858_s30 + $0x368] sm:$0xff]  ;;  %v7885_v19 = vld [vmem:[%s11858_s30 + $0x378] sm:$0xff]  ;;  %v9710_v20 = vpack.c.bf16 %v7880_v17, %v7878_v16  ;;  %v7882_v22 = vld [vmem:[%s11858_s30 + $0x360] sm:$0xff] }
  0x19   : > { %v9712_v21 = vpack.c.bf16 %v7885_v19, %v7883_v18  ;;  %v7884_v23 = vld [vmem:[%s11858_s30 + $0x370] sm:$0xff]  ;;  %v7887_v24 = vld [vmem:[%s11858_s30 + $0x388] sm:$0xff]  ;;  %v7889_v25 = vld [vmem:[%s11858_s30 + $0x398] sm:$0xff] }
  0x1a   : > { %v9714_v26 = vpack.c.bf16 %v7884_v23, %v7882_v22  ;;  %v9716_v27 = vpack.c.bf16 %v7889_v25, %v7887_v24  ;;  %v7886_v28 = vld [vmem:[%s11858_s30 + $0x380] sm:$0xff]  ;;  %v7888_v29 = vld [vmem:[%s11858_s30 + $0x390] sm:$0xff]  ;;  %v7891_v30 = vld [vmem:[%s11858_s30 + $0x3a8] sm:$0xff] }
  0x1b   : > { %9707 = vmatpush1.bf16.msra.mxu0 %v9706_v14  ;;  %10091 = vmatpush1.bf16.msra.mxu1 %v9706_v14  ;;  %v7893_v31 = vld [vmem:[%s11858_s30 + $0x3b8] sm:$0xff]  ;;  %v9718_v32 = vpack.c.bf16 %v7888_v29, %v7886_v28  ;;  %v7890_v34 = vld [vmem:[%s11858_s30 + $0x3a0] sm:$0xff]  ;;  %v7892_v35 = vld [vmem:[%s11858_s30 + $0x3b0] sm:$0xff] }
  0x1c   : > { %9709 = vmatprep.subr.bf16.mxu0 %v9708_v15  ;;  %10093 = vmatprep.subr.bf16.mxu1 %v9708_v15  ;;  %v9720_v33 = vpack.c.bf16 %v7893_v31, %v7891_v30  ;;  %v7895_v36 = vld [vmem:[%s11858_s30 + $0x3c8] sm:$0xff]  ;;  %v7897_v37 = vld [vmem:[%s11858_s30 + $0x3d8] sm:$0xff]  ;;  %v9722_v38 = vpack.c.bf16 %v7892_v35, %v7890_v34  ;;  %v7894_v39 = vld [vmem:[%s11858_s30 + $0x3c0] sm:$0xff] }
  0x1d   : > { %v9724_v40 = vpack.c.bf16 %v7897_v37, %v7895_v36  ;;  %v7896_v41 = vld [vmem:[%s11858_s30 + $0x3d0] sm:$0xff]  ;;  %v537_v42 = vld [vmem:[%s11890_s11 + $0x8] sm:$0xfe]  ;;  %v11896_v43 = vld [vmem:[%s11890_s11 + $0x20] sm:$0xff] }
  0x1e   : > { %v7899_v44 = vld [vmem:[%s11858_s30 + $0x3e8] sm:$0xff]  ;;  %v7901_v45 = vld [vmem:[%s11858_s30 + $0x3f8] sm:$0xff]  ;;  %v667_v46 = vrot.slane %v537_v42, 1  ;;  %v668_v47 = vrot.slane %v11896_v43, 1  ;;  %v11903_v49 = vld [vmem:[%s11890_s11 + $0x200] sm:$0xff]  ;;  %v9726_v51 = vpack.c.bf16 %v7896_v41, %v7894_v39 }
  0x1f   : > { %9711 = vmatpush1.bf16.msra.mxu0 %v9710_v20  ;;  %10095 = vmatpush1.bf16.msra.mxu1 %v9710_v20  ;;  %v8201_v48 = vld [vmem:[%s11890_s11 + $0x1e8] sm:$0xfe]  ;;  %v2092_v53 = vrot.slane %v11903_v49, 1  ;;  %v9728_v54 = vpack.c.bf16 %v7901_v45, %v7899_v44  ;;  %v7898_v55 = vld [vmem:[%s11858_s30 + $0x3e0] sm:$0xff]  ;;  %v7900_v56 = vld [vmem:[%s11858_s30 + $0x3f0] sm:$0xff] }
  0x20   : > { %9713 = vmatprep.subr.bf16.mxu0 %v9712_v21  ;;  %10097 = vmatprep.subr.bf16.mxu1 %v9712_v21  ;;  %v2091_v50 = vrot.slane %v8201_v48, 1  ;;  %v669_v52 = vsel %vm663_vm0, %v667_v46, %v668_v47  ;;  %v7903_v57 = vld [vmem:[%s11858_s30 + $0x408] sm:$0xff]  ;;  %v7905_v58 = vld [vmem:[%s11858_s30 + $0x418] sm:$0xff]  ;;  %v9730_v60 = vpack.c.bf16 %v7900_v56, %v7898_v55  ;;  %v7902_v62 = vld [vmem:[%s11858_s30 + $0x400] sm:$0xff] }
  0x21   : > { %767 = vmatprep.mubr.f32.mxu0 %v669_v52  ;;  %v9732_v61 = vpack.c.bf16 %v7905_v58, %v7903_v57  ;;  %v7904_v63 = vld [vmem:[%s11858_s30 + $0x410] sm:$0xff]  ;;  %v7907_v1 = vld [vmem:[%s11858_s30 + $0x428] sm:$0xff]  ;;  %v7909_v2 = vld [vmem:[%s11858_s30 + $0x438] sm:$0xff] }
  0x22   : > { %v2093_v59 = vsel %vm663_vm0, %v2091_v50, %v2092_v53  ;;  %v9734_v3 = vpack.c.bf16 %v7904_v63, %v7902_v62  ;;  %v9736_v4 = vpack.c.bf16 %v7909_v2, %v7907_v1  ;;  %v7906_v5 = vld [vmem:[%s11858_s30 + $0x420] sm:$0xff]  ;;  %v7908_v6 = vld [vmem:[%s11858_s30 + $0x430] sm:$0xff]  ;;  %v7911_v7 = vld [vmem:[%s11858_s30 + $0x448] sm:$0xff] }
  0x23   : > { %9715 = vmatpush1.bf16.msra.mxu0 %v9714_v26  ;;  %10099 = vmatpush1.bf16.msra.mxu1 %v9714_v26  ;;  %v7913_v8 = vld [vmem:[%s11858_s30 + $0x458] sm:$0xff]  ;;  %v9738_v9 = vpack.c.bf16 %v7908_v6, %v7906_v5  ;;  %v7910_v11 = vld [vmem:[%s11858_s30 + $0x440] sm:$0xff]  ;;  %v7912_v12 = vld [vmem:[%s11858_s30 + $0x450] sm:$0xff] }
  0x24   : > { %9717 = vmatprep.subr.bf16.mxu0 %v9716_v27  ;;  %10101 = vmatprep.subr.bf16.mxu1 %v9716_v27  ;;  %v9740_v10 = vpack.c.bf16 %v7913_v8, %v7911_v7  ;;  %v7915_v13 = vld [vmem:[%s11858_s30 + $0x468] sm:$0xff]  ;;  %v7917_v14 = vld [vmem:[%s11858_s30 + $0x478] sm:$0xff]  ;;  %v9742_v15 = vpack.c.bf16 %v7912_v12, %v7910_v11  ;;  %v7914_v17 = vld [vmem:[%s11858_s30 + $0x460] sm:$0xff] }
  0x25   : > { %2191 = vmatprep.mubr.f32.mxu1 %v2093_v59  ;;  %v9744_v16 = vpack.c.bf16 %v7917_v14, %v7915_v13  ;;  %v7916_v18 = vld [vmem:[%s11858_s30 + $0x470] sm:$0xff]  ;;  %v7919_v19 = vld [vmem:[%s11858_s30 + $0x488] sm:$0xff]  ;;  %v7921_v20 = vld [vmem:[%s11858_s30 + $0x498] sm:$0xff] }
  0x26   : > { %v9746_v21 = vpack.c.bf16 %v7916_v18, %v7914_v17  ;;  %v9748_v22 = vpack.c.bf16 %v7921_v20, %v7919_v19  ;;  %v7918_v23 = vld [vmem:[%s11858_s30 + $0x480] sm:$0xff]  ;;  %v7920_v24 = vld [vmem:[%s11858_s30 + $0x490] sm:$0xff]  ;;  %v7923_v25 = vld [vmem:[%s11858_s30 + $0x4a8] sm:$0xff] }
  0x27   : > { %9719 = vmatpush1.bf16.msra.mxu0 %v9718_v32  ;;  %10103 = vmatpush1.bf16.msra.mxu1 %v9718_v32  ;;  %v7925_v26 = vld [vmem:[%s11858_s30 + $0x4b8] sm:$0xff]  ;;  %v9750_v27 = vpack.c.bf16 %v7920_v24, %v7918_v23  ;;  %v7922_v29 = vld [vmem:[%s11858_s30 + $0x4a0] sm:$0xff]  ;;  %v7924_v30 = vld [vmem:[%s11858_s30 + $0x4b0] sm:$0xff] }
  0x28   : > { %9721 = vmatprep.subr.bf16.mxu0 %v9720_v33  ;;  %10105 = vmatprep.subr.bf16.mxu1 %v9720_v33  ;;  %v9752_v28 = vpack.c.bf16 %v7925_v26, %v7923_v25  ;;  %v7927_v31 = vld [vmem:[%s11858_s30 + $0x4c8] sm:$0xff]  ;;  %v7929_v32 = vld [vmem:[%s11858_s30 + $0x4d8] sm:$0xff]  ;;  %v9754_v33 = vpack.c.bf16 %v7924_v30, %v7922_v29  ;;  %v7926_v35 = vld [vmem:[%s11858_s30 + $0x4c0] sm:$0xff] }
  0x29   : > { %v9756_v34 = vpack.c.bf16 %v7929_v32, %v7927_v31  ;;  %v7928_v36 = vld [vmem:[%s11858_s30 + $0x4d0] sm:$0xff]  ;;  %v7931_v37 = vld [vmem:[%s11858_s30 + $0x4e8] sm:$0xff]  ;;  %v536_v42 = vld [vmem:[%s11890_s11] sm:$0xfe] }
  0x2a   : > { %v9758_v39 = vpack.c.bf16 %v7928_v36, %v7926_v35  ;;  %v7932_v41 = vld [vmem:[%s11858_s30 + $0x4f0] sm:$0xff]  ;;  %v539_v45 = vld [vmem:[%s11890_s11 + $0x18] sm:$0xff]  ;;  %v8200_v46 = vld [vmem:[%s11890_s11 + $0x1e0] sm:$0xfe]  ;;  %v664_v52 = vrot.slane %v536_v42, 1 }
  0x2b   : > { %9723 = vmatpush1.bf16.msra.mxu0 %v9722_v38  ;;  %10107 = vmatpush1.bf16.msra.mxu1 %v9722_v38  ;;  %v7933_v38 = vld [vmem:[%s11858_s30 + $0x4f8] sm:$0xff]  ;;  %v7935_v50 = vld [vmem:[%s11858_s30 + $0x508] sm:$0xff]  ;;  %v665_v56 = vrot.slane %v539_v45, 1  ;;  %v7936_v57 = vld [vmem:[%s11858_s30 + $0x510] sm:$0xff]  ;;  %v2088_v58 = vrot.slane %v8200_v46, 1 }
  0x2c   : > { %9725 = vmatprep.subr.bf16.mxu0 %v9724_v40  ;;  %10109 = vmatprep.subr.bf16.mxu1 %v9724_v40  ;;  %v7930_v40 = vld [vmem:[%s11858_s30 + $0x4e0] sm:$0xff]  ;;  %v9760_v44 = vpack.c.bf16 %v7933_v38, %v7931_v37  ;;  %v8203_v48 = vld [vmem:[%s11890_s11 + $0x1f8] sm:$0xff]  ;;  %v542_v63 = vld [vmem:[%s11890_s11 + $0x30] sm:$0xff] }
  0x2d   : > { %v9762_v55 = vpack.c.bf16 %v7932_v41, %v7930_v40  ;;  %v2089_v59 = vrot.slane %v8203_v48, 1  ;;  %v8206_v1 = vld [vmem:[%s11890_s11 + $0x210] sm:$0xff]  ;;  %v7939_v2 = vld [vmem:[%s11858_s30 + $0x528] sm:$0xff]  ;;  %v7938_v5 = vld [vmem:[%s11858_s30 + $0x520] sm:$0xff]  ;;  %v673_v11 = vrot.slane %v542_v63, 1 }
  0x2e   : > { %v7940_v6 = vld [vmem:[%s11858_s30 + $0x530] sm:$0xff]  ;;  %v2097_v12 = vrot.slane %v8206_v1, 1  ;;  %v8209_v17 = vld [vmem:[%s11890_s11 + $0x228] sm:$0xff]  ;;  %v7945_v20 = vld [vmem:[%s11858_s30 + $0x558] sm:$0xff] }
  0x2f   : > { %9727 = vmatpush1.bf16.msra.mxu0 %v9726_v51  ;;  %10111 = vmatpush1.bf16.msra.mxu1 %v9726_v51  ;;  %v7937_v51 = vld [vmem:[%s11858_s30 + $0x518] sm:$0xff]  ;;  %v546_v13 = vld [vmem:[%s11890_s11 + $0x50] sm:$0xff]  ;;  %v9770_v18 = vpack.c.bf16 %v7940_v6, %v7938_v5  ;;  %v7943_v19 = vld [vmem:[%s11858_s30 + $0x548] sm:$0xff]  ;;  %v2103_v43 = vrot.slane %v8209_v17, 1 }
  0x30   : > { %9729 = vmatprep.subr.bf16.mxu0 %v9728_v54  ;;  %10113 = vmatprep.subr.bf16.mxu1 %v9728_v54  ;;  %v7934_v54 = vld [vmem:[%s11858_s30 + $0x500] sm:$0xff]  ;;  %v9764_v62 = vpack.c.bf16 %v7937_v51, %v7935_v50  ;;  %v8210_v14 = vld [vmem:[%s11890_s11 + $0x230] sm:$0xff]  ;;  %v681_v25 = vrot.slane %v546_v13, 1  ;;  %v549_v30 = vld [vmem:[%s11890_s11 + $0x68] sm:$0x1] }
  0x31   : > { %v2105_v26 = vrot.slane %v8210_v14, 1  ;;  %v8213_v31 = vld [vmem:[%s11890_s11 + $0x248] sm:$0x1]  ;;  %v548_v49 = vld [vmem:[%s11890_s11 + $0x60] sm:$0x1]  ;;  %v687_v37 = vrot.slane %v549_v30, 1  ;;  %v2104_v40 = vsel %vm663_vm0, %v2097_v12, %v2103_v43 }
  0x32   : > { %v8212_v32 = vld [vmem:[%s11890_s11 + $0x240] sm:$0x1]  ;;  %v2111_v38 = vrot.slane %v8213_v31, 1  ;;  %v685_v41 = vrot.slane %v548_v49, 1  ;;  %v7948_v46 = vld [vmem:[%s11858_s30 + $0x570] sm:$0xff]  ;;  %v7951_v48 = vld [vmem:[%s11858_s30 + $0x588] sm:$0xff] }
  0x33   : > { %9731 = vmatpush1.bf16.msra.mxu0 %v9730_v60  ;;  %10115 = vmatpush1.bf16.msra.mxu1 %v9730_v60  ;;  %v543_v60 = vld [vmem:[%s11890_s11 + $0x38] sm:$0xff]  ;;  %v2109_v42 = vrot.slane %v8212_v32, 1  ;;  %v7946_v45 = vld [vmem:[%s11858_s30 + $0x560] sm:$0xff]  ;;  %v688_v51 = vsel %vm663_vm0, %v681_v25, %v687_v37  ;;  %v7964_v13 = vld [vmem:[%s11858_s30 + $0x5f0] sm:$0xff] }
  0x34   : > { %9733 = vmatprep.subr.bf16.mxu0 %v9732_v61  ;;  %10117 = vmatprep.subr.bf16.mxu1 %v9732_v61  ;;  %v8207_v61 = vld [vmem:[%s11890_s11 + $0x218] sm:$0xff]  ;;  %v675_v7 = vrot.slane %v543_v60, 1  ;;  %v7955_v60 = vld [vmem:[%s11858_s30 + $0x5a8] sm:$0xff]  ;;  %v7954_v1 = vld [vmem:[%s11858_s30 + $0x5a0] sm:$0xff] }
  0x35   : > { %v2099_v8 = vrot.slane %v8207_v61, 1  ;;  %v7953_v50 = vld [vmem:[%s11858_s30 + $0x598] sm:$0xff]  ;;  %v538_v14 = vld [vmem:[%s11890_s11 + $0x10] sm:$0xfe]  ;;  %v445_v30 = vld [vmem:[%s11858_s30 + $0x28] sm:$0xff] }
  0x36   : > { %v676_v23 = vsel %vm663_vm0, %v668_v47, %v675_v7  ;;  %v9772_v47 = vpack.c.bf16 %v7945_v20, %v7943_v19  ;;  %v682_v35 = vsel %vm663_vm0, %v675_v7, %v681_v25  ;;  %v7957_v61 = vld [vmem:[%s11858_s30 + $0x5b8] sm:$0xff]  ;;  %v7958_v7 = vld [vmem:[%s11858_s30 + $0x5c0] sm:$0xff]  ;;  %v8202_v17 = vld [vmem:[%s11890_s11 + $0x1f0] sm:$0xfe] }
  0x37   : > { %9735 = vmatpush1.bf16.msra.mxu0 %v9734_v3  ;;  %10119 = vmatpush1.bf16.msra.mxu1 %v9734_v3  ;;  %v7941_v3 = vld [vmem:[%s11858_s30 + $0x538] sm:$0xff]  ;;  %v2100_v24 = vsel %vm663_vm0, %v2092_v53, %v2099_v8  ;;  %v2106_v36 = vsel %vm663_vm0, %v2099_v8, %v2105_v26  ;;  %v9784_v63 = vpack.c.bf16 %v7957_v61, %v7955_v60  ;;  %v7960_v8 = vld [vmem:[%s11858_s30 + $0x5d0] sm:$0xff]  ;;  %v441_v19 = vld [vmem:[%s11858_s30 + $0x8] sm:$0xff] }
  0x38   : > { %9737 = vmatprep.subr.bf16.mxu0 %v9736_v4  ;;  %10121 = vmatprep.subr.bf16.mxu1 %v9736_v4  ;;  %v9766_v4 = vpack.c.bf16 %v7936_v57, %v7934_v54  ;;  %v9778_v54 = vpack.c.bf16 %v7948_v46, %v7946_v45  ;;  %v9780_v57 = vpack.c.bf16 %v7953_v50, %v7951_v48  ;;  %v443_v20 = vld [vmem:[%s11858_s30 + $0x18] sm:$0xff]  ;;  %v442_v25 = vld [vmem:[%s11858_s30 + $0x10] sm:$0xff] }
  0x39   : > { %v447_v31 = vld [vmem:[%s11858_s30 + $0x38] sm:$0xff] }
  0x3a   : > { %v547_v37 = vld [vmem:[%s11890_s11 + $0x58] sm:$0xff] }
  0x3b   : > { %9739 = vmatpush1.bf16.msra.mxu0 %v9738_v9  ;;  %10123 = vmatpush1.bf16.msra.mxu1 %v9738_v9  ;;  %v666_v9 = vsel %vm663_vm0, %v664_v52, %v665_v56  ;;  %v2112_v52 = vsel %vm663_vm0, %v2105_v26, %v2111_v38  ;;  %v2094_v26 = vrot.slane %v8202_v17, 1  ;;  %v8211_v38 = vld [vmem:[%s11890_s11 + $0x238] sm:$0xff]  ;;  %v683_v48 = vrot.slane %v547_v37, 1  ;;  %v462_v17 = vld [vmem:[%s11858_s30 + $0xb0] sm:$0xff]  ;;  %v481_v37 = vld [vmem:[%s11858_s30 + $0x148] sm:$0xff] }
  0x3c   : > { %9741 = vmatprep.subr.bf16.mxu0 %v9740_v10  ;;  %10125 = vmatprep.subr.bf16.mxu1 %v9740_v10  ;;  %v2090_v10 = vsel %vm663_vm0, %v2088_v58, %v2089_v59  ;;  %v7950_v58 = vld [vmem:[%s11858_s30 + $0x580] sm:$0xff]  ;;  %v2107_v50 = vrot.slane %v8211_v38, 1  ;;  %v483_v38 = vld [vmem:[%s11858_s30 + $0x158] sm:$0xff] }
  0x3f   : > { %9743 = vmatpush1.bf16.msra.mxu0 %v9742_v15  ;;  %10127 = vmatpush1.bf16.msra.mxu1 %v9742_v15  ;;  %v9768_v15 = vpack.c.bf16 %v7941_v3, %v7939_v2  ;;  %v7956_v2 = vld [vmem:[%s11858_s30 + $0x5b0] sm:$0xff]  ;;  %v7959_v3 = vld [vmem:[%s11858_s30 + $0x5c8] sm:$0xff] }
  0x40   : > { %9745 = vmatprep.subr.bf16.mxu0 %v9744_v16  ;;  %10129 = vmatprep.subr.bf16.mxu1 %v9744_v16  ;;  %v545_v16 = vld [vmem:[%s11890_s11 + $0x48] sm:$0xff]  ;;  %v9786_v5 = vpack.c.bf16 %v7956_v2, %v7954_v1  ;;  %v454_v1 = vld [vmem:[%s11858_s30 + $0x70] sm:$0xff] }
  0x41   : > { %v679_v29 = vrot.slane %v545_v16, 1  ;;  %v541_v16 = vld [vmem:[%s11890_s11 + $0x28] sm:$0xff] }
  0x42   : > { %v457_v2 = vld [vmem:[%s11858_s30 + $0x88] sm:$0xff] }
  0x43   : > { %9747 = vmatpush1.bf16.msra.mxu0 %v9746_v21  ;;  %10131 = vmatpush1.bf16.msra.mxu1 %v9746_v21  ;;  %v7942_v21 = vld [vmem:[%s11858_s30 + $0x540] sm:$0xff] }
  0x44   : > { %9749 = vmatprep.subr.bf16.mxu0 %v9748_v22  ;;  %10133 = vmatprep.subr.bf16.mxu1 %v9748_v22  ;;  %v7944_v22 = vld [vmem:[%s11858_s30 + $0x550] sm:$0xff] }
  0x45   : > { %v9774_v53 = vpack.c.bf16 %v7944_v22, %v7942_v21  ;;  %v670_v22 = vrot.slane %v538_v14, 1 }
  0x47   : > { %9751 = vmatpush1.bf16.msra.mxu0 %v9750_v27  ;;  %10135 = vmatpush1.bf16.msra.mxu1 %v9750_v27  ;;  %v674_v27 = vsel %vm663_vm0, %v665_v56, %v673_v11  ;;  %v2110_v56 = vsel %vm663_vm0, %v2103_v43, %v2109_v42  ;;  %v8208_v43 = vld [vmem:[%s11890_s11 + $0x220] sm:$0xff] }
  0x48   : > { %9753 = vmatprep.subr.bf16.mxu0 %v9752_v28  ;;  %10137 = vmatprep.subr.bf16.mxu1 %v9752_v28  ;;  %v2098_v28 = vsel %vm663_vm0, %v2089_v59, %v2097_v12  ;;  %v7952_v59 = vld [vmem:[%s11858_s30 + $0x590] sm:$0xff]  ;;  %v7962_v12 = vld [vmem:[%s11858_s30 + $0x5e0] sm:$0xff] }
  0x49   : > { %v9794_v21 = vpack.c.bf16 %v7964_v13, %v7962_v12  ;;  %v448_v42 = vld [vmem:[%s11858_s30 + $0x40] sm:$0xff]  ;;  %v7859_v12 = vld [vmem:[%s11890_s11 + $0x170] sm:$0xff] }
  0x4a   : > { %v8189_v13 = vld [vmem:[%s11890_s11 + $0x350] sm:$0xff] }
  0x4b   : > { %9755 = vmatpush1.bf16.msra.mxu0 %v9754_v33  ;;  %10139 = vmatpush1.bf16.msra.mxu1 %v9754_v33  ;;  %v7947_v33 = vld [vmem:[%s11858_s30 + $0x568] sm:$0xff] }
  0x4c   : > { %9757 = vmatprep.subr.bf16.mxu0 %v9756_v34  ;;  %10141 = vmatprep.subr.bf16.mxu1 %v9756_v34  ;;  %v7949_v34 = vld [vmem:[%s11858_s30 + $0x578] sm:$0xff] }
  0x4f   : > { %9759 = vmatpush1.bf16.msra.mxu0 %v9758_v39  ;;  %10143 = vmatpush1.bf16.msra.mxu1 %v9758_v39  ;;  %v680_v39 = vsel %vm663_vm0, %v673_v11, %v679_v29  ;;  %v9790_v11 = vpack.c.bf16 %v7960_v8, %v7958_v7  ;;  %v456_v8 = vld [vmem:[%s11858_s30 + $0x80] sm:$0xff] }
  0x50   : > { %9761 = vmatprep.subr.bf16.mxu0 %v9760_v44  ;;  %10145 = vmatprep.subr.bf16.mxu1 %v9760_v44  ;;  %v9776_v44 = vpack.c.bf16 %v7949_v34, %v7947_v33  ;;  %v446_v33 = vld [vmem:[%s11858_s30 + $0x30] sm:$0xff] }
  0x53   : > { %9763 = vmatpush1.bf16.msra.mxu0 %v9762_v55  ;;  %10147 = vmatpush1.bf16.msra.mxu1 %v9762_v55  ;;  %v686_v55 = vsel %vm663_vm0, %v679_v29, %v685_v41  ;;  %v544_v29 = vld [vmem:[%s11890_s11 + $0x40] sm:$0xff] }
  0x54   : > { %9765 = vmatprep.subr.bf16.mxu0 %v9764_v62  ;;  %10149 = vmatprep.subr.bf16.mxu1 %v9764_v62  ;;  %v9782_v62 = vpack.c.bf16 %v7952_v59, %v7950_v58  ;;  %v677_v34 = vrot.slane %v544_v29, 1  ;;  %v473_v29 = vld [vmem:[%s11858_s30 + $0x108] sm:$0xff] }
  0x56   : > { %768 = vmatmul.mubr.f32.vlgmr.msra.gmra.mrb[0].mxu0 %v666_v9  ;;  %2192 = vmatmul.mubr.f32.vlgmr.msra.gmra.mrb[0].mxu1 %v2090_v10  ;;  %v7963_v9 = vld [vmem:[%s11858_s30 + $0x5e8] sm:$0xff]  ;;  %v7965_v10 = vld [vmem:[%s11858_s30 + $0x5f8] sm:$0xff]  ;;  %v684_v58 = vsel %vm663_vm0, %v677_v34, %v683_v48 }
  0x57   : > { %9767 = vmatpush1.bf16.msra.mxu0 %v9766_v4  ;;  %10151 = vmatpush1.bf16.msra.mxu1 %v9766_v4  ;;  %v7961_v4 = vld [vmem:[%s11858_s30 + $0x5d8] sm:$0xff] }
  0x58   : > { %9769 = vmatprep.subr.bf16.mxu0 %v9768_v15  ;;  %10153 = vmatprep.subr.bf16.mxu1 %v9768_v15  ;;  %v9788_v6 = vpack.c.bf16 %v7961_v4, %v7959_v3  ;;  %v9792_v15 = vpack.c.bf16 %v7965_v10, %v7963_v9  ;;  %v459_v3 = vld [vmem:[%s11858_s30 + $0x98] sm:$0xff]  ;;  %v458_v9 = vld [vmem:[%s11858_s30 + $0x90] sm:$0xff]  ;;  %v461_v10 = vld [vmem:[%s11858_s30 + $0xa8] sm:$0xff] }
  0x59   : > { %773 = vmatprep.mubr.f32.mxu0 %v676_v23  ;;  %2197 = vmatprep.mubr.f32.mxu1 %v2100_v24  ;;  %v671_v23 = vrot.slane %v541_v16, 1  ;;  %v440_v24 = vld [vmem:[%s11858_s30] sm:$0xff]  ;;  %v9812_v7 = vpack.c.bf16 %v459_v3, %v457_v2  ;;  %v9814_v14 = vpack.c.bf16 %v458_v9, %v456_v8  ;;  %v497_v2 = vld [vmem:[%s11858_s30 + $0x1c8] sm:$0xff]  ;;  %v499_v3 = vld [vmem:[%s11858_s30 + $0x1d8] sm:$0xff] }
  0x5a   : > { %774 = vmatmul.mubr.f32.gmra.mrb[2].mxu0 %v674_v27  ;;  %2198 = vmatmul.mubr.f32.gmra.mrb[2].mxu1 %v2098_v28  ;;  %v9796_v28 = vpack.c.bf16 %v443_v20, %v441_v19  ;;  %v460_v16 = vld [vmem:[%s11858_s30 + $0xa0] sm:$0xff]  ;;  %v467_v19 = vld [vmem:[%s11858_s30 + $0xd8] sm:$0xff]  ;;  %v501_v8 = vld [vmem:[%s11858_s30 + $0x1e8] sm:$0xff] }
  0x5b   : > { %9771 = vmatpush1.bf16.msra.mxu0 %v9770_v18  ;;  %10155 = vmatpush1.bf16.msra.mxu1 %v9770_v18  ;;  %v8205_v18 = vld [vmem:[%s11890_s11 + $0x208] sm:$0xff]  ;;  %v672_v49 = vsel %vm663_vm0, %v670_v22, %v671_v23  ;;  %v678_v45 = vsel %vm663_vm0, %v671_v23, %v677_v34  ;;  %v466_v22 = vld [vmem:[%s11858_s30 + $0xd0] sm:$0xff]  ;;  %v503_v9 = vld [vmem:[%s11858_s30 + $0x1f8] sm:$0xff] }
  0x5c   : > { %9773 = vmatprep.subr.bf16.mxu0 %v9772_v47  ;;  %10157 = vmatprep.subr.bf16.mxu1 %v9772_v47  ;;  %v2095_v27 = vrot.slane %v8205_v18, 1  ;;  %v9798_v47 = vpack.c.bf16 %v442_v25, %v440_v24  ;;  %v465_v18 = vld [vmem:[%s11858_s30 + $0xc8] sm:$0xff]  ;;  %v471_v24 = vld [vmem:[%s11858_s30 + $0xf8] sm:$0xff] }
  0x5d   : > { %779 = vmatprep.mubr.f32.mxu0 %v682_v35  ;;  %2203 = vmatprep.mubr.f32.mxu1 %v2106_v36  ;;  %v2101_v35 = vrot.slane %v8208_v43, 1  ;;  %v9800_v36 = vpack.c.bf16 %v447_v31, %v445_v30  ;;  %v9820_v20 = vpack.c.bf16 %v467_v19, %v465_v18  ;;  %v469_v23 = vld [vmem:[%s11858_s30 + $0xe8] sm:$0xff]  ;;  %v475_v43 = vld [vmem:[%s11858_s30 + $0x118] sm:$0xff]  ;;  %v504_v18 = vld [vmem:[%s11858_s30 + $0x200] sm:$0xff] }
  0x5e   : > { %780 = vmatmul.mubr.f32.gmra.mrb[4].mxu0 %v680_v39  ;;  %2204 = vmatmul.mubr.f32.gmra.mrb[4].mxu1 %v2104_v40  ;;  %v2096_v32 = vsel %vm663_vm0, %v2094_v26, %v2095_v27  ;;  %v449_v39 = vld [vmem:[%s11858_s30 + $0x48] sm:$0xff]  ;;  %v451_v40 = vld [vmem:[%s11858_s30 + $0x58] sm:$0xff]  ;;  %v9824_v26 = vpack.c.bf16 %v471_v24, %v469_v23  ;;  %v9828_v31 = vpack.c.bf16 %v475_v43, %v473_v29  ;;  %v506_v19 = vld [vmem:[%s11858_s30 + $0x210] sm:$0xff] }
  0x5f   : > { %9775 = vmatpush1.bf16.msra.mxu0 %v9774_v53  ;;  %10159 = vmatpush1.bf16.msra.mxu1 %v9774_v53  ;;  %v444_v53 = vld [vmem:[%s11858_s30 + $0x20] sm:$0xff]  ;;  %v2102_v46 = vsel %vm663_vm0, %v2095_v27, %v2101_v35  ;;  %v2108_v59 = vsel %vm663_vm0, %v2101_v35, %v2107_v50  ;;  %v8188_v23 = vld [vmem:[%s11890_s11 + $0x348] sm:$0xff] }
  0x60   : > { %9777 = vmatprep.subr.bf16.mxu0 %v9776_v44  ;;  %10161 = vmatprep.subr.bf16.mxu1 %v9776_v44  ;;  %v9802_v41 = vpack.c.bf16 %v446_v33, %v444_v53  ;;  %v450_v44 = vld [vmem:[%s11858_s30 + $0x50] sm:$0xff]  ;;  %v468_v27 = vld [vmem:[%s11858_s30 + $0xe0] sm:$0xff]  ;;  %v479_v53 = vld [vmem:[%s11858_s30 + $0x138] sm:$0xff] }
  0x61   : > { %785 = vmatprep.mubr.f32.mxu0 %v688_v51  ;;  %2209 = vmatprep.mubr.f32.mxu1 %v2112_v52  ;;  %v9804_v51 = vpack.c.bf16 %v451_v40, %v449_v39  ;;  %v550_v52 = vld [vmem:[%s11890_s11 + $0x70] sm:$0x1]  ;;  %v476_v35 = vld [vmem:[%s11858_s30 + $0x120] sm:$0xff]  ;;  %v9836_v40 = vpack.c.bf16 %v483_v38, %v481_v37  ;;  %v7862_v29 = vld [vmem:[%s11890_s11 + $0x188] sm:$0xff] }
  0x62   : > { %786 = vmatmul.mubr.f32.gmra.mrb[6].mxu0 %v686_v55  ;;  %2210 = vmatmul.mubr.f32.gmra.mrb[6].mxu1 %v2110_v56  ;;  %v453_v55 = vld [vmem:[%s11858_s30 + $0x68] sm:$0xff]  ;;  %v455_v56 = vld [vmem:[%s11858_s30 + $0x78] sm:$0xff]  ;;  %v689_v60 = vrot.slane %v550_v52, 1 }
  0x63   : > { %9779 = vmatpush1.bf16.msra.mxu0 %v9778_v54  ;;  %10163 = vmatpush1.bf16.msra.mxu1 %v9778_v54  ;;  %v8214_v54 = vld [vmem:[%s11890_s11 + $0x250] sm:$0x1]  ;;  %v489_v52 = vld [vmem:[%s11858_s30 + $0x188] sm:$0xff]  ;;  %v7864_v38 = vld [vmem:[%s11890_s11 + $0x198] sm:$0xff] }
  0x64   : > { %9781 = vmatprep.subr.bf16.mxu0 %v9780_v57  ;;  %10165 = vmatprep.subr.bf16.mxu1 %v9780_v57  ;;  %v9806_v57 = vpack.c.bf16 %v450_v44, %v448_v42  ;;  %v2113_v61 = vrot.slane %v8214_v54, 1  ;;  %v482_v42 = vld [vmem:[%s11858_s30 + $0x150] sm:$0xff]  ;;  %v485_v44 = vld [vmem:[%s11858_s30 + $0x168] sm:$0xff]  ;;  %v491_v54 = vld [vmem:[%s11858_s30 + $0x198] sm:$0xff] }
  0x65   : > { %856 = vmatprep.mubr.f32.mxu0 %v11781_v0  ;;  %2280 = vmatprep.mubr.f32.mxu1 %v11781_v0  ;;  %v8192_v43 = vld [vmem:[%s11890_s11 + $0x368] sm:$0xff] }
  0x67   : > { %9783 = vmatpush1.bf16.msra.mxu0 %v9782_v62  ;;  %10167 = vmatpush1.bf16.msra.mxu1 %v9782_v62  ;;  %v9808_v62 = vpack.c.bf16 %v455_v56, %v453_v55  ;;  %v9844_v56 = vpack.c.bf16 %v491_v54, %v489_v52  ;;  %v8197_v52 = vld [vmem:[%s11890_s11 + $0x390] sm:$0xff] }
  0x68   : > { %9785 = vmatprep.subr.bf16.mxu0 %v9784_v63  ;;  %10169 = vmatprep.subr.bf16.mxu1 %v9784_v63  ;;  %v452_v63 = vld [vmem:[%s11858_s30 + $0x60] sm:$0xff] }
  0x69   : > { %v9810_v4 = vpack.c.bf16 %v454_v1, %v452_v63  ;;  %v492_v63 = vld [vmem:[%s11858_s30 + $0x1a0] sm:$0xff]  ;;  %v494_v1 = vld [vmem:[%s11858_s30 + $0x1b0] sm:$0xff] }
  0x6b   : > { %9787 = vmatpush1.bf16.msra.mxu0 %v9786_v5  ;;  %10171 = vmatpush1.bf16.msra.mxu1 %v9786_v5  ;;  %v690_v5 = vsel %vm663_vm0, %v683_v48, %v689_v60  ;;  %v495_v60 = vld [vmem:[%s11858_s30 + $0x1b8] sm:$0xff] }
  0x6c   : > { %9789 = vmatprep.subr.bf16.mxu0 %v9788_v6  ;;  %10173 = vmatprep.subr.bf16.mxu1 %v9788_v6  ;;  %v2114_v6 = vsel %vm663_vm0, %v2107_v50, %v2113_v61  ;;  %v484_v50 = vld [vmem:[%s11858_s30 + $0x160] sm:$0xff] }
  0x6f   : > { %9791 = vmatpush1.bf16.msra.mxu0 %v9790_v11  ;;  %10175 = vmatpush1.bf16.msra.mxu1 %v9790_v11  ;;  %v463_v11 = vld [vmem:[%s11858_s30 + $0xb8] sm:$0xff] }
  0x70   : > { %9793 = vmatprep.subr.bf16.mxu0 %v9792_v15  ;;  %10177 = vmatprep.subr.bf16.mxu1 %v9792_v15  ;;  %v9816_v15 = vpack.c.bf16 %v463_v11, %v461_v10  ;;  %v9856_v11 = vpack.c.bf16 %v503_v9, %v501_v8  ;;  %v535_v8 = vld [vmem:[%s11858_s30 + $0x2f8] sm:$0xff] }
  0x73   : > { %9795 = vmatpush1.bf16.msra.mxu0 %v9794_v21  ;;  %10179 = vmatpush1.bf16.msra.mxu1 %v9794_v21  ;;  %v464_v21 = vld [vmem:[%s11858_s30 + $0xc0] sm:$0xff] }
  0x74   : > { %9797 = vmatprep.subr.bf16.mxu0 %v9796_v28  ;;  %10181 = vmatprep.subr.bf16.mxu1 %v9796_v28  ;;  %v9822_v25 = vpack.c.bf16 %v466_v22, %v464_v21  ;;  %v470_v28 = vld [vmem:[%s11858_s30 + $0xf0] sm:$0xff]  ;;  %v7858_v21 = vld [vmem:[%s11890_s11 + $0x168] sm:$0xff]  ;;  %v9862_v22 = vpack.c.bf16 %v506_v19, %v504_v18 }
  0x75   : > { %v9826_v30 = vpack.c.bf16 %v470_v28, %v468_v27  ;;  %v513_v27 = vld [vmem:[%s11858_s30 + $0x248] sm:$0xff]  ;;  %v515_v28 = vld [vmem:[%s11858_s30 + $0x258] sm:$0xff]  ;;  %v7983_v18 = vld [vmem:[%s11858_s30 + $0x610] sm:$0xff] }
  0x76   : > { %857 = vmatmul.mubr.f32.vlgmr.msra.gmra.mrb[0].mxu0 %v672_v49  ;;  %2281 = vmatmul.mubr.f32.vlgmr.msra.gmra.mrb[0].mxu1 %v2096_v32  ;;  %v474_v49 = vld [vmem:[%s11858_s30 + $0x110] sm:$0xff]  ;;  %v477_v32 = vld [vmem:[%s11858_s30 + $0x128] sm:$0xff] }
  0x77   : > { %9799 = vmatpush1.bf16.msra.mxu0 %v9798_v47  ;;  %10183 = vmatpush1.bf16.msra.mxu1 %v9798_v47  ;;  %v472_v47 = vld [vmem:[%s11858_s30 + $0x100] sm:$0xff]  ;;  %v9832_v34 = vpack.c.bf16 %v479_v53, %v477_v32  ;;  %v514_v53 = vld [vmem:[%s11858_s30 + $0x250] sm:$0xff]  ;;  %v7986_v19 = vld [vmem:[%s11858_s30 + $0x628] sm:$0xff] }
  0x78   : > { %9801 = vmatprep.subr.bf16.mxu0 %v9800_v36  ;;  %10185 = vmatprep.subr.bf16.mxu1 %v9800_v36  ;;  %v9830_v33 = vpack.c.bf16 %v474_v49, %v472_v47  ;;  %v478_v36 = vld [vmem:[%s11858_s30 + $0x130] sm:$0xff]  ;;  %v8191_v47 = vld [vmem:[%s11890_s11 + $0x360] sm:$0xff]  ;;  %v9868_v49 = vpack.c.bf16 %v515_v28, %v513_v27  ;;  %v7992_v27 = vld [vmem:[%s11858_s30 + $0x658] sm:$0xff] }
  0x79   : > { %862 = vmatprep.mubr.f32.mxu0 %v11781_v0  ;;  %2286 = vmatprep.mubr.f32.mxu1 %v11781_v0  ;;  %v9834_v39 = vpack.c.bf16 %v478_v36, %v476_v35  ;;  %v512_v32 = vld [vmem:[%s11858_s30 + $0x240] sm:$0xff] }
  0x7a   : > { %863 = vmatmul.mubr.f32.gmra.mrb[2].mxu0 %v678_v45  ;;  %2287 = vmatmul.mubr.f32.gmra.mrb[2].mxu1 %v2102_v46  ;;  %v487_v45 = vld [vmem:[%s11858_s30 + $0x178] sm:$0xff]  ;;  %v7865_v35 = vld [vmem:[%s11890_s11 + $0x1a0] sm:$0xff]  ;;  %v9870_v37 = vpack.c.bf16 %v514_v53, %v512_v32  ;;  %v7866_v53 = vld [vmem:[%s11890_s11 + $0x1a8] sm:$0xff] }
  0x7b   : > { %9803 = vmatpush1.bf16.msra.mxu0 %v9802_v41  ;;  %10187 = vmatpush1.bf16.msra.mxu1 %v9802_v41  ;;  %v480_v41 = vld [vmem:[%s11858_s30 + $0x140] sm:$0xff]  ;;  %v9840_v48 = vpack.c.bf16 %v487_v45, %v485_v44  ;;  %v521_v44 = vld [vmem:[%s11858_s30 + $0x288] sm:$0xff]  ;;  %v523_v45 = vld [vmem:[%s11858_s30 + $0x298] sm:$0xff] }
  0x7c   : > { %9805 = vmatprep.subr.bf16.mxu0 %v9804_v51  ;;  %10189 = vmatprep.subr.bf16.mxu1 %v9804_v51  ;;  %v9838_v46 = vpack.c.bf16 %v482_v42, %v480_v41  ;;  %v486_v51 = vld [vmem:[%s11858_s30 + $0x170] sm:$0xff]  ;;  %v8195_v36 = vld [vmem:[%s11890_s11 + $0x380] sm:$0xff]  ;;  %v9876_v54 = vpack.c.bf16 %v523_v45, %v521_v44  ;;  %v7996_v32 = vld [vmem:[%s11858_s30 + $0x678] sm:$0xff] }
  0x7d   : > { %868 = vmatprep.mubr.f32.mxu0 %v11781_v0  ;;  %2292 = vmatprep.mubr.f32.mxu1 %v11781_v0  ;;  %v9842_v55 = vpack.c.bf16 %v486_v51, %v484_v50  ;;  %v516_v41 = vld [vmem:[%s11858_s30 + $0x260] sm:$0xff]  ;;  %v518_v42 = vld [vmem:[%s11858_s30 + $0x270] sm:$0xff]  ;;  %v8000_v44 = vld [vmem:[%s11858_s30 + $0x698] sm:$0xff] }
  0x7e   : > { %869 = vmatmul.mubr.f32.gmra.mrb[4].mxu0 %v684_v58  ;;  %2293 = vmatmul.mubr.f32.gmra.mrb[4].mxu1 %v2108_v59  ;;  %v490_v58 = vld [vmem:[%s11858_s30 + $0x190] sm:$0xff]  ;;  %v493_v59 = vld [vmem:[%s11858_s30 + $0x1a8] sm:$0xff]  ;;  %v9874_v50 = vpack.c.bf16 %v518_v42, %v516_v41 }
  0x7f   : > { %9807 = vmatpush1.bf16.msra.mxu0 %v9806_v57  ;;  %10191 = vmatpush1.bf16.msra.mxu1 %v9806_v57  ;;  %v488_v57 = vld [vmem:[%s11858_s30 + $0x180] sm:$0xff]  ;;  %v7867_v51 = vld [vmem:[%s11890_s11 + $0x1b0] sm:$0xff]  ;;  %v7998_v42 = vld [vmem:[%s11858_s30 + $0x688] sm:$0xff] }
  0x80   : > { %9809 = vmatprep.subr.bf16.mxu0 %v9808_v62  ;;  %10193 = vmatprep.subr.bf16.mxu1 %v9808_v62  ;;  %v9846_v61 = vpack.c.bf16 %v490_v58, %v488_v57  ;;  %v9848_v62 = vpack.c.bf16 %v495_v60, %v493_v59  ;;  %v525_v57 = vld [vmem:[%s11858_s30 + $0x2a8] sm:$0xff]  ;;  %v527_v58 = vld [vmem:[%s11858_s30 + $0x2b8] sm:$0xff]  ;;  %v7995_v41 = vld [vmem:[%s11858_s30 + $0x670] sm:$0xff] }
  0x81   : > { %874 = vmatprep.mubr.f32.mxu0 %v11781_v0  ;;  %2298 = vmatprep.mubr.f32.mxu1 %v11781_v0  ;;  %v9818_v0 = vpack.c.bf16 %v462_v17, %v460_v16  ;;  %v9880_v60 = vpack.c.bf16 %v527_v58, %v525_v57  ;;  %v7999_v57 = vld [vmem:[%s11858_s30 + $0x690] sm:$0xff]  ;;  %v8002_v58 = vld [vmem:[%s11858_s30 + $0x6a8] sm:$0xff] }
  0x82   : > { %875 = vmatmul.mubr.f32.gmra.mrb[6].mxu0 %v690_v5  ;;  %2299 = vmatmul.mubr.f32.gmra.mrb[6].mxu1 %v2114_v6  ;;  %v9852_v5 = vpack.c.bf16 %v499_v3, %v497_v2  ;;  %v496_v6 = vld [vmem:[%s11858_s30 + $0x1c0] sm:$0xff] }
  0x83   : > { %9811 = vmatpush1.bf16.msra.mxu0 %v9810_v4  ;;  %10195 = vmatpush1.bf16.msra.mxu1 %v9810_v4  ;;  %v9850_v4 = vpack.c.bf16 %v494_v1, %v492_v63  ;;  %v529_v63 = vld [vmem:[%s11858_s30 + $0x2c8] sm:$0xff]  ;;  %v531_v1 = vld [vmem:[%s11858_s30 + $0x2d8] sm:$0xff]  ;;  %v12144_v2 = vld [vmem:[#allocation2] sm:$0xff] }
  0x84   : > { %9813 = vmatprep.subr.bf16.mxu0 %v9812_v7  ;;  %10197 = vmatprep.subr.bf16.mxu1 %v9812_v7  ;;  %v498_v7 = vld [vmem:[%s11858_s30 + $0x1d0] sm:$0xff] }
  0x85   : > { %945 = vmatprep.mubr.f32.mxu0 %v7859_v12  ;;  %2369 = vmatprep.mubr.f32.mxu1 %v8189_v13  ;;  %v9854_v10 = vpack.c.bf16 %v498_v7, %v496_v6  ;;  %v500_v12 = vld [vmem:[%s11858_s30 + $0x1e0] sm:$0xff]  ;;  %v502_v13 = vld [vmem:[%s11858_s30 + $0x1f0] sm:$0xff]  ;;  %v533_v7 = vld [vmem:[%s11858_s30 + $0x2e8] sm:$0xff] }
  0x86   : > { %v9858_v16 = vpack.c.bf16 %v502_v13, %v500_v12  ;;  %v530_v6 = vld [vmem:[%s11858_s30 + $0x2d0] sm:$0xff]  ;;  %v7982_v13 = vld [vmem:[%s11858_s30 + $0x608] sm:$0xff] }
  0x87   : > { %9815 = vmatpush1.bf16.msra.mxu0 %v9814_v14  ;;  %10199 = vmatpush1.bf16.msra.mxu1 %v9814_v14  ;;  %v505_v14 = vld [vmem:[%s11858_s30 + $0x208] sm:$0xff]  ;;  %v534_v12 = vld [vmem:[%s11858_s30 + $0x2f0] sm:$0xff] }
  0x88   : > { %9817 = vmatprep.subr.bf16.mxu0 %v9816_v15  ;;  %10201 = vmatprep.subr.bf16.mxu1 %v9816_v15  ;;  %v507_v15 = vld [vmem:[%s11858_s30 + $0x218] sm:$0xff] }
  0x89   : > { %v9860_v17 = vpack.c.bf16 %v507_v15, %v505_v14  ;;  %v7984_v14 = vld [vmem:[%s11858_s30 + $0x618] sm:$0xff] }
  0x8b   : > { %9819 = vmatpush1.bf16.msra.mxu0 %v9818_v0  ;;  %10203 = vmatpush1.bf16.msra.mxu1 %v9818_v0  ;;  %v509_v0 = vld [vmem:[%s11858_s30 + $0x228] sm:$0xff] }
  0x8c   : > { %9821 = vmatprep.subr.bf16.mxu0 %v9820_v20  ;;  %10205 = vmatprep.subr.bf16.mxu1 %v9820_v20  ;;  %v511_v20 = vld [vmem:[%s11858_s30 + $0x238] sm:$0xff] }
  0x8d   : > { %v9864_v24 = vpack.c.bf16 %v511_v20, %v509_v0  ;;  %v7988_v0 = vld [vmem:[%s11858_s30 + $0x638] sm:$0xff] }
  0x8e   : > { %v7860_v20 = vld [vmem:[%s11890_s11 + $0x178] sm:$0xff] }
  0x8f   : > { %9823 = vmatpush1.bf16.msra.mxu0 %v9822_v25  ;;  %10207 = vmatpush1.bf16.msra.mxu1 %v9822_v25  ;;  %v508_v25 = vld [vmem:[%s11858_s30 + $0x220] sm:$0xff] }
  0x90   : > { %9825 = vmatprep.subr.bf16.mxu0 %v9824_v26  ;;  %10209 = vmatprep.subr.bf16.mxu1 %v9824_v26  ;;  %v510_v26 = vld [vmem:[%s11858_s30 + $0x230] sm:$0xff] }
  0x93   : > { %9827 = vmatpush1.bf16.msra.mxu0 %v9826_v30  ;;  %10211 = vmatpush1.bf16.msra.mxu1 %v9826_v30  ;;  %v9866_v30 = vpack.c.bf16 %v510_v26, %v508_v25  ;;  %v7987_v25 = vld [vmem:[%s11858_s30 + $0x630] sm:$0xff]  ;;  %v7990_v26 = vld [vmem:[%s11858_s30 + $0x648] sm:$0xff] }
  0x94   : > { %9829 = vmatprep.subr.bf16.mxu0 %v9828_v31  ;;  %10213 = vmatprep.subr.bf16.mxu1 %v9828_v31  ;;  %v7861_v31 = vld [vmem:[%s11890_s11 + $0x180] sm:$0xff] }
  0x97   : > { %9831 = vmatpush1.bf16.msra.mxu0 %v9830_v33  ;;  %10215 = vmatpush1.bf16.msra.mxu1 %v9830_v33  ;;  %v517_v33 = vld [vmem:[%s11858_s30 + $0x268] sm:$0xff] }
  0x98   : > { %9833 = vmatprep.subr.bf16.mxu0 %v9832_v34  ;;  %10217 = vmatprep.subr.bf16.mxu1 %v9832_v34  ;;  %v519_v34 = vld [vmem:[%s11858_s30 + $0x278] sm:$0xff] }
  0x9b   : > { %9835 = vmatpush1.bf16.msra.mxu0 %v9834_v39  ;;  %10219 = vmatpush1.bf16.msra.mxu1 %v9834_v39  ;;  %v8194_v39 = vld [vmem:[%s11890_s11 + $0x378] sm:$0xff] }
  0x9c   : > { %9837 = vmatprep.subr.bf16.mxu0 %v9836_v40  ;;  %10221 = vmatprep.subr.bf16.mxu1 %v9836_v40  ;;  %v9872_v40 = vpack.c.bf16 %v519_v34, %v517_v33  ;;  %v8196_v33 = vld [vmem:[%s11890_s11 + $0x388] sm:$0xff]  ;;  %v7967_v34 = vld [vmem:[%s11890_s11 + $0x80] sm:$0xfe] }
  0x9d   : > { %v1190_v45 = vrot.slane %v7967_v34, 1  ;;  %v8027_v34 = vld [vmem:[%s11858_s30 + $0x770] sm:$0xff] }
  0x9f   : > { %9839 = vmatpush1.bf16.msra.mxu0 %v9838_v46  ;;  %10223 = vmatpush1.bf16.msra.mxu1 %v9838_v46  ;;  %v7868_v46 = vld [vmem:[%s11890_s11 + $0x1b8] sm:$0xff] }
  0xa0   : > { %9841 = vmatprep.subr.bf16.mxu0 %v9840_v48  ;;  %10225 = vmatprep.subr.bf16.mxu1 %v9840_v48  ;;  %v8198_v48 = vld [vmem:[%s11890_s11 + $0x398] sm:$0xff] }
  0xa3   : > { %9843 = vmatpush1.bf16.msra.mxu0 %v9842_v55  ;;  %10227 = vmatpush1.bf16.msra.mxu1 %v9842_v55  ;;  %v520_v55 = vld [vmem:[%s11858_s30 + $0x280] sm:$0xff] }
  0xa4   : > { %9845 = vmatprep.subr.bf16.mxu0 %v9844_v56  ;;  %10229 = vmatprep.subr.bf16.mxu1 %v9844_v56  ;;  %v522_v56 = vld [vmem:[%s11858_s30 + $0x290] sm:$0xff] }
  0xa5   : > { %v9878_v59 = vpack.c.bf16 %v522_v56, %v520_v55  ;;  %v9908_v55 = vpack.c.bf16 %v8000_v44, %v7998_v42  ;;  %v7997_v56 = vld [vmem:[%s11858_s30 + $0x680] sm:$0xff]  ;;  %v8031_v42 = vld [vmem:[%s11858_s30 + $0x790] sm:$0xff]  ;;  %v8034_v44 = vld [vmem:[%s11858_s30 + $0x7a8] sm:$0xff] }
  0xa7   : > { %9847 = vmatpush1.bf16.msra.mxu0 %v9846_v61  ;;  %10231 = vmatpush1.bf16.msra.mxu1 %v9846_v61  ;;  %v524_v61 = vld [vmem:[%s11858_s30 + $0x2a0] sm:$0xff] }
  0xa8   : > { %9849 = vmatprep.subr.bf16.mxu0 %v9848_v62  ;;  %10233 = vmatprep.subr.bf16.mxu1 %v9848_v62  ;;  %v526_v62 = vld [vmem:[%s11858_s30 + $0x2b0] sm:$0xff] }
  0xa9   : > { %v9882_v3 = vpack.c.bf16 %v526_v62, %v524_v61  ;;  %v9910_v62 = vpack.c.bf16 %v7999_v57, %v7997_v56  ;;  %v8040_v56 = vld [vmem:[%s11858_s30 + $0x7d8] sm:$0xff] }
  0xab   : > { %9851 = vmatpush1.bf16.msra.mxu0 %v9850_v4  ;;  %10235 = vmatpush1.bf16.msra.mxu1 %v9850_v4  ;;  %v9884_v4 = vpack.c.bf16 %v531_v1, %v529_v63  ;;  %v8001_v1 = vld [vmem:[%s11858_s30 + $0x6a0] sm:$0xff] }
  0xac   : > { %9853 = vmatprep.subr.bf16.mxu0 %v9852_v5  ;;  %10237 = vmatprep.subr.bf16.mxu1 %v9852_v5  ;;  %v528_v5 = vld [vmem:[%s11858_s30 + $0x2c0] sm:$0xff] }
  0xad   : > { %v9886_v9 = vpack.c.bf16 %v530_v6, %v528_v5  ;;  %v8008_v5 = vld [vmem:[%s11858_s30 + $0x6d8] sm:$0xff] }
  0xaf   : > { %9855 = vmatpush1.bf16.msra.mxu0 %v9854_v10  ;;  %10239 = vmatpush1.bf16.msra.mxu1 %v9854_v10  ;;  %v9888_v10 = vpack.c.bf16 %v535_v8, %v533_v7  ;;  %v8005_v8 = vld [vmem:[%s11858_s30 + $0x6c0] sm:$0xff] }
  0xb0   : > { %9857 = vmatprep.subr.bf16.mxu0 %v9856_v11  ;;  %10241 = vmatprep.subr.bf16.mxu1 %v9856_v11  ;;  %v532_v11 = vld [vmem:[%s11858_s30 + $0x2e0] sm:$0xff] }
  0xb1   : > { %v9890_v15 = vpack.c.bf16 %v534_v12, %v532_v11  ;;  %v8012_v11 = vld [vmem:[%s11858_s30 + $0x6f8] sm:$0xff] }
  0xb3   : > { %9859 = vmatpush1.bf16.msra.mxu0 %v9858_v16  ;;  %10243 = vmatpush1.bf16.msra.mxu1 %v9858_v16  ;;  %v9892_v16 = vpack.c.bf16 %v7984_v14, %v7982_v13  ;;  %v8009_v14 = vld [vmem:[%s11858_s30 + $0x6e0] sm:$0xff] }
  0xb4   : > { %9861 = vmatprep.subr.bf16.mxu0 %v9860_v17  ;;  %10245 = vmatprep.subr.bf16.mxu1 %v9860_v17  ;;  %v7981_v17 = vld [vmem:[%s11858_s30 + $0x600] sm:$0xff] }
  0xb6   : > { %946 = vmatmul.mubr.f32.vlgmr.msra.gmra.mrb[0].mxu0 %v7858_v21  ;;  %2370 = vmatmul.mubr.f32.vlgmr.msra.gmra.mrb[0].mxu1 %v8188_v23  ;;  %v9894_v21 = vpack.c.bf16 %v7983_v18, %v7981_v17  ;;  %v9896_v23 = vpack.c.bf16 %v7988_v0, %v7986_v19  ;;  %v8016_v17 = vld [vmem:[%s11858_s30 + $0x718] sm:$0xff]  ;;  %v8013_v0 = vld [vmem:[%s11858_s30 + $0x700] sm:$0xff] }
  0xb7   : > { %9863 = vmatpush1.bf16.msra.mxu0 %v9862_v22  ;;  %10247 = vmatpush1.bf16.msra.mxu1 %v9862_v22  ;;  %v8190_v22 = vld [vmem:[%s11890_s11 + $0x358] sm:$0xff] }
  0xb8   : > { %9865 = vmatprep.subr.bf16.mxu0 %v9864_v24  ;;  %10249 = vmatprep.subr.bf16.mxu1 %v9864_v24  ;;  %v7985_v24 = vld [vmem:[%s11858_s30 + $0x620] sm:$0xff] }
  0xb9   : > { %951 = vmatprep.mubr.f32.mxu0 %v7862_v29  ;;  %2375 = vmatprep.mubr.f32.mxu1 %v8192_v43  ;;  %v9898_v28 = vpack.c.bf16 %v7987_v25, %v7985_v24  ;;  %v7863_v29 = vld [vmem:[%s11890_s11 + $0x190] sm:$0xff]  ;;  %v8017_v25 = vld [vmem:[%s11858_s30 + $0x720] sm:$0xff] }
  0xba   : > { %952 = vmatmul.mubr.f32.gmra.mrb[2].mxu0 %v7861_v31  ;;  %2376 = vmatmul.mubr.f32.gmra.mrb[2].mxu1 %v8191_v47  ;;  %v8193_v43 = vld [vmem:[%s11890_s11 + $0x370] sm:$0xff]  ;;  %v7989_v31 = vld [vmem:[%s11858_s30 + $0x640] sm:$0xff] }
  0xbb   : > { %9867 = vmatpush1.bf16.msra.mxu0 %v9866_v30  ;;  %10251 = vmatpush1.bf16.msra.mxu1 %v9866_v30  ;;  %v9900_v30 = vpack.c.bf16 %v7992_v27, %v7990_v26  ;;  %v7991_v47 = vld [vmem:[%s11858_s30 + $0x650] sm:$0xff]  ;;  %v8022_v27 = vld [vmem:[%s11858_s30 + $0x748] sm:$0xff] }
  0xbc   : > { %9869 = vmatprep.subr.bf16.mxu0 %v9868_v49  ;;  %10253 = vmatprep.subr.bf16.mxu1 %v9868_v49  ;;  %v7994_v49 = vld [vmem:[%s11858_s30 + $0x668] sm:$0xff]  ;;  %v8019_v26 = vld [vmem:[%s11858_s30 + $0x730] sm:$0xff] }
  0xbd   : > { %957 = vmatprep.mubr.f32.mxu0 %v7865_v35  ;;  %2381 = vmatprep.mubr.f32.mxu1 %v8195_v36  ;;  %v9902_v35 = vpack.c.bf16 %v7991_v47, %v7989_v31  ;;  %v12178_v36 = vld [vmem:[%s11890_s11 + $0x98] sm:$0xff]  ;;  %v8023_v31 = vld [vmem:[%s11858_s30 + $0x750] sm:$0xff]  ;;  %v8026_v47 = vld [vmem:[%s11858_s30 + $0x768] sm:$0xff] }
  0xbe   : > { %958 = vmatmul.mubr.f32.gmra.mrb[4].mxu0 %v7864_v38  ;;  %2382 = vmatmul.mubr.f32.gmra.mrb[4].mxu1 %v8194_v39  ;;  %v12182_v38 = vld [vmem:[%s11890_s11 + $0x278] sm:$0xff]  ;;  %v9904_v39 = vpack.c.bf16 %v7996_v32, %v7994_v49 }
  0xbf   : > { %9871 = vmatpush1.bf16.msra.mxu0 %v9870_v37  ;;  %10255 = vmatpush1.bf16.msra.mxu1 %v9870_v37  ;;  %v8312_v37 = vld [vmem:[%s11890_s11 + $0x260] sm:$0xfe]  ;;  %v8028_v49 = vld [vmem:[%s11858_s30 + $0x778] sm:$0xff] }
  0xc0   : > { %9873 = vmatprep.subr.bf16.mxu0 %v9872_v40  ;;  %10257 = vmatprep.subr.bf16.mxu1 %v9872_v40  ;;  %v7993_v40 = vld [vmem:[%s11858_s30 + $0x660] sm:$0xff] }
  0xc1   : > { %963 = vmatprep.mubr.f32.mxu0 %v7868_v46  ;;  %2387 = vmatprep.mubr.f32.mxu1 %v8198_v48  ;;  %v1191_v46 = vrot.slane %v12178_v36, 1  ;;  %v2613_v48 = vrot.slane %v8312_v37, 1  ;;  %v8032_v37 = vld [vmem:[%s11858_s30 + $0x798] sm:$0xff] }
  0xc2   : > { %964 = vmatmul.mubr.f32.gmra.mrb[6].mxu0 %v7867_v51  ;;  %2388 = vmatmul.mubr.f32.gmra.mrb[6].mxu1 %v8197_v52  ;;  %v9906_v51 = vpack.c.bf16 %v7995_v41, %v7993_v40  ;;  %v7869_v52 = vld [vmem:[%s11890_s11 + $0x1c0] sm:$0xff] }
  0xc3   : > { %9875 = vmatpush1.bf16.msra.mxu0 %v9874_v50  ;;  %10259 = vmatpush1.bf16.msra.mxu1 %v9874_v50  ;;  %v2614_v50 = vrot.slane %v12182_v38, 1  ;;  %v8029_v41 = vld [vmem:[%s11858_s30 + $0x780] sm:$0xff] }
  0xc4   : > { %9877 = vmatprep.subr.bf16.mxu0 %v9876_v54  ;;  %10261 = vmatprep.subr.bf16.mxu1 %v9876_v54  ;;  %v8199_v54 = vld [vmem:[%s11890_s11 + $0x3a0] sm:$0xff] }
  0xc5   : > { %1034 = vmatprep.mubr.f32.mxu0 %v12144_v2  ;;  %2458 = vmatprep.mubr.f32.mxu1 %v12144_v2  ;;  %v2615_v61 = vsel %vm663_vm0, %v2613_v48, %v2614_v50  ;;  %v9942_v48 = vpack.c.bf16 %v8031_v42, %v8029_v41 }
  0xc7   : > { %9879 = vmatpush1.bf16.msra.mxu0 %v9878_v59  ;;  %10263 = vmatpush1.bf16.msra.mxu1 %v9878_v59  ;;  %v8004_v59 = vld [vmem:[%s11858_s30 + $0x6b8] sm:$0xff] }
  0xc8   : > { %9881 = vmatprep.subr.bf16.mxu0 %v9880_v60  ;;  %10265 = vmatprep.subr.bf16.mxu1 %v9880_v60  ;;  %v1192_v60 = vsel %vm663_vm0, %v1190_v45, %v1191_v46  ;;  %v9912_v63 = vpack.c.bf16 %v8004_v59, %v8002_v58  ;;  %v8036_v45 = vld [vmem:[%s11858_s30 + $0x7b8] sm:$0xff]  ;;  %v8037_v59 = vld [vmem:[%s11858_s30 + $0x7c0] sm:$0xff] }
  0xcb   : > { %9883 = vmatpush1.bf16.msra.mxu0 %v9882_v3  ;;  %10267 = vmatpush1.bf16.msra.mxu1 %v9882_v3  ;;  %v8003_v3 = vld [vmem:[%s11858_s30 + $0x6b0] sm:$0xff] }
  0xcc   : > { %9885 = vmatprep.subr.bf16.mxu0 %v9884_v4  ;;  %10269 = vmatprep.subr.bf16.mxu1 %v9884_v4  ;;  %v8006_v4 = vld [vmem:[%s11858_s30 + $0x6c8] sm:$0xff]  ;;  %v9914_v6 = vpack.c.bf16 %v8003_v3, %v8001_v1  ;;  %v8041_v1 = vld [vmem:[%s11858_s30 + $0x7e0] sm:$0xff]  ;;  %v8043_v3 = vld [vmem:[%s11858_s30 + $0x7f0] sm:$0xff] }
  0xcd   : > { %v9916_v7 = vpack.c.bf16 %v8008_v5, %v8006_v4  ;;  %v7966_v4 = vld [vmem:[%s11890_s11 + $0x78] sm:$0xfe] }
  0xcf   : > { %9887 = vmatpush1.bf16.msra.mxu0 %v9886_v9  ;;  %10271 = vmatpush1.bf16.msra.mxu1 %v9886_v9  ;;  %v8007_v9 = vld [vmem:[%s11858_s30 + $0x6d0] sm:$0xff] }
  0xd0   : > { %9889 = vmatprep.subr.bf16.mxu0 %v9888_v10  ;;  %10273 = vmatprep.subr.bf16.mxu1 %v9888_v10  ;;  %v8010_v10 = vld [vmem:[%s11858_s30 + $0x6e8] sm:$0xff]  ;;  %v9918_v12 = vpack.c.bf16 %v8007_v9, %v8005_v8  ;;  %v8314_v8 = vld [vmem:[%s11890_s11 + $0x270] sm:$0xff] }
  0xd1   : > { %v9920_v13 = vpack.c.bf16 %v8012_v11, %v8010_v10  ;;  %v8046_v9 = vld [vmem:[%s11858_s30 + $0x808] sm:$0xff]  ;;  %v8048_v10 = vld [vmem:[%s11858_s30 + $0x818] sm:$0xff]  ;;  %v1187_v11 = vrot.slane %v7966_v4, 1 }
  0xd3   : > { %9891 = vmatpush1.bf16.msra.mxu0 %v9890_v15  ;;  %10275 = vmatpush1.bf16.msra.mxu1 %v9890_v15  ;;  %v8011_v15 = vld [vmem:[%s11858_s30 + $0x6f0] sm:$0xff] }
  0xd4   : > { %9893 = vmatprep.subr.bf16.mxu0 %v9892_v16  ;;  %10277 = vmatprep.subr.bf16.mxu1 %v9892_v16  ;;  %v8014_v16 = vld [vmem:[%s11858_s30 + $0x708] sm:$0xff]  ;;  %v9922_v18 = vpack.c.bf16 %v8011_v15, %v8009_v14  ;;  %v8047_v15 = vld [vmem:[%s11858_s30 + $0x810] sm:$0xff] }
  0xd5   : > { %v9924_v19 = vpack.c.bf16 %v8016_v17, %v8014_v16  ;;  %v2611_v17 = vrot.slane %v8314_v8, 1  ;;  %v8062_v8 = vld [vmem:[%s11858_s30 + $0x888] sm:$0xff] }
  0xd6   : > { %1035 = vmatmul.mubr.f32.vlgmr.msra.gmra.mrb[0].mxu0 %v7860_v20  ;;  %2459 = vmatmul.mubr.f32.vlgmr.msra.gmra.mrb[0].mxu1 %v8190_v22  ;;  %v8015_v20 = vld [vmem:[%s11858_s30 + $0x710] sm:$0xff]  ;;  %v8020_v22 = vld [vmem:[%s11858_s30 + $0x738] sm:$0xff] }
  0xd7   : > { %9895 = vmatpush1.bf16.msra.mxu0 %v9894_v21  ;;  %10279 = vmatpush1.bf16.msra.mxu1 %v9894_v21  ;;  %v8018_v21 = vld [vmem:[%s11858_s30 + $0x728] sm:$0xff] }
  0xd8   : > { %9897 = vmatprep.subr.bf16.mxu0 %v9896_v23  ;;  %10281 = vmatprep.subr.bf16.mxu1 %v9896_v23  ;;  %v9926_v23 = vpack.c.bf16 %v8015_v20, %v8013_v0  ;;  %v9928_v24 = vpack.c.bf16 %v8020_v22, %v8018_v21  ;;  %v9956_v0 = vpack.c.bf16 %v8048_v10, %v8046_v9  ;;  %v7972_v20 = vld [vmem:[%s11890_s11 + $0xa8] sm:$0xff]  ;;  %v8064_v9 = vld [vmem:[%s11858_s30 + $0x898] sm:$0xff] }
  0xd9   : > { %1040 = vmatprep.mubr.f32.mxu0 %v12144_v2  ;;  %2464 = vmatprep.mubr.f32.mxu1 %v12144_v2  ;;  %v8317_v21 = vld [vmem:[%s11890_s11 + $0x288] sm:$0xff] }
  0xda   : > { %1041 = vmatmul.mubr.f32.gmra.mrb[2].mxu0 %v7863_v29  ;;  %2465 = vmatmul.mubr.f32.gmra.mrb[2].mxu1 %v8193_v43  ;;  %v9930_v29 = vpack.c.bf16 %v8019_v26, %v8017_v25  ;;  %v8050_v22 = vld [vmem:[%s11858_s30 + $0x828] sm:$0xff]  ;;  %v8049_v25 = vld [vmem:[%s11858_s30 + $0x820] sm:$0xff]  ;;  %v8051_v26 = vld [vmem:[%s11858_s30 + $0x830] sm:$0xff] }
  0xdb   : > { %9899 = vmatpush1.bf16.msra.mxu0 %v9898_v28  ;;  %10283 = vmatpush1.bf16.msra.mxu1 %v9898_v28  ;;  %v8024_v28 = vld [vmem:[%s11858_s30 + $0x758] sm:$0xff] }
  0xdc   : > { %9901 = vmatprep.subr.bf16.mxu0 %v9900_v30  ;;  %10285 = vmatprep.subr.bf16.mxu1 %v9900_v30  ;;  %v9932_v43 = vpack.c.bf16 %v8024_v28, %v8022_v27  ;;  %v8021_v30 = vld [vmem:[%s11858_s30 + $0x740] sm:$0xff] }
  0xdd   : > { %1046 = vmatprep.mubr.f32.mxu0 %v12144_v2  ;;  %2470 = vmatprep.mubr.f32.mxu1 %v12144_v2  ;;  %v9934_v32 = vpack.c.bf16 %v8023_v31, %v8021_v30  ;;  %v1196_v30 = vrot.slane %v7972_v20, 1  ;;  %v2619_v31 = vrot.slane %v8317_v21, 1  ;;  %v8065_v21 = vld [vmem:[%s11858_s30 + $0x8a0] sm:$0xff] }
  0xde   : > { %1047 = vmatmul.mubr.f32.gmra.mrb[4].mxu0 %v7866_v53  ;;  %2471 = vmatmul.mubr.f32.gmra.mrb[4].mxu1 %v8196_v33  ;;  %v9936_v53 = vpack.c.bf16 %v8028_v49, %v8026_v47  ;;  %v8025_v33 = vld [vmem:[%s11858_s30 + $0x760] sm:$0xff]  ;;  %v7976_v47 = vld [vmem:[%s11890_s11 + $0xc8] sm:$0xff] }
  0xdf   : > { %9903 = vmatpush1.bf16.msra.mxu0 %v9902_v35  ;;  %10287 = vmatpush1.bf16.msra.mxu1 %v9902_v35  ;;  %v8030_v35 = vld [vmem:[%s11858_s30 + $0x788] sm:$0xff] }
  0xe0   : > { %9905 = vmatprep.subr.bf16.mxu0 %v9904_v39  ;;  %10289 = vmatprep.subr.bf16.mxu1 %v9904_v39  ;;  %v9938_v39 = vpack.c.bf16 %v8027_v34, %v8025_v33  ;;  %v9940_v40 = vpack.c.bf16 %v8032_v37, %v8030_v35  ;;  %v8321_v49 = vld [vmem:[%s11890_s11 + $0x2a8] sm:$0xff]  ;;  %v8320_v33 = vld [vmem:[%s11890_s11 + $0x2a0] sm:$0xff]  ;;  %v9962_v34 = vpack.c.bf16 %v8051_v26, %v8049_v25  ;;  %v8056_v37 = vld [vmem:[%s11858_s30 + $0x858] sm:$0xff] }
  0xe1   : > { %1052 = vmatprep.mubr.f32.mxu0 %v12144_v2  ;;  %2476 = vmatprep.mubr.f32.mxu1 %v12144_v2  ;;  %v8054_v35 = vld [vmem:[%s11858_s30 + $0x848] sm:$0xff]  ;;  %v2625_v36 = vrot.slane %v8320_v33, 1 }
  0xe2   : > { %1053 = vmatmul.mubr.f32.gmra.mrb[6].mxu0 %v7869_v52  ;;  %2477 = vmatmul.mubr.f32.gmra.mrb[6].mxu1 %v8199_v54  ;;  %v8033_v52 = vld [vmem:[%s11858_s30 + $0x7a0] sm:$0xff]  ;;  %v8035_v54 = vld [vmem:[%s11858_s30 + $0x7b0] sm:$0xff]  ;;  %v9964_v38 = vpack.c.bf16 %v8056_v37, %v8054_v35  ;;  %v8313_v33 = vld [vmem:[%s11890_s11 + $0x268] sm:$0xfe] }
  0xe3   : > { %9907 = vmatpush1.bf16.msra.mxu0 %v9906_v51  ;;  %10291 = vmatpush1.bf16.msra.mxu1 %v9906_v51  ;;  %v9944_v51 = vpack.c.bf16 %v8036_v45, %v8034_v44  ;;  %v9946_v57 = vpack.c.bf16 %v8035_v54, %v8033_v52  ;;  %v1204_v44 = vrot.slane %v7976_v47, 1  ;;  %v2627_v45 = vrot.slane %v8321_v49, 1  ;;  %v7979_v54 = vld [vmem:[%s11890_s11 + $0xe0] sm:$0x1]  ;;  %v8075_v47 = vld [vmem:[%s11858_s30 + $0x8f0] sm:$0xff]  ;;  %v8093_v35 = vld [vmem:[%s11858_s30 + $0x908] sm:$0xff] }
  0xe4   : > { %9909 = vmatprep.subr.bf16.mxu0 %v9908_v55  ;;  %10293 = vmatprep.subr.bf16.mxu1 %v9908_v55  ;;  %v8038_v55 = vld [vmem:[%s11858_s30 + $0x7c8] sm:$0xff]  ;;  %v8095_v37 = vld [vmem:[%s11858_s30 + $0x918] sm:$0xff] }
  0xe5   : > { %1290 = vmatprep.mubr.f32.mxu0 %v1192_v60  ;;  %2713 = vmatprep.mubr.f32.mxu1 %v2615_v61  ;;  %v9948_v58 = vpack.c.bf16 %v8040_v56, %v8038_v55  ;;  %v8039_v60 = vld [vmem:[%s11858_s30 + $0x7d0] sm:$0xff]  ;;  %v8042_v61 = vld [vmem:[%s11858_s30 + $0x7e8] sm:$0xff]  ;;  %v8324_v55 = vld [vmem:[%s11890_s11 + $0x2c0] sm:$0x1] }
  0xe6   : > { %v8323_v56 = vld [vmem:[%s11890_s11 + $0x2b8] sm:$0x1]  ;;  %v7968_v49 = vld [vmem:[%s11890_s11 + $0x88] sm:$0xfe] }
  0xe7   : > { %9911 = vmatpush1.bf16.msra.mxu0 %v9910_v62  ;;  %10295 = vmatpush1.bf16.msra.mxu1 %v9910_v62  ;;  %v8044_v62 = vld [vmem:[%s11858_s30 + $0x7f8] sm:$0xff]  ;;  %v2631_v4 = vrot.slane %v8323_v56, 1 }
  0xe8   : > { %9913 = vmatprep.subr.bf16.mxu0 %v9912_v63  ;;  %10297 = vmatprep.subr.bf16.mxu1 %v9912_v63  ;;  %v9950_v63 = vpack.c.bf16 %v8039_v60, %v8037_v59  ;;  %v9952_v5 = vpack.c.bf16 %v8044_v62, %v8042_v61  ;;  %v1210_v61 = vrot.slane %v7979_v54, 1  ;;  %v2633_v62 = vrot.slane %v8324_v55, 1  ;;  %v8097_v54 = vld [vmem:[%s11858_s30 + $0x928] sm:$0xff]  ;;  %v8099_v55 = vld [vmem:[%s11858_s30 + $0x938] sm:$0xff] }
  0xea   : > { %v1211_v10 = vsel %vm663_vm0, %v1204_v44, %v1210_v61  ;;  %v7977_v61 = vld [vmem:[%s11890_s11 + $0xd0] sm:$0xff] }
  0xeb   : > { %9915 = vmatpush1.bf16.msra.mxu0 %v9914_v6  ;;  %10299 = vmatpush1.bf16.msra.mxu1 %v9914_v6  ;;  %v7969_v6 = vld [vmem:[%s11890_s11 + $0x90] sm:$0xff] }
  0xec   : > { %9917 = vmatprep.subr.bf16.mxu0 %v9916_v7  ;;  %10301 = vmatprep.subr.bf16.mxu1 %v9916_v7  ;;  %v8311_v7 = vld [vmem:[%s11890_s11 + $0x258] sm:$0xfe]  ;;  %v1188_v14 = vrot.slane %v7969_v6, 1  ;;  %v8057_v6 = vld [vmem:[%s11858_s30 + $0x860] sm:$0xff] }
  0xed   : > { %v2610_v16 = vrot.slane %v8311_v7, 1  ;;  %v8059_v7 = vld [vmem:[%s11858_s30 + $0x870] sm:$0xff] }
  0xef   : > { %9919 = vmatpush1.bf16.msra.mxu0 %v9918_v12  ;;  %10303 = vmatpush1.bf16.msra.mxu1 %v9918_v12  ;;  %v8045_v12 = vld [vmem:[%s11858_s30 + $0x800] sm:$0xff] }
  0xf0   : > { %9921 = vmatprep.subr.bf16.mxu0 %v9920_v13  ;;  %10305 = vmatprep.subr.bf16.mxu1 %v9920_v13  ;;  %v9954_v13 = vpack.c.bf16 %v8043_v3, %v8041_v1  ;;  %v2626_v1 = vsel %vm663_vm0, %v2619_v31, %v2625_v36 }
  0xf3   : > { %9923 = vmatpush1.bf16.msra.mxu0 %v9922_v18  ;;  %10307 = vmatpush1.bf16.msra.mxu1 %v9922_v18  ;;  %v7973_v18 = vld [vmem:[%s11890_s11 + $0xb0] sm:$0xff] }
  0xf4   : > { %9925 = vmatprep.subr.bf16.mxu0 %v9924_v19  ;;  %10309 = vmatprep.subr.bf16.mxu1 %v9924_v19  ;;  %v8318_v19 = vld [vmem:[%s11890_s11 + $0x290] sm:$0xff]  ;;  %v1198_v27 = vrot.slane %v7973_v18, 1  ;;  %v8066_v18 = vld [vmem:[%s11858_s30 + $0x8a8] sm:$0xff] }
  0xf5   : > { %v2621_v28 = vrot.slane %v8318_v19, 1  ;;  %v8068_v19 = vld [vmem:[%s11858_s30 + $0x8b8] sm:$0xff] }
  0xf6   : > { %v1199_v41 = vsel %vm663_vm0, %v1191_v46, %v1198_v27  ;;  %v7978_v46 = vld [vmem:[%s11890_s11 + $0xd8] sm:$0x1]  ;;  %v1205_v59 = vsel %vm663_vm0, %v1198_v27, %v1204_v44  ;;  %v9976_v20 = vpack.c.bf16 %v8068_v19, %v8066_v18  ;;  %v8069_v27 = vld [vmem:[%s11858_s30 + $0x8c0] sm:$0xff]  ;;  %v8094_v44 = vld [vmem:[%s11858_s30 + $0x910] sm:$0xff] }
  0xf7   : > { %9927 = vmatpush1.bf16.msra.mxu0 %v9926_v23  ;;  %10311 = vmatpush1.bf16.msra.mxu1 %v9926_v23  ;;  %v8052_v23 = vld [vmem:[%s11858_s30 + $0x838] sm:$0xff]  ;;  %v2622_v42 = vsel %vm663_vm0, %v2614_v50, %v2621_v28  ;;  %v2628_v60 = vsel %vm663_vm0, %v2621_v28, %v2627_v45  ;;  %v1208_v3 = vrot.slane %v7978_v46, 1  ;;  %v8071_v28 = vld [vmem:[%s11858_s30 + $0x8d0] sm:$0xff] }
  0xf8   : > { %9929 = vmatprep.subr.bf16.mxu0 %v9928_v24  ;;  %10313 = vmatprep.subr.bf16.mxu1 %v9928_v24  ;;  %v9958_v24 = vpack.c.bf16 %v8047_v15, %v8045_v12  ;;  %v9970_v12 = vpack.c.bf16 %v8059_v7, %v8057_v6  ;;  %v9972_v15 = vpack.c.bf16 %v8064_v9, %v8062_v8  ;;  %v1206_v8 = vrot.slane %v7977_v61, 1  ;;  %v8124_v61 = vld [vmem:[%s11858_s30 + $0xa00] sm:$0xff] }
  0xfb   : > { %9931 = vmatpush1.bf16.msra.mxu0 %v9930_v29  ;;  %10315 = vmatpush1.bf16.msra.mxu1 %v9930_v29  ;;  %v1189_v29 = vsel %vm663_vm0, %v1187_v11, %v1188_v14  ;;  %v2634_v11 = vsel %vm663_vm0, %v2627_v45, %v2633_v62  ;;  %v2616_v45 = vrot.slane %v8313_v33, 1  ;;  %v8322_v62 = vld [vmem:[%s11890_s11 + $0x2b0] sm:$0xff] }
  0xfc   : > { %9933 = vmatprep.subr.bf16.mxu0 %v9932_v43  ;;  %10317 = vmatprep.subr.bf16.mxu1 %v9932_v43  ;;  %v2612_v43 = vsel %vm663_vm0, %v2610_v16, %v2611_v17  ;;  %v8061_v16 = vld [vmem:[%s11858_s30 + $0x880] sm:$0xff]  ;;  %v2629_v9 = vrot.slane %v8322_v62, 1  ;;  %v8110_v33 = vld [vmem:[%s11858_s30 + $0x990] sm:$0xff] }
  0xfd   : > { %v8126_v62 = vld [vmem:[%s11858_s30 + $0xa10] sm:$0xff] }
  0xff   : > { %9935 = vmatpush1.bf16.msra.mxu0 %v9934_v32  ;;  %10319 = vmatpush1.bf16.msra.mxu1 %v9934_v32  ;;  %v9960_v32 = vpack.c.bf16 %v8052_v23, %v8050_v22  ;;  %v8067_v22 = vld [vmem:[%s11858_s30 + $0x8b0] sm:$0xff]  ;;  %v8070_v23 = vld [vmem:[%s11858_s30 + $0x8c8] sm:$0xff] }
 0x100   : > { %9937 = vmatprep.subr.bf16.mxu0 %v9936_v53  ;;  %10321 = vmatprep.subr.bf16.mxu1 %v9936_v53  ;;  %v7975_v53 = vld [vmem:[%s11890_s11 + $0xc0] sm:$0xff]  ;;  %v9978_v25 = vpack.c.bf16 %v8067_v22, %v8065_v21  ;;  %v8423_v21 = vld [vmem:[%s11890_s11 + $0x2d8] sm:$0xfe]  ;;  %v8426_v22 = vld [vmem:[%s11890_s11 + $0x2f0] sm:$0xff] }
 0x101   : > { %v1202_v52 = vrot.slane %v7975_v53, 1  ;;  %v7971_v53 = vld [vmem:[%s11890_s11 + $0xa0] sm:$0xff] }
 0x103   : > { %9939 = vmatpush1.bf16.msra.mxu0 %v9938_v39  ;;  %10323 = vmatpush1.bf16.msra.mxu1 %v9938_v39  ;;  %v8053_v39 = vld [vmem:[%s11858_s30 + $0x840] sm:$0xff] }
 0x104   : > { %9941 = vmatprep.subr.bf16.mxu0 %v9940_v40  ;;  %10325 = vmatprep.subr.bf16.mxu1 %v9940_v40  ;;  %v8055_v40 = vld [vmem:[%s11858_s30 + $0x850] sm:$0xff] }
 0x105   : > { %v9966_v50 = vpack.c.bf16 %v8055_v40, %v8053_v39  ;;  %v1193_v40 = vrot.slane %v7968_v49, 1 }
 0x107   : > { %9943 = vmatpush1.bf16.msra.mxu0 %v9942_v48  ;;  %10327 = vmatpush1.bf16.msra.mxu1 %v9942_v48  ;;  %v1197_v48 = vsel %vm663_vm0, %v1188_v14, %v1196_v30  ;;  %v2632_v14 = vsel %vm663_vm0, %v2625_v36, %v2631_v4  ;;  %v8319_v36 = vld [vmem:[%s11890_s11 + $0x298] sm:$0xff]  ;;  %v8100_v4 = vld [vmem:[%s11858_s30 + $0x940] sm:$0xff] }
 0x108   : > { %9945 = vmatprep.subr.bf16.mxu0 %v9944_v51  ;;  %10329 = vmatprep.subr.bf16.mxu1 %v9944_v51  ;;  %v2620_v51 = vsel %vm663_vm0, %v2611_v17, %v2619_v31  ;;  %v8063_v17 = vld [vmem:[%s11858_s30 + $0x890] sm:$0xff]  ;;  %v8073_v31 = vld [vmem:[%s11858_s30 + $0x8e0] sm:$0xff] }
 0x109   : > { %v9986_v39 = vpack.c.bf16 %v8075_v47, %v8073_v31 }
 0x10b   : > { %9947 = vmatpush1.bf16.msra.mxu0 %v9946_v57  ;;  %10331 = vmatpush1.bf16.msra.mxu1 %v9946_v57  ;;  %v8058_v57 = vld [vmem:[%s11858_s30 + $0x868] sm:$0xff] }
 0x10c   : > { %9949 = vmatprep.subr.bf16.mxu0 %v9948_v58  ;;  %10333 = vmatprep.subr.bf16.mxu1 %v9948_v58  ;;  %v8060_v58 = vld [vmem:[%s11858_s30 + $0x878] sm:$0xff] }
 0x10f   : > { %9951 = vmatpush1.bf16.msra.mxu0 %v9950_v63  ;;  %10335 = vmatpush1.bf16.msra.mxu1 %v9950_v63  ;;  %v1203_v63 = vsel %vm663_vm0, %v1196_v30, %v1202_v52  ;;  %v9982_v30 = vpack.c.bf16 %v8071_v28, %v8069_v27  ;;  %v8111_v27 = vld [vmem:[%s11858_s30 + $0x998] sm:$0xff] }
 0x110   : > { %9953 = vmatprep.subr.bf16.mxu0 %v9952_v5  ;;  %10337 = vmatprep.subr.bf16.mxu1 %v9952_v5  ;;  %v9968_v5 = vpack.c.bf16 %v8060_v58, %v8058_v57  ;;  %v8098_v57 = vld [vmem:[%s11858_s30 + $0x930] sm:$0xff] }
 0x113   : > { %9955 = vmatpush1.bf16.msra.mxu0 %v9954_v13  ;;  %10339 = vmatpush1.bf16.msra.mxu1 %v9954_v13  ;;  %v1209_v13 = vsel %vm663_vm0, %v1202_v52, %v1208_v3  ;;  %v7974_v52 = vld [vmem:[%s11890_s11 + $0xb8] sm:$0xff] }
 0x114   : > { %9957 = vmatprep.subr.bf16.mxu0 %v9956_v0  ;;  %10341 = vmatprep.subr.bf16.mxu1 %v9956_v0  ;;  %v9974_v0 = vpack.c.bf16 %v8063_v17, %v8061_v16  ;;  %v1200_v58 = vrot.slane %v7974_v52, 1  ;;  %v8078_v16 = vld [vmem:[%s11890_s11 + $0xf8] sm:$0xfe]  ;;  %v8116_v52 = vld [vmem:[%s11858_s30 + $0x9c0] sm:$0xff] }
 0x115   : > { %v1543_v28 = vrot.slane %v8078_v16, 1 }
 0x116   : > { %1291 = vmatmul.mubr.f32.vlgmr.msra.gmra.mrb[0].mxu0 %v1189_v29  ;;  %2714 = vmatmul.mubr.f32.vlgmr.msra.gmra.mrb[0].mxu1 %v2612_v43  ;;  %v8074_v29 = vld [vmem:[%s11858_s30 + $0x8e8] sm:$0xff]  ;;  %v8076_v43 = vld [vmem:[%s11858_s30 + $0x8f8] sm:$0xff]  ;;  %v1207_v17 = vsel %vm663_vm0, %v1200_v58, %v1206_v8 }
 0x117   : > { %9959 = vmatpush1.bf16.msra.mxu0 %v9958_v24  ;;  %10343 = vmatpush1.bf16.msra.mxu1 %v9958_v24  ;;  %v8072_v24 = vld [vmem:[%s11858_s30 + $0x8d8] sm:$0xff] }
 0x118   : > { %9961 = vmatprep.subr.bf16.mxu0 %v9960_v32  ;;  %10345 = vmatprep.subr.bf16.mxu1 %v9960_v32  ;;  %v9980_v26 = vpack.c.bf16 %v8072_v24, %v8070_v23  ;;  %v9984_v32 = vpack.c.bf16 %v8076_v43, %v8074_v29  ;;  %v8104_v24 = vld [vmem:[%s11858_s30 + $0x960] sm:$0xff]  ;;  %v2965_v43 = vrot.slane %v8423_v21, 1 }
 0x119   : > { %1296 = vmatprep.mubr.f32.mxu0 %v1199_v41  ;;  %2719 = vmatprep.mubr.f32.mxu1 %v2622_v42  ;;  %v1194_v41 = vrot.slane %v7971_v53, 1  ;;  %v8092_v42 = vld [vmem:[%s11858_s30 + $0x900] sm:$0xff] }
 0x11a   : > { %1297 = vmatmul.mubr.f32.gmra.mrb[2].mxu0 %v1197_v48  ;;  %2720 = vmatmul.mubr.f32.gmra.mrb[2].mxu1 %v2620_v51  ;;  %v9988_v51 = vpack.c.bf16 %v8095_v37, %v8093_v35  ;;  %v8108_v53 = vld [vmem:[%s11858_s30 + $0x980] sm:$0xff]  ;;  %v8115_v35 = vld [vmem:[%s11858_s30 + $0x9b8] sm:$0xff] }
 0x11b   : > { %9963 = vmatpush1.bf16.msra.mxu0 %v9962_v34  ;;  %10347 = vmatpush1.bf16.msra.mxu1 %v9962_v34  ;;  %v8316_v34 = vld [vmem:[%s11890_s11 + $0x280] sm:$0xff]  ;;  %v1195_v46 = vsel %vm663_vm0, %v1193_v40, %v1194_v41  ;;  %v1201_v6 = vsel %vm663_vm0, %v1194_v41, %v1200_v58  ;;  %v10006_v40 = vpack.c.bf16 %v8110_v33, %v8108_v53  ;;  %v8127_v58 = vld [vmem:[%s11858_s30 + $0xa18] sm:$0xff]  ;;  %v8150_v33 = vld [vmem:[%s11858_s30 + $0xad0] sm:$0xff] }
 0x11c   : > { %9965 = vmatprep.subr.bf16.mxu0 %v9964_v38  ;;  %10349 = vmatprep.subr.bf16.mxu1 %v9964_v38  ;;  %v2617_v48 = vrot.slane %v8316_v34, 1  ;;  %v9990_v38 = vpack.c.bf16 %v8094_v44, %v8092_v42  ;;  %v8113_v34 = vld [vmem:[%s11858_s30 + $0x9a8] sm:$0xff]  ;;  %v8112_v42 = vld [vmem:[%s11858_s30 + $0x9a0] sm:$0xff] }
 0x11d   : > { %1302 = vmatprep.mubr.f32.mxu0 %v1205_v59  ;;  %2725 = vmatprep.mubr.f32.mxu1 %v2628_v60  ;;  %v2623_v59 = vrot.slane %v8319_v36, 1  ;;  %v9992_v60 = vpack.c.bf16 %v8099_v55, %v8097_v54  ;;  %v10008_v41 = vpack.c.bf16 %v8115_v35, %v8113_v34  ;;  %v8117_v44 = vld [vmem:[%s11858_s30 + $0x9c8] sm:$0xff]  ;;  %v8118_v36 = vld [vmem:[%s11858_s30 + $0x9d0] sm:$0xff]  ;;  %v8123_v55 = vld [vmem:[%s11858_s30 + $0x9f8] sm:$0xff] }
 0x11e   : > { %1303 = vmatmul.mubr.f32.gmra.mrb[4].mxu0 %v1203_v63  ;;  %2726 = vmatmul.mubr.f32.gmra.mrb[4].mxu1 %v2626_v1  ;;  %v2618_v56 = vsel %vm663_vm0, %v2616_v45, %v2617_v48  ;;  %v8101_v63 = vld [vmem:[%s11858_s30 + $0x948] sm:$0xff]  ;;  %v8103_v1 = vld [vmem:[%s11858_s30 + $0x958] sm:$0xff]  ;;  %v8148_v53 = vld [vmem:[%s11858_s30 + $0xac0] sm:$0xff] }
 0x11f   : > { %9967 = vmatpush1.bf16.msra.mxu0 %v9966_v50  ;;  %10351 = vmatpush1.bf16.msra.mxu1 %v9966_v50  ;;  %v8096_v50 = vld [vmem:[%s11858_s30 + $0x920] sm:$0xff]  ;;  %v2624_v7 = vsel %vm663_vm0, %v2617_v48, %v2623_v59  ;;  %v2630_v18 = vsel %vm663_vm0, %v2623_v59, %v2629_v9  ;;  %v8119_v45 = vld [vmem:[%s11858_s30 + $0x9d8] sm:$0xff]  ;;  %v8121_v54 = vld [vmem:[%s11858_s30 + $0x9e8] sm:$0xff] }
 0x120   : > { %9969 = vmatprep.subr.bf16.mxu0 %v9968_v5  ;;  %10353 = vmatprep.subr.bf16.mxu1 %v9968_v5  ;;  %v9994_v3 = vpack.c.bf16 %v8098_v57, %v8096_v50  ;;  %v8102_v5 = vld [vmem:[%s11858_s30 + $0x950] sm:$0xff]  ;;  %v8125_v57 = vld [vmem:[%s11858_s30 + $0xa08] sm:$0xff]  ;;  %v8155_v35 = vld [vmem:[%s11858_s30 + $0xaf8] sm:$0xff] }
 0x121   : > { %1308 = vmatprep.mubr.f32.mxu0 %v1211_v10  ;;  %2731 = vmatprep.mubr.f32.mxu1 %v2634_v11  ;;  %v9996_v10 = vpack.c.bf16 %v8103_v1, %v8101_v63  ;;  %v7980_v11 = vld [vmem:[%s11890_s11 + $0xe8] sm:$0x1]  ;;  %v8122_v50 = vld [vmem:[%s11858_s30 + $0x9f0] sm:$0xff]  ;;  %v8131_v1 = vld [vmem:[%s11858_s30 + $0xa38] sm:$0xff] }
 0x122   : > { %1309 = vmatmul.mubr.f32.gmra.mrb[6].mxu0 %v1209_v13  ;;  %2732 = vmatmul.mubr.f32.gmra.mrb[6].mxu1 %v2632_v14  ;;  %v8105_v13 = vld [vmem:[%s11858_s30 + $0x968] sm:$0xff]  ;;  %v8107_v14 = vld [vmem:[%s11858_s30 + $0x978] sm:$0xff]  ;;  %v1212_v19 = vrot.slane %v7980_v11, 1  ;;  %v8132_v11 = vld [vmem:[%s11858_s30 + $0xa40] sm:$0xff] }
 0x123   : > { %9971 = vmatpush1.bf16.msra.mxu0 %v9970_v12  ;;  %10355 = vmatpush1.bf16.msra.mxu1 %v9970_v12  ;;  %v8325_v12 = vld [vmem:[%s11890_s11 + $0x2c8] sm:$0x1]  ;;  %v10000_v23 = vpack.c.bf16 %v8107_v14, %v8105_v13  ;;  %v8139_v14 = vld [vmem:[%s11858_s30 + $0xa78] sm:$0xff] }
 0x124   : > { %9973 = vmatprep.subr.bf16.mxu0 %v9972_v15  ;;  %10357 = vmatprep.subr.bf16.mxu1 %v9972_v15  ;;  %v9998_v15 = vpack.c.bf16 %v8102_v5, %v8100_v4  ;;  %v1213_v47 = vsel %vm663_vm0, %v1206_v8, %v1212_v19  ;;  %v8129_v63 = vld [vmem:[%s11858_s30 + $0xa28] sm:$0xff]  ;;  %v8128_v5 = vld [vmem:[%s11858_s30 + $0xa20] sm:$0xff]  ;;  %v8135_v8 = vld [vmem:[%s11858_s30 + $0xa58] sm:$0xff] }
 0x125   : > { %1379 = vmatprep.mubr.f32.mxu0 %v12144_v2  ;;  %2802 = vmatprep.mubr.f32.mxu1 %v12144_v2  ;;  %v10024_v4 = vpack.c.bf16 %v8131_v1, %v8129_v63  ;;  %v8137_v13 = vld [vmem:[%s11858_s30 + $0xa68] sm:$0xff]  ;;  %v8160_v1 = vld [vmem:[%s11858_s30 + $0xb20] sm:$0xff] }
 0x126   : > { %v10032_v16 = vpack.c.bf16 %v8139_v14, %v8137_v13  ;;  %v8141_v19 = vld [vmem:[%s11858_s30 + $0xa88] sm:$0xff]  ;;  %v8086_v13 = vld [vmem:[%s11890_s11 + $0x138] sm:$0xff] }
 0x127   : > { %9975 = vmatpush1.bf16.msra.mxu0 %v9974_v0  ;;  %10359 = vmatpush1.bf16.msra.mxu1 %v9974_v0  ;;  %v2635_v0 = vrot.slane %v8325_v12, 1  ;;  %v8134_v12 = vld [vmem:[%s11858_s30 + $0xa50] sm:$0xff]  ;;  %v8153_v34 = vld [vmem:[%s11858_s30 + $0xae8] sm:$0xff]  ;;  %v8431_v14 = vld [vmem:[%s11890_s11 + $0x318] sm:$0xff] }
 0x128   : > { %9977 = vmatprep.subr.bf16.mxu0 %v9976_v20  ;;  %10361 = vmatprep.subr.bf16.mxu1 %v9976_v20  ;;  %v8081_v20 = vld [vmem:[%s11890_s11 + $0x110] sm:$0xff] }
 0x129   : > { %v12358_v29 = vrot.slane %v8081_v20, 1  ;;  %v2636_v49 = vsel %vm663_vm0, %v2629_v9, %v2635_v0  ;;  %v8143_v0 = vld [vmem:[%s11858_s30 + $0xa98] sm:$0xff] }
 0x12a   : > { %v10036_v21 = vpack.c.bf16 %v8143_v0, %v8141_v19  ;;  %v8166_v19 = vld [vmem:[%s11858_s30 + $0xb50] sm:$0xff] }
 0x12b   : > { %9979 = vmatpush1.bf16.msra.mxu0 %v9978_v25  ;;  %10363 = vmatpush1.bf16.msra.mxu1 %v9978_v25  ;;  %v8106_v25 = vld [vmem:[%s11858_s30 + $0x970] sm:$0xff]  ;;  %v1545_v37 = vsel %vm663_vm0, %v1543_v28, %v12358_v29  ;;  %v8144_v28 = vld [vmem:[%s11858_s30 + $0xaa0] sm:$0xff] }
 0x12c   : > { %9981 = vmatprep.subr.bf16.mxu0 %v9980_v26  ;;  %10365 = vmatprep.subr.bf16.mxu1 %v9980_v26  ;;  %v8109_v26 = vld [vmem:[%s11858_s30 + $0x988] sm:$0xff]  ;;  %v10002_v31 = vpack.c.bf16 %v8106_v25, %v8104_v24  ;;  %v8147_v25 = vld [vmem:[%s11858_s30 + $0xab8] sm:$0xff] }
 0x12d   : > { %v8145_v24 = vld [vmem:[%s11858_s30 + $0xaa8] sm:$0xff] }
 0x12f   : > { %9983 = vmatpush1.bf16.msra.mxu0 %v9982_v30  ;;  %10367 = vmatpush1.bf16.msra.mxu1 %v9982_v30  ;;  %v12360_v30 = vrot.slane %v8426_v22, 1  ;;  %v8140_v22 = vld [vmem:[%s11858_s30 + $0xa80] sm:$0xff] }
 0x130   : > { %9985 = vmatprep.subr.bf16.mxu0 %v9984_v32  ;;  %10369 = vmatprep.subr.bf16.mxu1 %v9984_v32  ;;  %v10004_v32 = vpack.c.bf16 %v8111_v27, %v8109_v26  ;;  %v10040_v27 = vpack.c.bf16 %v8147_v25, %v8145_v24  ;;  %v12468_v25 = vrot.slane %v8086_v13, 1  ;;  %v8184_v13 = vld [vmem:[%s11858_s30 + $0xbe0] sm:$0xff] }
 0x133   : > { %9987 = vmatpush1.bf16.msra.mxu0 %v9986_v39  ;;  %10371 = vmatpush1.bf16.msra.mxu1 %v9986_v39  ;;  %v2967_v39 = vsel %vm663_vm0, %v2965_v43, %v12360_v30  ;;  %v8146_v43 = vld [vmem:[%s11858_s30 + $0xab0] sm:$0xff] }
 0x134   : > { %9989 = vmatprep.subr.bf16.mxu0 %v9988_v51  ;;  %10373 = vmatprep.subr.bf16.mxu1 %v9988_v51  ;;  %v10012_v51 = vpack.c.bf16 %v8119_v45, %v8117_v44  ;;  %v8422_v44 = vld [vmem:[%s11890_s11 + $0x2d0] sm:$0xfe]  ;;  %v8425_v45 = vld [vmem:[%s11890_s11 + $0x2e8] sm:$0xff] }
 0x136   : > { %1380 = vmatmul.mubr.f32.vlgmr.msra.gmra.mrb[0].mxu0 %v1195_v46  ;;  %2803 = vmatmul.mubr.f32.vlgmr.msra.gmra.mrb[0].mxu1 %v2618_v56  ;;  %v10016_v46 = vpack.c.bf16 %v8123_v55, %v8121_v54  ;;  %v8120_v56 = vld [vmem:[%s11858_s30 + $0x9e0] sm:$0xff] }
 0x137   : > { %9991 = vmatpush1.bf16.msra.mxu0 %v9990_v38  ;;  %10375 = vmatpush1.bf16.msra.mxu1 %v9990_v38  ;;  %v10014_v38 = vpack.c.bf16 %v8118_v36, %v8116_v52  ;;  %v10018_v59 = vpack.c.bf16 %v8122_v50, %v8120_v56  ;;  %v8156_v36 = vld [vmem:[%s11858_s30 + $0xb00] sm:$0xff]  ;;  %v12426_v56 = vrot.slane %v8425_v45, 1  ;;  %v8084_v50 = vld [vmem:[%s11890_s11 + $0x128] sm:$0xff]  ;;  %v8170_v45 = vld [vmem:[%s11858_s30 + $0xb70] sm:$0xff] }
 0x138   : > { %9993 = vmatprep.subr.bf16.mxu0 %v9992_v60  ;;  %10377 = vmatprep.subr.bf16.mxu1 %v9992_v60  ;;  %v10020_v60 = vpack.c.bf16 %v8127_v58, %v8125_v57  ;;  %v8429_v57 = vld [vmem:[%s11890_s11 + $0x308] sm:$0xff] }
 0x139   : > { %1385 = vmatprep.mubr.f32.mxu0 %v12144_v2  ;;  %2808 = vmatprep.mubr.f32.mxu1 %v12144_v2 }
 0x13a   : > { %1386 = vmatmul.mubr.f32.gmra.mrb[2].mxu0 %v1201_v6  ;;  %2809 = vmatmul.mubr.f32.gmra.mrb[2].mxu1 %v2624_v7  ;;  %v8130_v6 = vld [vmem:[%s11858_s30 + $0xa30] sm:$0xff]  ;;  %v8133_v7 = vld [vmem:[%s11858_s30 + $0xa48] sm:$0xff] }
 0x13b   : > { %9995 = vmatpush1.bf16.msra.mxu0 %v9994_v3  ;;  %10379 = vmatpush1.bf16.msra.mxu1 %v9994_v3  ;;  %v10022_v3 = vpack.c.bf16 %v8126_v62, %v8124_v61  ;;  %v10026_v9 = vpack.c.bf16 %v8130_v6, %v8128_v5  ;;  %v8161_v61 = vld [vmem:[%s11858_s30 + $0xb28] sm:$0xff]  ;;  %v8163_v62 = vld [vmem:[%s11858_s30 + $0xb38] sm:$0xff]  ;;  %v2973_v5 = vrot.slane %v8429_v57, 1  ;;  %v8172_v57 = vld [vmem:[%s11858_s30 + $0xb80] sm:$0xff] }
 0x13c   : > { %9997 = vmatprep.subr.bf16.mxu0 %v9996_v10  ;;  %10381 = vmatprep.subr.bf16.mxu1 %v9996_v10  ;;  %v10028_v10 = vpack.c.bf16 %v8135_v8, %v8133_v7 }
 0x13d   : > { %1391 = vmatprep.mubr.f32.mxu0 %v12144_v2  ;;  %2814 = vmatprep.mubr.f32.mxu1 %v12144_v2 }
 0x13e   : > { %1392 = vmatmul.mubr.f32.gmra.mrb[4].mxu0 %v1207_v17  ;;  %2815 = vmatmul.mubr.f32.gmra.mrb[4].mxu1 %v2630_v18  ;;  %v8136_v17 = vld [vmem:[%s11858_s30 + $0xa60] sm:$0xff]  ;;  %v8138_v18 = vld [vmem:[%s11858_s30 + $0xa70] sm:$0xff] }
 0x13f   : > { %9999 = vmatpush1.bf16.msra.mxu0 %v9998_v15  ;;  %10383 = vmatpush1.bf16.msra.mxu1 %v9998_v15  ;;  %v10030_v15 = vpack.c.bf16 %v8134_v12, %v8132_v11  ;;  %v10034_v20 = vpack.c.bf16 %v8138_v18, %v8136_v17  ;;  %v8432_v11 = vld [vmem:[%s11890_s11 + $0x320] sm:$0xff]  ;;  %v10056_v12 = vpack.c.bf16 %v8163_v62, %v8161_v61  ;;  %v8167_v17 = vld [vmem:[%s11858_s30 + $0xb58] sm:$0xff] }
 0x140   : > { %10001 = vmatprep.subr.bf16.mxu0 %v10000_v23  ;;  %10385 = vmatprep.subr.bf16.mxu1 %v10000_v23  ;;  %v8142_v23 = vld [vmem:[%s11858_s30 + $0xa90] sm:$0xff]  ;;  %v8164_v18 = vld [vmem:[%s11858_s30 + $0xb40] sm:$0xff] }
 0x141   : > { %1397 = vmatprep.mubr.f32.mxu0 %v12144_v2  ;;  %2820 = vmatprep.mubr.f32.mxu1 %v12144_v2  ;;  %v8114_v2 = vld [vmem:[%s11858_s30 + $0x9b0] sm:$0xff]  ;;  %v10038_v26 = vpack.c.bf16 %v8142_v23, %v8140_v22  ;;  %v12458_v22 = vrot.slane %v8432_v11, 1  ;;  %v8187_v11 = vld [vmem:[%s11858_s30 + $0xbf8] sm:$0xff] }
 0x142   : > { %1398 = vmatmul.mubr.f32.gmra.mrb[6].mxu0 %v1213_v47  ;;  %2821 = vmatmul.mubr.f32.gmra.mrb[6].mxu1 %v2636_v49  ;;  %v10010_v48 = vpack.c.bf16 %v8114_v2, %v8112_v42  ;;  %v8151_v47 = vld [vmem:[%s11858_s30 + $0xad8] sm:$0xff]  ;;  %v10042_v49 = vpack.c.bf16 %v8146_v43, %v8144_v28  ;;  %v10048_v42 = vpack.c.bf16 %v8155_v35, %v8153_v34  ;;  %v8080_v2 = vld [vmem:[%s11890_s11 + $0x108] sm:$0xff] }
 0x143   : > { %10003 = vmatpush1.bf16.msra.mxu0 %v10002_v31  ;;  %10387 = vmatpush1.bf16.msra.mxu1 %v10002_v31  ;;  %v8149_v31 = vld [vmem:[%s11858_s30 + $0xac8] sm:$0xff]  ;;  %v12423_v55 = vrot.slane %v8080_v2, 1  ;;  %v8435_v28 = vld [vmem:[%s11890_s11 + $0x338] sm:$0x1]  ;;  %v12488_v34 = vsel %vm663_vm0, %v2973_v5, %v12458_v22 }
 0x144   : > { %10005 = vmatprep.subr.bf16.mxu0 %v10004_v32  ;;  %10389 = vmatprep.subr.bf16.mxu1 %v10004_v32  ;;  %v10044_v32 = vpack.c.bf16 %v8151_v47, %v8149_v31  ;;  %v8089_v31 = vld [vmem:[%s11890_s11 + $0x150] sm:$0x1] }
 0x145   : > { %1643 = vmatprep.mubr.f32.mxu0 %v1545_v37  ;;  %3065 = vmatprep.mubr.f32.mxu1 %v2967_v39  ;;  %v10046_v37 = vpack.c.bf16 %v8150_v33, %v8148_v53  ;;  %v8152_v39 = vld [vmem:[%s11858_s30 + $0xae0] sm:$0xff]  ;;  %v8434_v47 = vld [vmem:[%s11890_s11 + $0x330] sm:$0x1]  ;;  %v8171_v53 = vld [vmem:[%s11858_s30 + $0xb78] sm:$0xff] }
 0x147   : > { %10007 = vmatpush1.bf16.msra.mxu0 %v10006_v40  ;;  %10391 = vmatpush1.bf16.msra.mxu1 %v10006_v40  ;;  %v8154_v40 = vld [vmem:[%s11858_s30 + $0xaf0] sm:$0xff] }
 0x148   : > { %10009 = vmatprep.subr.bf16.mxu0 %v10008_v41  ;;  %10393 = vmatprep.subr.bf16.mxu1 %v10008_v41  ;;  %v8077_v41 = vld [vmem:[%s11890_s11 + $0xf0] sm:$0xfe]  ;;  %v10050_v54 = vpack.c.bf16 %v8154_v40, %v8152_v39 }
 0x149   : > { %v1540_v52 = vrot.slane %v8077_v41, 1  ;;  %v1561_v41 = vrot.slane %v8089_v31, 1 }
 0x14b   : > { %10011 = vmatpush1.bf16.msra.mxu0 %v10010_v48  ;;  %10395 = vmatpush1.bf16.msra.mxu1 %v10010_v48  ;;  %v8157_v48 = vld [vmem:[%s11858_s30 + $0xb08] sm:$0xff]  ;;  %v1542_v6 = vsel %vm663_vm0, %v1540_v52, %v12423_v55 }
 0x14c   : > { %10013 = vmatprep.subr.bf16.mxu0 %v10012_v51  ;;  %10397 = vmatprep.subr.bf16.mxu1 %v10012_v51  ;;  %v8159_v51 = vld [vmem:[%s11858_s30 + $0xb18] sm:$0xff] }
 0x14d   : > { %v10052_v58 = vpack.c.bf16 %v8159_v51, %v8157_v48  ;;  %v8173_v48 = vld [vmem:[%s11858_s30 + $0xb88] sm:$0xff]  ;;  %v8175_v51 = vld [vmem:[%s11858_s30 + $0xb98] sm:$0xff] }
 0x14f   : > { %10015 = vmatpush1.bf16.msra.mxu0 %v10014_v38  ;;  %10399 = vmatpush1.bf16.msra.mxu1 %v10014_v38  ;;  %v8158_v38 = vld [vmem:[%s11858_s30 + $0xb10] sm:$0xff] }
 0x150   : > { %10017 = vmatprep.subr.bf16.mxu0 %v10016_v46  ;;  %10401 = vmatprep.subr.bf16.mxu1 %v10016_v46  ;;  %v2962_v46 = vrot.slane %v8422_v44, 1  ;;  %v10054_v63 = vpack.c.bf16 %v8158_v38, %v8156_v36  ;;  %v8168_v44 = vld [vmem:[%s11858_s30 + $0xb60] sm:$0xff]  ;;  %v1562_v38 = vsel %vm663_vm0, %v12468_v25, %v1561_v41  ;;  %v8085_v41 = vld [vmem:[%s11890_s11 + $0x130] sm:$0xff] }
 0x152   : > { %v2964_v7 = vsel %vm663_vm0, %v2962_v46, %v12426_v56 }
 0x153   : > { %10019 = vmatpush1.bf16.msra.mxu0 %v10018_v59  ;;  %10403 = vmatpush1.bf16.msra.mxu1 %v10018_v59  ;;  %v8083_v59 = vld [vmem:[%s11890_s11 + $0x120] sm:$0xff] }
 0x154   : > { %10021 = vmatprep.subr.bf16.mxu0 %v10020_v60  ;;  %10405 = vmatprep.subr.bf16.mxu1 %v10020_v60  ;;  %v8428_v60 = vld [vmem:[%s11890_s11 + $0x300] sm:$0xff]  ;;  %v1549_v8 = vrot.slane %v8083_v59, 1  ;;  %v8177_v59 = vld [vmem:[%s11858_s30 + $0xba8] sm:$0xff] }
 0x156   : > { %v12462_v23 = vsel %vm663_vm0, %v12423_v55, %v1549_v8  ;;  %v12492_v39 = vsel %vm663_vm0, %v1549_v8, %v12468_v25  ;;  %v8180_v8 = vld [vmem:[%s11858_s30 + $0xbc0] sm:$0xff] }
 0x157   : > { %10023 = vmatpush1.bf16.msra.mxu0 %v10022_v3  ;;  %10407 = vmatpush1.bf16.msra.mxu1 %v10022_v3  ;;  %v8162_v3 = vld [vmem:[%s11858_s30 + $0xb30] sm:$0xff] }
 0x158   : > { %10025 = vmatprep.subr.bf16.mxu0 %v10024_v4  ;;  %10409 = vmatprep.subr.bf16.mxu1 %v10024_v4  ;;  %v1551_v4 = vrot.slane %v8084_v50, 1  ;;  %v10068_v50 = vpack.c.bf16 %v8175_v51, %v8173_v48 }
 0x15a   : > { %v12450_v0 = vsel %vm663_vm0, %v12358_v29, %v1551_v4 }
 0x15b   : > { %10027 = vmatpush1.bf16.msra.mxu0 %v10026_v9  ;;  %10411 = vmatpush1.bf16.msra.mxu1 %v10026_v9  ;;  %v2971_v9 = vrot.slane %v8428_v60, 1  ;;  %v8179_v60 = vld [vmem:[%s11858_s30 + $0xbb8] sm:$0xff] }
 0x15c   : > { %10029 = vmatprep.subr.bf16.mxu0 %v10028_v10  ;;  %10413 = vmatprep.subr.bf16.mxu1 %v10028_v10  ;;  %v8087_v10 = vld [vmem:[%s11890_s11 + $0x140] sm:$0xff]  ;;  %v10072_v62 = vpack.c.bf16 %v8179_v60, %v8177_v59  ;;  %v8572_v59 = vld [vmem:[%s11858_s30 + $0x348] sm:$0xff]  ;;  %v8574_v60 = vld [vmem:[%s11858_s30 + $0x358] sm:$0xff] }
 0x15d   : > { %v12466_v24 = vsel %vm663_vm0, %v12426_v56, %v2971_v9 }
 0x15f   : > { %10031 = vmatpush1.bf16.msra.mxu0 %v10030_v15  ;;  %10415 = vmatpush1.bf16.msra.mxu1 %v10030_v15  ;;  %v10058_v15 = vpack.c.bf16 %v8162_v3, %v8160_v1  ;;  %v8178_v1 = vld [vmem:[%s11858_s30 + $0xbb0] sm:$0xff]  ;;  %v8181_v3 = vld [vmem:[%s11858_s30 + $0xbc8] sm:$0xff] }
 0x160   : > { %10033 = vmatprep.subr.bf16.mxu0 %v10032_v16  ;;  %10417 = vmatprep.subr.bf16.mxu1 %v10032_v16  ;;  %v8165_v16 = vld [vmem:[%s11858_s30 + $0xb48] sm:$0xff] }
 0x161   : > { %v10060_v43 = vpack.c.bf16 %v8167_v17, %v8165_v16  ;;  %v8186_v17 = vld [vmem:[%s11858_s30 + $0xbf0] sm:$0xff] }
 0x163   : > { %10035 = vmatpush1.bf16.msra.mxu0 %v10034_v20  ;;  %10419 = vmatpush1.bf16.msra.mxu1 %v10034_v20  ;;  %v12454_v20 = vsel %vm663_vm0, %v12360_v30, %v2973_v5  ;;  %v12522_v5 = vld [vmem:[#allocation2] sm:$0xff] }
 0x164   : > { %10037 = vmatprep.subr.bf16.mxu0 %v10036_v21  ;;  %10421 = vmatprep.subr.bf16.mxu1 %v10036_v21  ;;  %v12456_v21 = vrot.slane %v8087_v10, 1  ;;  %v8185_v10 = vld [vmem:[%s11858_s30 + $0xbe8] sm:$0xff] }
 0x165   : > { %v10080_v16 = vpack.c.bf16 %v8187_v11, %v8185_v10  ;;  %v8576_v10 = vld [vmem:[%s11858_s30 + $0x368] sm:$0xff]  ;;  %v8578_v11 = vld [vmem:[%s11858_s30 + $0x378] sm:$0xff] }
 0x166   : > { %v12484_v33 = vsel %vm663_vm0, %v1551_v4, %v12456_v21  ;;  %v8183_v4 = vld [vmem:[%s11858_s30 + $0xbd8] sm:$0xff] }
 0x167   : > { %10039 = vmatpush1.bf16.msra.mxu0 %v10038_v26  ;;  %10423 = vmatpush1.bf16.msra.mxu1 %v10038_v26  ;;  %v12470_v26 = vrot.slane %v8431_v14, 1  ;;  %v8079_v14 = vld [vmem:[%s11890_s11 + $0x100] sm:$0xfe] }
 0x168   : > { %10041 = vmatprep.subr.bf16.mxu0 %v10040_v27  ;;  %10425 = vmatprep.subr.bf16.mxu1 %v10040_v27  ;;  %v8090_v27 = vld [vmem:[%s11890_s11 + $0x158] sm:$0x1] }
 0x169   : > { %v1563_v35 = vrot.slane %v8090_v27, 1  ;;  %v12496_v40 = vsel %vm663_vm0, %v2971_v9, %v12470_v26  ;;  %v8182_v9 = vld [vmem:[%s11858_s30 + $0xbd0] sm:$0xff]  ;;  %v8564_v27 = vld [vmem:[%s11858_s30 + $0x308] sm:$0xff] }
 0x16b   : > { %10043 = vmatpush1.bf16.msra.mxu0 %v10042_v49  ;;  %10427 = vmatpush1.bf16.msra.mxu1 %v10042_v49  ;;  %v10062_v49 = vpack.c.bf16 %v8166_v19, %v8164_v18  ;;  %v1564_v52 = vsel %vm663_vm0, %v12456_v21, %v1563_v35  ;;  %v8424_v18 = vld [vmem:[%s11890_s11 + $0x2e0] sm:$0xfe]  ;;  %v8427_v19 = vld [vmem:[%s11890_s11 + $0x2f8] sm:$0xff] }
 0x16c   : > { %10045 = vmatprep.subr.bf16.mxu0 %v10044_v32  ;;  %10429 = vmatprep.subr.bf16.mxu1 %v10044_v32  ;;  %v8169_v32 = vld [vmem:[%s11858_s30 + $0xb68] sm:$0xff] }
 0x16d   : > { %v10064_v2 = vpack.c.bf16 %v8171_v53, %v8169_v32  ;;  %v12540_v32 = vrot.slane %v8427_v19, 1  ;;  %v8563_v53 = vld [vmem:[%s11858_s30 + $0x300] sm:$0xff]  ;;  %v8577_v19 = vld [vmem:[%s11858_s30 + $0x370] sm:$0xff] }
 0x16f   : > { %10047 = vmatpush1.bf16.msra.mxu0 %v10046_v37  ;;  %10431 = vmatpush1.bf16.msra.mxu1 %v10046_v37  ;;  %v2985_v37 = vrot.slane %v8435_v28, 1  ;;  %v8566_v28 = vld [vmem:[%s11858_s30 + $0x318] sm:$0xff] }
 0x170   : > { %10049 = vmatprep.subr.bf16.mxu0 %v10048_v42  ;;  %10433 = vmatprep.subr.bf16.mxu1 %v10048_v42  ;;  %v2983_v42 = vrot.slane %v8434_v47, 1  ;;  %v10082_v47 = vpack.c.bf16 %v8186_v17, %v8184_v13  ;;  %v10468_v35 = vpack.c.bf16 %v8566_v28, %v8564_v27  ;;  %v8882_v17 = vld [vmem:[%s11890_s11 + $0x2d8] sm:$0xfe]  ;;  %v10480_v27 = vpack.c.bf16 %v8578_v11, %v8576_v10  ;;  %v8580_v28 = vld [vmem:[%s11858_s30 + $0x388] sm:$0xff] }
 0x171   : > { %v2986_v36 = vsel %vm663_vm0, %v12458_v22, %v2985_v37  ;;  %v8565_v37 = vld [vmem:[%s11858_s30 + $0x310] sm:$0xff]  ;;  %v8600_v10 = vld [vmem:[%s11858_s30 + $0x428] sm:$0xff]  ;;  %v8602_v11 = vld [vmem:[%s11858_s30 + $0x438] sm:$0xff] }
 0x172   : > { %v2984_v46 = vsel %vm663_vm0, %v12470_v26, %v2983_v42  ;;  %v8430_v42 = vld [vmem:[%s11890_s11 + $0x310] sm:$0xff]  ;;  %v10470_v51 = vpack.c.bf16 %v8565_v37, %v8563_v53 }
 0x173   : > { %10051 = vmatpush1.bf16.msra.mxu0 %v10050_v54  ;;  %10435 = vmatpush1.bf16.msra.mxu1 %v10050_v54  ;;  %v10066_v54 = vpack.c.bf16 %v8170_v45, %v8168_v44  ;;  %v8568_v44 = vld [vmem:[%s11858_s30 + $0x328] sm:$0xff]  ;;  %v8570_v45 = vld [vmem:[%s11858_s30 + $0x338] sm:$0xff] }
 0x174   : > { %10053 = vmatprep.subr.bf16.mxu0 %v10052_v58  ;;  %10437 = vmatprep.subr.bf16.mxu1 %v10052_v58  ;;  %v8174_v58 = vld [vmem:[%s11858_s30 + $0xb90] sm:$0xff] }
 0x175   : > { %v10070_v61 = vpack.c.bf16 %v8174_v58, %v8172_v57  ;;  %v10472_v57 = vpack.c.bf16 %v8570_v45, %v8568_v44  ;;  %v8584_v44 = vld [vmem:[%s11858_s30 + $0x3a8] sm:$0xff]  ;;  %v8586_v45 = vld [vmem:[%s11858_s30 + $0x3b8] sm:$0xff] }
 0x176   : > { %1644 = vmatmul.mubr.f32.vlgmr.msra.gmra.mrb[0].mxu0 %v1542_v6  ;;  %3066 = vmatmul.mubr.f32.vlgmr.msra.gmra.mrb[0].mxu1 %v2964_v7  ;;  %v10076_v7 = vpack.c.bf16 %v8183_v4, %v8181_v3  ;;  %v8571_v3 = vld [vmem:[%s11858_s30 + $0x340] sm:$0xff]  ;;  %v8573_v4 = vld [vmem:[%s11858_s30 + $0x350] sm:$0xff] }
 0x177   : > { %10055 = vmatpush1.bf16.msra.mxu0 %v10054_v63  ;;  %10439 = vmatpush1.bf16.msra.mxu1 %v10054_v63  ;;  %v8176_v63 = vld [vmem:[%s11858_s30 + $0xba0] sm:$0xff]  ;;  %v10478_v13 = vpack.c.bf16 %v8573_v4, %v8571_v3  ;;  %v8596_v3 = vld [vmem:[%s11858_s30 + $0x408] sm:$0xff]  ;;  %v8598_v4 = vld [vmem:[%s11858_s30 + $0x418] sm:$0xff] }
 0x178   : > { %10057 = vmatprep.subr.bf16.mxu0 %v10056_v12  ;;  %10441 = vmatprep.subr.bf16.mxu1 %v10056_v12  ;;  %v10074_v6 = vpack.c.bf16 %v8178_v1, %v8176_v63  ;;  %v10078_v12 = vpack.c.bf16 %v8182_v9, %v8180_v8  ;;  %v10476_v8 = vpack.c.bf16 %v8574_v60, %v8572_v59  ;;  %v8592_v59 = vld [vmem:[%s11858_s30 + $0x3e8] sm:$0xff]  ;;  %v8594_v60 = vld [vmem:[%s11858_s30 + $0x3f8] sm:$0xff] }
 0x179   : > { %1649 = vmatprep.mubr.f32.mxu0 %v12450_v0  ;;  %3071 = vmatprep.mubr.f32.mxu1 %v12454_v20 }
 0x17a   : > { %1650 = vmatmul.mubr.f32.gmra.mrb[2].mxu0 %v12462_v23  ;;  %3072 = vmatmul.mubr.f32.gmra.mrb[2].mxu1 %v12466_v24 }
 0x17b   : > { %10059 = vmatpush1.bf16.msra.mxu0 %v10058_v15  ;;  %10443 = vmatpush1.bf16.msra.mxu1 %v10058_v15  ;;  %v8082_v15 = vld [vmem:[%s11890_s11 + $0x118] sm:$0xff] }
 0x17c   : > { %10061 = vmatprep.subr.bf16.mxu0 %v10060_v43  ;;  %10445 = vmatprep.subr.bf16.mxu1 %v10060_v43  ;;  %v1546_v43 = vrot.slane %v8079_v14, 1  ;;  %v12538_v31 = vrot.slane %v8082_v15, 1 }
 0x17d   : > { %1655 = vmatprep.mubr.f32.mxu0 %v12484_v33  ;;  %3077 = vmatprep.mubr.f32.mxu1 %v12488_v34 }
 0x17e   : > { %1656 = vmatmul.mubr.f32.gmra.mrb[4].mxu0 %v12492_v39  ;;  %3078 = vmatmul.mubr.f32.gmra.mrb[4].mxu1 %v12496_v40 }
 0x17f   : > { %10063 = vmatpush1.bf16.msra.mxu0 %v10062_v49  ;;  %10447 = vmatpush1.bf16.msra.mxu1 %v10062_v49  ;;  %v2968_v49 = vrot.slane %v8424_v18, 1  ;;  %v8575_v18 = vld [vmem:[%s11858_s30 + $0x360] sm:$0xff] }
 0x180   : > { %10065 = vmatprep.subr.bf16.mxu0 %v10064_v2  ;;  %10449 = vmatprep.subr.bf16.mxu1 %v10064_v2  ;;  %v1548_v2 = vsel %vm663_vm0, %v1546_v43, %v12538_v31  ;;  %v8582_v43 = vld [vmem:[%s11858_s30 + $0x398] sm:$0xff]  ;;  %v10482_v37 = vpack.c.bf16 %v8577_v19, %v8575_v18 }
 0x181   : > { %1661 = vmatprep.mubr.f32.mxu0 %v1564_v52  ;;  %3083 = vmatprep.mubr.f32.mxu1 %v2986_v36  ;;  %v2970_v48 = vsel %vm663_vm0, %v2968_v49, %v12540_v32  ;;  %v1553_v52 = vrot.slane %v8085_v41, 1  ;;  %v2975_v36 = vrot.slane %v8430_v42, 1  ;;  %v4990_v49 = vrot.slane %v8882_v17, 1  ;;  %v8579_v42 = vld [vmem:[%s11858_s30 + $0x380] sm:$0xff]  ;;  %v8606_v17 = vld [vmem:[%s11858_s30 + $0x458] sm:$0xff] }
 0x182   : > { %1662 = vmatmul.mubr.f32.gmra.mrb[6].mxu0 %v1562_v38  ;;  %3084 = vmatmul.mubr.f32.gmra.mrb[6].mxu1 %v2984_v46  ;;  %v8567_v38 = vld [vmem:[%s11858_s30 + $0x320] sm:$0xff]  ;;  %v8569_v46 = vld [vmem:[%s11858_s30 + $0x330] sm:$0xff]  ;;  %v10484_v41 = vpack.c.bf16 %v8582_v43, %v8580_v28  ;;  %v8608_v43 = vld [vmem:[%s11858_s30 + $0x468] sm:$0xff] }
 0x183   : > { %10067 = vmatpush1.bf16.msra.mxu0 %v10066_v54  ;;  %10451 = vmatpush1.bf16.msra.mxu1 %v10066_v54  ;;  %v8088_v54 = vld [vmem:[%s11890_s11 + $0x148] sm:$0xff]  ;;  %v10474_v63 = vpack.c.bf16 %v8569_v46, %v8567_v38  ;;  %v8585_v38 = vld [vmem:[%s11858_s30 + $0x3b0] sm:$0xff] }
 0x184   : > { %10069 = vmatprep.subr.bf16.mxu0 %v10068_v50  ;;  %10453 = vmatprep.subr.bf16.mxu1 %v10068_v50  ;;  %v8433_v50 = vld [vmem:[%s11890_s11 + $0x328] sm:$0xff]  ;;  %v1559_v58 = vrot.slane %v8088_v54, 1  ;;  %v8583_v54 = vld [vmem:[%s11858_s30 + $0x3a0] sm:$0xff]  ;;  %v8605_v28 = vld [vmem:[%s11858_s30 + $0x450] sm:$0xff] }
 0x185   : > { %1732 = vmatprep.mubr.f32.mxu0 %v12522_v5  ;;  %3154 = vmatprep.mubr.f32.mxu1 %v12522_v5  ;;  %v2981_v1 = vrot.slane %v8433_v50, 1  ;;  %v8588_v46 = vld [vmem:[%s11858_s30 + $0x3c8] sm:$0xff]  ;;  %v8590_v50 = vld [vmem:[%s11858_s30 + $0x3d8] sm:$0xff] }
 0x186   : > { %v1560_v9 = vsel %vm663_vm0, %v1553_v52, %v1559_v58 }
 0x187   : > { %10071 = vmatpush1.bf16.msra.mxu0 %v10070_v61  ;;  %10455 = vmatpush1.bf16.msra.mxu1 %v10070_v61  ;;  %v1554_v61 = vsel %vm663_vm0, %v12538_v31, %v1553_v52 }
 0x188   : > { %10073 = vmatprep.subr.bf16.mxu0 %v10072_v62  ;;  %10457 = vmatprep.subr.bf16.mxu1 %v10072_v62  ;;  %v2976_v62 = vsel %vm663_vm0, %v12540_v32, %v2975_v36 }
 0x18b   : > { %10075 = vmatpush1.bf16.msra.mxu0 %v10074_v6  ;;  %10459 = vmatpush1.bf16.msra.mxu1 %v10074_v6  ;;  %v8091_v6 = vld [vmem:[%s11890_s11 + $0x160] sm:$0x1] }
 0x18c   : > { %10077 = vmatprep.subr.bf16.mxu0 %v10076_v7  ;;  %10461 = vmatprep.subr.bf16.mxu1 %v10076_v7  ;;  %v8436_v7 = vld [vmem:[%s11890_s11 + $0x340] sm:$0x1]  ;;  %v1565_v14 = vrot.slane %v8091_v6, 1 }
 0x18d   : > { %v2987_v15 = vrot.slane %v8436_v7, 1  ;;  %v10500_v7 = vpack.c.bf16 %v8598_v4, %v8596_v3  ;;  %v8625_v3 = vld [vmem:[%s11858_s30 + $0x4f0] sm:$0xff] }
 0x18e   : > { %v1566_v53 = vsel %vm663_vm0, %v1559_v58, %v1565_v14  ;;  %v8589_v58 = vld [vmem:[%s11858_s30 + $0x3d0] sm:$0xff]  ;;  %v8599_v14 = vld [vmem:[%s11858_s30 + $0x420] sm:$0xff] }
 0x18f   : > { %10079 = vmatpush1.bf16.msra.mxu0 %v10078_v12  ;;  %10463 = vmatpush1.bf16.msra.mxu1 %v10078_v12  ;;  %v2982_v12 = vsel %vm663_vm0, %v2975_v36, %v2981_v1  ;;  %v10488_v36 = vpack.c.bf16 %v8586_v45, %v8584_v44  ;;  %v8611_v45 = vld [vmem:[%s11858_s30 + $0x480] sm:$0xff]  ;;  %v8548_v4 = vld [vmem:[%s11890_s11 + $0xf0] sm:$0xfe] }
 0x190   : > { %10081 = vmatprep.subr.bf16.mxu0 %v10080_v16  ;;  %10465 = vmatprep.subr.bf16.mxu1 %v10080_v16  ;;  %v8549_v16 = vld [vmem:[%s11890_s11 + $0xf8] sm:$0xfe] }
 0x193   : > { %10083 = vmatpush1.bf16.msra.mxu0 %v10082_v47  ;;  %10467 = vmatpush1.bf16.msra.mxu1 %v10082_v47  ;;  %v3514_v47 = vrot.slane %v8549_v16, 1  ;;  %v8604_v16 = vld [vmem:[%s11858_s30 + $0x448] sm:$0xff] }
 0x194   : > { %10469 = vmatprep.subr.bf16.mxu0 %v10468_v35  ;;  %10853 = vmatprep.subr.bf16.mxu1 %v10468_v35  ;;  %v2988_v35 = vsel %vm663_vm0, %v2981_v1, %v2987_v15  ;;  %v8593_v1 = vld [vmem:[%s11858_s30 + $0x3f0] sm:$0xff]  ;;  %v10508_v19 = vpack.c.bf16 %v8606_v17, %v8604_v16  ;;  %v8634_v16 = vld [vmem:[%s11858_s30 + $0x538] sm:$0xff] }
 0x195   : > { %v8601_v15 = vld [vmem:[%s11858_s30 + $0x430] sm:$0xff] }
 0x196   : > { %1733 = vmatmul.mubr.f32.vlgmr.msra.gmra.mrb[0].mxu0 %v1548_v2  ;;  %3155 = vmatmul.mubr.f32.vlgmr.msra.gmra.mrb[0].mxu1 %v2970_v48  ;;  %v8581_v2 = vld [vmem:[%s11858_s30 + $0x390] sm:$0xff]  ;;  %v3516_v48 = vsel %vm663_vm0, %v3514_v47, %v12358_v29  ;;  %v10490_v29 = vpack.c.bf16 %v8585_v38, %v8583_v54  ;;  %v10506_v18 = vpack.c.bf16 %v8601_v15, %v8599_v14  ;;  %v8610_v47 = vld [vmem:[%s11858_s30 + $0x478] sm:$0xff]  ;;  %v8615_v38 = vld [vmem:[%s11858_s30 + $0x4a0] sm:$0xff] }
 0x197   : > { %10471 = vmatpush1.bf16.msra.mxu0 %v10470_v51  ;;  %10855 = vmatpush1.bf16.msra.mxu1 %v10470_v51  ;;  %v4992_v51 = vsel %vm663_vm0, %v4990_v49, %v12360_v30  ;;  %v10486_v52 = vpack.c.bf16 %v8581_v2, %v8579_v42  ;;  %v10492_v30 = vpack.c.bf16 %v8590_v50, %v8588_v46  ;;  %v8614_v42 = vld [vmem:[%s11858_s30 + $0x498] sm:$0xff]  ;;  %v8617_v46 = vld [vmem:[%s11858_s30 + $0x4b0] sm:$0xff]  ;;  %v8620_v50 = vld [vmem:[%s11858_s30 + $0x4c8] sm:$0xff] }
 0x198   : > { %1738 = vmatprep.mubr.f32.mxu0 %v12522_v5  ;;  %3160 = vmatprep.mubr.f32.mxu1 %v12522_v5  ;;  %v8629_v14 = vld [vmem:[%s11858_s30 + $0x510] sm:$0xff]  ;;  %v8632_v15 = vld [vmem:[%s11858_s30 + $0x528] sm:$0xff] }
 0x199   : > { %10473 = vmatprep.subr.bf16.mxu0 %v10472_v57  ;;  %10857 = vmatprep.subr.bf16.mxu1 %v10472_v57  ;;  %v8587_v57 = vld [vmem:[%s11858_s30 + $0x3c0] sm:$0xff] }
 0x19a   : > { %1739 = vmatmul.mubr.f32.gmra.mrb[2].mxu0 %v1554_v61  ;;  %3161 = vmatmul.mubr.f32.gmra.mrb[2].mxu1 %v2976_v62  ;;  %v10494_v61 = vpack.c.bf16 %v8589_v58, %v8587_v57  ;;  %v10496_v62 = vpack.c.bf16 %v8594_v60, %v8592_v59  ;;  %v8619_v58 = vld [vmem:[%s11858_s30 + $0x4c0] sm:$0xff]  ;;  %v8621_v59 = vld [vmem:[%s11858_s30 + $0x4d0] sm:$0xff]  ;;  %v8624_v60 = vld [vmem:[%s11858_s30 + $0x4e8] sm:$0xff] }
 0x19b   : > { %10475 = vmatpush1.bf16.msra.mxu0 %v10474_v63  ;;  %10859 = vmatpush1.bf16.msra.mxu1 %v10474_v63  ;;  %v8591_v63 = vld [vmem:[%s11858_s30 + $0x3e0] sm:$0xff] }
 0x19c   : > { %1744 = vmatprep.mubr.f32.mxu0 %v12522_v5  ;;  %3166 = vmatprep.mubr.f32.mxu1 %v12522_v5  ;;  %v10498_v6 = vpack.c.bf16 %v8593_v1, %v8591_v63  ;;  %v8623_v63 = vld [vmem:[%s11858_s30 + $0x4e0] sm:$0xff] }
 0x19d   : > { %10477 = vmatprep.subr.bf16.mxu0 %v10476_v8  ;;  %10861 = vmatprep.subr.bf16.mxu1 %v10476_v8  ;;  %v8595_v8 = vld [vmem:[%s11858_s30 + $0x400] sm:$0xff] }
 0x19e   : > { %1745 = vmatmul.mubr.f32.gmra.mrb[4].mxu0 %v1560_v9  ;;  %3167 = vmatmul.mubr.f32.gmra.mrb[4].mxu1 %v2982_v12  ;;  %v8597_v9 = vld [vmem:[%s11858_s30 + $0x410] sm:$0xff] }
 0x19f   : > { %10479 = vmatpush1.bf16.msra.mxu0 %v10478_v13  ;;  %10863 = vmatpush1.bf16.msra.mxu1 %v10478_v13  ;;  %v10502_v12 = vpack.c.bf16 %v8597_v9, %v8595_v8  ;;  %v10504_v13 = vpack.c.bf16 %v8602_v11, %v8600_v10  ;;  %v8630_v8 = vld [vmem:[%s11858_s30 + $0x518] sm:$0xff]  ;;  %v10530_v9 = vpack.c.bf16 %v8625_v3, %v8623_v63  ;;  %v3511_v10 = vrot.slane %v8548_v4, 1  ;;  %v8651_v63 = vld [vmem:[%s11858_s30 + $0x5c0] sm:$0xff]  ;;  %v8656_v3 = vld [vmem:[%s11858_s30 + $0x5e8] sm:$0xff] }
 0x1a0   : > { %1750 = vmatprep.mubr.f32.mxu0 %v12522_v5  ;;  %3172 = vmatprep.mubr.f32.mxu1 %v12522_v5  ;;  %v8658_v4 = vld [vmem:[%s11858_s30 + $0x5f8] sm:$0xff] }
 0x1a1   : > { %10481 = vmatprep.subr.bf16.mxu0 %v10480_v27  ;;  %10865 = vmatprep.subr.bf16.mxu1 %v10480_v27  ;;  %v8603_v27 = vld [vmem:[%s11858_s30 + $0x440] sm:$0xff]  ;;  %v3513_v17 = vsel %vm663_vm0, %v3511_v10, %v12423_v55 }
 0x1a2   : > { %1751 = vmatmul.mubr.f32.gmra.mrb[6].mxu0 %v1566_v53  ;;  %3173 = vmatmul.mubr.f32.gmra.mrb[6].mxu1 %v2988_v35  ;;  %v10510_v49 = vpack.c.bf16 %v8605_v28, %v8603_v27  ;;  %v10512_v53 = vpack.c.bf16 %v8610_v47, %v8608_v43  ;;  %v8607_v35 = vld [vmem:[%s11858_s30 + $0x460] sm:$0xff]  ;;  %v10536_v27 = vpack.c.bf16 %v8634_v16, %v8632_v15  ;;  %v8633_v43 = vld [vmem:[%s11858_s30 + $0x530] sm:$0xff]  ;;  %v8636_v47 = vld [vmem:[%s11858_s30 + $0x548] sm:$0xff] }
 0x1a3   : > { %10483 = vmatpush1.bf16.msra.mxu0 %v10482_v37  ;;  %10867 = vmatpush1.bf16.msra.mxu1 %v10482_v37  ;;  %v8609_v37 = vld [vmem:[%s11858_s30 + $0x470] sm:$0xff]  ;;  %v8631_v28 = vld [vmem:[%s11858_s30 + $0x520] sm:$0xff] }
 0x1a4   : > { %10485 = vmatprep.subr.bf16.mxu0 %v10484_v41  ;;  %10869 = vmatprep.subr.bf16.mxu1 %v10484_v41  ;;  %v8612_v41 = vld [vmem:[%s11858_s30 + $0x488] sm:$0xff]  ;;  %v10514_v2 = vpack.c.bf16 %v8609_v37, %v8607_v35  ;;  %v10538_v55 = vpack.c.bf16 %v8633_v43, %v8631_v28  ;;  %v8561_v35 = vld [vmem:[%s11890_s11 + $0x158] sm:$0x1]  ;;  %v8550_v10 = vld [vmem:[%s11890_s11 + $0x100] sm:$0xfe] }
 0x1a5   : > { %3614 = vmatprep.mubr.f32.mxu0 %v3516_v48  ;;  %5090 = vmatprep.mubr.f32.mxu1 %v4992_v51  ;;  %v10516_v44 = vpack.c.bf16 %v8614_v42, %v8612_v41  ;;  %v8613_v48 = vld [vmem:[%s11858_s30 + $0x490] sm:$0xff]  ;;  %v8616_v51 = vld [vmem:[%s11858_s30 + $0x4a8] sm:$0xff]  ;;  %v3517_v15 = vrot.slane %v8550_v10, 1  ;;  %v3289_v16 = vld [vmem:[%s11858_s30] sm:$0xff] }
 0x1a6   : > { %v8637_v41 = vld [vmem:[%s11858_s30 + $0x550] sm:$0xff]  ;;  %v3294_v43 = vld [vmem:[%s11858_s30 + $0x28] sm:$0xff]  ;;  %v3312_v10 = vld [vmem:[%s11858_s30 + $0xb8] sm:$0xff] }
 0x1a7   : > { %10487 = vmatpush1.bf16.msra.mxu0 %v10486_v52  ;;  %10871 = vmatpush1.bf16.msra.mxu1 %v10486_v52  ;;  %v8618_v52 = vld [vmem:[%s11858_s30 + $0x4b8] sm:$0xff]  ;;  %v8560_v42 = vld [vmem:[%s11890_s11 + $0x150] sm:$0x1] }
 0x1a8   : > { %10489 = vmatprep.subr.bf16.mxu0 %v10488_v36  ;;  %10873 = vmatprep.subr.bf16.mxu1 %v10488_v36  ;;  %v10518_v36 = vpack.c.bf16 %v8613_v48, %v8611_v45  ;;  %v10520_v54 = vpack.c.bf16 %v8618_v52, %v8616_v51  ;;  %v8642_v45 = vld [vmem:[%s11858_s30 + $0x578] sm:$0xff]  ;;  %v3534_v48 = vrot.slane %v8561_v35, 1  ;;  %v8889_v28 = vld [vmem:[%s11890_s11 + $0x310] sm:$0xff]  ;;  %v3293_v35 = vld [vmem:[%s11858_s30 + $0x20] sm:$0xff] }
 0x1ab   : > { %10491 = vmatpush1.bf16.msra.mxu0 %v10490_v29  ;;  %10875 = vmatpush1.bf16.msra.mxu1 %v10490_v29  ;;  %v8622_v29 = vld [vmem:[%s11858_s30 + $0x4d8] sm:$0xff] }
 0x1ac   : > { %10493 = vmatprep.subr.bf16.mxu0 %v10492_v30  ;;  %10877 = vmatprep.subr.bf16.mxu1 %v10492_v30  ;;  %v10522_v30 = vpack.c.bf16 %v8617_v46, %v8615_v38  ;;  %v10524_v57 = vpack.c.bf16 %v8622_v29, %v8620_v50  ;;  %v8639_v46 = vld [vmem:[%s11858_s30 + $0x560] sm:$0xff]  ;;  %v8644_v50 = vld [vmem:[%s11858_s30 + $0x588] sm:$0xff] }
 0x1af   : > { %10495 = vmatpush1.bf16.msra.mxu0 %v10494_v61  ;;  %10879 = vmatpush1.bf16.msra.mxu1 %v10494_v61  ;;  %v8626_v61 = vld [vmem:[%s11858_s30 + $0x4f8] sm:$0xff] }
 0x1b0   : > { %10497 = vmatprep.subr.bf16.mxu0 %v10496_v62  ;;  %10881 = vmatprep.subr.bf16.mxu1 %v10496_v62  ;;  %v10526_v62 = vpack.c.bf16 %v8621_v59, %v8619_v58  ;;  %v10528_v1 = vpack.c.bf16 %v8626_v61, %v8624_v60  ;;  %v8649_v58 = vld [vmem:[%s11858_s30 + $0x5b0] sm:$0xff]  ;;  %v8652_v59 = vld [vmem:[%s11858_s30 + $0x5c8] sm:$0xff]  ;;  %v8654_v60 = vld [vmem:[%s11858_s30 + $0x5d8] sm:$0xff] }
 0x1b3   : > { %10499 = vmatpush1.bf16.msra.mxu0 %v10498_v6  ;;  %10883 = vmatpush1.bf16.msra.mxu1 %v10498_v6  ;;  %v8881_v6 = vld [vmem:[%s11890_s11 + $0x2d0] sm:$0xfe] }
 0x1b4   : > { %10501 = vmatprep.subr.bf16.mxu0 %v10500_v7  ;;  %10885 = vmatprep.subr.bf16.mxu1 %v10500_v7  ;;  %v8628_v7 = vld [vmem:[%s11858_s30 + $0x508] sm:$0xff]  ;;  %v4987_v11 = vrot.slane %v8881_v6, 1 }
 0x1b7   : > { %10503 = vmatpush1.bf16.msra.mxu0 %v10502_v12  ;;  %10887 = vmatpush1.bf16.msra.mxu1 %v10502_v12  ;;  %v10532_v12 = vpack.c.bf16 %v8630_v8, %v8628_v7  ;;  %v8655_v7 = vld [vmem:[%s11858_s30 + $0x5e0] sm:$0xff]  ;;  %v10560_v8 = vpack.c.bf16 %v8658_v4, %v8656_v3 }
 0x1b8   : > { %10505 = vmatprep.subr.bf16.mxu0 %v10504_v13  ;;  %10889 = vmatprep.subr.bf16.mxu1 %v10504_v13  ;;  %v8627_v13 = vld [vmem:[%s11858_s30 + $0x500] sm:$0xff] }
 0x1bb   : > { %10507 = vmatpush1.bf16.msra.mxu0 %v10506_v18  ;;  %10891 = vmatpush1.bf16.msra.mxu1 %v10506_v18  ;;  %v10534_v18 = vpack.c.bf16 %v8629_v14, %v8627_v13  ;;  %v3292_v13 = vld [vmem:[%s11858_s30 + $0x18] sm:$0xff] }
 0x1bc   : > { %10509 = vmatprep.subr.bf16.mxu0 %v10508_v19  ;;  %10893 = vmatprep.subr.bf16.mxu1 %v10508_v19  ;;  %v4989_v19 = vsel %vm663_vm0, %v4987_v11, %v12426_v56  ;;  %v8894_v56 = vld [vmem:[%s11890_s11 + $0x338] sm:$0x1]  ;;  %v8883_v11 = vld [vmem:[%s11890_s11 + $0x2e0] sm:$0xfe] }
 0x1bd   : > { %v5010_v51 = vrot.slane %v8894_v56, 1  ;;  %v3295_v56 = vld [vmem:[%s11858_s30 + $0x30] sm:$0xff] }
 0x1bf   : > { %10511 = vmatpush1.bf16.msra.mxu0 %v10510_v49  ;;  %10895 = vmatpush1.bf16.msra.mxu1 %v10510_v49  ;;  %v8638_v49 = vld [vmem:[%s11858_s30 + $0x558] sm:$0xff] }
 0x1c0   : > { %10513 = vmatprep.subr.bf16.mxu0 %v10512_v53  ;;  %10897 = vmatprep.subr.bf16.mxu1 %v10512_v53  ;;  %v8635_v53 = vld [vmem:[%s11858_s30 + $0x540] sm:$0xff]  ;;  %v10540_v37 = vpack.c.bf16 %v8638_v49, %v8636_v47  ;;  %v3296_v47 = vld [vmem:[%s11858_s30 + $0x38] sm:$0xff] }
 0x1c1   : > { %v10542_v52 = vpack.c.bf16 %v8637_v41, %v8635_v53  ;;  %v5000_v41 = vrot.slane %v8889_v28, 1  ;;  %v3315_v28 = vld [vmem:[%s11858_s30 + $0xd0] sm:$0xff] }
 0x1c3   : > { %10515 = vmatpush1.bf16.msra.mxu0 %v10514_v2  ;;  %10899 = vmatpush1.bf16.msra.mxu1 %v10514_v2  ;;  %v8893_v2 = vld [vmem:[%s11890_s11 + $0x330] sm:$0x1] }
 0x1c4   : > { %10517 = vmatprep.subr.bf16.mxu0 %v10516_v44  ;;  %10901 = vmatprep.subr.bf16.mxu1 %v10516_v44  ;;  %v8640_v44 = vld [vmem:[%s11858_s30 + $0x568] sm:$0xff] }
 0x1c5   : > { %v10544_v38 = vpack.c.bf16 %v8642_v45, %v8640_v44  ;;  %v8892_v44 = vld [vmem:[%s11890_s11 + $0x328] sm:$0xff] }
 0x1c6   : > { %v3298_v45 = vld [vmem:[%s11858_s30 + $0x48] sm:$0xff] }
 0x1c7   : > { %10519 = vmatpush1.bf16.msra.mxu0 %v10518_v36  ;;  %10903 = vmatpush1.bf16.msra.mxu1 %v10518_v36  ;;  %v3532_v36 = vrot.slane %v8560_v42, 1  ;;  %v10568_v42 = vpack.c.bf16 %v3296_v47, %v3294_v43  ;;  %v3318_v43 = vld [vmem:[%s11858_s30 + $0xe8] sm:$0xff]  ;;  %v3320_v47 = vld [vmem:[%s11858_s30 + $0xf8] sm:$0xff] }
 0x1c8   : > { %10521 = vmatprep.subr.bf16.mxu0 %v10520_v54  ;;  %10905 = vmatprep.subr.bf16.mxu1 %v10520_v54  ;;  %v5008_v54 = vrot.slane %v8893_v2, 1  ;;  %v8559_v2 = vld [vmem:[%s11890_s11 + $0x148] sm:$0xff] }
 0x1cb   : > { %10523 = vmatpush1.bf16.msra.mxu0 %v10522_v30  ;;  %10907 = vmatpush1.bf16.msra.mxu1 %v10522_v30  ;;  %v8648_v30 = vld [vmem:[%s11858_s30 + $0x5a8] sm:$0xff] }
 0x1cc   : > { %10525 = vmatprep.subr.bf16.mxu0 %v10524_v57  ;;  %10909 = vmatprep.subr.bf16.mxu1 %v10524_v57  ;;  %v8647_v57 = vld [vmem:[%s11858_s30 + $0x5a0] sm:$0xff] }
 0x1cd   : > { %v10554_v61 = vpack.c.bf16 %v8649_v58, %v8647_v57  ;;  %v3303_v57 = vld [vmem:[%s11858_s30 + $0x70] sm:$0xff]  ;;  %v3306_v58 = vld [vmem:[%s11858_s30 + $0x88] sm:$0xff] }
 0x1cf   : > { %10527 = vmatpush1.bf16.msra.mxu0 %v10526_v62  ;;  %10911 = vmatpush1.bf16.msra.mxu1 %v10526_v62  ;;  %v10556_v62 = vpack.c.bf16 %v8654_v60, %v8652_v59  ;;  %v3308_v59 = vld [vmem:[%s11858_s30 + $0x98] sm:$0xff] }
 0x1d0   : > { %10529 = vmatprep.subr.bf16.mxu0 %v10528_v1  ;;  %10913 = vmatprep.subr.bf16.mxu1 %v10528_v1  ;;  %v8653_v1 = vld [vmem:[%s11858_s30 + $0x5d0] sm:$0xff] }
 0x1d1   : > { %v10558_v6 = vpack.c.bf16 %v8653_v1, %v8651_v63 }
 0x1d3   : > { %10531 = vmatpush1.bf16.msra.mxu0 %v10530_v9  ;;  %10915 = vmatpush1.bf16.msra.mxu1 %v10530_v9  ;;  %v8657_v9 = vld [vmem:[%s11858_s30 + $0x5f0] sm:$0xff] }
 0x1d4   : > { %10533 = vmatprep.subr.bf16.mxu0 %v10532_v12  ;;  %10917 = vmatprep.subr.bf16.mxu1 %v10532_v12  ;;  %v3290_v12 = vld [vmem:[%s11858_s30 + $0x8] sm:$0xff]  ;;  %v10562_v14 = vpack.c.bf16 %v8657_v9, %v8655_v7  ;;  %v3305_v7 = vld [vmem:[%s11858_s30 + $0x80] sm:$0xff] }
 0x1d5   : > { %v3310_v9 = vld [vmem:[%s11858_s30 + $0xa8] sm:$0xff] }
 0x1d6   : > { %3615 = vmatmul.mubr.f32.vlgmr.msra.gmra.mrb[8].mxu0 %v3513_v17  ;;  %5091 = vmatmul.mubr.f32.vlgmr.msra.gmra.mrb[8].mxu1 %v4989_v19  ;;  %v3291_v17 = vld [vmem:[%s11858_s30 + $0x10] sm:$0xff]  ;;  %v10564_v19 = vpack.c.bf16 %v3292_v13, %v3290_v12 }
 0x1d7   : > { %10535 = vmatpush1.bf16.msra.mxu0 %v10534_v18  ;;  %10919 = vmatpush1.bf16.msra.mxu1 %v10534_v18  ;;  %v4993_v18 = vrot.slane %v8883_v11, 1  ;;  %v10566_v49 = vpack.c.bf16 %v3291_v17, %v3289_v16  ;;  %v3314_v16 = vld [vmem:[%s11858_s30 + $0xc8] sm:$0xff]  ;;  %v3316_v17 = vld [vmem:[%s11858_s30 + $0xd8] sm:$0xff] }
 0x1d8   : > { %10537 = vmatprep.subr.bf16.mxu0 %v10536_v27  ;;  %10921 = vmatprep.subr.bf16.mxu1 %v10536_v27  ;;  %v8556_v27 = vld [vmem:[%s11890_s11 + $0x130] sm:$0xff] }
 0x1d9   : > { %3620 = vmatprep.mubr.f32.mxu0 %v12450_v0  ;;  %5096 = vmatprep.mubr.f32.mxu1 %v12454_v20  ;;  %v8641_v0 = vld [vmem:[%s11858_s30 + $0x570] sm:$0xff]  ;;  %v8646_v20 = vld [vmem:[%s11858_s30 + $0x598] sm:$0xff]  ;;  %v4995_v53 = vsel %vm663_vm0, %v4993_v18, %v12540_v32 }
 0x1da   : > { %3621 = vmatmul.mubr.f32.gmra.mrb[10].mxu0 %v12462_v23  ;;  %5097 = vmatmul.mubr.f32.gmra.mrb[10].mxu1 %v12466_v24  ;;  %v3535_v23 = vsel %vm663_vm0, %v12456_v21, %v3534_v48  ;;  %v5011_v24 = vsel %vm663_vm0, %v12458_v22, %v5010_v51  ;;  %v10546_v29 = vpack.c.bf16 %v8641_v0, %v8639_v46  ;;  %v8645_v21 = vld [vmem:[%s11858_s30 + $0x590] sm:$0xff]  ;;  %v8650_v22 = vld [vmem:[%s11858_s30 + $0x5b8] sm:$0xff]  ;;  %v3530_v46 = vrot.slane %v8559_v2, 1  ;;  %v3321_v2 = vld [vmem:[%s11858_s30 + $0x100] sm:$0xff] }
 0x1db   : > { %10539 = vmatpush1.bf16.msra.mxu0 %v10538_v55  ;;  %10923 = vmatpush1.bf16.msra.mxu1 %v10538_v55  ;;  %v3519_v55 = vsel %vm663_vm0, %v3517_v15, %v12538_v31  ;;  %v3300_v48 = vld [vmem:[%s11858_s30 + $0x58] sm:$0xff]  ;;  %v10570_v51 = vpack.c.bf16 %v3295_v56, %v3293_v35  ;;  %v5006_v0 = vrot.slane %v8892_v44, 1  ;;  %v3311_v15 = vld [vmem:[%s11858_s30 + $0xb0] sm:$0xff]  ;;  %v3322_v56 = vld [vmem:[%s11858_s30 + $0x108] sm:$0xff] }
 0x1dc   : > { %10541 = vmatprep.subr.bf16.mxu0 %v10540_v37  ;;  %10925 = vmatprep.subr.bf16.mxu1 %v10540_v37  ;;  %v3524_v37 = vrot.slane %v8556_v27, 1  ;;  %v3313_v27 = vld [vmem:[%s11858_s30 + $0xc0] sm:$0xff]  ;;  %v3319_v35 = vld [vmem:[%s11858_s30 + $0xf0] sm:$0xff] }
 0x1dd   : > { %3626 = vmatprep.mubr.f32.mxu0 %v12484_v33  ;;  %5102 = vmatprep.mubr.f32.mxu1 %v12488_v34  ;;  %v3533_v33 = vsel %vm663_vm0, %v12468_v25, %v3532_v36  ;;  %v5009_v34 = vsel %vm663_vm0, %v12470_v26, %v5008_v54  ;;  %v10552_v26 = vpack.c.bf16 %v8650_v22, %v8648_v30  ;;  %v3299_v36 = vld [vmem:[%s11858_s30 + $0x50] sm:$0xff]  ;;  %v8867_v30 = vld [vmem:[%s11890_s11 + $0x260] sm:$0xfe]  ;;  %v12734_v22 = vld [vmem:[%s11890_s11 + $0x278] sm:$0xff] }
 0x1de   : > { %3627 = vmatmul.mubr.f32.gmra.mrb[12].mxu0 %v12492_v39  ;;  %5103 = vmatmul.mubr.f32.gmra.mrb[12].mxu1 %v12496_v40  ;;  %v10548_v39 = vpack.c.bf16 %v8646_v20, %v8644_v50  ;;  %v8643_v40 = vld [vmem:[%s11858_s30 + $0x580] sm:$0xff]  ;;  %v3525_v54 = vsel %vm663_vm0, %v12538_v31, %v3524_v37  ;;  %v10572_v50 = vpack.c.bf16 %v3300_v48, %v3298_v45  ;;  %v5223_v63 = vrot.slane %v12734_v22, 1  ;;  %v3323_v44 = vld [vmem:[%s11858_s30 + $0x110] sm:$0xff]  ;;  %v3326_v45 = vld [vmem:[%s11858_s30 + $0x128] sm:$0xff] }
 0x1df   : > { %10543 = vmatpush1.bf16.msra.mxu0 %v10542_v52  ;;  %10927 = vmatpush1.bf16.msra.mxu1 %v10542_v52  ;;  %v10550_v25 = vpack.c.bf16 %v8645_v21, %v8643_v40  ;;  %v3297_v52 = vld [vmem:[%s11858_s30 + $0x40] sm:$0xff]  ;;  %v12730_v21 = vld [vmem:[%s11890_s11 + $0x98] sm:$0xff] }
 0x1e0   : > { %10545 = vmatprep.subr.bf16.mxu0 %v10544_v38  ;;  %10929 = vmatprep.subr.bf16.mxu1 %v10544_v38  ;;  %v5001_v38 = vsel %vm663_vm0, %v12540_v32, %v5000_v41  ;;  %v8562_v20 = vld [vmem:[%s11890_s11 + $0x160] sm:$0x1]  ;;  %v10574_v31 = vpack.c.bf16 %v3299_v36, %v3297_v52  ;;  %v8534_v32 = vld [vmem:[%s11890_s11 + $0x80] sm:$0xfe]  ;;  %v3328_v48 = vld [vmem:[%s11858_s30 + $0x138] sm:$0xff] }
 0x1e1   : > { %3632 = vmatprep.mubr.f32.mxu0 %v3535_v23  ;;  %5108 = vmatprep.mubr.f32.mxu1 %v5011_v24  ;;  %v8895_v23 = vld [vmem:[%s11890_s11 + $0x340] sm:$0x1]  ;;  %v3302_v24 = vld [vmem:[%s11858_s30 + $0x68] sm:$0xff]  ;;  %v3746_v60 = vrot.slane %v8534_v32, 1  ;;  %v10600_v52 = vpack.c.bf16 %v3328_v48, %v3326_v45  ;;  %v3360_v48 = vld [vmem:[%s11858_s30 + $0x238] sm:$0xff] }
 0x1e2   : > { %3633 = vmatmul.mubr.f32.gmra.mrb[14].mxu0 %v3533_v33  ;;  %5109 = vmatmul.mubr.f32.gmra.mrb[14].mxu1 %v5009_v34  ;;  %v3531_v33 = vsel %vm663_vm0, %v3524_v37, %v3530_v46  ;;  %v5007_v34 = vsel %vm663_vm0, %v5000_v41, %v5006_v0  ;;  %v5012_v40 = vrot.slane %v8895_v23, 1  ;;  %v3324_v37 = vld [vmem:[%s11858_s30 + $0x118] sm:$0xff]  ;;  %v3325_v36 = vld [vmem:[%s11858_s30 + $0x120] sm:$0xff]  ;;  %v3331_v23 = vld [vmem:[%s11858_s30 + $0x150] sm:$0xff] }
 0x1e3   : > { %10547 = vmatpush1.bf16.msra.mxu0 %v10546_v29  ;;  %10931 = vmatpush1.bf16.msra.mxu1 %v10546_v29  ;;  %v3304_v29 = vld [vmem:[%s11858_s30 + $0x78] sm:$0xff]  ;;  %v3358_v45 = vld [vmem:[%s11858_s30 + $0x228] sm:$0xff] }
 0x1e4   : > { %10549 = vmatprep.subr.bf16.mxu0 %v10548_v39  ;;  %10933 = vmatprep.subr.bf16.mxu1 %v10548_v39  ;;  %v3536_v39 = vrot.slane %v8562_v20, 1  ;;  %v5013_v4 = vsel %vm663_vm0, %v5006_v0, %v5012_v40  ;;  %v3329_v20 = vld [vmem:[%s11858_s30 + $0x140] sm:$0xff]  ;;  %v3340_v40 = vld [vmem:[%s11858_s30 + $0x198] sm:$0xff] }
 0x1e5   : > { %3703 = vmatprep.mubr.f32.mxu0 %v12522_v5  ;;  %5179 = vmatprep.mubr.f32.mxu1 %v12522_v5 }
 0x1e6   : > { %v3537_v3 = vsel %vm663_vm0, %v3530_v46, %v3536_v39  ;;  %v3332_v46 = vld [vmem:[%s11858_s30 + $0x158] sm:$0xff]  ;;  %v3338_v39 = vld [vmem:[%s11858_s30 + $0x188] sm:$0xff] }
 0x1e7   : > { %10551 = vmatpush1.bf16.msra.mxu0 %v10550_v25  ;;  %10935 = vmatpush1.bf16.msra.mxu1 %v10550_v25  ;;  %v10576_v25 = vpack.c.bf16 %v3304_v29, %v3302_v24  ;;  %v3334_v24 = vld [vmem:[%s11858_s30 + $0x168] sm:$0xff]  ;;  %v3336_v29 = vld [vmem:[%s11858_s30 + $0x178] sm:$0xff] }
 0x1e8   : > { %10553 = vmatprep.subr.bf16.mxu0 %v10552_v26  ;;  %10937 = vmatprep.subr.bf16.mxu1 %v10552_v26  ;;  %v3301_v26 = vld [vmem:[%s11858_s30 + $0x60] sm:$0xff]  ;;  %v10608_v32 = vpack.c.bf16 %v3336_v29, %v3334_v24  ;;  %v8876_v24 = vld [vmem:[%s11890_s11 + $0x2a8] sm:$0xff]  ;;  %v10632_v29 = vpack.c.bf16 %v3360_v48, %v3358_v45  ;;  %v3380_v48 = vld [vmem:[%s11858_s30 + $0x2d8] sm:$0xff] }
 0x1e9   : > { %v10578_v1 = vpack.c.bf16 %v3303_v57, %v3301_v26  ;;  %v3337_v26 = vld [vmem:[%s11858_s30 + $0x180] sm:$0xff]  ;;  %v3339_v57 = vld [vmem:[%s11858_s30 + $0x190] sm:$0xff]  ;;  %v3378_v45 = vld [vmem:[%s11858_s30 + $0x2c8] sm:$0xff] }
 0x1eb   : > { %10555 = vmatpush1.bf16.msra.mxu0 %v10554_v61  ;;  %10939 = vmatpush1.bf16.msra.mxu1 %v10554_v61  ;;  %v3747_v61 = vrot.slane %v12730_v21, 1 }
 0x1ec   : > { %10557 = vmatprep.subr.bf16.mxu0 %v10556_v62  ;;  %10941 = vmatprep.subr.bf16.mxu1 %v10556_v62  ;;  %v5222_v62 = vrot.slane %v8867_v30, 1 }
 0x1ed   : > { %v3748_v11 = vsel %vm663_vm0, %v3746_v60, %v3747_v61  ;;  %v10614_v60 = vpack.c.bf16 %v3339_v57, %v3337_v26 }
 0x1ee   : > { %v5224_v12 = vsel %vm663_vm0, %v5222_v62, %v5223_v63 }
 0x1ef   : > { %10559 = vmatpush1.bf16.msra.mxu0 %v10558_v6  ;;  %10943 = vmatpush1.bf16.msra.mxu1 %v10558_v6  ;;  %v10580_v6 = vpack.c.bf16 %v3308_v59, %v3306_v58  ;;  %v3342_v58 = vld [vmem:[%s11858_s30 + $0x1a8] sm:$0xff]  ;;  %v3344_v59 = vld [vmem:[%s11858_s30 + $0x1b8] sm:$0xff] }
 0x1f0   : > { %10561 = vmatprep.subr.bf16.mxu0 %v10560_v8  ;;  %10945 = vmatprep.subr.bf16.mxu1 %v10560_v8  ;;  %v3307_v8 = vld [vmem:[%s11858_s30 + $0x90] sm:$0xff]  ;;  %v10616_v62 = vpack.c.bf16 %v3344_v59, %v3342_v58  ;;  %v5236_v58 = vrot.slane %v8876_v24, 1  ;;  %v8535_v24 = vld [vmem:[%s11890_s11 + $0x88] sm:$0xfe] }
 0x1f1   : > { %v10582_v13 = vpack.c.bf16 %v3307_v8, %v3305_v7 }
 0x1f3   : > { %10563 = vmatpush1.bf16.msra.mxu0 %v10562_v14  ;;  %10947 = vmatpush1.bf16.msra.mxu1 %v10562_v14  ;;  %v10584_v14 = vpack.c.bf16 %v3312_v10, %v3310_v9  ;;  %v3345_v9 = vld [vmem:[%s11858_s30 + $0x1c0] sm:$0xff]  ;;  %v3347_v10 = vld [vmem:[%s11858_s30 + $0x1d0] sm:$0xff] }
 0x1f4   : > { %10565 = vmatprep.subr.bf16.mxu0 %v10564_v19  ;;  %10949 = vmatprep.subr.bf16.mxu1 %v10564_v19  ;;  %v10588_v19 = vpack.c.bf16 %v3316_v17, %v3314_v16  ;;  %v8536_v17 = vld [vmem:[%s11890_s11 + $0x90] sm:$0xff] }
 0x1f6   : > { %3704 = vmatmul.mubr.f32.vlgmr.msra.gmra.mrb[8].mxu0 %v3519_v55  ;;  %5180 = vmatmul.mubr.f32.vlgmr.msra.gmra.mrb[8].mxu1 %v4995_v53  ;;  %v10592_v55 = vpack.c.bf16 %v3320_v47, %v3318_v43  ;;  %v3317_v53 = vld [vmem:[%s11858_s30 + $0xe0] sm:$0xff] }
 0x1f7   : > { %10567 = vmatpush1.bf16.msra.mxu0 %v10566_v49  ;;  %10951 = vmatpush1.bf16.msra.mxu1 %v10566_v49  ;;  %v10590_v49 = vpack.c.bf16 %v3315_v28, %v3313_v27  ;;  %v10594_v41 = vpack.c.bf16 %v3319_v35, %v3317_v53  ;;  %v3354_v27 = vld [vmem:[%s11858_s30 + $0x208] sm:$0xff]  ;;  %v3356_v28 = vld [vmem:[%s11858_s30 + $0x218] sm:$0xff]  ;;  %v3353_v47 = vld [vmem:[%s11858_s30 + $0x200] sm:$0xff] }
 0x1f8   : > { %10569 = vmatprep.subr.bf16.mxu0 %v10568_v42  ;;  %10953 = vmatprep.subr.bf16.mxu1 %v10568_v42  ;;  %v10596_v42 = vpack.c.bf16 %v3324_v37, %v3322_v56  ;;  %v3355_v53 = vld [vmem:[%s11858_s30 + $0x210] sm:$0xff] }
 0x1f9   : > { %3709 = vmatprep.mubr.f32.mxu0 %v12522_v5  ;;  %5185 = vmatprep.mubr.f32.mxu1 %v12522_v5  ;;  %v8540_v37 = vld [vmem:[%s11890_s11 + $0xb0] sm:$0xff] }
 0x1fa   : > { %3710 = vmatmul.mubr.f32.gmra.mrb[10].mxu0 %v3525_v54  ;;  %5186 = vmatmul.mubr.f32.gmra.mrb[10].mxu1 %v5001_v38  ;;  %v3327_v54 = vld [vmem:[%s11858_s30 + $0x130] sm:$0xff]  ;;  %v3330_v38 = vld [vmem:[%s11858_s30 + $0x148] sm:$0xff] }
 0x1fb   : > { %10571 = vmatpush1.bf16.msra.mxu0 %v10570_v51  ;;  %10955 = vmatpush1.bf16.msra.mxu1 %v10570_v51  ;;  %v10598_v51 = vpack.c.bf16 %v3323_v44, %v3321_v2  ;;  %v10602_v0 = vpack.c.bf16 %v3327_v54, %v3325_v36  ;;  %v8539_v2 = vld [vmem:[%s11890_s11 + $0xa8] sm:$0xff]  ;;  %v3359_v36 = vld [vmem:[%s11858_s30 + $0x230] sm:$0xff]  ;;  %v3754_v54 = vrot.slane %v8540_v37, 1  ;;  %v3376_v37 = vld [vmem:[%s11858_s30 + $0x2b8] sm:$0xff] }
 0x1fc   : > { %10573 = vmatprep.subr.bf16.mxu0 %v10572_v50  ;;  %10957 = vmatprep.subr.bf16.mxu1 %v10572_v50  ;;  %v10604_v50 = vpack.c.bf16 %v3332_v46, %v3330_v38  ;;  %v8872_v44 = vld [vmem:[%s11890_s11 + $0x288] sm:$0xff] }
 0x1fd   : > { %3715 = vmatprep.mubr.f32.mxu0 %v12522_v5  ;;  %5191 = vmatprep.mubr.f32.mxu1 %v12522_v5 }
 0x1fe   : > { %3716 = vmatmul.mubr.f32.gmra.mrb[12].mxu0 %v3531_v33  ;;  %5192 = vmatmul.mubr.f32.gmra.mrb[12].mxu1 %v5007_v34  ;;  %v3333_v33 = vld [vmem:[%s11858_s30 + $0x160] sm:$0xff]  ;;  %v3335_v34 = vld [vmem:[%s11858_s30 + $0x170] sm:$0xff] }
 0x1ff   : > { %10575 = vmatpush1.bf16.msra.mxu0 %v10574_v31  ;;  %10959 = vmatpush1.bf16.msra.mxu1 %v10574_v31  ;;  %v10606_v31 = vpack.c.bf16 %v3331_v23, %v3329_v20  ;;  %v10610_v30 = vpack.c.bf16 %v3335_v34, %v3333_v33  ;;  %v5228_v20 = vrot.slane %v8872_v44, 1  ;;  %v8543_v23 = vld [vmem:[%s11890_s11 + $0xc8] sm:$0xff]  ;;  %v3375_v44 = vld [vmem:[%s11858_s30 + $0x2b0] sm:$0xff] }
 0x200   : > { %10577 = vmatprep.subr.bf16.mxu0 %v10576_v25  ;;  %10961 = vmatprep.subr.bf16.mxu1 %v10576_v25  ;;  %v10612_v25 = vpack.c.bf16 %v3340_v40, %v3338_v39  ;;  %v3362_v34 = vld [vmem:[%s11858_s30 + $0x248] sm:$0xff]  ;;  %v3364_v39 = vld [vmem:[%s11858_s30 + $0x258] sm:$0xff]  ;;  %v3361_v40 = vld [vmem:[%s11858_s30 + $0x240] sm:$0xff]  ;;  %v3760_v57 = vrot.slane %v8543_v23, 1 }
 0x201   : > { %3721 = vmatprep.mubr.f32.mxu0 %v12522_v5  ;;  %5197 = vmatprep.mubr.f32.mxu1 %v12522_v5  ;;  %v3309_v5 = vld [vmem:[%s11858_s30 + $0xa0] sm:$0xff]  ;;  %v10636_v22 = vpack.c.bf16 %v3364_v39, %v3362_v34  ;;  %v3383_v23 = vld [vmem:[%s11858_s30 + $0x2f0] sm:$0xff]  ;;  %v8675_v34 = vld [vmem:[%s11858_s30 + $0x608] sm:$0xff] }
 0x202   : > { %3722 = vmatmul.mubr.f32.gmra.mrb[14].mxu0 %v3537_v3  ;;  %5198 = vmatmul.mubr.f32.gmra.mrb[14].mxu1 %v5013_v4  ;;  %v10586_v18 = vpack.c.bf16 %v3311_v15, %v3309_v5  ;;  %v3343_v3 = vld [vmem:[%s11858_s30 + $0x1b0] sm:$0xff]  ;;  %v3346_v4 = vld [vmem:[%s11858_s30 + $0x1c8] sm:$0xff]  ;;  %v8533_v15 = vld [vmem:[%s11890_s11 + $0x78] sm:$0xfe] }
 0x203   : > { %10579 = vmatpush1.bf16.msra.mxu0 %v10578_v1  ;;  %10963 = vmatpush1.bf16.msra.mxu1 %v10578_v1  ;;  %v3341_v1 = vld [vmem:[%s11858_s30 + $0x1a0] sm:$0xff]  ;;  %v3351_v5 = vld [vmem:[%s11858_s30 + $0x1f0] sm:$0xff]  ;;  %v3743_v43 = vrot.slane %v8533_v15, 1  ;;  %v8677_v39 = vld [vmem:[%s11858_s30 + $0x618] sm:$0xff] }
 0x204   : > { %10581 = vmatprep.subr.bf16.mxu0 %v10580_v6  ;;  %10965 = vmatprep.subr.bf16.mxu1 %v10580_v6  ;;  %v3348_v6 = vld [vmem:[%s11858_s30 + $0x1d8] sm:$0xff]  ;;  %v10618_v7 = vpack.c.bf16 %v3343_v3, %v3341_v1  ;;  %v8546_v1 = vld [vmem:[%s11890_s11 + $0xe0] sm:$0x1] }
 0x205   : > { %3846 = vmatprep.mubr.f32.mxu0 %v3748_v11  ;;  %5322 = vmatprep.mubr.f32.mxu1 %v5224_v12  ;;  %v10620_v8 = vpack.c.bf16 %v3348_v6, %v3346_v4  ;;  %v3350_v11 = vld [vmem:[%s11858_s30 + $0x1e8] sm:$0xff]  ;;  %v3352_v12 = vld [vmem:[%s11858_s30 + $0x1f8] sm:$0xff]  ;;  %v8879_v3 = vld [vmem:[%s11890_s11 + $0x2c0] sm:$0x1] }
 0x206   : > { %v10624_v16 = vpack.c.bf16 %v3352_v12, %v3350_v11  ;;  %v8878_v4 = vld [vmem:[%s11890_s11 + $0x2b8] sm:$0x1]  ;;  %v3366_v6 = vld [vmem:[%s11858_s30 + $0x268] sm:$0xff]  ;;  %v5242_v11 = vrot.slane %v8879_v3, 1 }
 0x207   : > { %10583 = vmatpush1.bf16.msra.mxu0 %v10582_v13  ;;  %10967 = vmatpush1.bf16.msra.mxu1 %v10582_v13  ;;  %v10622_v13 = vpack.c.bf16 %v3347_v10, %v3345_v9  ;;  %v3766_v10 = vrot.slane %v8546_v1, 1  ;;  %v8679_v1 = vld [vmem:[%s11858_s30 + $0x628] sm:$0xff]  ;;  %v8681_v3 = vld [vmem:[%s11858_s30 + $0x638] sm:$0xff] }
 0x208   : > { %10585 = vmatprep.subr.bf16.mxu0 %v10584_v14  ;;  %10969 = vmatprep.subr.bf16.mxu1 %v10584_v14  ;;  %v3349_v14 = vld [vmem:[%s11858_s30 + $0x1e0] sm:$0xff] }
 0x20b   : > { %10587 = vmatpush1.bf16.msra.mxu0 %v10586_v18  ;;  %10971 = vmatpush1.bf16.msra.mxu1 %v10586_v18  ;;  %v8866_v18 = vld [vmem:[%s11890_s11 + $0x258] sm:$0xfe] }
 0x20c   : > { %10589 = vmatprep.subr.bf16.mxu0 %v10588_v19  ;;  %10973 = vmatprep.subr.bf16.mxu1 %v10588_v19  ;;  %v8869_v19 = vld [vmem:[%s11890_s11 + $0x270] sm:$0xff]  ;;  %v5219_v35 = vrot.slane %v8866_v18, 1  ;;  %v3370_v18 = vld [vmem:[%s11858_s30 + $0x288] sm:$0xff] }
 0x20d   : > { %v5220_v56 = vrot.slane %v8869_v19, 1  ;;  %v3372_v19 = vld [vmem:[%s11858_s30 + $0x298] sm:$0xff] }
 0x20f   : > { %10591 = vmatpush1.bf16.msra.mxu0 %v10590_v49  ;;  %10975 = vmatpush1.bf16.msra.mxu1 %v10590_v49  ;;  %v10626_v49 = vpack.c.bf16 %v3351_v5, %v3349_v14  ;;  %v5240_v5 = vrot.slane %v8878_v4, 1 }
 0x210   : > { %10593 = vmatprep.subr.bf16.mxu0 %v10592_v55  ;;  %10977 = vmatprep.subr.bf16.mxu1 %v10592_v55  ;;  %v3744_v55 = vrot.slane %v8536_v17, 1  ;;  %v3367_v17 = vld [vmem:[%s11858_s30 + $0x270] sm:$0xff] }
 0x212   : > { %v3745_v46 = vsel %vm663_vm0, %v3743_v43, %v3744_v55 }
 0x213   : > { %10595 = vmatpush1.bf16.msra.mxu0 %v10594_v41  ;;  %10979 = vmatpush1.bf16.msra.mxu1 %v10594_v41  ;;  %v8873_v41 = vld [vmem:[%s11890_s11 + $0x290] sm:$0xff] }
 0x214   : > { %10597 = vmatprep.subr.bf16.mxu0 %v10596_v42  ;;  %10981 = vmatprep.subr.bf16.mxu1 %v10596_v42  ;;  %v10628_v42 = vpack.c.bf16 %v3356_v28, %v3354_v27  ;;  %v5230_v38 = vrot.slane %v8873_v41, 1  ;;  %v3767_v27 = vsel %vm663_vm0, %v3760_v57, %v3766_v10  ;;  %v5243_v28 = vsel %vm663_vm0, %v5236_v58, %v5242_v11  ;;  %v8544_v10 = vld [vmem:[%s11890_s11 + $0xd0] sm:$0xff] }
 0x215   : > { %v8877_v11 = vld [vmem:[%s11890_s11 + $0x2b0] sm:$0xff] }
 0x216   : > { %v5231_v26 = vsel %vm663_vm0, %v5223_v63, %v5230_v38  ;;  %v5237_v9 = vsel %vm663_vm0, %v5230_v38, %v5236_v58  ;;  %v3379_v38 = vld [vmem:[%s11858_s30 + $0x2d0] sm:$0xff] }
 0x217   : > { %10599 = vmatpush1.bf16.msra.mxu0 %v10598_v51  ;;  %10983 = vmatpush1.bf16.msra.mxu1 %v10598_v51  ;;  %v10630_v51 = vpack.c.bf16 %v3355_v53, %v3353_v47  ;;  %v3369_v53 = vld [vmem:[%s11858_s30 + $0x280] sm:$0xff] }
 0x218   : > { %10601 = vmatprep.subr.bf16.mxu0 %v10600_v52  ;;  %10985 = vmatprep.subr.bf16.mxu1 %v10600_v52  ;;  %v3357_v52 = vld [vmem:[%s11858_s30 + $0x220] sm:$0xff] }
 0x219   : > { %v10634_v33 = vpack.c.bf16 %v3359_v36, %v3357_v52  ;;  %v10652_v36 = vpack.c.bf16 %v3380_v48, %v3378_v45  ;;  %v12908_v45 = vld [vmem:[%s11890_s11 + $0x368] sm:$0xff] }
 0x21b   : > { %10603 = vmatpush1.bf16.msra.mxu0 %v10602_v0  ;;  %10987 = vmatpush1.bf16.msra.mxu1 %v10602_v0  ;;  %v5221_v0 = vsel %vm663_vm0, %v5219_v35, %v5220_v56  ;;  %v3371_v35 = vld [vmem:[%s11858_s30 + $0x290] sm:$0xff] }
 0x21c   : > { %10605 = vmatprep.subr.bf16.mxu0 %v10604_v50  ;;  %10989 = vmatprep.subr.bf16.mxu1 %v10604_v50  ;;  %v3752_v50 = vrot.slane %v8539_v2, 1  ;;  %v10646_v41 = vpack.c.bf16 %v3371_v35, %v3369_v53  ;;  %v3373_v2 = vld [vmem:[%s11858_s30 + $0x2a0] sm:$0xff]  ;;  %v8660_v35 = vld [vmem:[%s11890_s11 + $0x170] sm:$0xfe] }
 0x21d   : > { %v10650_v52 = vpack.c.bf16 %v3375_v44, %v3373_v2  ;;  %v12904_v2 = vld [vmem:[%s11890_s11 + $0x188] sm:$0xff]  ;;  %v8993_v44 = vld [vmem:[%s11890_s11 + $0x350] sm:$0xfe] }
 0x21e   : > { %v3753_v59 = vsel %vm663_vm0, %v3744_v55, %v3752_v50  ;;  %v10644_v55 = vpack.c.bf16 %v3372_v19, %v3370_v18  ;;  %v3762_v18 = vrot.slane %v8544_v10, 1  ;;  %v5238_v19 = vrot.slane %v8877_v11, 1  ;;  %v8707_v10 = vld [vmem:[%s11858_s30 + $0x708] sm:$0xff]  ;;  %v8709_v11 = vld [vmem:[%s11858_s30 + $0x718] sm:$0xff] }
 0x21f   : > { %10607 = vmatpush1.bf16.msra.mxu0 %v10606_v31  ;;  %10991 = vmatpush1.bf16.msra.mxu1 %v10606_v31  ;;  %v8542_v31 = vld [vmem:[%s11890_s11 + $0xc0] sm:$0xff] }
 0x220   : > { %10609 = vmatprep.subr.bf16.mxu0 %v10608_v32  ;;  %10993 = vmatprep.subr.bf16.mxu1 %v10608_v32  ;;  %v8875_v32 = vld [vmem:[%s11890_s11 + $0x2a0] sm:$0xff] }
 0x221   : > { %v5234_v21 = vrot.slane %v8875_v32, 1  ;;  %v8868_v32 = vld [vmem:[%s11890_s11 + $0x268] sm:$0xfe] }
 0x222   : > { %v5225_v58 = vrot.slane %v8868_v32, 1 }
 0x223   : > { %10611 = vmatpush1.bf16.msra.mxu0 %v10610_v30  ;;  %10995 = vmatpush1.bf16.msra.mxu1 %v10610_v30  ;;  %v3363_v30 = vld [vmem:[%s11858_s30 + $0x250] sm:$0xff] }
 0x224   : > { %10613 = vmatprep.subr.bf16.mxu0 %v10612_v25  ;;  %10997 = vmatprep.subr.bf16.mxu1 %v10612_v25  ;;  %v3755_v25 = vsel %vm663_vm0, %v3747_v61, %v3754_v54  ;;  %v8545_v61 = vld [vmem:[%s11890_s11 + $0xd8] sm:$0x1]  ;;  %v10638_v63 = vpack.c.bf16 %v3363_v30, %v3361_v40  ;;  %v3749_v30 = vrot.slane %v8535_v24, 1 }
 0x225   : > { %v3764_v14 = vrot.slane %v8545_v61, 1 }
 0x227   : > { %10615 = vmatpush1.bf16.msra.mxu0 %v10614_v60  ;;  %10999 = vmatpush1.bf16.msra.mxu1 %v10614_v60  ;;  %v5229_v60 = vsel %vm663_vm0, %v5220_v56, %v5228_v20  ;;  %v3374_v56 = vld [vmem:[%s11858_s30 + $0x2a8] sm:$0xff] }
 0x228   : > { %10617 = vmatprep.subr.bf16.mxu0 %v10616_v62  ;;  %11001 = vmatprep.subr.bf16.mxu1 %v10616_v62  ;;  %v3758_v62 = vrot.slane %v8542_v31, 1  ;;  %v8538_v31 = vld [vmem:[%s11890_s11 + $0xa0] sm:$0xff] }
 0x22a   : > { %v3759_v12 = vsel %vm663_vm0, %v3752_v50, %v3758_v62  ;;  %v3765_v47 = vsel %vm663_vm0, %v3758_v62, %v3764_v14  ;;  %v8541_v62 = vld [vmem:[%s11890_s11 + $0xb8] sm:$0xff] }
 0x22b   : > { %10619 = vmatpush1.bf16.msra.mxu0 %v10618_v7  ;;  %11003 = vmatpush1.bf16.msra.mxu1 %v10618_v7  ;;  %v3368_v7 = vld [vmem:[%s11858_s30 + $0x278] sm:$0xff] }
 0x22c   : > { %10621 = vmatprep.subr.bf16.mxu0 %v10620_v8  ;;  %11005 = vmatprep.subr.bf16.mxu1 %v10620_v8  ;;  %v3761_v8 = vsel %vm663_vm0, %v3754_v54, %v3760_v57  ;;  %v10640_v15 = vpack.c.bf16 %v3368_v7, %v3366_v6  ;;  %v3377_v54 = vld [vmem:[%s11858_s30 + $0x2c0] sm:$0xff]  ;;  %v8676_v57 = vld [vmem:[%s11858_s30 + $0x610] sm:$0xff]  ;;  %v3756_v7 = vrot.slane %v8541_v62, 1 }
 0x22d   : > { %v10654_v50 = vpack.c.bf16 %v3379_v38, %v3377_v54  ;;  %v8680_v6 = vld [vmem:[%s11858_s30 + $0x630] sm:$0xff]  ;;  %v8691_v54 = vld [vmem:[%s11858_s30 + $0x688] sm:$0xff]  ;;  %v8693_v38 = vld [vmem:[%s11858_s30 + $0x698] sm:$0xff] }
 0x22e   : > { %v10676_v32 = vpack.c.bf16 %v8693_v38, %v8691_v54  ;;  %v8696_v62 = vld [vmem:[%s11858_s30 + $0x6b0] sm:$0xff] }
 0x22f   : > { %10623 = vmatpush1.bf16.msra.mxu0 %v10622_v13  ;;  %11007 = vmatpush1.bf16.msra.mxu1 %v10622_v13  ;;  %v5235_v13 = vsel %vm663_vm0, %v5228_v20, %v5234_v21  ;;  %v3381_v20 = vld [vmem:[%s11858_s30 + $0x2e0] sm:$0xff] }
 0x230   : > { %10625 = vmatprep.subr.bf16.mxu0 %v10624_v16  ;;  %11009 = vmatprep.subr.bf16.mxu1 %v10624_v16  ;;  %v3365_v16 = vld [vmem:[%s11858_s30 + $0x260] sm:$0xff]  ;;  %v10658_v40 = vpack.c.bf16 %v3383_v23, %v3381_v20  ;;  %v5565_v20 = vrot.slane %v8993_v44, 1  ;;  %v5566_v23 = vrot.slane %v12908_v45, 1 }
 0x231   : > { %v10642_v43 = vpack.c.bf16 %v3367_v17, %v3365_v16 }
 0x233   : > { %10627 = vmatpush1.bf16.msra.mxu0 %v10626_v49  ;;  %11011 = vmatpush1.bf16.msra.mxu1 %v10626_v49  ;;  %v5241_v49 = vsel %vm663_vm0, %v5234_v21, %v5240_v5  ;;  %v8874_v21 = vld [vmem:[%s11890_s11 + $0x298] sm:$0xff]  ;;  %v8682_v5 = vld [vmem:[%s11858_s30 + $0x640] sm:$0xff] }
 0x234   : > { %10629 = vmatprep.subr.bf16.mxu0 %v10628_v42  ;;  %11013 = vmatprep.subr.bf16.mxu1 %v10628_v42  ;;  %v10648_v42 = vpack.c.bf16 %v3376_v37, %v3374_v56  ;;  %v3763_v56 = vsel %vm663_vm0, %v3756_v7, %v3762_v18 }
 0x236   : > { %3847 = vmatmul.mubr.f32.vlgmr.msra.gmra.mrb[8].mxu0 %v3745_v46  ;;  %5323 = vmatmul.mubr.f32.vlgmr.msra.gmra.mrb[8].mxu1 %v5221_v0  ;;  %v3382_v46 = vld [vmem:[%s11858_s30 + $0x2e8] sm:$0xff]  ;;  %v3384_v0 = vld [vmem:[%s11858_s30 + $0x2f8] sm:$0xff] }
 0x237   : > { %10631 = vmatpush1.bf16.msra.mxu0 %v10630_v51  ;;  %11015 = vmatpush1.bf16.msra.mxu1 %v10630_v51  ;;  %v12860_v51 = vld [vmem:[#allocation2] sm:$0xff] }
 0x238   : > { %10633 = vmatprep.subr.bf16.mxu0 %v10632_v29  ;;  %11017 = vmatprep.subr.bf16.mxu1 %v10632_v29  ;;  %v10656_v29 = vpack.c.bf16 %v3384_v0, %v3382_v46  ;;  %v4089_v0 = vrot.slane %v8660_v35, 1  ;;  %v12983_v35 = vpack.c.bf16 %v8709_v11, %v8707_v10 }
 0x239   : > { %3852 = vmatprep.mubr.f32.mxu0 %v3755_v25  ;;  %5328 = vmatprep.mubr.f32.mxu1 %v5231_v26  ;;  %v3750_v25 = vrot.slane %v8538_v31, 1  ;;  %v8674_v26 = vld [vmem:[%s11858_s30 + $0x600] sm:$0xff] }
 0x23a   : > { %3853 = vmatmul.mubr.f32.gmra.mrb[10].mxu0 %v3753_v59  ;;  %5329 = vmatmul.mubr.f32.gmra.mrb[10].mxu1 %v5229_v60  ;;  %v10660_v60 = vpack.c.bf16 %v8677_v39, %v8675_v34  ;;  %v8692_v34 = vld [vmem:[%s11858_s30 + $0x690] sm:$0xff]  ;;  %v8695_v39 = vld [vmem:[%s11858_s30 + $0x6a8] sm:$0xff] }
 0x23b   : > { %10635 = vmatpush1.bf16.msra.mxu0 %v10634_v33  ;;  %11019 = vmatpush1.bf16.msra.mxu1 %v10634_v33  ;;  %v8871_v33 = vld [vmem:[%s11890_s11 + $0x280] sm:$0xff]  ;;  %v3751_v61 = vsel %vm663_vm0, %v3749_v30, %v3750_v25  ;;  %v3757_v16 = vsel %vm663_vm0, %v3750_v25, %v3756_v7  ;;  %v8704_v7 = vld [vmem:[%s11858_s30 + $0x6f0] sm:$0xff] }
 0x23c   : > { %10637 = vmatprep.subr.bf16.mxu0 %v10636_v22  ;;  %11021 = vmatprep.subr.bf16.mxu1 %v10636_v22  ;;  %v5226_v59 = vrot.slane %v8871_v33, 1  ;;  %v10662_v22 = vpack.c.bf16 %v8676_v57, %v8674_v26  ;;  %v8690_v33 = vld [vmem:[%s11858_s30 + $0x680] sm:$0xff] }
 0x23d   : > { %3858 = vmatprep.mubr.f32.mxu0 %v3761_v8  ;;  %5334 = vmatprep.mubr.f32.mxu1 %v5237_v9  ;;  %v5232_v8 = vrot.slane %v8874_v21, 1  ;;  %v10664_v9 = vpack.c.bf16 %v8681_v3, %v8679_v1  ;;  %v1765_v30 = vld [vmem:[%s12927_s15] sm:$0x3]  ;;  %v8699_v21 = vld [vmem:[%s11858_s30 + $0x6c8] sm:$0xff]  ;;  %v8701_v1 = vld [vmem:[%s11858_s30 + $0x6d8] sm:$0xff] }
 0x23e   : > { %3859 = vmatmul.mubr.f32.gmra.mrb[12].mxu0 %v3759_v12  ;;  %5335 = vmatmul.mubr.f32.gmra.mrb[12].mxu1 %v5235_v13  ;;  %v5227_v4 = vsel %vm663_vm0, %v5225_v58, %v5226_v59  ;;  %v8683_v12 = vld [vmem:[%s11858_s30 + $0x648] sm:$0xff]  ;;  %v8685_v13 = vld [vmem:[%s11858_s30 + $0x658] sm:$0xff]  ;;  %v3187_v26 = vld [vmem:[%s12927_s15] sm:$0x3] }
 0x23f   : > { %10639 = vmatpush1.bf16.msra.mxu0 %v10638_v63  ;;  %11023 = vmatpush1.bf16.msra.mxu1 %v10638_v63  ;;  %v8678_v63 = vld [vmem:[%s11858_s30 + $0x620] sm:$0xff]  ;;  %v5233_v17 = vsel %vm663_vm0, %v5226_v59, %v5232_v8  ;;  %v5239_v37 = vsel %vm663_vm0, %v5232_v8, %v5238_v19  ;;  %v10678_v59 = vpack.c.bf16 %v8692_v34, %v8690_v33 }
 0x240   : > { %10641 = vmatprep.subr.bf16.mxu0 %v10640_v15  ;;  %11025 = vmatprep.subr.bf16.mxu1 %v10640_v15  ;;  %v10666_v14 = vpack.c.bf16 %v8680_v6, %v8678_v63  ;;  %v8684_v15 = vld [vmem:[%s11858_s30 + $0x650] sm:$0xff]  ;;  %v8694_v57 = vld [vmem:[%s11858_s30 + $0x6a0] sm:$0xff]  ;;  %v8705_v63 = vld [vmem:[%s11858_s30 + $0x6f8] sm:$0xff] }
 0x241   : > { %3864 = vmatprep.mubr.f32.mxu0 %v3767_v27  ;;  %5340 = vmatprep.mubr.f32.mxu1 %v5243_v28  ;;  %v10668_v27 = vpack.c.bf16 %v8685_v13, %v8683_v12  ;;  %v8547_v28 = vld [vmem:[%s11890_s11 + $0xe8] sm:$0x1]  ;;  %v10670_v53 = vpack.c.bf16 %v8684_v15, %v8682_v5  ;;  %v8702_v6 = vld [vmem:[%s11858_s30 + $0x6e0] sm:$0xff]  ;;  %v10682_v5 = vpack.c.bf16 %v8696_v62, %v8694_v57  ;;  %v8708_v15 = vld [vmem:[%s11858_s30 + $0x710] sm:$0xff] }
 0x242   : > { %3865 = vmatmul.mubr.f32.gmra.mrb[14].mxu0 %v3765_v47  ;;  %5341 = vmatmul.mubr.f32.gmra.mrb[14].mxu1 %v5241_v49  ;;  %v8687_v47 = vld [vmem:[%s11858_s30 + $0x668] sm:$0xff]  ;;  %v8689_v49 = vld [vmem:[%s11858_s30 + $0x678] sm:$0xff]  ;;  %v8706_v12 = vld [vmem:[%s11858_s30 + $0x700] sm:$0xff] }
 0x243   : > { %10643 = vmatpush1.bf16.msra.mxu0 %v10642_v43  ;;  %11027 = vmatpush1.bf16.msra.mxu1 %v10642_v43  ;;  %v8880_v43 = vld [vmem:[%s11890_s11 + $0x2c8] sm:$0x1]  ;;  %v10672_v48 = vpack.c.bf16 %v8689_v49, %v8687_v47  ;;  %v12987_v44 = vpack.c.bf16 %v8708_v15, %v8706_v12  ;;  %v8720_v62 = vld [vmem:[%s11858_s30 + $0x770] sm:$0xff] }
 0x244   : > { %10645 = vmatprep.subr.bf16.mxu0 %v10644_v55  ;;  %11029 = vmatprep.subr.bf16.mxu1 %v10644_v55  ;;  %v14288_v55 = vlaneseq }
 0x245   : > { %3935 = vmatprep.mubr.f32.mxu0 %v12860_v51  ;;  %5411 = vmatprep.mubr.f32.mxu1 %v12860_v51 }
 0x246   : > { %v12916_v46 = vshrl.u32 %v14288_v55, 7 }
 0x247   : > { %10647 = vmatpush1.bf16.msra.mxu0 %v10646_v41  ;;  %11031 = vmatpush1.bf16.msra.mxu1 %v10646_v41  ;;  %v3768_v41 = vrot.slane %v8547_v28, 1 }
 0x248   : > { %10649 = vmatprep.subr.bf16.mxu0 %v10648_v42  ;;  %11033 = vmatprep.subr.bf16.mxu1 %v10648_v42  ;;  %v5244_v42 = vrot.slane %v8880_v43, 1  ;;  %14325 = vst [vmem:[#allocation3_spill] sm:$0xff] %v12916_v46  ;;  %v12939_v25 = vsub.s32 0, %v12916_v46 }
 0x24a   : > { %v5245_v31 = vsel %vm663_vm0, %v5238_v19, %v5244_v42  ;;  %v12962_v8 = vrot.slane %v1765_v30, %v12939_v25  ;;  %v8710_v19 = vld [vmem:[%s11858_s30 + $0x720] sm:$0xff] }
 0x24b   : > { %10651 = vmatpush1.bf16.msra.mxu0 %v10650_v52  ;;  %11035 = vmatpush1.bf16.msra.mxu1 %v10650_v52  ;;  %v8686_v52 = vld [vmem:[%s11858_s30 + $0x660] sm:$0xff] }
 0x24c   : > { %10653 = vmatprep.subr.bf16.mxu0 %v10652_v36  ;;  %11037 = vmatprep.subr.bf16.mxu1 %v10652_v36  ;;  %v8688_v36 = vld [vmem:[%s11858_s30 + $0x670] sm:$0xff] }
 0x24d   : > { %v10674_v24 = vpack.c.bf16 %v8688_v36, %v8686_v52  ;;  %v8715_v52 = vld [vmem:[%s11858_s30 + $0x748] sm:$0xff] }
 0x24f   : > { %10655 = vmatpush1.bf16.msra.mxu0 %v10654_v50  ;;  %11039 = vmatpush1.bf16.msra.mxu1 %v10654_v50  ;;  %v4090_v50 = vrot.slane %v12904_v2, 1  ;;  %v8753_v2 = vld [vmem:[%s11858_s30 + $0x878] sm:$0xff] }
 0x250   : > { %10657 = vmatprep.subr.bf16.mxu0 %v10656_v29  ;;  %11041 = vmatprep.subr.bf16.mxu1 %v10656_v29  ;;  %v3769_v29 = vsel %vm663_vm0, %v3762_v18, %v3768_v41  ;;  %v10684_v18 = vpack.c.bf16 %v8701_v1, %v8699_v21 }
 0x251   : > { %v4091_v58 = vsel %vm663_vm0, %v4089_v0, %v4090_v50  ;;  %v8717_v0 = vld [vmem:[%s11858_s30 + $0x758] sm:$0xff] }
 0x252   : > { %v13004_v57 = vpack.c.bf16 %v8717_v0, %v8715_v52 }
 0x253   : > { %10659 = vmatpush1.bf16.msra.mxu0 %v10658_v40  ;;  %11043 = vmatpush1.bf16.msra.mxu1 %v10658_v40  ;;  %v8697_v40 = vld [vmem:[%s11858_s30 + $0x6b8] sm:$0xff] }
 0x254   : > { %10661 = vmatprep.subr.bf16.mxu0 %v10660_v60  ;;  %11045 = vmatprep.subr.bf16.mxu1 %v10660_v60  ;;  %v12950_v60 = vsub.s32 1, %v12916_v46  ;;  %v10680_v3 = vpack.c.bf16 %v8697_v40, %v8695_v39  ;;  %v9295_v46 = vld [vmem:[%s13385_s19 + $0x388] sm:$0xff] }
 0x256   : > { %3936 = vmatmul.mubr.f32.vlgmr.msra.gmra.mrb[8].mxu0 %v3751_v61  ;;  %5412 = vmatmul.mubr.f32.vlgmr.msra.gmra.mrb[8].mxu1 %v5227_v4  ;;  %v8700_v61 = vld [vmem:[%s11858_s30 + $0x6d0] sm:$0xff]  ;;  %v8703_v4 = vld [vmem:[%s11858_s30 + $0x6e8] sm:$0xff]  ;;  %v12971_v13 = vrot.slane %v1765_v30, %v12950_v60 }
 0x257   : > { %10663 = vmatpush1.bf16.msra.mxu0 %v10662_v22  ;;  %11047 = vmatpush1.bf16.msra.mxu1 %v10662_v22  ;;  %v8698_v22 = vld [vmem:[%s11858_s30 + $0x6c0] sm:$0xff]  ;;  %v10688_v49 = vpack.c.bf16 %v8705_v63, %v8703_v4 }
 0x258   : > { %10665 = vmatprep.subr.bf16.mxu0 %v10664_v9  ;;  %11049 = vmatprep.subr.bf16.mxu1 %v10664_v9  ;;  %v12965_v9 = vrot.slane %v3187_v26, %v12939_v25  ;;  %v10686_v47 = vpack.c.bf16 %v8700_v61, %v8698_v22 }
 0x259   : > { %3941 = vmatprep.mubr.f32.mxu0 %v12860_v51  ;;  %5417 = vmatprep.mubr.f32.mxu1 %v12860_v51 }
 0x25a   : > { %3942 = vmatmul.mubr.f32.gmra.mrb[10].mxu0 %v3757_v16  ;;  %5418 = vmatmul.mubr.f32.gmra.mrb[10].mxu1 %v5233_v17  ;;  %v8711_v16 = vld [vmem:[%s11858_s30 + $0x728] sm:$0xff]  ;;  %v8713_v17 = vld [vmem:[%s11858_s30 + $0x738] sm:$0xff] }
 0x25b   : > { %10667 = vmatpush1.bf16.msra.mxu0 %v10666_v14  ;;  %11051 = vmatpush1.bf16.msra.mxu1 %v10666_v14  ;;  %v12974_v14 = vrot.slane %v3187_v26, %v12950_v60 }
 0x25c   : > { %10669 = vmatprep.subr.bf16.mxu0 %v10668_v27  ;;  %11053 = vmatprep.subr.bf16.mxu1 %v10668_v27  ;;  %v8712_v27 = vld [vmem:[%s11858_s30 + $0x730] sm:$0xff] }
 0x25d   : > { %3947 = vmatprep.mubr.f32.mxu0 %v12860_v51  ;;  %5423 = vmatprep.mubr.f32.mxu1 %v12860_v51  ;;  %v12994_v38 = vpack.c.bf16 %v8712_v27, %v8710_v19 }
 0x25e   : > { %3948 = vmatmul.mubr.f32.gmra.mrb[12].mxu0 %v3763_v56  ;;  %5424 = vmatmul.mubr.f32.gmra.mrb[12].mxu1 %v5239_v37 }
 0x25f   : > { %10671 = vmatpush1.bf16.msra.mxu0 %v10670_v53  ;;  %11055 = vmatpush1.bf16.msra.mxu1 %v10670_v53  ;;  %v12981_v53 = vpack.c.bf16 %v8704_v7, %v8702_v6 }
 0x260   : > { %10673 = vmatprep.subr.bf16.mxu0 %v10672_v48  ;;  %11057 = vmatprep.subr.bf16.mxu1 %v10672_v48  ;;  %v12989_v48 = vpack.c.bf16 %v8713_v17, %v8711_v16 }
 0x261   : > { %3953 = vmatprep.mubr.f32.mxu0 %v12860_v51  ;;  %5429 = vmatprep.mubr.f32.mxu1 %v12860_v51  ;;  %v5567_v51 = vsel %vm663_vm0, %v5565_v20, %v5566_v23  ;;  %v8714_v20 = vld [vmem:[%s11858_s30 + $0x740] sm:$0xff] }
 0x262   : > { %3954 = vmatmul.mubr.f32.gmra.mrb[14].mxu0 %v3769_v29  ;;  %5430 = vmatmul.mubr.f32.gmra.mrb[14].mxu1 %v5245_v31 }
 0x263   : > { %10675 = vmatpush1.bf16.msra.mxu0 %v10674_v24  ;;  %11059 = vmatpush1.bf16.msra.mxu1 %v10674_v24  ;;  %v8716_v24 = vld [vmem:[%s11858_s30 + $0x750] sm:$0xff] }
 0x264   : > { %10677 = vmatprep.subr.bf16.mxu0 %v10676_v32  ;;  %11061 = vmatprep.subr.bf16.mxu1 %v10676_v32  ;;  %v8719_v32 = vld [vmem:[%s11858_s30 + $0x768] sm:$0xff] }
 0x265   : > { %4189 = vmatprep.mubr.f32.mxu0 %v4091_v58  ;;  %5665 = vmatprep.mubr.f32.mxu1 %v5567_v51  ;;  %v13006_v58 = vpack.c.bf16 %v8716_v24, %v8714_v20  ;;  %v8721_v51 = vld [vmem:[%s11858_s30 + $0x778] sm:$0xff] }
 0x266   : > { %v13017_v16 = vpack.c.bf16 %v8721_v51, %v8719_v32 }
 0x267   : > { %10679 = vmatpush1.bf16.msra.mxu0 %v10678_v59  ;;  %11063 = vmatpush1.bf16.msra.mxu1 %v10678_v59  ;;  %v8718_v59 = vld [vmem:[%s11858_s30 + $0x760] sm:$0xff] }
 0x268   : > { %10681 = vmatprep.subr.bf16.mxu0 %v10680_v3  ;;  %11065 = vmatprep.subr.bf16.mxu1 %v10680_v3  ;;  %v13019_v17 = vpack.c.bf16 %v8720_v62, %v8718_v59 }
 0x269   : > { %v1734_v28 = vpop.f32.mrb[0].mxu0  ;;  %v3156_v43 = vpop.f32.mrb[0].mxu1 }
 0x26a   : > { %v1777_v56 = vadd.f32 %v12962_v8, %v1734_v28  ;;  %v3199_v37 = vadd.f32 %v12965_v9, %v3156_v43  ;;  %v1736_v41 = vpop.f32.mrb[1].mxu0  ;;  %v3158_v42 = vpop.f32.mrb[1].mxu1 }
 0x26b   : > { %v1778_v36 = vadd.f32 %v12971_v13, %v1736_v41  ;;  %v3200_v54 = vadd.f32 %v12974_v14, %v3158_v42  ;;  %10683 = vmatpush1.bf16.msra.mxu0 %v10682_v5  ;;  %11067 = vmatpush1.bf16.msra.mxu1 %v10682_v5 }
 0x26c   : > { %vm1785_vm1 = vcmp.gt.f32.partialorder %v1777_v56, 0.0  ;;  %v1793_v29 = vmul.f32 0.01, %v1777_v56  ;;  %vm3207_vm2 = vcmp.gt.f32.partialorder %v3199_v37, 0.0  ;;  %v3215_v31 = vmul.f32 0.01, %v3199_v37  ;;  %10685 = vmatprep.subr.bf16.mxu0 %v10684_v18  ;;  %11069 = vmatprep.subr.bf16.mxu1 %v10684_v18 }
 0x26d   : > { %vm1786_vm4 = vcmp.gt.f32.partialorder %v1778_v36, 0.0  ;;  %v1794_v33 = vmul.f32 0.01, %v1778_v36  ;;  %vm3208_vm5 = vcmp.gt.f32.partialorder %v3200_v54, 0.0  ;;  %v3216_v34 = vmul.f32 0.01, %v3200_v54 }
 0x26e   : > { %v13000_v39 = vsel %vm1785_vm1, %v1777_v56, %v1793_v29  ;;  %v13002_v40 = vsel %vm3207_vm2, %v3199_v37, %v3215_v31  ;;  %v1740_v30 = vpop.f32.mrb[2].mxu0  ;;  %v3162_v26 = vpop.f32.mrb[2].mxu1 }
 0x26f   : > { %v1818_v21 = vrot.slane %v13000_v39, 7  ;;  %v3239_v1 = vrot.slane %v13002_v40, 7  ;;  %v1802_v3 = vsel %vm1786_vm4, %v1778_v36, %v1794_v33  ;;  %v3224_v22 = vsel %vm3208_vm5, %v3200_v54, %v3216_v34  ;;  %v1742_v61 = vpop.f32.mrb[3].mxu0  ;;  %v3164_v4 = vpop.f32.mrb[3].mxu1  ;;  %10687 = vmatpush1.bf16.msra.mxu0 %v10686_v47  ;;  %11071 = vmatpush1.bf16.msra.mxu1 %v10686_v47 }
 0x270   : > { %v1819_v63 = vrot.slane %v1802_v3, 7  ;;  %v3240_v6 = vrot.slane %v3224_v22, 7  ;;  %v1779_v7 = vadd.f32 %v12962_v8, %v1740_v30  ;;  %v3201_v10 = vadd.f32 %v12965_v9, %v3162_v26  ;;  %10689 = vmatprep.subr.bf16.mxu0 %v10688_v49  ;;  %11073 = vmatprep.subr.bf16.mxu1 %v10688_v49 }
 0x271   : > { %1842 = vst [vmem:[#allocation2] sm:$0xfe] %v1818_v21  ;;  %3264 = vst [vmem:[#allocation2 + $0x50] sm:$0xfe] %v3239_v1  ;;  %v1780_v11 = vadd.f32 %v12971_v13, %v1742_v61  ;;  %v3202_v12 = vadd.f32 %v12974_v14, %v3164_v4  ;;  %v1746_v5 = vpop.f32.mrb[4].mxu0  ;;  %v3168_v15 = vpop.f32.mrb[4].mxu1 }
 0x272   : > { %1843 = vst [vmem:[#allocation2 + $0x8] sm:$0xfe] %v1819_v63  ;;  %3265 = vst [vmem:[#allocation2 + $0x58] sm:$0xfe] %v3240_v6  ;;  %vm1787_vm6 = vcmp.gt.f32.partialorder %v1779_v7, 0.0  ;;  %vm3209_vm7 = vcmp.gt.f32.partialorder %v3201_v10, 0.0  ;;  %v1781_v49 = vadd.f32 %v12962_v8, %v1746_v5  ;;  %v3203_v56 = vadd.f32 %v12965_v9, %v3168_v15 }
 0x273   : > { %v1795_v18 = vmul.f32 0.01, %v1779_v7  ;;  %v3217_v19 = vmul.f32 0.01, %v3201_v10  ;;  %vm1788_vm8 = vcmp.gt.f32.partialorder %v1780_v11, 0.0  ;;  %vm3210_vm9 = vcmp.gt.f32.partialorder %v3202_v12, 0.0  ;;  %10691 = vmatpush1.bf16.msra.mxu0 %v12981_v53  ;;  %11075 = vmatpush1.bf16.msra.mxu1 %v12981_v53 }
 0x274   : > { %v1796_v27 = vmul.f32 0.01, %v1780_v11  ;;  %v3218_v28 = vmul.f32 0.01, %v3202_v12  ;;  %v1748_v37 = vpop.f32.mrb[5].mxu0  ;;  %v3170_v41 = vpop.f32.mrb[5].mxu1  ;;  %10693 = vmatprep.subr.bf16.mxu0 %v12983_v35  ;;  %11077 = vmatprep.subr.bf16.mxu1 %v12983_v35 }
 0x275   : > { %v1803_v43 = vsel %vm1787_vm6, %v1779_v7, %v1795_v18  ;;  %v3225_v47 = vsel %vm3209_vm7, %v3201_v10, %v3217_v19  ;;  %v1752_v0 = vpop.f32.mrb[6].mxu0  ;;  %v3174_v20 = vpop.f32.mrb[6].mxu1  ;;  %vm1789_vm10 = vcmp.gt.f32.partialorder %v1781_v49, 0.0  ;;  %v1797_v29 = vmul.f32 0.01, %v1781_v49  ;;  %v8723_v4 = vld [vmem:[%s11858_s30 + $0x788] sm:$0xff] }
 0x276   : > { %v1820_v42 = vrot.slane %v1803_v43, 7  ;;  %v3241_v52 = vrot.slane %v3225_v47, 7  ;;  %v1804_v36 = vsel %vm1788_vm8, %v1780_v11, %v1796_v27  ;;  %v13026_v54 = vsel %vm3210_vm9, %v3202_v12, %v3218_v28  ;;  %v1754_v31 = vpop.f32.mrb[7].mxu0  ;;  %v3176_v39 = vpop.f32.mrb[7].mxu1  ;;  %v8724_v43 = vld [vmem:[%s11858_s30 + $0x790] sm:$0xff] }
 0x277   : > { %v1822_v53 = vrot.slane %v1804_v36, 7  ;;  %v3243_v24 = vrot.slane %v13026_v54, 7  ;;  %vm3211_vm11 = vcmp.gt.f32.partialorder %v3203_v56, 0.0  ;;  %v3219_v34 = vmul.f32 0.01, %v3203_v56  ;;  %10695 = vmatpush1.bf16.msra.mxu0 %v12987_v44  ;;  %11079 = vmatpush1.bf16.msra.mxu1 %v12987_v44 }
 0x278   : > { %v1821_v32 = vsel %vm1817_vm3, %v1818_v21, %v1820_v42  ;;  %v3242_v33 = vsel %vm1817_vm3, %v3239_v1, %v3241_v52  ;;  %v1805_v30 = vsel %vm1789_vm10, %v1781_v49, %v1797_v29  ;;  %v1782_v26 = vadd.f32 %v12971_v13, %v1748_v37  ;;  %10697 = vmatprep.subr.bf16.mxu0 %v12989_v48  ;;  %v8733_v29 = vld [vmem:[%s11858_s30 + $0x7d8] sm:$0xff] }
 0x279   : > { %1844 = vst [vmem:[#allocation2 + $0x10] sm:$0xff] %v1821_v32  ;;  %3266 = vst [vmem:[#allocation2 + $0x60] sm:$0xff] %v3242_v33  ;;  %v1823_v35 = vsel %vm1817_vm3, %v1819_v63, %v1822_v53  ;;  %v3244_v40 = vsel %vm1817_vm3, %v3240_v6, %v3243_v24  ;;  %v1824_v51 = vrot.slane %v1805_v30, 7  ;;  %v3227_v59 = vsel %vm3211_vm11, %v3203_v56, %v3219_v34  ;;  %v8725_v63 = vld [vmem:[%s11858_s30 + $0x798] sm:$0xff]  ;;  %v8727_v56 = vld [vmem:[%s11858_s30 + $0x7a8] sm:$0xff] }
 0x27a   : > { %1845 = vst [vmem:[#allocation2 + $0x18] sm:$0xff] %v1823_v35  ;;  %3267 = vst [vmem:[#allocation2 + $0x68] sm:$0xff] %v3244_v40  ;;  %v3204_v62 = vadd.f32 %v12974_v14, %v3170_v41  ;;  %v1783_v44 = vadd.f32 %v12962_v8, %v1752_v0  ;;  %11081 = vmatprep.subr.bf16.mxu1 %v12989_v48  ;;  %v3245_v21 = vrot.slane %v3227_v59, 7  ;;  %vm1790_vm12 = vcmp.gt.f32.partialorder %v1782_v26, 0.0  ;;  %v8726_v0 = vld [vmem:[%s11858_s30 + $0x7a0] sm:$0xff]  ;;  %v8732_v34 = vld [vmem:[%s11858_s30 + $0x7d0] sm:$0xff] }
 0x27b   : > { %v1798_v1 = vmul.f32 0.01, %v1782_v26  ;;  %v3205_v3 = vadd.f32 %v12965_v9, %v3174_v20  ;;  %v1825_v22 = vsel %vm1817_vm3, %v1820_v42, %v1824_v51  ;;  %10699 = vmatpush1.bf16.msra.mxu0 %v12994_v38  ;;  %11083 = vmatpush1.bf16.msra.mxu1 %v12994_v38  ;;  %v1784_v11 = vadd.f32 %v12971_v13, %v1754_v31  ;;  %v8728_v20 = vld [vmem:[%s11858_s30 + $0x7b0] sm:$0xff]  ;;  %v8730_v33 = vld [vmem:[%s11858_s30 + $0x7c0] sm:$0xff]  ;;  %v8737_v35 = vld [vmem:[%s11858_s30 + $0x7f8] sm:$0xff] }
 0x27c   : > { %vm3212_vm13 = vcmp.gt.f32.partialorder %v3204_v62, 0.0  ;;  %v3220_v61 = vmul.f32 0.01, %v3204_v62  ;;  %vm1791_vm14 = vcmp.gt.f32.partialorder %v1783_v44, 0.0  ;;  %1846 = vst [vmem:[#allocation2 + $0x20] sm:$0xff] %v1825_v22  ;;  %v3246_v8 = vsel %vm1817_vm3, %v3241_v52, %v3245_v21  ;;  %10701 = vmatprep.subr.bf16.mxu0 %v13004_v57  ;;  %11085 = vmatprep.subr.bf16.mxu1 %v13004_v57  ;;  %v8734_v30 = vld [vmem:[%s11858_s30 + $0x7e0] sm:$0xff] }
 0x27d   : > { %v1806_v48 = vsel %vm1790_vm12, %v1782_v26, %v1798_v1  ;;  %v1799_v6 = vmul.f32 0.01, %v1783_v44  ;;  %vm3213_vm15 = vcmp.gt.f32.partialorder %v3205_v3, 0.0  ;;  %3268 = vst [vmem:[#allocation2 + $0x70] sm:$0xff] %v3246_v8  ;;  %v3221_v10 = vmul.f32 0.01, %v3205_v3 }
 0x27e   : > { %v1826_v9 = vrot.slane %v1806_v48, 7  ;;  %v3228_v7 = vsel %vm3212_vm13, %v3204_v62, %v3220_v61  ;;  %v3206_v5 = vadd.f32 %v12974_v14, %v3176_v39  ;;  %v10708_v15 = vpack.c.bf16 %v8725_v63, %v8723_v4  ;;  %v8722_v14 = vld [vmem:[%s11858_s30 + $0x780] sm:$0xff]  ;;  %v8735_v39 = vld [vmem:[%s11858_s30 + $0x7e8] sm:$0xff]  ;;  %v8736_v26 = vld [vmem:[%s11858_s30 + $0x7f0] sm:$0xff] }
 0x27f   : > { %v3247_v38 = vrot.slane %v3228_v7, 7  ;;  %v1807_v12 = vsel %vm1791_vm14, %v1783_v44, %v1799_v6  ;;  %v3229_v27 = vsel %vm3213_vm15, %v3205_v3, %v3221_v10  ;;  %vm1792_vm1 = vcmp.gt.f32.partialorder %v1784_v11, 0.0  ;;  %10703 = vmatpush1.bf16.msra.mxu0 %v13006_v58  ;;  %11087 = vmatpush1.bf16.msra.mxu1 %v13006_v58  ;;  %v8729_v58 = vld [vmem:[%s11858_s30 + $0x7b8] sm:$0xff]  ;;  %v8662_v62 = vld [vmem:[%s11890_s11 + $0x180] sm:$0xff]  ;;  %v8992_v44 = vld [vmem:[%s11890_s11 + $0x348] sm:$0xfe] }
 0x280   : > { %v1827_v18 = vsel %vm1817_vm3, %v1822_v53, %v1826_v9  ;;  %v1828_v19 = vrot.slane %v1807_v12, 7  ;;  %v3249_v57 = vrot.slane %v3229_v27, 7  ;;  %v1800_v28 = vmul.f32 0.01, %v1784_v11  ;;  %10705 = vmatprep.subr.bf16.mxu0 %v13017_v16  ;;  %11089 = vmatprep.subr.bf16.mxu1 %v13017_v16  ;;  %v8739_v1 = vld [vmem:[%s11858_s30 + $0x808] sm:$0xff]  ;;  %v8741_v3 = vld [vmem:[%s11858_s30 + $0x818] sm:$0xff] }
 0x281   : > { %1847 = vst [vmem:[#allocation2 + $0x28] sm:$0xff] %v1827_v18  ;;  %v3248_v13 = vsel %vm1817_vm3, %v3243_v24, %v3247_v38  ;;  %vm3214_vm2 = vcmp.gt.f32.partialorder %v3206_v5, 0.0  ;;  %v3222_v49 = vmul.f32 0.01, %v3206_v5  ;;  %v10710_v52 = vpack.c.bf16 %v8724_v43, %v8722_v14  ;;  %v8731_v24 = vld [vmem:[%s11858_s30 + $0x7c8] sm:$0xff]  ;;  %v8738_v61 = vld [vmem:[%s11858_s30 + $0x800] sm:$0xff] }
 0x282   : > { %3269 = vst [vmem:[#allocation2 + $0x78] sm:$0xff] %v3248_v13  ;;  %v1829_v47 = vsel %vm1817_vm3, %v1824_v51, %v1828_v19  ;;  %1850 = vst [vmem:[#allocation2 + $0x40] sm:$0x1] %v1828_v19  ;;  %v3250_v37 = vsel %vm1817_vm3, %v3245_v21, %v3249_v57  ;;  %v1808_v41 = vsel %vm1792_vm1, %v1784_v11, %v1800_v28  ;;  %v8659_v51 = vld [vmem:[%s11890_s11 + $0x168] sm:$0xfe]  ;;  %v8995_v21 = vld [vmem:[%s11890_s11 + $0x360] sm:$0xff] }
 0x283   : > { %1848 = vst [vmem:[#allocation2 + $0x30] sm:$0xff] %v1829_v47  ;;  %3272 = vst [vmem:[#allocation2 + $0x90] sm:$0x1] %v3249_v57  ;;  %v1830_v16 = vrot.slane %v1808_v41, 7  ;;  %v3230_v42 = vsel %vm3214_vm2, %v3206_v5, %v3222_v49  ;;  %10707 = vmatpush1.bf16.msra.mxu0 %v13019_v17  ;;  %11091 = vmatpush1.bf16.msra.mxu1 %v13019_v17  ;;  %v10712_v54 = vpack.c.bf16 %v8729_v58, %v8727_v56  ;;  %v8740_v8 = vld [vmem:[%s11858_s30 + $0x810] sm:$0xff]  ;;  %v13094_v7 = vld [vmem:[%s11890_s11 + $0x380] sm:$0xff] }
 0x284   : > { %3270 = vst [vmem:[#allocation2 + $0x80] sm:$0xff] %v3250_v37  ;;  %v3251_v36 = vrot.slane %v3230_v42, 7  ;;  %10709 = vmatprep.subr.bf16.mxu0 %v10708_v15  ;;  %11093 = vmatprep.subr.bf16.mxu1 %v10708_v15  ;;  %v10714_v17 = vpack.c.bf16 %v8728_v20, %v8726_v0  ;;  %v10716_v32 = vpack.c.bf16 %v8733_v29, %v8731_v24  ;;  %v4086_v22 = vrot.slane %v8659_v51, 1  ;;  %v13097_v11 = vld [vmem:[%s11890_s11 + $0x198] sm:$0xff]  ;;  %v8743_v12 = vld [vmem:[%s11858_s30 + $0x828] sm:$0xff]  ;;  %v8742_v14 = vld [vmem:[%s11858_s30 + $0x820] sm:$0xff] }
 0x285   : > { %v1831_v53 = vsel %vm1817_vm3, %v1826_v9, %v1830_v16  ;;  %1851 = vst [vmem:[#allocation2 + $0x48] sm:$0x1] %v1830_v16  ;;  %v10718_v40 = vpack.c.bf16 %v8732_v34, %v8730_v33  ;;  %v10720_v59 = vpack.c.bf16 %v8737_v35, %v8735_v39  ;;  %v10722_v4 = vpack.c.bf16 %v8736_v26, %v8734_v30  ;;  %v13091_v9 = vld [vmem:[%s11890_s11 + $0x1a0] sm:$0xff]  ;;  %v8745_v5 = vld [vmem:[%s11858_s30 + $0x838] sm:$0xff]  ;;  %v13118_v49 = vld [vmem:[%s11890_s11 + $0x1b0] sm:$0xff] }
 0x286   : > { %1849 = vst [vmem:[#allocation2 + $0x38] sm:$0xff] %v1831_v53  ;;  %v3252_v31 = vsel %vm1817_vm3, %v3247_v38, %v3251_v36  ;;  %3273 = vst [vmem:[#allocation2 + $0x98] sm:$0x1] %v3251_v36  ;;  %v4087_v63 = vrot.slane %v8662_v62, 1  ;;  %v5562_v48 = vrot.slane %v8992_v44, 1  ;;  %v5563_v6 = vrot.slane %v8995_v21, 1 }
 0x287   : > { %3271 = vst [vmem:[#allocation2 + $0x88] sm:$0xff] %v3252_v31  ;;  %10711 = vmatpush1.bf16.msra.mxu0 %v10710_v52  ;;  %11095 = vmatpush1.bf16.msra.mxu1 %v10710_v52  ;;  %v10724_v10 = vpack.c.bf16 %v8741_v3, %v8739_v1  ;;  %v13100_v38 = vld [vmem:[%s11890_s11 + $0x378] sm:$0xff]  ;;  %v10726_v15 = vpack.c.bf16 %v8740_v8, %v8738_v61  ;;  %v4097_v18 = vrot.slane %v13091_v9, 1  ;;  %v5573_v19 = vrot.slane %v13094_v7, 1  ;;  %v8744_v58 = vld [vmem:[%s11858_s30 + $0x830] sm:$0xff]  ;;  %v8747_v37 = vld [vmem:[%s11858_s30 + $0x848] sm:$0xff] }
 0x288   : > { %10713 = vmatprep.subr.bf16.mxu0 %v10712_v54  ;;  %11097 = vmatprep.subr.bf16.mxu1 %v10712_v54  ;;  %v13107_v27 = vld [vmem:[%s11890_s11 + $0x1b8] sm:$0xff]  ;;  %v4088_v57 = vsel %vm663_vm0, %v4086_v22, %v4087_v63  ;;  %v5564_v28 = vsel %vm663_vm0, %v5562_v48, %v5563_v6  ;;  %v4095_v43 = vrot.slane %v13097_v11, 1  ;;  %v5571_v47 = vrot.slane %v13100_v38, 1  ;;  %v13123_v41 = vld [vmem:[%s11890_s11 + $0x390] sm:$0xff]  ;;  %v8746_v42 = vld [vmem:[%s11858_s30 + $0x840] sm:$0xff] }
 0x289   : > { %v13110_v13 = vld [vmem:[%s11890_s11 + $0x398] sm:$0xff]  ;;  %v10728_v56 = vpack.c.bf16 %v8745_v5, %v8743_v12  ;;  %v8748_v52 = vld [vmem:[%s11858_s30 + $0x850] sm:$0xff]  ;;  %v4103_v36 = vrot.slane %v13107_v27, 1  ;;  %v4098_v0 = vsel %vm663_vm0, %v4090_v50, %v4097_v18  ;;  %v5574_v20 = vsel %vm663_vm0, %v5566_v23, %v5573_v19  ;;  %v6687_v31 = vld [vmem:[#allocation2 + $0x8] sm:$0xfc] }
 0x28a   : > { %v8749_v16 = vld [vmem:[%s11858_s30 + $0x858] sm:$0xff]  ;;  %v5579_v54 = vrot.slane %v13110_v13, 1  ;;  %v4101_v53 = vrot.slane %v13118_v49, 1  ;;  %v8672_v24 = vld [vmem:[%s11890_s11 + $0x1d0] sm:$0x1]  ;;  %v4096_v50 = vsel %vm663_vm0, %v4087_v63, %v4095_v43  ;;  %v5572_v45 = vsel %vm663_vm0, %v5563_v6, %v5571_v47  ;;  %v8750_v39 = vld [vmem:[%s11858_s30 + $0x860] sm:$0xff] }
 0x28b   : > { %10715 = vmatpush1.bf16.msra.mxu0 %v10714_v17  ;;  %11099 = vmatpush1.bf16.msra.mxu1 %v10714_v17  ;;  %v13138_v29 = vld [vmem:[#allocation2 + $0x18] sm:$0xff]  ;;  %v10730_v17 = vpack.c.bf16 %v8744_v58, %v8742_v14  ;;  %v5577_v23 = vrot.slane %v13123_v41, 1  ;;  %v9005_v33 = vld [vmem:[%s11890_s11 + $0x3b0] sm:$0x1]  ;;  %v10732_v34 = vpack.c.bf16 %v8749_v16, %v8747_v37  ;;  %v8671_v35 = vld [vmem:[%s11890_s11 + $0x1c8] sm:$0x1]  ;;  %v10734_v30 = vpack.c.bf16 %v8748_v52, %v8746_v42 }
 0x28c   : > { %10717 = vmatprep.subr.bf16.mxu0 %v10716_v32  ;;  %11101 = vmatprep.subr.bf16.mxu1 %v10716_v32  ;;  %v8751_v32 = vld [vmem:[%s11858_s30 + $0x868] sm:$0xff]  ;;  %vm4437_vm4 = vcmask 1045504   ;;  %v4109_v26 = vrot.slane %v8672_v24, 1  ;;  %v6271_v51 = vld [vmem:[#allocation2 + $0x10] sm:$0xff]  ;;  %v6731_v62 = vrot.slane %v13138_v29, 2  ;;  %v4104_v1 = vsel %vm663_vm0, %v4097_v18, %v4103_v36  ;;  %v6273_v63 = vld [vmem:[#allocation2 + $0x20] sm:$0xff] }
 0x28d   : > { %v6686_v44 = vld [vmem:[#allocation2] sm:$0xfc]  ;;  %v8752_v21 = vld [vmem:[%s11858_s30 + $0x870] sm:$0xff]  ;;  %v5580_v3 = vsel %vm663_vm0, %v5573_v19, %v5579_v54  ;;  %v4102_v22 = vsel %vm663_vm0, %v4095_v43, %v4101_v53  ;;  %v5585_v61 = vrot.slane %v9005_v33, 1  ;;  %v5578_v8 = vsel %vm663_vm0, %v5571_v47, %v5577_v23  ;;  %v6276_v9 = vld [vmem:[#allocation2 + $0x38] sm:$0xff] }
 0x28e   : > { %v4107_v48 = vrot.slane %v8671_v35, 1  ;;  %v6275_v7 = vld [vmem:[#allocation2 + $0x30] sm:$0xff]  ;;  %v10736_v11 = vpack.c.bf16 %v8753_v2, %v8751_v32  ;;  %v6727_v38 = vrot.slane %v6686_v44, 2  ;;  %v6728_v12 = vrot.slane %v6271_v51, 2  ;;  %v8757_v18 = vld [vmem:[%s11858_s30 + $0x898] sm:$0xff]  ;;  %v8754_v42 = vld [vmem:[%s11858_s30 + $0x880] sm:$0xff] }
 0x28f   : > { %10719 = vmatpush1.bf16.msra.mxu0 %v10718_v40  ;;  %11103 = vmatpush1.bf16.msra.mxu1 %v10718_v40  ;;  %v9004_v40 = vld [vmem:[%s11890_s11 + $0x3a8] sm:$0x1]  ;;  %v10738_v5 = vpack.c.bf16 %v8752_v21, %v8750_v39  ;;  %v4110_v19 = vsel %vm663_vm0, %v4103_v36, %v4109_v26  ;;  %v6739_v43 = vrot.slane %v6276_v9, 2  ;;  %v6737_v47 = vrot.slane %v6275_v7, 2  ;;  %v6688_v41 = vld [vmem:[#allocation2 + $0x40] sm:$0x3] }
 0x290   : > { %10721 = vmatprep.subr.bf16.mxu0 %v10720_v59  ;;  %11105 = vmatprep.subr.bf16.mxu1 %v10720_v59  ;;  %v6730_v59 = vrot.slane %v6687_v31, 2  ;;  %v5583_v6 = vrot.slane %v9004_v40, 1  ;;  %v13169_v14 = vsel %vm4437_vm4, %v6727_v38, %v6728_v12  ;;  %v4108_v58 = vsel %vm663_vm0, %v4101_v53, %v4107_v48  ;;  %v8756_v52 = vld [vmem:[%s11858_s30 + $0x890] sm:$0xff]  ;;  %v8759_v49 = vld [vmem:[%s11858_s30 + $0x8a8] sm:$0xff]  ;;  %v8758_v32 = vld [vmem:[%s11858_s30 + $0x8a0] sm:$0xff] }
 0x291   : > { %v6741_v24 = vrot.slane %v6688_v41, 2  ;;  %v10742_v29 = vpack.c.bf16 %v8756_v52, %v8754_v42  ;;  %v8760_v2 = vld [vmem:[%s11858_s30 + $0x8b0] sm:$0xff]  ;;  %v13201_v33 = vld [vmem:[#allocation2 + $0xa0] sm:$0xff]  ;;  %v8769_v26 = vld [vmem:[%s11858_s30 + $0x8f8] sm:$0xff] }
 0x292   : > { %v5584_v37 = vsel %vm663_vm0, %v5577_v23, %v5583_v6  ;;  %v8765_v23 = vld [vmem:[%s11858_s30 + $0x8d8] sm:$0xff]  ;;  %v8762_v35 = vld [vmem:[%s11858_s30 + $0x8c0] sm:$0xff]  ;;  %v8764_v40 = vld [vmem:[%s11858_s30 + $0x8d0] sm:$0xff] }
 0x293   : > { %10723 = vmatpush1.bf16.msra.mxu0 %v10722_v4  ;;  %11107 = vmatpush1.bf16.msra.mxu1 %v10722_v4  ;;  %v6274_v4 = vld [vmem:[#allocation2 + $0x28] sm:$0xff]  ;;  %v10750_v51 = vpack.c.bf16 %v8764_v40, %v8762_v35  ;;  %v8664_v44 = vld [vmem:[%s11890_s11 + $0x190] sm:$0xff]  ;;  %v8770_v6 = vld [vmem:[%s11858_s30 + $0x900] sm:$0xff] }
 0x294   : > { %10725 = vmatprep.subr.bf16.mxu0 %v10724_v10  ;;  %11109 = vmatprep.subr.bf16.mxu1 %v10724_v10  ;;  %v13160_v10 = vsel %vm4437_vm4, %v6730_v59, %v6731_v62  ;;  %v6735_v27 = vrot.slane %v6274_v4, 2  ;;  %v8766_v59 = vld [vmem:[%s11858_s30 + $0x8e0] sm:$0xff]  ;;  %v8773_v4 = vld [vmem:[%s11858_s30 + $0x918] sm:$0xff]  ;;  %v8772_v38 = vld [vmem:[%s11858_s30 + $0x910] sm:$0xff] }
 0x295   : > { %v9003_v41 = vld [vmem:[%s11890_s11 + $0x3a0] sm:$0xff]  ;;  %v8781_v42 = vld [vmem:[%s11858_s30 + $0x958] sm:$0xff]  ;;  %v4312_v35 = vld [vmem:[%s11890_s11 + $0x8] sm:$0xfc] }
 0x296   : > { %4190 = vmatmul.mubr.f32.vlgmr.msra.gmra.mrb[8].mxu0 %v4088_v57  ;;  %5666 = vmatmul.mubr.f32.vlgmr.msra.gmra.mrb[8].mxu1 %v5564_v28  ;;  %v6733_v57 = vrot.slane %v6273_v63, 2  ;;  %v5586_v28 = vsel %vm663_vm0, %v5579_v54, %v5585_v61  ;;  %v13176_v13 = vsel %vm4437_vm4, %v6731_v62, %v6735_v27  ;;  %v13184_v54 = vsel %vm4437_vm4, %v6735_v27, %v6739_v43  ;;  %v8661_v62 = vld [vmem:[%s11890_s11 + $0x178] sm:$0xfe]  ;;  %v8771_v61 = vld [vmem:[%s11858_s30 + $0x908] sm:$0xff] }
 0x297   : > { %10727 = vmatpush1.bf16.msra.mxu0 %v10726_v15  ;;  %11111 = vmatpush1.bf16.msra.mxu1 %v10726_v15  ;;  %v8755_v15 = vld [vmem:[%s11858_s30 + $0x888] sm:$0xff]  ;;  %v4092_v63 = vrot.slane %v8661_v62, 1  ;;  %v10758_v27 = vpack.c.bf16 %v8772_v38, %v8770_v6  ;;  %v8786_v38 = vld [vmem:[%s11858_s30 + $0x980] sm:$0xff] }
 0x298   : > { %10729 = vmatprep.subr.bf16.mxu0 %v10728_v56  ;;  %11113 = vmatprep.subr.bf16.mxu1 %v10728_v56  ;;  %v6689_v56 = vld [vmem:[#allocation2 + $0x48] sm:$0x3]  ;;  %v10740_v16 = vpack.c.bf16 %v8757_v18, %v8755_v15  ;;  %v13181_v36 = vsel %vm4437_vm4, %v6728_v12, %v6733_v57  ;;  %v8777_v18 = vld [vmem:[%s11858_s30 + $0x938] sm:$0xff]  ;;  %v9104_v62 = vld [vmem:[%s11890_s11 + $0x1e8] sm:$0xfc] }
 0x299   : > { %4195 = vmatprep.mubr.f32.mxu0 %v4098_v0  ;;  %5671 = vmatprep.mubr.f32.mxu1 %v5574_v20  ;;  %v8761_v0 = vld [vmem:[%s11858_s30 + $0x8b8] sm:$0xff]  ;;  %v13189_v20 = vsel %vm4437_vm4, %v6733_v57, %v6737_v47  ;;  %v6743_v53 = vrot.slane %v6689_v56, 2  ;;  %v8667_v12 = vld [vmem:[%s11890_s11 + $0x1a8] sm:$0xff] }
 0x29a   : > { %4196 = vmatmul.mubr.f32.gmra.mrb[10].mxu0 %v4096_v50  ;;  %5672 = vmatmul.mubr.f32.gmra.mrb[10].mxu1 %v5572_v45  ;;  %14326 = vst [vmem:[#allocation4_spill] sm:$0xff] %v13189_v20  ;;  %v13197_v50 = vsel %vm4437_vm4, %v6737_v47, %v6741_v24  ;;  %v8763_v45 = vld [vmem:[%s11858_s30 + $0x8c8] sm:$0xff]  ;;  %v4099_v47 = vrot.slane %v8667_v12, 1  ;;  %v8788_v12 = vld [vmem:[%s11858_s30 + $0x990] sm:$0xff] }
 0x29b   : > { %10731 = vmatpush1.bf16.msra.mxu0 %v10730_v17  ;;  %11115 = vmatpush1.bf16.msra.mxu1 %v10730_v17  ;;  %v13192_v31 = vsel %vm4437_vm4, %v6739_v43, %v6743_v53  ;;  %v10744_v17 = vpack.c.bf16 %v8761_v0, %v8759_v49  ;;  %14328 = vst [vmem:[#allocation6_spill] sm:$0xff] %v13197_v50  ;;  %v8775_v15 = vld [vmem:[%s11858_s30 + $0x928] sm:$0xff]  ;;  %v8776_v43 = vld [vmem:[%s11858_s30 + $0x930] sm:$0xff]  ;;  %v8778_v49 = vld [vmem:[%s11858_s30 + $0x940] sm:$0xff] }
 0x29c   : > { %10733 = vmatprep.subr.bf16.mxu0 %v10732_v34  ;;  %11117 = vmatprep.subr.bf16.mxu1 %v10732_v34  ;;  %14327 = vst [vmem:[#allocation5_spill] sm:$0xff] %v13192_v31  ;;  %v10746_v34 = vpack.c.bf16 %v8760_v2, %v8758_v32  ;;  %v10748_v39 = vpack.c.bf16 %v8765_v23, %v8763_v45  ;;  %v8780_v0 = vld [vmem:[%s11858_s30 + $0x950] sm:$0xff]  ;;  %v8673_v2 = vld [vmem:[%s11890_s11 + $0x1d8] sm:$0x1]  ;;  %v8783_v23 = vld [vmem:[%s11858_s30 + $0x968] sm:$0xff] }
 0x29d   : > { %4201 = vmatprep.mubr.f32.mxu0 %v4104_v1  ;;  %5677 = vmatprep.mubr.f32.mxu1 %v5580_v3  ;;  %v8768_v1 = vld [vmem:[%s11858_s30 + $0x8f0] sm:$0xff]  ;;  %v8994_v3 = vld [vmem:[%s11890_s11 + $0x358] sm:$0xfe]  ;;  %v9006_v45 = vld [vmem:[%s11890_s11 + $0x3b8] sm:$0x1] }
 0x29e   : > { %4202 = vmatmul.mubr.f32.gmra.mrb[12].mxu0 %v4102_v22  ;;  %5678 = vmatmul.mubr.f32.gmra.mrb[12].mxu1 %v5578_v8  ;;  %v8997_v22 = vld [vmem:[%s11890_s11 + $0x370] sm:$0xff]  ;;  %v4093_v8 = vrot.slane %v8664_v44, 1  ;;  %v10754_v48 = vpack.c.bf16 %v8768_v1, %v8766_v59  ;;  %v5568_v9 = vrot.slane %v8994_v3, 1  ;;  %v13245_v59 = vld [vmem:[%s11890_s11 + $0x20] sm:$0xff] }
 0x29f   : > { %10735 = vmatpush1.bf16.msra.mxu0 %v10734_v30  ;;  %11119 = vmatpush1.bf16.msra.mxu1 %v10734_v30  ;;  %v8767_v30 = vld [vmem:[%s11858_s30 + $0x8e8] sm:$0xff]  ;;  %v5569_v7 = vrot.slane %v8997_v22, 1  ;;  %v13249_v44 = vld [vmem:[%s11890_s11 + $0x200] sm:$0xff]  ;;  %v8784_v3 = vld [vmem:[%s11858_s30 + $0x970] sm:$0xff] }
 0x2a0   : > { %10737 = vmatprep.subr.bf16.mxu0 %v10736_v11  ;;  %11121 = vmatprep.subr.bf16.mxu1 %v10736_v11  ;;  %v10752_v21 = vpack.c.bf16 %v8769_v26, %v8767_v30  ;;  %v10756_v11 = vpack.c.bf16 %v8773_v4, %v8771_v61  ;;  %v4100_v53 = vsel %vm663_vm0, %v4093_v8, %v4099_v47  ;;  %v4111_v26 = vrot.slane %v8673_v2, 1  ;;  %v8782_v1 = vld [vmem:[%s11858_s30 + $0x960] sm:$0xff]  ;;  %v8787_v22 = vld [vmem:[%s11858_s30 + $0x988] sm:$0xff]  ;;  %v8789_v61 = vld [vmem:[%s11858_s30 + $0x998] sm:$0xff] }
 0x2a1   : > { %4207 = vmatprep.mubr.f32.mxu0 %v4110_v19  ;;  %5683 = vmatprep.mubr.f32.mxu1 %v5586_v28  ;;  %v4094_v19 = vsel %vm663_vm0, %v4092_v63, %v4093_v8  ;;  %v5570_v57 = vsel %vm663_vm0, %v5568_v9, %v5569_v7  ;;  %v8774_v28 = vld [vmem:[%s11858_s30 + $0x920] sm:$0xff]  ;;  %v4441_v4 = vrot.slane %v4312_v35, 2  ;;  %v4442_v63 = vrot.slane %v13245_v59, 2 }
 0x2a2   : > { %4208 = vmatmul.mubr.f32.gmra.mrb[14].mxu0 %v4108_v58  ;;  %5684 = vmatmul.mubr.f32.gmra.mrb[14].mxu1 %v5584_v37  ;;  %v10760_v58 = vpack.c.bf16 %v8777_v18, %v8775_v15  ;;  %v8670_v37 = vld [vmem:[%s11890_s11 + $0x1c0] sm:$0xff]  ;;  %v10762_v52 = vpack.c.bf16 %v8776_v43, %v8774_v28  ;;  %v5916_v8 = vrot.slane %v9104_v62, 2  ;;  %v10770_v6 = vpack.c.bf16 %v8784_v3, %v8782_v1  ;;  %v8793_v15 = vld [vmem:[%s11858_s30 + $0x9b8] sm:$0xff]  ;;  %v8792_v43 = vld [vmem:[%s11858_s30 + $0x9b0] sm:$0xff] }
 0x2a3   : > { %10739 = vmatpush1.bf16.msra.mxu0 %v10738_v5  ;;  %11123 = vmatpush1.bf16.msra.mxu1 %v10738_v5  ;;  %v9000_v5 = vld [vmem:[%s11890_s11 + $0x388] sm:$0xff]  ;;  %v4443_v18 = vsel %vm4437_vm4, %v4441_v4, %v4442_v63  ;;  %v8790_v28 = vld [vmem:[%s11858_s30 + $0x9a0] sm:$0xff]  ;;  %v8813_v62 = vld [vmem:[%s11858_s30 + $0xa58] sm:$0xff] }
 0x2a4   : > { %10741 = vmatprep.subr.bf16.mxu0 %v10740_v16  ;;  %11125 = vmatprep.subr.bf16.mxu1 %v10740_v16  ;;  %v5575_v56 = vrot.slane %v9000_v5, 1  ;;  %v8779_v16 = vld [vmem:[%s11858_s30 + $0x948] sm:$0xff]  ;;  %v8810_v3 = vld [vmem:[%s11858_s30 + $0xa40] sm:$0xff]  ;;  %v8817_v4 = vld [vmem:[%s11858_s30 + $0xa78] sm:$0xff] }
 0x2a5   : > { %4278 = vmatprep.mubr.f32.mxu0 %v13201_v33  ;;  %5754 = vmatprep.mubr.f32.mxu1 %v13201_v33  ;;  %v10764_v32 = vpack.c.bf16 %v8781_v42, %v8779_v16  ;;  %v8791_v5 = vld [vmem:[%s11858_s30 + $0x9a8] sm:$0xff]  ;;  %v8796_v16 = vld [vmem:[%s11858_s30 + $0x9d0] sm:$0xff] }
 0x2a6   : > { %v5576_v24 = vsel %vm663_vm0, %v5569_v7, %v5575_v56  ;;  %v8799_v42 = vld [vmem:[%s11858_s30 + $0x9e8] sm:$0xff] }
 0x2a7   : > { %10743 = vmatpush1.bf16.msra.mxu0 %v10742_v29  ;;  %11127 = vmatpush1.bf16.msra.mxu1 %v10742_v29  ;;  %v4105_v29 = vrot.slane %v8670_v37, 1 }
 0x2a8   : > { %10745 = vmatprep.subr.bf16.mxu0 %v10744_v17  ;;  %11129 = vmatprep.subr.bf16.mxu1 %v10744_v17  ;;  %v5581_v17 = vrot.slane %v9003_v41, 1  ;;  %v8794_v41 = vld [vmem:[%s11858_s30 + $0x9c0] sm:$0xff] }
 0x2a9   : > { %v4106_v40 = vsel %vm663_vm0, %v4099_v47, %v4105_v29  ;;  %v4112_v9 = vsel %vm663_vm0, %v4105_v29, %v4111_v26  ;;  %v8795_v47 = vld [vmem:[%s11858_s30 + $0x9c8] sm:$0xff]  ;;  %v8808_v26 = vld [vmem:[%s11858_s30 + $0xa30] sm:$0xff] }
 0x2aa   : > { %v5582_v30 = vsel %vm663_vm0, %v5575_v56, %v5581_v17  ;;  %v8797_v56 = vld [vmem:[%s11858_s30 + $0x9d8] sm:$0xff]  ;;  %v8803_v29 = vld [vmem:[%s11858_s30 + $0xa08] sm:$0xff] }
 0x2ab   : > { %10747 = vmatpush1.bf16.msra.mxu0 %v10746_v34  ;;  %11131 = vmatpush1.bf16.msra.mxu1 %v10746_v34  ;;  %v8785_v34 = vld [vmem:[%s11858_s30 + $0x978] sm:$0xff]  ;;  %v10780_v37 = vpack.c.bf16 %v8797_v56, %v8795_v47  ;;  %v8824_v47 = vld [vmem:[%s11858_s30 + $0xab0] sm:$0xff]  ;;  %v8827_v56 = vld [vmem:[%s11858_s30 + $0xac8] sm:$0xff] }
 0x2ac   : > { %10749 = vmatprep.subr.bf16.mxu0 %v10748_v39  ;;  %11133 = vmatprep.subr.bf16.mxu1 %v10748_v39  ;;  %v10766_v39 = vpack.c.bf16 %v8780_v0, %v8778_v49  ;;  %v10782_v49 = vpack.c.bf16 %v8796_v16, %v8794_v41  ;;  %v8826_v16 = vld [vmem:[%s11858_s30 + $0xac0] sm:$0xff] }
 0x2af   : > { %10751 = vmatpush1.bf16.msra.mxu0 %v10750_v51  ;;  %11135 = vmatpush1.bf16.msra.mxu1 %v10750_v51  ;;  %v5587_v51 = vrot.slane %v9006_v45, 1  ;;  %v8802_v45 = vld [vmem:[%s11858_s30 + $0xa00] sm:$0xff] }
 0x2b0   : > { %10753 = vmatprep.subr.bf16.mxu0 %v10752_v21  ;;  %11137 = vmatprep.subr.bf16.mxu1 %v10752_v21  ;;  %v10768_v21 = vpack.c.bf16 %v8785_v34, %v8783_v23  ;;  %v8804_v23 = vld [vmem:[%s11858_s30 + $0xa10] sm:$0xff]  ;;  %v8807_v34 = vld [vmem:[%s11858_s30 + $0xa28] sm:$0xff] }
 0x2b1   : > { %v5588_v7 = vsel %vm663_vm0, %v5581_v17, %v5587_v51  ;;  %v8805_v17 = vld [vmem:[%s11858_s30 + $0xa18] sm:$0xff]  ;;  %v10790_v35 = vpack.c.bf16 %v8804_v23, %v8802_v45  ;;  %v8811_v51 = vld [vmem:[%s11858_s30 + $0xa48] sm:$0xff] }
 0x2b2   : > { %v10788_v2 = vpack.c.bf16 %v8805_v17, %v8803_v29  ;;  %v10796_v1 = vpack.c.bf16 %v8813_v62, %v8811_v51  ;;  %v4311_v29 = vld [vmem:[%s11890_s11] sm:$0xfc]  ;;  %v9106_v45 = vld [vmem:[%s11890_s11 + $0x1f8] sm:$0xff]  ;;  %v8835_v23 = vld [vmem:[%s11858_s30 + $0xb08] sm:$0xff] }
 0x2b3   : > { %10755 = vmatpush1.bf16.msra.mxu0 %v10754_v48  ;;  %11139 = vmatpush1.bf16.msra.mxu1 %v10754_v48  ;;  %v5917_v48 = vrot.slane %v13249_v44, 2  ;;  %v5914_v62 = vrot.slane %v9106_v45, 2  ;;  %v8849_v45 = vld [vmem:[%s11858_s30 + $0xb78] sm:$0xff] }
 0x2b4   : > { %10757 = vmatprep.subr.bf16.mxu0 %v10756_v11  ;;  %11141 = vmatprep.subr.bf16.mxu1 %v10756_v11  ;;  %v10772_v11 = vpack.c.bf16 %v8789_v61, %v8787_v22  ;;  %v8812_v22 = vld [vmem:[%s11858_s30 + $0xa50] sm:$0xff]  ;;  %v8815_v61 = vld [vmem:[%s11858_s30 + $0xa68] sm:$0xff] }
 0x2b6   : > { %4279 = vmatmul.mubr.f32.vlgmr.msra.gmra.mrb[8].mxu0 %v4094_v19  ;;  %5755 = vmatmul.mubr.f32.vlgmr.msra.gmra.mrb[8].mxu1 %v5570_v57  ;;  %v5918_v19 = vsel %vm4437_vm4, %v5916_v8, %v5917_v48  ;;  %v10776_v57 = vpack.c.bf16 %v8793_v15, %v8791_v5  ;;  %v10798_v8 = vpack.c.bf16 %v8812_v22, %v8810_v3  ;;  %v8818_v15 = vld [vmem:[%s11858_s30 + $0xa80] sm:$0xff]  ;;  %v4317_v22 = vld [vmem:[%s11890_s11 + $0x30] sm:$0xff] }
 0x2b7   : > { %10759 = vmatpush1.bf16.msra.mxu0 %v10758_v27  ;;  %11143 = vmatpush1.bf16.msra.mxu1 %v10758_v27  ;;  %v10774_v27 = vpack.c.bf16 %v8788_v12, %v8786_v38  ;;  %v8821_v38 = vld [vmem:[%s11858_s30 + $0xa98] sm:$0xff] }
 0x2b8   : > { %10761 = vmatprep.subr.bf16.mxu0 %v10760_v58  ;;  %11145 = vmatprep.subr.bf16.mxu1 %v10760_v58  ;;  %v10778_v58 = vpack.c.bf16 %v8792_v43, %v8790_v28  ;;  %v8822_v43 = vld [vmem:[%s11858_s30 + $0xaa0] sm:$0xff] }
 0x2b9   : > { %4284 = vmatprep.mubr.f32.mxu0 %v13201_v33  ;;  %5760 = vmatprep.mubr.f32.mxu1 %v13201_v33 }
 0x2ba   : > { %4285 = vmatmul.mubr.f32.gmra.mrb[10].mxu0 %v4100_v53  ;;  %5761 = vmatmul.mubr.f32.gmra.mrb[10].mxu1 %v5576_v24  ;;  %v8798_v53 = vld [vmem:[%s11858_s30 + $0x9e0] sm:$0xff]  ;;  %v8800_v24 = vld [vmem:[%s11858_s30 + $0x9f0] sm:$0xff] }
 0x2bb   : > { %10763 = vmatpush1.bf16.msra.mxu0 %v10762_v52  ;;  %11147 = vmatpush1.bf16.msra.mxu1 %v10762_v52  ;;  %v8801_v52 = vld [vmem:[%s11858_s30 + $0x9f8] sm:$0xff] }
 0x2bc   : > { %10765 = vmatprep.subr.bf16.mxu0 %v10764_v32  ;;  %11149 = vmatprep.subr.bf16.mxu1 %v10764_v32  ;;  %v10784_v0 = vpack.c.bf16 %v8801_v52, %v8799_v42  ;;  %v10786_v32 = vpack.c.bf16 %v8800_v24, %v8798_v53  ;;  %v8828_v42 = vld [vmem:[%s11858_s30 + $0xad0] sm:$0xff]  ;;  %v8831_v52 = vld [vmem:[%s11858_s30 + $0xae8] sm:$0xff]  ;;  %v8830_v53 = vld [vmem:[%s11858_s30 + $0xae0] sm:$0xff] }
 0x2bd   : > { %4290 = vmatprep.mubr.f32.mxu0 %v13201_v33  ;;  %5766 = vmatprep.mubr.f32.mxu1 %v13201_v33  ;;  %v8832_v24 = vld [vmem:[%s11858_s30 + $0xaf0] sm:$0xff] }
 0x2be   : > { %4291 = vmatmul.mubr.f32.gmra.mrb[12].mxu0 %v4106_v40  ;;  %5767 = vmatmul.mubr.f32.gmra.mrb[12].mxu1 %v5582_v30  ;;  %v8806_v30 = vld [vmem:[%s11858_s30 + $0xa20] sm:$0xff] }
 0x2bf   : > { %10767 = vmatpush1.bf16.msra.mxu0 %v10766_v39  ;;  %11151 = vmatpush1.bf16.msra.mxu1 %v10766_v39  ;;  %v8809_v39 = vld [vmem:[%s11858_s30 + $0xa38] sm:$0xff] }
 0x2c0   : > { %10769 = vmatprep.subr.bf16.mxu0 %v10768_v21  ;;  %11153 = vmatprep.subr.bf16.mxu1 %v10768_v21  ;;  %v10792_v40 = vpack.c.bf16 %v8809_v39, %v8807_v34  ;;  %v10794_v21 = vpack.c.bf16 %v8808_v26, %v8806_v30  ;;  %v8837_v34 = vld [vmem:[%s11858_s30 + $0xb18] sm:$0xff]  ;;  %v10818_v39 = vpack.c.bf16 %v8832_v24, %v8830_v53  ;;  %v4438_v30 = vrot.slane %v4311_v29, 2  ;;  %v4324_v29 = vld [vmem:[%s11890_s11 + $0x68] sm:$0x3] }
 0x2c1   : > { %4296 = vmatprep.mubr.f32.mxu0 %v13201_v33  ;;  %5772 = vmatprep.mubr.f32.mxu1 %v13201_v33  ;;  %v10820_v3 = vpack.c.bf16 %v8837_v34, %v8835_v23 }
 0x2c2   : > { %4297 = vmatmul.mubr.f32.gmra.mrb[14].mxu0 %v4112_v9  ;;  %5773 = vmatmul.mubr.f32.gmra.mrb[14].mxu1 %v5588_v7  ;;  %v8814_v9 = vld [vmem:[%s11858_s30 + $0xa60] sm:$0xff]  ;;  %v8816_v7 = vld [vmem:[%s11858_s30 + $0xa70] sm:$0xff] }
 0x2c3   : > { %10771 = vmatpush1.bf16.msra.mxu0 %v10770_v6  ;;  %11155 = vmatpush1.bf16.msra.mxu1 %v10770_v6  ;;  %v10800_v6 = vpack.c.bf16 %v8817_v4, %v8815_v61  ;;  %v10802_v12 = vpack.c.bf16 %v8816_v7, %v8814_v9  ;;  %v9109_v61 = vld [vmem:[%s11890_s11 + $0x210] sm:$0xff]  ;;  %v8839_v4 = vld [vmem:[%s11858_s30 + $0xb28] sm:$0xff]  ;;  %v8838_v9 = vld [vmem:[%s11858_s30 + $0xb20] sm:$0xff] }
 0x2c4   : > { %10773 = vmatprep.subr.bf16.mxu0 %v10772_v11  ;;  %11157 = vmatprep.subr.bf16.mxu1 %v10772_v11  ;;  %v8819_v11 = vld [vmem:[%s11858_s30 + $0xa88] sm:$0xff]  ;;  %v8840_v7 = vld [vmem:[%s11858_s30 + $0xb30] sm:$0xff] }
 0x2c5   : > { %4541 = vmatprep.mubr.f32.mxu0 %v4443_v18  ;;  %6016 = vmatprep.mubr.f32.mxu1 %v5918_v19  ;;  %v10804_v5 = vpack.c.bf16 %v8821_v38, %v8819_v11  ;;  %v8820_v18 = vld [vmem:[%s11858_s30 + $0xa90] sm:$0xff]  ;;  %v8823_v19 = vld [vmem:[%s11858_s30 + $0xaa8] sm:$0xff] }
 0x2c7   : > { %10775 = vmatpush1.bf16.msra.mxu0 %v10774_v27  ;;  %11159 = vmatpush1.bf16.msra.mxu1 %v10774_v27  ;;  %v8825_v27 = vld [vmem:[%s11858_s30 + $0xab8] sm:$0xff] }
 0x2c8   : > { %10777 = vmatprep.subr.bf16.mxu0 %v10776_v57  ;;  %11161 = vmatprep.subr.bf16.mxu1 %v10776_v57  ;;  %v10806_v57 = vpack.c.bf16 %v8820_v18, %v8818_v15  ;;  %v10808_v28 = vpack.c.bf16 %v8825_v27, %v8823_v19  ;;  %v4447_v15 = vrot.slane %v4317_v22, 2  ;;  %v5922_v18 = vrot.slane %v9109_v61, 2  ;;  %v4321_v19 = vld [vmem:[%s11890_s11 + $0x50] sm:$0xff]  ;;  %v8853_v22 = vld [vmem:[%s11858_s30 + $0xb98] sm:$0xff] }
 0x2c9   : > { %v9113_v27 = vld [vmem:[%s11890_s11 + $0x230] sm:$0xff] }
 0x2ca   : > { %v5923_v53 = vsel %vm4437_vm4, %v5914_v62, %v5922_v18 }
 0x2cb   : > { %10779 = vmatpush1.bf16.msra.mxu0 %v10778_v58  ;;  %11163 = vmatpush1.bf16.msra.mxu1 %v10778_v58  ;;  %v8829_v58 = vld [vmem:[%s11858_s30 + $0xad8] sm:$0xff] }
 0x2cc   : > { %10781 = vmatprep.subr.bf16.mxu0 %v10780_v37  ;;  %11165 = vmatprep.subr.bf16.mxu1 %v10780_v37  ;;  %v10810_v37 = vpack.c.bf16 %v8824_v47, %v8822_v43  ;;  %v10812_v41 = vpack.c.bf16 %v8829_v58, %v8827_v56  ;;  %v9112_v43 = vld [vmem:[%s11890_s11 + $0x228] sm:$0xff]  ;;  %v10826_v47 = vpack.c.bf16 %v8840_v7, %v8838_v9  ;;  %v8845_v58 = vld [vmem:[%s11858_s30 + $0xb58] sm:$0xff] }
 0x2cd   : > { %v8843_v56 = vld [vmem:[%s11858_s30 + $0xb48] sm:$0xff]  ;;  %v5928_v59 = vrot.slane %v9112_v43, 2 }
 0x2ce   : > { %v10828_v44 = vpack.c.bf16 %v8845_v58, %v8843_v56  ;;  %v8858_v56 = vld [vmem:[%s11858_s30 + $0xbc0] sm:$0xff]  ;;  %v8860_v58 = vld [vmem:[%s11858_s30 + $0xbd0] sm:$0xff] }
 0x2cf   : > { %10783 = vmatpush1.bf16.msra.mxu0 %v10782_v49  ;;  %11167 = vmatpush1.bf16.msra.mxu1 %v10782_v49  ;;  %v8833_v49 = vld [vmem:[%s11858_s30 + $0xaf8] sm:$0xff] }
 0x2d0   : > { %10785 = vmatprep.subr.bf16.mxu0 %v10784_v0  ;;  %11169 = vmatprep.subr.bf16.mxu1 %v10784_v0  ;;  %v10814_v0 = vpack.c.bf16 %v8828_v42, %v8826_v16  ;;  %v10816_v17 = vpack.c.bf16 %v8833_v49, %v8831_v52  ;;  %v4455_v52 = vrot.slane %v4321_v19, 2  ;;  %v5930_v49 = vrot.slane %v9113_v27, 2  ;;  %v8854_v19 = vld [vmem:[%s11858_s30 + $0xba0] sm:$0xff]  ;;  %v8856_v27 = vld [vmem:[%s11858_s30 + $0xbb0] sm:$0xff] }
 0x2d1   : > { %v10842_v43 = vpack.c.bf16 %v8856_v27, %v8854_v19  ;;  %v6255_v19 = vld [vmem:[%s13385_s19 + $0x90] sm:$0xff]  ;;  %v6256_v27 = vld [vmem:[%s13385_s19 + $0x98] sm:$0xff] }
 0x2d3   : > { %10787 = vmatpush1.bf16.msra.mxu0 %v10786_v32  ;;  %11171 = vmatpush1.bf16.msra.mxu1 %v10786_v32  ;;  %v4314_v32 = vld [vmem:[%s11890_s11 + $0x18] sm:$0xff] }
 0x2d4   : > { %10789 = vmatprep.subr.bf16.mxu0 %v10788_v2  ;;  %11173 = vmatprep.subr.bf16.mxu1 %v10788_v2  ;;  %v9103_v2 = vld [vmem:[%s11890_s11 + $0x1e0] sm:$0xfc]  ;;  %v4439_v26 = vrot.slane %v4314_v32, 2  ;;  %v9115_v32 = vld [vmem:[%s11890_s11 + $0x240] sm:$0x3] }
 0x2d5   : > { %v5913_v51 = vrot.slane %v9103_v2, 2  ;;  %v8847_v2 = vld [vmem:[%s11858_s30 + $0xb68] sm:$0xff] }
 0x2d7   : > { %10791 = vmatpush1.bf16.msra.mxu0 %v10790_v35  ;;  %11175 = vmatpush1.bf16.msra.mxu1 %v10790_v35  ;;  %v8834_v35 = vld [vmem:[%s11858_s30 + $0xb00] sm:$0xff] }
 0x2d8   : > { %10793 = vmatprep.subr.bf16.mxu0 %v10792_v40  ;;  %11177 = vmatprep.subr.bf16.mxu1 %v10792_v40  ;;  %v8836_v40 = vld [vmem:[%s11858_s30 + $0xb10] sm:$0xff] }
 0x2db   : > { %10795 = vmatpush1.bf16.msra.mxu0 %v10794_v21  ;;  %11179 = vmatpush1.bf16.msra.mxu1 %v10794_v21  ;;  %v4318_v21 = vld [vmem:[%s11890_s11 + $0x38] sm:$0xff] }
 0x2dc   : > { %10797 = vmatprep.subr.bf16.mxu0 %v10796_v1  ;;  %11181 = vmatprep.subr.bf16.mxu1 %v10796_v1  ;;  %v9110_v1 = vld [vmem:[%s11890_s11 + $0x218] sm:$0xff]  ;;  %v4449_v11 = vrot.slane %v4318_v21, 2  ;;  %v8846_v21 = vld [vmem:[%s11858_s30 + $0xb60] sm:$0xff] }
 0x2dd   : > { %v5924_v38 = vrot.slane %v9110_v1, 2  ;;  %v8848_v1 = vld [vmem:[%s11858_s30 + $0xb70] sm:$0xff] }
 0x2de   : > { %v4450_v16 = vsel %vm4437_vm4, %v4442_v63, %v4449_v11  ;;  %v4323_v63 = vld [vmem:[%s11890_s11 + $0x60] sm:$0x3]  ;;  %v4456_v23 = vsel %vm4437_vm4, %v4449_v11, %v4455_v52 }
 0x2df   : > { %10799 = vmatpush1.bf16.msra.mxu0 %v10798_v8  ;;  %11183 = vmatpush1.bf16.msra.mxu1 %v10798_v8  ;;  %v8841_v8 = vld [vmem:[%s11858_s30 + $0xb38] sm:$0xff]  ;;  %v5925_v42 = vsel %vm4437_vm4, %v5917_v48, %v5924_v38  ;;  %v5931_v34 = vsel %vm4437_vm4, %v5924_v38, %v5930_v49  ;;  %v8850_v11 = vld [vmem:[%s11858_s30 + $0xb80] sm:$0xff]  ;;  %v8852_v38 = vld [vmem:[%s11858_s30 + $0xb90] sm:$0xff] }
 0x2e0   : > { %10801 = vmatprep.subr.bf16.mxu0 %v10800_v6  ;;  %11185 = vmatprep.subr.bf16.mxu1 %v10800_v6  ;;  %v10822_v6 = vpack.c.bf16 %v8836_v40, %v8834_v35 }
 0x2e3   : > { %10803 = vmatpush1.bf16.msra.mxu0 %v10802_v12  ;;  %11187 = vmatpush1.bf16.msra.mxu1 %v10802_v12  ;;  %v4440_v12 = vsel %vm4437_vm4, %v4438_v30, %v4439_v26  ;;  %v5929_v30 = vsel %vm4437_vm4, %v5922_v18, %v5928_v59 }
 0x2e4   : > { %10805 = vmatprep.subr.bf16.mxu0 %v10804_v5  ;;  %11189 = vmatprep.subr.bf16.mxu1 %v10804_v5  ;;  %v5915_v5 = vsel %vm4437_vm4, %v5913_v51, %v5914_v62  ;;  %v5934_v51 = vrot.slane %v9115_v32, 2  ;;  %v10832_v62 = vpack.c.bf16 %v8849_v45, %v8847_v2 }
 0x2e6   : > { %v5935_v9 = vsel %vm4437_vm4, %v5928_v59, %v5934_v51  ;;  %v9108_v59 = vld [vmem:[%s11890_s11 + $0x208] sm:$0xff]  ;;  %v9232_v51 = vld [vmem:[%s13385_s19 + $0x190] sm:$0xff] }
 0x2e7   : > { %10807 = vmatpush1.bf16.msra.mxu0 %v10806_v57  ;;  %11191 = vmatpush1.bf16.msra.mxu1 %v10806_v57  ;;  %v10824_v57 = vpack.c.bf16 %v8841_v8, %v8839_v4  ;;  %v10834_v8 = vpack.c.bf16 %v8848_v1, %v8846_v21  ;;  %v6237_v1 = vld [vmem:[%s13385_s19] sm:$0xff] }
 0x2e8   : > { %10809 = vmatprep.subr.bf16.mxu0 %v10808_v28  ;;  %11193 = vmatprep.subr.bf16.mxu1 %v10808_v28  ;;  %v4320_v28 = vld [vmem:[%s11890_s11 + $0x48] sm:$0xff] }
 0x2e9   : > { %v4453_v24 = vrot.slane %v4320_v28, 2  ;;  %v8861_v28 = vld [vmem:[%s11858_s30 + $0xbd8] sm:$0xff] }
 0x2eb   : > { %10811 = vmatpush1.bf16.msra.mxu0 %v10810_v37  ;;  %11195 = vmatpush1.bf16.msra.mxu1 %v10810_v37  ;;  %v8842_v37 = vld [vmem:[%s11858_s30 + $0xb40] sm:$0xff]  ;;  %v4454_v40 = vsel %vm4437_vm4, %v4447_v15, %v4453_v24 }
 0x2ec   : > { %10813 = vmatprep.subr.bf16.mxu0 %v10812_v41  ;;  %11197 = vmatprep.subr.bf16.mxu1 %v10812_v41  ;;  %v8844_v41 = vld [vmem:[%s11858_s30 + $0xb50] sm:$0xff] }
 0x2ed   : > { %v10830_v48 = vpack.c.bf16 %v8844_v41, %v8842_v37  ;;  %v8863_v37 = vld [vmem:[%s11858_s30 + $0xbe8] sm:$0xff]  ;;  %v8865_v41 = vld [vmem:[%s11858_s30 + $0xbf8] sm:$0xff] }
 0x2ef   : > { %10815 = vmatpush1.bf16.msra.mxu0 %v10814_v0  ;;  %11199 = vmatpush1.bf16.msra.mxu1 %v10814_v0  ;;  %v4448_v0 = vsel %vm4437_vm4, %v4439_v26, %v4447_v15  ;;  %v4459_v26 = vrot.slane %v4323_v63, 2  ;;  %v10838_v15 = vpack.c.bf16 %v8852_v38, %v8850_v11  ;;  %v6254_v63 = vld [vmem:[%s13385_s19 + $0x88] sm:$0xff]  ;;  %v9217_v11 = vld [vmem:[%s13385_s19 + $0x118] sm:$0xff] }
 0x2f0   : > { %10817 = vmatprep.subr.bf16.mxu0 %v10816_v17  ;;  %11201 = vmatprep.subr.bf16.mxu1 %v10816_v17  ;;  %v9116_v17 = vld [vmem:[%s11890_s11 + $0x248] sm:$0x3]  ;;  %v9114_v38 = vld [vmem:[%s11890_s11 + $0x238] sm:$0xff] }
 0x2f1   : > { %v5936_v35 = vrot.slane %v9116_v17, 2  ;;  %v9231_v17 = vld [vmem:[%s13385_s19 + $0x188] sm:$0xff] }
 0x2f3   : > { %10819 = vmatpush1.bf16.msra.mxu0 %v10818_v39  ;;  %11203 = vmatpush1.bf16.msra.mxu1 %v10818_v39  ;;  %v4461_v39 = vrot.slane %v4324_v29, 2  ;;  %v5937_v4 = vsel %vm4437_vm4, %v5930_v49, %v5936_v35  ;;  %v4313_v49 = vld [vmem:[%s11890_s11 + $0x10] sm:$0xfc]  ;;  %v9230_v29 = vld [vmem:[%s13385_s19 + $0x180] sm:$0xff]  ;;  %v9215_v35 = vld [vmem:[%s13385_s19 + $0x108] sm:$0xff] }
 0x2f4   : > { %10821 = vmatprep.subr.bf16.mxu0 %v10820_v3  ;;  %11205 = vmatprep.subr.bf16.mxu1 %v10820_v3  ;;  %v8851_v3 = vld [vmem:[%s11858_s30 + $0xb88] sm:$0xff]  ;;  %v4444_v32 = vrot.slane %v4313_v49, 2  ;;  %v13447_v49 = vpack.c.bf16 %v6256_v27, %v6255_v19 }
 0x2f5   : > { %v4462_v61 = vsel %vm4437_vm4, %v4455_v52, %v4461_v39  ;;  %v10836_v7 = vpack.c.bf16 %v8853_v22, %v8851_v3  ;;  %v8864_v52 = vld [vmem:[%s11858_s30 + $0xbf0] sm:$0xff]  ;;  %v13398_v39 = vpack.c.bf16 %v9231_v17, %v9230_v29  ;;  %v6238_v3 = vld [vmem:[%s13385_s19 + $0x8] sm:$0xff] }
 0x2f6   : > { %4542 = vmatmul.mubr.f32.vlgmr.msra.gmra.mrb[8].mxu0 %v4440_v12  ;;  %6017 = vmatmul.mubr.f32.vlgmr.msra.gmra.mrb[8].mxu1 %v5915_v5  ;;  %v8855_v12 = vld [vmem:[%s11858_s30 + $0xba8] sm:$0xff]  ;;  %v8857_v5 = vld [vmem:[%s11858_s30 + $0xbb8] sm:$0xff] }
 0x2f7   : > { %10823 = vmatpush1.bf16.msra.mxu0 %v10822_v6  ;;  %11207 = vmatpush1.bf16.msra.mxu1 %v10822_v6  ;;  %v4460_v6 = vsel %vm4437_vm4, %v4453_v24, %v4459_v26  ;;  %v10840_v18 = vpack.c.bf16 %v8857_v5, %v8855_v12  ;;  %v9105_v24 = vld [vmem:[%s11890_s11 + $0x1f0] sm:$0xfc]  ;;  %v9234_v12 = vld [vmem:[%s13385_s19 + $0x1a0] sm:$0xff]  ;;  %v9235_v5 = vld [vmem:[%s13385_s19 + $0x1a8] sm:$0xff] }
 0x2f8   : > { %10825 = vmatprep.subr.bf16.mxu0 %v10824_v57  ;;  %11209 = vmatprep.subr.bf16.mxu1 %v10824_v57  ;;  %v8859_v57 = vld [vmem:[%s11858_s30 + $0xbc8] sm:$0xff]  ;;  %v5919_v45 = vrot.slane %v9105_v24, 2  ;;  %v6240_v24 = vld [vmem:[%s13385_s19 + $0x18] sm:$0xff] }
 0x2f9   : > { %4547 = vmatprep.mubr.f32.mxu0 %v4450_v16  ;;  %6022 = vmatprep.mubr.f32.mxu1 %v5925_v42  ;;  %v8862_v16 = vld [vmem:[%s11858_s30 + $0xbe0] sm:$0xff]  ;;  %v10846_v42 = vpack.c.bf16 %v8860_v58, %v8858_v56  ;;  %v13439_v58 = vpack.c.bf16 %v9235_v5, %v9234_v12  ;;  %v9240_v5 = vld [vmem:[%s13385_s19 + $0x1d0] sm:$0xff] }
 0x2fa   : > { %4548 = vmatmul.mubr.f32.gmra.mrb[10].mxu0 %v4448_v0  ;;  %6023 = vmatmul.mubr.f32.gmra.mrb[10].mxu1 %v5923_v53  ;;  %v4316_v0 = vld [vmem:[%s11890_s11 + $0x28] sm:$0xff]  ;;  %v10848_v53 = vpack.c.bf16 %v8865_v41, %v8863_v37  ;;  %v10850_v2 = vpack.c.bf16 %v8864_v52, %v8862_v16  ;;  %v9218_v56 = vld [vmem:[%s13385_s19 + $0x120] sm:$0xff]  ;;  %v4325_v41 = vld [vmem:[%s11890_s11 + $0x70] sm:$0x3] }
 0x2fb   : > { %10827 = vmatpush1.bf16.msra.mxu0 %v10826_v47  ;;  %11211 = vmatpush1.bf16.msra.mxu1 %v10826_v47  ;;  %v10844_v47 = vpack.c.bf16 %v8861_v28, %v8859_v57  ;;  %v9219_v37 = vld [vmem:[%s13385_s19 + $0x128] sm:$0xff]  ;;  %v9117_v16 = vld [vmem:[%s11890_s11 + $0x250] sm:$0x3]  ;;  %v9237_v52 = vld [vmem:[%s13385_s19 + $0x1b8] sm:$0xff]  ;;  %v4463_v17 = vrot.slane %v4325_v41, 2 }
 0x2fc   : > { %10829 = vmatprep.subr.bf16.mxu0 %v10828_v44  ;;  %11213 = vmatprep.subr.bf16.mxu1 %v10828_v44  ;;  %v6253_v44 = vld [vmem:[%s13385_s19 + $0x80] sm:$0xff]  ;;  %v13455_v29 = vpack.c.bf16 %v9219_v37, %v9218_v56  ;;  %v9224_v37 = vld [vmem:[%s13385_s19 + $0x150] sm:$0xff]  ;;  %v9225_v41 = vld [vmem:[%s13385_s19 + $0x158] sm:$0xff] }
 0x2fd   : > { %4553 = vmatprep.mubr.f32.mxu0 %v4456_v23  ;;  %6028 = vmatprep.mubr.f32.mxu1 %v5931_v34  ;;  %v5920_v23 = vrot.slane %v9108_v59, 2  ;;  %v9214_v34 = vld [vmem:[%s13385_s19 + $0x100] sm:$0xff]  ;;  %v13403_v26 = vpack.c.bf16 %v6254_v63, %v6253_v44  ;;  %v5938_v44 = vrot.slane %v9117_v16, 2  ;;  %v6270_v63 = vld [vmem:[#allocation2 + $0x8] sm:$0xfe] }
 0x2fe   : > { %4554 = vmatmul.mubr.f32.gmra.mrb[12].mxu0 %v4454_v40  ;;  %6029 = vmatmul.mubr.f32.gmra.mrb[12].mxu1 %v5929_v30  ;;  %v4319_v40 = vld [vmem:[%s11890_s11 + $0x40] sm:$0xff] }
 0x2ff   : > { %10831 = vmatpush1.bf16.msra.mxu0 %v10830_v48  ;;  %11215 = vmatpush1.bf16.msra.mxu1 %v10830_v48  ;;  %v4445_v48 = vrot.slane %v4316_v0, 2  ;;  %v9111_v30 = vld [vmem:[%s11890_s11 + $0x220] sm:$0xff]  ;;  %v5921_v22 = vsel %vm4437_vm4, %v5919_v45, %v5920_v23 }
 0x300   : > { %10833 = vmatprep.subr.bf16.mxu0 %v10832_v62  ;;  %11217 = vmatprep.subr.bf16.mxu1 %v10832_v62  ;;  %v9233_v62 = vld [vmem:[%s13385_s19 + $0x198] sm:$0xff]  ;;  %v9238_v45 = vld [vmem:[%s13385_s19 + $0x1c0] sm:$0xff] }
 0x301   : > { %4559 = vmatprep.mubr.f32.mxu0 %v4462_v61  ;;  %6034 = vmatprep.mubr.f32.mxu1 %v5937_v4  ;;  %v4446_v21 = vsel %vm4437_vm4, %v4444_v32, %v4445_v48  ;;  %v13411_v61 = vpack.c.bf16 %v9215_v35, %v9214_v34  ;;  %v4451_v4 = vrot.slane %v4319_v40, 2  ;;  %v6257_v35 = vld [vmem:[%s13385_s19 + $0xa0] sm:$0xff]  ;;  %v6258_v40 = vld [vmem:[%s13385_s19 + $0xa8] sm:$0xff] }
 0x302   : > { %4560 = vmatmul.mubr.f32.gmra.mrb[14].mxu0 %v4460_v6  ;;  %6035 = vmatmul.mubr.f32.gmra.mrb[14].mxu1 %v5935_v9  ;;  %v13414_v6 = vld [vmem:[%s11890_s11 + $0x58] sm:$0xff]  ;;  %v13417_v9 = vpack.c.bf16 %v9233_v62, %v9232_v51  ;;  %v6241_v62 = vld [vmem:[%s13385_s19 + $0x20] sm:$0xff]  ;;  %v13489_v12 = vpack.c.bf16 %v6258_v40, %v6257_v35  ;;  %v9263_v35 = vld [vmem:[%s13385_s19 + $0x288] sm:$0xff] }
 0x303   : > { %10835 = vmatpush1.bf16.msra.mxu0 %v10834_v8  ;;  %11219 = vmatpush1.bf16.msra.mxu1 %v10834_v8  ;;  %v5926_v8 = vrot.slane %v9111_v30, 2  ;;  %v4452_v57 = vsel %vm4437_vm4, %v4445_v48, %v4451_v4  ;;  %v9220_v48 = vld [vmem:[%s13385_s19 + $0x130] sm:$0xff]  ;;  %v13470_v30 = vld [vmem:[#allocation2 + $0x18] sm:$0xff]  ;;  %v9242_v16 = vld [vmem:[%s13385_s19 + $0x1e0] sm:$0xff] }
 0x304   : > { %10837 = vmatprep.subr.bf16.mxu0 %v10836_v7  ;;  %11221 = vmatprep.subr.bf16.mxu1 %v10836_v7  ;;  %v9216_v7 = vld [vmem:[%s13385_s19 + $0x110] sm:$0xff]  ;;  %v6326_v51 = vrot.slane %v13470_v30, 1  ;;  %14329 = vst [vmem:[#allocation7_spill] sm:$0xff] %v13489_v12 }
 0x305   : > { %4630 = vmatprep.mubr.f32.mxu0 %v13201_v33  ;;  %6105 = vmatprep.mubr.f32.mxu1 %v13201_v33  ;;  %v5927_v28 = vsel %vm4437_vm4, %v5920_v23, %v5926_v8  ;;  %v9239_v23 = vld [vmem:[%s13385_s19 + $0x1c8] sm:$0xff] }
 0x307   : > { %10839 = vmatpush1.bf16.msra.mxu0 %v10838_v15  ;;  %11223 = vmatpush1.bf16.msra.mxu1 %v10838_v15  ;;  %v13425_v15 = vpack.c.bf16 %v6238_v3, %v6237_v1 }
 0x308   : > { %10841 = vmatprep.subr.bf16.mxu0 %v10840_v18  ;;  %11225 = vmatprep.subr.bf16.mxu1 %v10840_v18  ;;  %v4457_v18 = vrot.slane %v13414_v6, 2  ;;  %v6325_v6 = vrot.slane %v6270_v63, 1 }
 0x30a   : > { %v4458_v0 = vsel %vm4437_vm4, %v4451_v4, %v4457_v18  ;;  %v4464_v1 = vsel %vm4437_vm4, %v4457_v18, %v4463_v17  ;;  %v6259_v4 = vld [vmem:[%s13385_s19 + $0xb0] sm:$0xff]  ;;  %v9241_v18 = vld [vmem:[%s13385_s19 + $0x1d8] sm:$0xff] }
 0x30b   : > { %10843 = vmatpush1.bf16.msra.mxu0 %v10842_v43  ;;  %11227 = vmatpush1.bf16.msra.mxu1 %v10842_v43  ;;  %v13434_v43 = vpack.c.bf16 %v9217_v11, %v9216_v7  ;;  %v13485_v7 = vpack.c.bf16 %v9239_v23, %v9238_v45  ;;  %v9222_v11 = vld [vmem:[%s13385_s19 + $0x140] sm:$0xff]  ;;  %v13507_v56 = vpack.c.bf16 %v9241_v18, %v9240_v5  ;;  %v9244_v17 = vld [vmem:[%s13385_s19 + $0x1f0] sm:$0xff]  ;;  %v9229_v45 = vld [vmem:[%s13385_s19 + $0x178] sm:$0xff] }
 0x30c   : > { %10845 = vmatprep.subr.bf16.mxu0 %v10844_v47  ;;  %11229 = vmatprep.subr.bf16.mxu1 %v10844_v47  ;;  %v5932_v47 = vrot.slane %v9114_v38, 2  ;;  %v9223_v38 = vld [vmem:[%s13385_s19 + $0x148] sm:$0xff]  ;;  %v9262_v23 = vld [vmem:[%s13385_s19 + $0x280] sm:$0xff] }
 0x30e   : > { %v5933_v59 = vsel %vm4437_vm4, %v5926_v8, %v5932_v47  ;;  %v5939_v3 = vsel %vm4437_vm4, %v5932_v47, %v5938_v44  ;;  %v6260_v8 = vld [vmem:[%s13385_s19 + $0xb8] sm:$0xff]  ;;  %v13504_v47 = vpack.c.bf16 %v9223_v38, %v9222_v11  ;;  %v11769_v38 = vld [vmem:[#allocation2 + $0x28] sm:$0xff] }
 0x30f   : > { %10847 = vmatpush1.bf16.msra.mxu0 %v10846_v42  ;;  %11231 = vmatpush1.bf16.msra.mxu1 %v10846_v42  ;;  %v9236_v42 = vld [vmem:[%s13385_s19 + $0x1b0] sm:$0xff]  ;;  %v13499_v27 = vpack.c.bf16 %v6260_v8, %v6259_v4  ;;  %v9245_v44 = vld [vmem:[%s13385_s19 + $0x1f8] sm:$0xff]  ;;  %v6330_v5 = vrot.slane %v11769_v38, 1  ;;  %v9266_v38 = vld [vmem:[%s13385_s19 + $0x2a0] sm:$0xff] }
 0x310   : > { %10849 = vmatprep.subr.bf16.mxu0 %v10848_v53  ;;  %11233 = vmatprep.subr.bf16.mxu1 %v10848_v53  ;;  %v6239_v53 = vld [vmem:[%s13385_s19 + $0x10] sm:$0xff]  ;;  %v13459_v32 = vpack.c.bf16 %v9237_v52, %v9236_v42  ;;  %v9243_v42 = vld [vmem:[%s13385_s19 + $0x1e8] sm:$0xff]  ;;  %v9265_v11 = vld [vmem:[%s13385_s19 + $0x298] sm:$0xff] }
 0x311   : > { %v13466_v34 = vpack.c.bf16 %v6240_v24, %v6239_v53  ;;  %14331 = vst [vmem:[#allocation9_spill] sm:$0xff] %v13499_v27  ;;  %v13522_v53 = vpack.c.bf16 %v9243_v42, %v9242_v16  ;;  %v9226_v24 = vld [vmem:[%s13385_s19 + $0x160] sm:$0xff]  ;;  %v11768_v4 = vld [vmem:[#allocation2 + $0x10] sm:$0xff] }
 0x312   : > { %v6323_v8 = vrot.slane %v11768_v4, 1  ;;  %v11770_v16 = vld [vmem:[#allocation2 + $0x20] sm:$0xff] }
 0x313   : > { %10851 = vmatpush1.bf16.msra.mxu0 %v10850_v2  ;;  %11235 = vmatpush1.bf16.msra.mxu1 %v10850_v2  ;;  %v9221_v2 = vld [vmem:[%s13385_s19 + $0x138] sm:$0xff]  ;;  %v6328_v42 = vrot.slane %v11770_v16, 1 }
 0x314   : > { %11237 = vmatprep.subr.bf16.mxu0 %v13398_v39  ;;  %11269 = vmatprep.subr.bf16.mxu1 %v13403_v26 }
 0x316   : > { %4631 = vmatmul.mubr.f32.vlgmr.msra.gmra.mrb[8].mxu0 %v4446_v21  ;;  %6106 = vmatmul.mubr.f32.vlgmr.msra.gmra.mrb[8].mxu1 %v5921_v22  ;;  %v6242_v21 = vld [vmem:[%s13385_s19 + $0x28] sm:$0xff]  ;;  %v13479_v22 = vpack.c.bf16 %v9221_v2, %v9220_v48  ;;  %v13533_v48 = vpack.c.bf16 %v9245_v44, %v9244_v17  ;;  %v9228_v2 = vld [vmem:[%s13385_s19 + $0x170] sm:$0xff] }
 0x317   : > { %11239 = vmatpush3.bf16.msra.mxu0 %v13411_v61  ;;  %4636 = vmatprep.mubr.f32.mxu0 %v13201_v33  ;;  %v13494_v19 = vpack.c.bf16 %v6242_v21, %v6241_v62  ;;  %v13540_v40 = vpack.c.bf16 %v9229_v45, %v9228_v2  ;;  %v6269_v62 = vld [vmem:[#allocation2] sm:$0xfe]  ;;  %v13543_v21 = vpack.c.bf16 %v9263_v35, %v9262_v23  ;;  %v6278_v44 = vld [vmem:[#allocation2 + $0x48] sm:$0x1]  ;;  %v11772_v23 = vld [vmem:[#allocation2 + $0x30] sm:$0xff] }
 0x318   : > { %6111 = vmatprep.mubr.f32.mxu1 %v13201_v33  ;;  %11241 = vmatprep.subr.bf16.mxu0 %v13417_v9  ;;  %v6322_v18 = vrot.slane %v6269_v62, 1  ;;  %v6329_v45 = vsel %vm663_vm0, %v6323_v8, %v6328_v42  ;;  %v6332_v35 = vrot.slane %v11772_v23, 1  ;;  %v6277_v62 = vld [vmem:[#allocation2 + $0x40] sm:$0x1] }
 0x319   : > { %11271 = vmatpush3.bf16.msra.mxu1 %v13425_v15  ;;  %14330 = vst [vmem:[#allocation8_spill] sm:$0xff] %v13494_v19  ;;  %14333 = vst [vmem:[#allocation11_spill] sm:$0xff] %v13540_v40 }
 0x31a   : > { %4637 = vmatmul.mubr.f32.gmra.mrb[10].mxu0 %v4452_v57  ;;  %6112 = vmatmul.mubr.f32.gmra.mrb[10].mxu1 %v5927_v28  ;;  %v6243_v57 = vld [vmem:[%s13385_s19 + $0x30] sm:$0xff]  ;;  %v6244_v28 = vld [vmem:[%s13385_s19 + $0x38] sm:$0xff]  ;;  %14334 = vst [vmem:[#allocation12_spill] sm:$0xff] %v13543_v21 }
 0x31b   : > { %11243 = vmatpush3.bf16.msra.mxu0 %v13434_v43  ;;  %4642 = vmatprep.mubr.f32.mxu0 %v13201_v33  ;;  %v13515_v52 = vpack.c.bf16 %v6244_v28, %v6243_v57  ;;  %v9248_v28 = vld [vmem:[%s13385_s19 + $0x210] sm:$0xff] }
 0x31c   : > { %6117 = vmatprep.mubr.f32.mxu1 %v13201_v33  ;;  %11245 = vmatprep.subr.bf16.mxu0 %v13439_v58 }
 0x31d   : > { %11273 = vmatprep.subr.bf16.mxu1 %v13447_v49  ;;  %14332 = vst [vmem:[#allocation10_spill] sm:$0xff] %v13515_v52 }
 0x31e   : > { %4643 = vmatmul.mubr.f32.gmra.mrb[12].mxu0 %v4458_v0  ;;  %6118 = vmatmul.mubr.f32.gmra.mrb[12].mxu1 %v5933_v59  ;;  %v13519_v0 = vpack.c.bf16 %v9225_v41, %v9224_v37  ;;  %v9227_v59 = vld [vmem:[%s13385_s19 + $0x168] sm:$0xff]  ;;  %v9249_v37 = vld [vmem:[%s13385_s19 + $0x218] sm:$0xff]  ;;  %v6324_v41 = vsel %vm663_vm0, %v6322_v18, %v6323_v8 }
 0x31f   : > { %11247 = vmatpush3.bf16.msra.mxu0 %v13455_v29  ;;  %4648 = vmatprep.mubr.f32.mxu0 %v13201_v33  ;;  %v13530_v63 = vpack.c.bf16 %v9227_v59, %v9226_v24  ;;  %v6331_v24 = vsel %vm663_vm0, %v6326_v51, %v6330_v5  ;;  %v11771_v59 = vld [vmem:[#allocation2 + $0x38] sm:$0xff]  ;;  %v13562_v2 = vpack.c.bf16 %v9249_v37, %v9248_v28  ;;  %v9267_v18 = vld [vmem:[%s13385_s19 + $0x2a8] sm:$0xff]  ;;  %v6245_v28 = vld [vmem:[%s13385_s19 + $0x40] sm:$0xff] }
 0x320   : > { %6123 = vmatprep.mubr.f32.mxu1 %v13201_v33  ;;  %11249 = vmatprep.subr.bf16.mxu0 %v13459_v32  ;;  %v6327_v33 = vsel %vm663_vm0, %v6325_v6, %v6326_v51  ;;  %v9264_v6 = vld [vmem:[%s13385_s19 + $0x290] sm:$0xff]  ;;  %v6334_v17 = vrot.slane %v11771_v59, 1  ;;  %v6338_v51 = vrot.slane %v6278_v44, 1  ;;  %v6246_v37 = vld [vmem:[%s13385_s19 + $0x48] sm:$0xff]  ;;  %v6264_v44 = vld [vmem:[%s13385_s19 + $0xd8] sm:$0xff] }
 0x321   : > { %11275 = vmatpush3.bf16.msra.mxu1 %v13466_v34  ;;  %v13553_v57 = vpack.c.bf16 %v9265_v11, %v9264_v6  ;;  %14337 = vst [vmem:[#allocation15_spill] sm:$0xff] %v13562_v2  ;;  %v6261_v6 = vld [vmem:[%s13385_s19 + $0xc0] sm:$0xff]  ;;  %v6262_v11 = vld [vmem:[%s13385_s19 + $0xc8] sm:$0xff]  ;;  %v13581_v16 = vpack.c.bf16 %v6246_v37, %v6245_v28 }
 0x322   : > { %4649 = vmatmul.mubr.f32.gmra.mrb[14].mxu0 %v4464_v1  ;;  %6124 = vmatmul.mubr.f32.gmra.mrb[14].mxu1 %v5939_v3  ;;  %v9246_v1 = vld [vmem:[%s13385_s19 + $0x200] sm:$0xff]  ;;  %v9247_v3 = vld [vmem:[%s13385_s19 + $0x208] sm:$0xff]  ;;  %v6335_v30 = vsel %vm663_vm0, %v6330_v5, %v6334_v17  ;;  %v6339_v4 = vsel %vm663_vm0, %v6334_v17, %v6338_v51  ;;  %v13574_v5 = vpack.c.bf16 %v6262_v11, %v6261_v6  ;;  %v6263_v17 = vld [vmem:[%s13385_s19 + $0xd0] sm:$0xff] }
 0x323   : > { %11251 = vmatpush3.bf16.msra.mxu0 %v13479_v22  ;;  %6412 = vmatprep.mubr.f32.mxu0 %v6327_v33  ;;  %v13550_v33 = vpack.c.bf16 %v9247_v3, %v9246_v1  ;;  %14336 = vst [vmem:[#allocation14_spill] sm:$0xff] %v13553_v57  ;;  %v6333_v1 = vsel %vm663_vm0, %v6328_v42, %v6332_v35  ;;  %v6336_v3 = vrot.slane %v6277_v62, 1  ;;  %14340 = vst [vmem:[#allocation18_spill] sm:$0xff] %v13581_v16  ;;  %v9250_v42 = vld [vmem:[%s13385_s19 + $0x220] sm:$0xff]  ;;  %v6248_v51 = vld [vmem:[%s13385_s19 + $0x58] sm:$0xff] }
 0x324   : > { %11253 = vmatprep.subr.bf16.mxu0 %v13485_v7  ;;  %11277 = vmatprep.subr.bf16.mxu1 %v13489_v12  ;;  %14338 = vst [vmem:[#allocation16_spill] sm:$0xff] %v13574_v5  ;;  %v13594_v23 = vpack.c.bf16 %v6264_v44, %v6263_v17  ;;  %v6265_v6 = vld [vmem:[%s13385_s19 + $0xe0] sm:$0xff]  ;;  %v6266_v11 = vld [vmem:[%s13385_s19 + $0xe8] sm:$0xff] }
 0x325   : > { %11279 = vmatpush3.bf16.msra.mxu1 %v13494_v19  ;;  %14335 = vst [vmem:[#allocation13_spill] sm:$0xff] %v13550_v33  ;;  %v6337_v8 = vsel %vm663_vm0, %v6332_v35, %v6336_v3  ;;  %v9269_v35 = vld [vmem:[%s13385_s19 + $0x2b8] sm:$0xff]  ;;  %v9252_v3 = vld [vmem:[%s13385_s19 + $0x230] sm:$0xff]  ;;  %v9271_v28 = vld [vmem:[%s13385_s19 + $0x2c8] sm:$0xff] }
 0x326   : > { %11281 = vmatprep.subr.bf16.mxu1 %v13499_v27  ;;  %14342 = vst [vmem:[#allocation20_spill] sm:$0xff] %v13594_v23  ;;  %v6249_v37 = vld [vmem:[%s13385_s19 + $0x60] sm:$0xff] }
 0x327   : > { %11255 = vmatpush3.bf16.msra.mxu0 %v13504_v47  ;;  %v9254_v44 = vld [vmem:[%s13385_s19 + $0x240] sm:$0xff] }
 0x328   : > { %11257 = vmatprep.subr.bf16.mxu0 %v13507_v56 }
 0x329   : > { %11283 = vmatpush3.bf16.msra.mxu1 %v13515_v52 }
 0x32a   : > { %11285 = vmatprep.subr.bf16.mxu1 %v13574_v5 }
 0x32b   : > { %11259 = vmatpush3.bf16.msra.mxu0 %v13519_v0 }
 0x32c   : > { %11261 = vmatprep.subr.bf16.mxu0 %v13522_v53 }
 0x32d   : > { %11287 = vmatpush3.bf16.msra.mxu1 %v13581_v16  ;;  %v9301_v16 = vld [vmem:[%s13385_s19 + $0x3b8] sm:$0xff] }
 0x32e   : > { %11289 = vmatprep.subr.bf16.mxu1 %v13594_v23 }
 0x32f   : > { %11263 = vmatpush3.bf16.msra.mxu0 %v13530_v63 }
 0x330   : > { %11265 = vmatprep.subr.bf16.mxu0 %v13533_v48 }
 0x333   : > { %11267 = vmatpush3.bf16.msra.mxu0 %v13540_v40 }
 0x334   : > { %11301 = vmatprep.subr.bf16.mxu0 %v13543_v21 }
 0x336   : > { %6413 = vmatmul.mubr.f32.vlgmr.msra.gmra.mrb[16].mxu0 %v6324_v41  ;;  %v13579_v41 = vpack.c.bf16 %v9267_v18, %v9266_v38  ;;  %v9270_v38 = vld [vmem:[%s13385_s19 + $0x2c0] sm:$0xff]  ;;  %v13614_v18 = vpack.c.bf16 %v6266_v11, %v6265_v6  ;;  %v9273_v6 = vld [vmem:[%s13385_s19 + $0x2d8] sm:$0xff]  ;;  %v6251_v11 = vld [vmem:[%s13385_s19 + $0x70] sm:$0xff] }
 0x337   : > { %6417 = vmatprep.mubr.f32.mxu0 %v6331_v24  ;;  %11303 = vmatpush3.bf16.msra.mxu0 %v13550_v33  ;;  %v9251_v24 = vld [vmem:[%s13385_s19 + $0x228] sm:$0xff] }
 0x338   : > { %11305 = vmatprep.subr.bf16.mxu0 %v13553_v57  ;;  %14339 = vst [vmem:[#allocation17_spill] sm:$0xff] %v13579_v41  ;;  %v13586_v59 = vpack.c.bf16 %v9251_v24, %v9250_v42  ;;  %14346 = vst [vmem:[#allocation24_spill] sm:$0xff] %v13614_v18  ;;  %v6250_v42 = vld [vmem:[%s13385_s19 + $0x68] sm:$0xff]  ;;  %v13619_v24 = vpack.c.bf16 %v9271_v28, %v9270_v38  ;;  %v6252_v38 = vld [vmem:[%s13385_s19 + $0x78] sm:$0xff] }
 0x339   : > { %v13621_v17 = vpack.c.bf16 %v6250_v42, %v6249_v37  ;;  %v13641_v37 = vpack.c.bf16 %v6252_v38, %v6251_v11  ;;  %v9256_v42 = vld [vmem:[%s13385_s19 + $0x250] sm:$0xff]  ;;  %v9258_v11 = vld [vmem:[%s13385_s19 + $0x260] sm:$0xff]  ;;  %v9259_v38 = vld [vmem:[%s13385_s19 + $0x268] sm:$0xff] }
 0x33a   : > { %6418 = vmatmul.mubr.f32.gmra.mrb[18].mxu0 %v6329_v45  ;;  %14341 = vst [vmem:[#allocation19_spill] sm:$0xff] %v13586_v59  ;;  %v9268_v45 = vld [vmem:[%s13385_s19 + $0x2b0] sm:$0xff]  ;;  %14347 = vst [vmem:[#allocation25_spill] sm:$0xff] %v13619_v24 }
 0x33b   : > { %6422 = vmatprep.mubr.f32.mxu0 %v6335_v30  ;;  %11307 = vmatpush3.bf16.msra.mxu0 %v13562_v2  ;;  %v6247_v30 = vld [vmem:[%s13385_s19 + $0x50] sm:$0xff]  ;;  %v13599_v62 = vpack.c.bf16 %v9269_v35, %v9268_v45  ;;  %14348 = vst [vmem:[#allocation26_spill] sm:$0xff] %v13621_v17  ;;  %v9255_v45 = vld [vmem:[%s13385_s19 + $0x248] sm:$0xff]  ;;  %14352 = vst [vmem:[#allocation30_spill] sm:$0xff] %v13641_v37 }
 0x33c   : > { %11309 = vmatprep.subr.bf16.mxu0 %v13579_v41  ;;  %v13626_v35 = vpack.c.bf16 %v9255_v45, %v9254_v44  ;;  %v9257_v44 = vld [vmem:[%s13385_s19 + $0x258] sm:$0xff]  ;;  %v9274_v45 = vld [vmem:[%s13385_s19 + $0x2e0] sm:$0xff]  ;;  %v9284_v41 = vld [vmem:[%s13385_s19 + $0x330] sm:$0xff] }
 0x33d   : > { %14343 = vst [vmem:[#allocation21_spill] sm:$0xff] %v13599_v62  ;;  %v13647_v55 = vpack.c.bf16 %v9257_v44, %v9256_v42  ;;  %v13661_v42 = vpack.c.bf16 %v9259_v38, %v9258_v11  ;;  %v9276_v44 = vld [vmem:[%s13385_s19 + $0x2f0] sm:$0xff]  ;;  %v4663_v11 = vld [vmem:[%s12927_s15] sm:$0x3]  ;;  %v9285_v2 = vld [vmem:[%s13385_s19 + $0x338] sm:$0xff] }
 0x33e   : > { %6423 = vmatmul.mubr.f32.gmra.mrb[20].mxu0 %v6333_v1  ;;  %v13601_v1 = vpack.c.bf16 %v6248_v51, %v6247_v30  ;;  %14349 = vst [vmem:[#allocation27_spill] sm:$0xff] %v13626_v35  ;;  %v6267_v30 = vld [vmem:[%s13385_s19 + $0xf0] sm:$0xff]  ;;  %v6268_v51 = vld [vmem:[%s13385_s19 + $0xf8] sm:$0xff]  ;;  %v6138_v38 = vld [vmem:[%s12927_s15] sm:$0x3] }
 0x33f   : > { %6427 = vmatprep.mubr.f32.mxu0 %v6339_v4  ;;  %11311 = vmatpush3.bf16.msra.mxu0 %v13586_v59  ;;  %v9253_v4 = vld [vmem:[%s13385_s19 + $0x238] sm:$0xff]  ;;  %14353 = vst [vmem:[#allocation31_spill] sm:$0xff] %v13647_v55  ;;  %14356 = vst [vmem:[#allocation34_spill] sm:$0xff] %v13661_v42  ;;  %v9283_v59 = vld [vmem:[%s13385_s19 + $0x328] sm:$0xff] }
 0x340   : > { %14344 = vst [vmem:[#allocation22_spill] sm:$0xff] %v13601_v1  ;;  %11313 = vmatprep.subr.bf16.mxu0 %v13599_v62  ;;  %11291 = vmatpush3.bf16.msra.mxu1 %v13601_v1  ;;  %v9299_v1 = vld [vmem:[%s13385_s19 + $0x3a8] sm:$0xff]  ;;  %v9282_v62 = vld [vmem:[%s13385_s19 + $0x320] sm:$0xff] }
 0x341   : > { %11293 = vmatprep.subr.bf16.mxu1 %v13614_v18  ;;  %v13714_v23 = vpack.c.bf16 %v9283_v59, %v9282_v62 }
 0x342   : > { %6428 = vmatmul.mubr.f32.gmra.mrb[22].mxu0 %v6337_v8  ;;  %v13606_v8 = vpack.c.bf16 %v9253_v4, %v9252_v3  ;;  %v9272_v3 = vld [vmem:[%s13385_s19 + $0x2d0] sm:$0xff]  ;;  %v13634_v4 = vpack.c.bf16 %v6268_v51, %v6267_v30  ;;  %v9275_v30 = vld [vmem:[%s13385_s19 + $0x2e8] sm:$0xff]  ;;  %v9294_v51 = vld [vmem:[%s13385_s19 + $0x380] sm:$0xff] }
 0x343   : > { %v13639_v28 = vpack.c.bf16 %v9273_v6, %v9272_v3  ;;  %v13654_v3 = vpack.c.bf16 %v9275_v30, %v9274_v45  ;;  %v13656_v6 = vpack.c.bf16 %v9295_v46, %v9294_v51  ;;  %v9260_v46 = vld [vmem:[%s13385_s19 + $0x270] sm:$0xff]  ;;  %v9261_v30 = vld [vmem:[%s13385_s19 + $0x278] sm:$0xff] }
 0x344   : > { %14345 = vst [vmem:[#allocation23_spill] sm:$0xff] %v13606_v8  ;;  %11315 = vmatpush3.bf16.msra.mxu0 %v13606_v8  ;;  %11295 = vmatpush3.bf16.msra.mxu1 %v13621_v17  ;;  %14350 = vst [vmem:[#allocation28_spill] sm:$0xff] %v13634_v4  ;;  %v13672_v51 = vpack.c.bf16 %v9261_v30, %v9260_v46  ;;  %v13689_v46 = vrot.slane %v6138_v38, %v12950_v60  ;;  %v9278_v30 = vld [vmem:[%s13385_s19 + $0x300] sm:$0xff] }
 0x345   : > { %11317 = vmatprep.subr.bf16.mxu0 %v13619_v24  ;;  %14351 = vst [vmem:[#allocation29_spill] sm:$0xff] %v13639_v28  ;;  %11297 = vmatprep.subr.bf16.mxu1 %v13634_v4  ;;  %14354 = vst [vmem:[#allocation32_spill] sm:$0xff] %v13654_v3 }
 0x346   : > { %14355 = vst [vmem:[#allocation33_spill] sm:$0xff] %v13656_v6  ;;  %14358 = vst [vmem:[#allocation36_spill] sm:$0xff] %v13672_v51 }
 0x348   : > { %11319 = vmatpush3.bf16.msra.mxu0 %v13626_v35  ;;  %11299 = vmatpush3.bf16.msra.mxu1 %v13641_v37  ;;  %v9277_v35 = vld [vmem:[%s13385_s19 + $0x2f8] sm:$0xff] }
 0x349   : > { %11321 = vmatprep.subr.bf16.mxu0 %v13639_v28  ;;  %11333 = vmatprep.subr.bf16.mxu1 %v13656_v6  ;;  %v13667_v45 = vpack.c.bf16 %v9277_v35, %v9276_v44  ;;  %v13680_v35 = vrot.slane %v4663_v11, %v12939_v25  ;;  %v13683_v44 = vrot.slane %v6138_v38, %v12939_v25  ;;  %v9298_v38 = vld [vmem:[%s13385_s19 + $0x3a0] sm:$0xff] }
 0x34b   : > { %14357 = vst [vmem:[#allocation35_spill] sm:$0xff] %v13667_v45 }
 0x34c   : > { %11323 = vmatpush3.bf16.msra.mxu0 %v13647_v55  ;;  %v9281_v55 = vld [vmem:[%s13385_s19 + $0x318] sm:$0xff] }
 0x34d   : > { %11325 = vmatprep.subr.bf16.mxu0 %v13654_v3  ;;  %v9280_v3 = vld [vmem:[%s13385_s19 + $0x310] sm:$0xff] }
 0x34e   : > { %v13706_v18 = vpack.c.bf16 %v9281_v55, %v9280_v3  ;;  %v13712_v3 = vpack.c.bf16 %v9299_v1, %v9298_v38 }
 0x350   : > { %11327 = vmatpush3.bf16.msra.mxu0 %v13661_v42  ;;  %v13686_v42 = vrot.slane %v4663_v11, %v12950_v60 }
 0x351   : > { %11329 = vmatprep.subr.bf16.mxu0 %v13667_v45  ;;  %v9279_v45 = vld [vmem:[%s13385_s19 + $0x308] sm:$0xff] }
 0x352   : > { %v13699_v60 = vpack.c.bf16 %v9279_v45, %v9278_v30  ;;  %v9300_v45 = vld [vmem:[%s13385_s19 + $0x3b0] sm:$0xff] }
 0x354   : > { %11331 = vmatpush3.bf16.msra.mxu0 %v13672_v51  ;;  %v9296_v51 = vld [vmem:[%s13385_s19 + $0x390] sm:$0xff] }
 0x355   : > { %11365 = vmatprep.subr.bf16.mxu0 %v13398_v39  ;;  %v9297_v39 = vld [vmem:[%s13385_s19 + $0x398] sm:$0xff] }
 0x356   : > { %v13704_v8 = vpack.c.bf16 %v9297_v39, %v9296_v51 }
 0x3e9   : > { %v4632_v6 = vpop.f32.mrb[8].mxu0  ;;  %v6107_v37 = vpop.f32.mrb[8].mxu1 }
 0x3ea   : > { %v4675_v25 = vadd.f32 %v13680_v35, %v4632_v6  ;;  %v6150_v28 = vadd.f32 %v13683_v44, %v6107_v37  ;;  %v4634_v11 = vpop.f32.mrb[9].mxu0  ;;  %v6109_v4 = vpop.f32.mrb[9].mxu1 }
 0x3eb   : > { %v4676_v17 = vadd.f32 %v13686_v42, %v4634_v11  ;;  %v6151_v24 = vadd.f32 %v13689_v46, %v6109_v4 }
 0x3ec   : > { %vm4683_vm5 = vcmp.gt.f32.partialorder %v4675_v25, 0.0  ;;  %v4691_v37 = vmul.f32 0.01, %v4675_v25  ;;  %vm6158_vm6 = vcmp.gt.f32.partialorder %v6150_v28, 0.0  ;;  %v6166_v6 = vmul.f32 0.01, %v6150_v28 }
 0x3ed   : > { %vm4684_vm7 = vcmp.gt.f32.partialorder %v4676_v17, 0.0  ;;  %v4692_v30 = vmul.f32 0.01, %v4676_v17  ;;  %vm6159_vm8 = vcmp.gt.f32.partialorder %v6151_v24, 0.0  ;;  %v6167_v11 = vmul.f32 0.01, %v6151_v24 }
 0x3ee   : > { %v4699_v4 = vsel %vm4683_vm5, %v4675_v25, %v4691_v37  ;;  %v6174_v51 = vsel %vm6158_vm6, %v6150_v28, %v6166_v6  ;;  %v4638_v39 = vpop.f32.mrb[10].mxu0  ;;  %v6113_v55 = vpop.f32.mrb[10].mxu1  ;;  %v13723_v37 = vpack.c.bf16 %v9301_v16, %v9300_v45 }
 0x3ef   : > { %v4715_v5 = vrot.slane %v4699_v4, 7  ;;  %v6190_v52 = vrot.slane %v6174_v51, 7  ;;  %v4700_v57 = vsel %vm4684_vm7, %v4676_v17, %v4692_v30  ;;  %v6175_v50 = vsel %vm6159_vm8, %v6151_v24, %v6167_v11  ;;  %v4640_v33 = vpop.f32.mrb[11].mxu0  ;;  %v6115_v27 = vpop.f32.mrb[11].mxu1 }
 0x3f0   : > { %v4716_v19 = vrot.slane %v4700_v57, 7  ;;  %v6191_v31 = vrot.slane %v6175_v50, 7  ;;  %v4677_v25 = vadd.f32 %v13680_v35, %v4638_v39  ;;  %v6152_v28 = vadd.f32 %v13683_v44, %v6113_v55 }
 0x3f1   : > { %4740 = vst [vmem:[#allocation2 + $0xa0] sm:$0xfe] %v4715_v5  ;;  %6215 = vst [vmem:[#allocation2 + $0xf0] sm:$0xfe] %v6190_v52  ;;  %v4678_v59 = vadd.f32 %v13686_v42, %v4640_v33  ;;  %v6153_v62 = vadd.f32 %v13689_v46, %v6115_v27  ;;  %v4644_v1 = vpop.f32.mrb[12].mxu0  ;;  %v6119_v38 = vpop.f32.mrb[12].mxu1  ;;  %v13725_v17 = vpack.c.bf16 %v9285_v2, %v9284_v41 }
 0x3f2   : > { %4741 = vst [vmem:[#allocation2 + $0xa8] sm:$0xfe] %v4716_v19  ;;  %6216 = vst [vmem:[#allocation2 + $0xf8] sm:$0xfe] %v6191_v31  ;;  %vm4685_vm9 = vcmp.gt.f32.partialorder %v4677_v25, 0.0  ;;  %vm6160_vm10 = vcmp.gt.f32.partialorder %v6152_v28, 0.0  ;;  %v4679_v27 = vadd.f32 %v13680_v35, %v4644_v1  ;;  %v6154_v11 = vadd.f32 %v13683_v44, %v6119_v38 }
 0x3f3   : > { %v4693_v50 = vmul.f32 0.01, %v4677_v25  ;;  %v6168_v57 = vmul.f32 0.01, %v6152_v28  ;;  %vm4686_vm11 = vcmp.gt.f32.partialorder %v4678_v59, 0.0  ;;  %vm6161_vm12 = vcmp.gt.f32.partialorder %v6153_v62, 0.0 }
 0x3f4   : > { %v4694_v24 = vmul.f32 0.01, %v4678_v59  ;;  %v6169_v6 = vmul.f32 0.01, %v6153_v62  ;;  %v4646_v16 = vpop.f32.mrb[13].mxu0  ;;  %v6121_v45 = vpop.f32.mrb[13].mxu1 }
 0x3f5   : > { %v4701_v30 = vsel %vm4685_vm9, %v4677_v25, %v4693_v50  ;;  %v6176_v33 = vsel %vm6160_vm10, %v6152_v28, %v6168_v57  ;;  %v4650_v39 = vpop.f32.mrb[14].mxu0  ;;  %v6125_v55 = vpop.f32.mrb[14].mxu1  ;;  %vm4687_vm13 = vcmp.gt.f32.partialorder %v4679_v27, 0.0  ;;  %v4695_v40 = vmul.f32 0.01, %v4679_v27 }
 0x3f6   : > { %v4717_v2 = vrot.slane %v4701_v30, 7  ;;  %v6192_v41 = vrot.slane %v6176_v33, 7  ;;  %v4702_v4 = vsel %vm4686_vm11, %v4678_v59, %v4694_v24  ;;  %v6177_v51 = vsel %vm6161_vm12, %v6153_v62, %v6169_v6  ;;  %v4652_v12 = vpop.f32.mrb[15].mxu0  ;;  %v6127_v38 = vpop.f32.mrb[15].mxu1 }
 0x3f7   : > { %v4719_v21 = vrot.slane %v4702_v4, 7  ;;  %v6194_v20 = vrot.slane %v6177_v51, 7  ;;  %vm6162_vm14 = vcmp.gt.f32.partialorder %v6154_v11, 0.0  ;;  %v6170_v1 = vmul.f32 0.01, %v6154_v11 }
 0x3f8   : > { %v13730_v25 = vsel %vm1817_vm3, %v4715_v5, %v4717_v2  ;;  %v13733_v28 = vsel %vm1817_vm3, %v6190_v52, %v6192_v41  ;;  %v4703_v62 = vsel %vm4687_vm13, %v4679_v27, %v4695_v40  ;;  %v4680_v57 = vadd.f32 %v13686_v42, %v4646_v16 }
 0x3f9   : > { %v13736_v50 = vsel %vm1817_vm3, %v4716_v19, %v4719_v21  ;;  %v13739_v59 = vsel %vm1817_vm3, %v6191_v31, %v6194_v20  ;;  %v4721_v24 = vrot.slane %v4703_v62, 7  ;;  %v6178_v6 = vsel %vm6162_vm14, %v6154_v11, %v6170_v1  ;;  %v6230_v52 = vld [vmem:[#allocation2 + $0xa8] sm:$0xff]  ;;  %v6229_v19 = vld [vmem:[#allocation2 + $0xa0] sm:$0xff] }
 0x3fa   : > { %v6155_v5 = vadd.f32 %v13689_v46, %v6121_v45  ;;  %v4681_v30 = vadd.f32 %v13680_v35, %v4650_v39  ;;  %v6196_v33 = vrot.slane %v6178_v6, 7  ;;  %vm4688_vm15 = vcmp.gt.f32.partialorder %v4680_v57, 0.0  ;;  %6497 = vmatprep.mubr.f32.mxu1 %v6230_v52  ;;  %v6519_v27 = vld [vmem:[#allocation2 + $0xa8] sm:$0xfe]  ;;  %v6518_v6 = vld [vmem:[#allocation2 + $0xa0] sm:$0xfe] }
 0x3fb   : > { %v4696_v4 = vmul.f32 0.01, %v4680_v57  ;;  %v6156_v51 = vadd.f32 %v13683_v44, %v6125_v55  ;;  %v13746_v31 = vsel %vm1817_vm3, %v4717_v2, %v4721_v24  ;;  %6498 = vmatmul.mubr.f32.vlgmr.msra.gmra.mrb[16].mxu1 %v6229_v19  ;;  %v4682_v2 = vadd.f32 %v13686_v42, %v4652_v12 }
 0x3fc   : > { %vm6163_vm1 = vcmp.gt.f32.partialorder %v6155_v5, 0.0  ;;  %v6171_v40 = vmul.f32 0.01, %v6155_v5  ;;  %vm4689_vm2 = vcmp.gt.f32.partialorder %v4681_v30, 0.0  ;;  %v13749_v11 = vsel %vm1817_vm3, %v6192_v41, %v6196_v33  ;;  %11335 = vmatpush3.bf16.msra.mxu1 %v13699_v60  ;;  %6502 = vmatprep.mubr.f32.mxu1 %v13736_v50 }
 0x3fd   : > { %v4704_v35 = vsel %vm4688_vm15, %v4680_v57, %v4696_v4  ;;  %v4697_v16 = vmul.f32 0.01, %v4681_v30  ;;  %vm6164_vm5 = vcmp.gt.f32.partialorder %v6156_v51, 0.0  ;;  %v6172_v39 = vmul.f32 0.01, %v6156_v51  ;;  %11337 = vmatprep.subr.bf16.mxu1 %v13704_v8 }
 0x3fe   : > { %v4723_v44 = vrot.slane %v4704_v35, 7  ;;  %v6179_v45 = vsel %vm6163_vm1, %v6155_v5, %v6171_v40  ;;  %v6157_v62 = vadd.f32 %v13689_v46, %v6127_v38  ;;  %v6574_v41 = vrot.slane %v6519_v27, 1 }
 0x3ff   : > { %v6198_v55 = vrot.slane %v6179_v45, 7  ;;  %v4705_v1 = vsel %vm4689_vm2, %v4681_v30, %v4697_v16  ;;  %v6180_v4 = vsel %vm6164_vm5, %v6156_v51, %v6172_v39  ;;  %vm4690_vm6 = vcmp.gt.f32.partialorder %v4682_v2, 0.0  ;;  %6503 = vmatmul.mubr.f32.gmra.mrb[18].mxu1 %v13730_v25  ;;  %v9303_v39 = vld [vmem:[%s13385_s19 + $0x3c8] sm:$0xff] }
 0x400   : > { %v4724_v57 = vsel %vm1817_vm3, %v4719_v21, %v4723_v44  ;;  %v4725_v52 = vrot.slane %v4705_v1, 7  ;;  %v6200_v19 = vrot.slane %v6180_v4, 7  ;;  %v4698_v12 = vmul.f32 0.01, %v4682_v2  ;;  %11339 = vmatpush3.bf16.msra.mxu1 %v13706_v18  ;;  %v9305_v4 = vld [vmem:[%s13385_s19 + $0x3d8] sm:$0xff] }
 0x401   : > { %v13759_v5 = vsel %vm1817_vm3, %v6194_v20, %v6198_v55  ;;  %vm6165_vm7 = vcmp.gt.f32.partialorder %v6157_v62, 0.0  ;;  %6507 = vmatprep.mubr.f32.mxu1 %v4724_v57  ;;  %v6173_v46 = vmul.f32 0.01, %v6157_v62  ;;  %v6575_v21 = vrot.slane %v13736_v50, 1  ;;  %11341 = vmatprep.subr.bf16.mxu1 %v13712_v3 }
 0x402   : > { %v13763_v42 = vsel %vm1817_vm3, %v4721_v24, %v4725_v52  ;;  %4748 = vst [vmem:[#allocation2 + $0xe0] sm:$0x1] %v4725_v52  ;;  %v6571_v38 = vrot.slane %v6518_v6, 1  ;;  %v13768_v20 = vsel %vm1817_vm3, %v6196_v33, %v6200_v19  ;;  %6223 = vst [vmem:[#allocation2 + $0x130] sm:$0x1] %v6200_v19  ;;  %v4706_v30 = vsel %vm4690_vm6, %v4682_v2, %v4698_v12  ;;  %v9304_v52 = vld [vmem:[%s13385_s19 + $0x3d0] sm:$0xff] }
 0x403   : > { %v6572_v51 = vrot.slane %v13730_v25, 1  ;;  %v6579_v40 = vrot.slane %v4724_v57, 1  ;;  %v4727_v24 = vrot.slane %v4706_v30, 7  ;;  %v6181_v27 = vsel %vm6165_vm7, %v6157_v62, %v6173_v46  ;;  %6508 = vmatmul.mubr.f32.gmra.mrb[20].mxu1 %v13746_v31  ;;  %v9302_v25 = vld [vmem:[%s13385_s19 + $0x3c0] sm:$0xff]  ;;  %v9288_v30 = vld [vmem:[%s13385_s19 + $0x350] sm:$0xff] }
 0x404   : > { %v6576_v35 = vsel %vm663_vm0, %v6574_v41, %v6575_v21  ;;  %v6577_v50 = vrot.slane %v13746_v31, 1  ;;  %v6202_v16 = vrot.slane %v6181_v27, 7  ;;  %11343 = vmatpush3.bf16.msra.mxu1 %v13714_v23  ;;  %v6581_v2 = vrot.slane %v13763_v42, 1  ;;  %v9286_v62 = vld [vmem:[%s13385_s19 + $0x340] sm:$0xff]  ;;  %v9287_v41 = vld [vmem:[%s13385_s19 + $0x348] sm:$0xff] }
 0x405   : > { %6661 = vmatprep.mubr.f32.mxu0 %v6576_v35  ;;  %v6573_v33 = vsel %vm663_vm0, %v6571_v38, %v6572_v51  ;;  %v6580_v45 = vsel %vm663_vm0, %v6575_v21, %v6579_v40  ;;  %v4728_v1 = vsel %vm1817_vm3, %v4723_v44, %v4727_v24  ;;  %4749 = vst [vmem:[#allocation2 + $0xe8] sm:$0x1] %v4727_v24  ;;  %v7305_v12 = vrot.slane %v13759_v5, 1  ;;  %v13811_v24 = vld [vmem:[#allocation2 + $0x68] sm:$0xff]  ;;  %v9306_v27 = vld [vmem:[%s13385_s19 + $0x3e0] sm:$0xff] }
 0x406   : > { %6662 = vmatmul.mubr.f32.vlgmr.msra.gmra.mrb[24].mxu0 %v6573_v33  ;;  %11345 = vmatprep.subr.bf16.mxu1 %v13723_v37  ;;  %v6578_v31 = vsel %vm663_vm0, %v6572_v51, %v6577_v50  ;;  %v13787_v6 = vsel %vm1817_vm3, %v6198_v55, %v6202_v16  ;;  %6224 = vst [vmem:[#allocation2 + $0x138] sm:$0x1] %v6202_v16  ;;  %v6583_v57 = vrot.slane %v4728_v1, 1  ;;  %v9289_v51 = vld [vmem:[%s13385_s19 + $0x358] sm:$0xff]  ;;  %v9307_v35 = vld [vmem:[%s13385_s19 + $0x3e8] sm:$0xff]  ;;  %vm7705_vm6 = vcmask 25600  }
 0x407   : > { %11367 = vmatpush3.bf16.msra.mxu0 %v13411_v61  ;;  %6666 = vmatprep.mubr.f32.mxu0 %v6580_v45  ;;  %v6582_v44 = vsel %vm663_vm0, %v6577_v50, %v6581_v2  ;;  %v13796_v19 = vpack.c.bf16 %v9303_v39, %v9302_v25  ;;  %v13800_v55 = vpack.c.bf16 %v9287_v41, %v9286_v62  ;;  %v7309_v46 = vrot.slane %v13787_v6, 1  ;;  %v7062_v45 = vld [vmem:[#allocation2 + $0x58] sm:$0xfe]  ;;  %v9290_v62 = vld [vmem:[%s13385_s19 + $0x360] sm:$0xff] }
 0x408   : > { %11369 = vmatprep.subr.bf16.mxu0 %v13417_v9  ;;  %6512 = vmatprep.mubr.f32.mxu1 %v4728_v1  ;;  %v6584_v61 = vsel %vm663_vm0, %v6579_v40, %v6583_v57  ;;  %v13805_v9 = vpack.c.bf16 %v9305_v4, %v9304_v52  ;;  %v13827_v33 = vpack.c.bf16 %v9289_v51, %v9288_v30  ;;  %v7085_v1 = vrot.slane %v13811_v24, 1  ;;  %v9308_v52 = vld [vmem:[%s13385_s19 + $0x3f0] sm:$0xff]  ;;  %v9309_v4 = vld [vmem:[%s13385_s19 + $0x3f8] sm:$0xff] }
 0x409   : > { %11347 = vmatpush3.bf16.msra.mxu1 %v13725_v17  ;;  %v9380_v21 = vpop.f32.mrb[16].mxu0  ;;  %v6526_v38 = vld [vmem:[#allocation2 + $0xe0] sm:$0x1]  ;;  %v13820_v50 = vsel %vm663_vm0, %v7305_v12, %v7309_v46  ;;  %v13852_v51 = vpack.c.bf16 %v9309_v4, %v9308_v52  ;;  %v14367_v52 = vld [vmem:[#allocation6_spill] sm:$0xff] }
 0x40a   : > { %6667 = vmatmul.mubr.f32.gmra.mrb[26].mxu0 %v6578_v31  ;;  %6513 = vmatmul.mubr.f32.gmra.mrb[22].mxu1 %v13763_v42  ;;  %v9381_v40 = vpop.f32.mrb[17].mxu0  ;;  %v13831_v31 = vpack.c.bf16 %v9307_v35, %v9306_v27  ;;  %v14368_v4 = vld [vmem:[#allocation14_spill] sm:$0xff] }
 0x40b   : > { %11371 = vmatpush3.bf16.msra.mxu0 %v13434_v43  ;;  %6817 = vmatprep.mubr.f32.mxu1 %v13160_v10  ;;  %v13822_v16 = vadd.f32 %v9381_v40, %v9380_v21  ;;  %v6585_v43 = vrot.slane %v6526_v38, 1  ;;  %v7084_v21 = vrot.slane %v7062_v45, 1  ;;  %v9293_v40 = vld [vmem:[%s13385_s19 + $0x378] sm:$0xff] }
 0x40c   : > { %6671 = vmatprep.mubr.f32.mxu0 %v6584_v61  ;;  %11349 = vmatprep.subr.bf16.mxu1 %v13796_v19  ;;  %v6527_v10 = vld [vmem:[#allocation2 + $0xe8] sm:$0x1] }
 0x40d   : > { %11373 = vmatprep.subr.bf16.mxu0 %v13439_v58  ;;  %11351 = vmatpush3.bf16.msra.mxu1 %v13800_v55  ;;  %v6587_v25 = vrot.slane %v6527_v10, 1  ;;  %v9383_v39 = vpop.f32.mrb[18].mxu0  ;;  %v9291_v58 = vld [vmem:[%s13385_s19 + $0x368] sm:$0xff]  ;;  %v6586_v38 = vsel %vm663_vm0, %v6581_v2, %v6585_v43  ;;  %v7086_v30 = vsel %vm663_vm0, %v7084_v21, %v7085_v1 }
 0x40e   : > { %6672 = vmatmul.mubr.f32.gmra.mrb[28].mxu0 %v6582_v44  ;;  %11353 = vmatprep.subr.bf16.mxu1 %v13805_v9  ;;  %v9384_v41 = vpop.f32.mrb[19].mxu0 }
 0x40f   : > { %11375 = vmatpush3.bf16.msra.mxu0 %v13455_v29  ;;  %v6588_v61 = vsel %vm663_vm0, %v6583_v57, %v6587_v25  ;;  %v13839_v44 = vadd.f32 %v9384_v41, %v9383_v39  ;;  %v13846_v29 = vpack.c.bf16 %v9291_v58, %v9290_v62  ;;  %v14365_v25 = vld [vmem:[#allocation9_spill] sm:$0xff]  ;;  %v13904_v62 = vld [vmem:[#allocation2 + $0x80] sm:$0xff]  ;;  %v7070_v41 = vld [vmem:[#allocation2 + $0x98] sm:$0x1] }
 0x410   : > { %11377 = vmatprep.subr.bf16.mxu0 %v13459_v32  ;;  %6676 = vmatprep.mubr.f32.mxu0 %v6588_v61  ;;  %v9292_v32 = vld [vmem:[%s13385_s19 + $0x370] sm:$0xff]  ;;  %v7054_v61 = vld [vmem:[#allocation2 + $0xf8] sm:$0xff] }
 0x411   : > { %11355 = vmatpush3.bf16.msra.mxu1 %v13827_v33  ;;  %v9386_v57 = vpop.f32.mrb[20].mxu0  ;;  %v13861_v27 = vpack.c.bf16 %v9293_v40, %v9292_v32  ;;  %v14366_v58 = vld [vmem:[#allocation13_spill] sm:$0xff]  ;;  %v7097_v32 = vrot.slane %v7070_v41, 1  ;;  %v14382_v41 = vld [vmem:[#allocation28_spill] sm:$0xff] }
 0x412   : > { %6677 = vmatmul.mubr.f32.gmra.mrb[30].mxu0 %v6586_v38  ;;  %11357 = vmatprep.subr.bf16.mxu1 %v13831_v31  ;;  %v9387_v42 = vpop.f32.mrb[21].mxu0  ;;  %v14369_v38 = vld [vmem:[#allocation10_spill] sm:$0xff]  ;;  %v7069_v40 = vld [vmem:[#allocation2 + $0x90] sm:$0x1] }
 0x413   : > { %11379 = vmatpush3.bf16.msra.mxu0 %v13479_v22  ;;  %7171 = vmatprep.mubr.f32.mxu0 %v7086_v30  ;;  %v13857_v2 = vadd.f32 %v9387_v42, %v9386_v57  ;;  %v13876_v22 = vld [vmem:[#allocation2 + $0x60] sm:$0xff]  ;;  %v14370_v57 = vld [vmem:[#allocation16_spill] sm:$0xff] }
 0x414   : > { %11381 = vmatprep.subr.bf16.mxu0 %v13485_v7  ;;  %v13879_v7 = vld [vmem:[#allocation2 + $0x78] sm:$0xff]  ;;  %v14371_v42 = vld [vmem:[#allocation15_spill] sm:$0xff] }
 0x415   : > { %11359 = vmatpush3.bf16.msra.mxu1 %v13846_v29  ;;  %v9389_v35 = vpop.f32.mrb[22].mxu0 }
 0x416   : > { %11361 = vmatprep.subr.bf16.mxu1 %v13852_v51  ;;  %v9390_v10 = vpop.f32.mrb[23].mxu0 }
 0x417   : > { %11383 = vmatpush3.bf16.msra.mxu0 %v13504_v47  ;;  %v13865_v43 = vadd.f32 %v9390_v10, %v9389_v35  ;;  %v14360_v47 = vld [vmem:[#allocation11_spill] sm:$0xff]  ;;  %v7278_v35 = vld [vmem:[#allocation2 + $0xf8] sm:$0xfe]  ;;  %v14372_v10 = vld [vmem:[#allocation17_spill] sm:$0xff] }
 0x418   : > { %11385 = vmatprep.subr.bf16.mxu0 %v13507_v56 }
 0x419   : > { %11363 = vmatpush3.bf16.msra.mxu1 %v13861_v27 }
 0x41a   : > { %11397 = vmatprep.subr.bf16.mxu1 %v13403_v26  ;;  %v7061_v26 = vld [vmem:[#allocation2 + $0x50] sm:$0xfe] }
 0x41b   : > { %11387 = vmatpush3.bf16.msra.mxu0 %v13519_v0  ;;  %v7081_v56 = vrot.slane %v7061_v26, 1  ;;  %v13891_v0 = vld [vmem:[#allocation2 + $0x88] sm:$0xff] }
 0x41c   : > { %6818 = vmatmul.mubr.f32.vlgmr.msra.gmra.mrb[24].mxu1 %v13169_v14  ;;  %11389 = vmatprep.subr.bf16.mxu0 %v13522_v53  ;;  %v7082_v14 = vrot.slane %v13876_v22, 1  ;;  %v14362_v53 = vld [vmem:[#allocation12_spill] sm:$0xff]  ;;  %v7093_v39 = vrot.slane %v13891_v0, 1 }
 0x41d   : > { %6822 = vmatprep.mubr.f32.mxu1 %v13176_v13  ;;  %11399 = vmatpush3.bf16.msra.mxu1 %v13425_v15  ;;  %v14359_v13 = vld [vmem:[#allocation7_spill] sm:$0xff]  ;;  %v7089_v15 = vrot.slane %v13879_v7, 1 }
 0x41e   : > { %11401 = vmatprep.subr.bf16.mxu1 %v13447_v49  ;;  %v13888_v49 = vld [vmem:[#allocation2 + $0x70] sm:$0xff] }
 0x41f   : > { %11391 = vmatpush3.bf16.msra.mxu0 %v13530_v63  ;;  %v14364_v63 = vld [vmem:[#allocation8_spill] sm:$0xff]  ;;  %v7090_v45 = vsel %vm663_vm0, %v7085_v1, %v7089_v15  ;;  %v7091_v1 = vrot.slane %v13904_v62, 1  ;;  %v7094_v30 = vsel %vm663_vm0, %v7089_v15, %v7093_v39  ;;  %v7300_v15 = vrot.slane %v7278_v35, 1 }
 0x420   : > { %6823 = vmatmul.mubr.f32.gmra.mrb[26].mxu1 %v13181_v36  ;;  %11393 = vmatprep.subr.bf16.mxu0 %v13533_v48  ;;  %v14361_v36 = vld [vmem:[#allocation4_spill] sm:$0xff]  ;;  %v7087_v48 = vrot.slane %v13888_v49, 1 }
 0x421   : > { %6827 = vmatprep.mubr.f32.mxu1 %v13184_v54  ;;  %11403 = vmatpush3.bf16.msra.mxu1 %v13466_v34  ;;  %v7083_v54 = vsel %vm663_vm0, %v7081_v56, %v7082_v14  ;;  %v14363_v34 = vld [vmem:[#allocation5_spill] sm:$0xff]  ;;  %v14374_v56 = vld [vmem:[#allocation20_spill] sm:$0xff] }
 0x422   : > { %11405 = vmatprep.subr.bf16.mxu1 %v14359_v13  ;;  %v7088_v21 = vsel %vm663_vm0, %v7082_v14, %v7087_v48  ;;  %v7092_v26 = vsel %vm663_vm0, %v7087_v48, %v7091_v1  ;;  %v14373_v14 = vld [vmem:[#allocation18_spill] sm:$0xff]  ;;  %v7095_v13 = vrot.slane %v7069_v40, 1  ;;  %v14390_v40 = vld [vmem:[#allocation35_spill] sm:$0xff]  ;;  %v14391_v35 = vld [vmem:[#allocation36_spill] sm:$0xff] }
 0x423   : > { %11395 = vmatpush3.bf16.msra.mxu0 %v14360_v47  ;;  %v7098_v47 = vsel %vm663_vm0, %v7093_v39, %v7097_v32  ;;  %v14380_v39 = vld [vmem:[#allocation25_spill] sm:$0xff]  ;;  %v14389_v32 = vld [vmem:[#allocation34_spill] sm:$0xff] }
 0x424   : > { %6828 = vmatmul.mubr.f32.gmra.mrb[28].mxu1 %v14361_v36  ;;  %11429 = vmatprep.subr.bf16.mxu0 %v14362_v53  ;;  %v14375_v36 = vld [vmem:[#allocation19_spill] sm:$0xff]  ;;  %v14376_v53 = vld [vmem:[#allocation21_spill] sm:$0xff] }
 0x425   : > { %6832 = vmatprep.mubr.f32.mxu1 %v14363_v34  ;;  %11407 = vmatpush3.bf16.msra.mxu1 %v14364_v63  ;;  %v7096_v34 = vsel %vm663_vm0, %v7091_v1, %v7095_v13  ;;  %v14377_v63 = vld [vmem:[#allocation22_spill] sm:$0xff]  ;;  %v7053_v1 = vld [vmem:[#allocation2 + $0xf0] sm:$0xff] }
 0x426   : > { %7172 = vmatmul.mubr.f32.vlgmr.msra.gmra.mrb[32].mxu0 %v7083_v54  ;;  %11409 = vmatprep.subr.bf16.mxu1 %v14365_v25  ;;  %v7301_v54 = vrot.slane %v13739_v59, 1  ;;  %v14379_v25 = vld [vmem:[#allocation23_spill] sm:$0xff]  ;;  %v7414_v13 = vld [vmem:[#allocation2 + $0x90] sm:$0x3] }
 0x427   : > { %7176 = vmatprep.mubr.f32.mxu0 %v7090_v45  ;;  %11431 = vmatpush3.bf16.msra.mxu0 %v14366_v58  ;;  %v14378_v45 = vld [vmem:[#allocation24_spill] sm:$0xff]  ;;  %v14381_v58 = vld [vmem:[#allocation26_spill] sm:$0xff] }
 0x428   : > { %6833 = vmatmul.mubr.f32.gmra.mrb[30].mxu1 %v14367_v52  ;;  %11433 = vmatprep.subr.bf16.mxu0 %v14368_v4  ;;  %v7302_v48 = vsel %vm663_vm0, %v7300_v15, %v7301_v54  ;;  %v14383_v52 = vld [vmem:[#allocation27_spill] sm:$0xff]  ;;  %v14384_v4 = vld [vmem:[#allocation29_spill] sm:$0xff] }
 0x429   : > { %11411 = vmatpush3.bf16.msra.mxu1 %v14369_v38  ;;  %7256 = vmatprep.mubr.f32.mxu1 %v7054_v61  ;;  %v14385_v61 = vld [vmem:[#allocation30_spill] sm:$0xff]  ;;  %v14387_v38 = vld [vmem:[#allocation31_spill] sm:$0xff] }
 0x42a   : > { %7177 = vmatmul.mubr.f32.gmra.mrb[34].mxu0 %v7088_v21  ;;  %11413 = vmatprep.subr.bf16.mxu1 %v14370_v57  ;;  %v14386_v21 = vld [vmem:[#allocation33_spill] sm:$0xff] }
 0x42b   : > { %7181 = vmatprep.mubr.f32.mxu0 %v7094_v30  ;;  %11435 = vmatpush3.bf16.msra.mxu0 %v14371_v42  ;;  %v14388_v30 = vld [vmem:[#allocation32_spill] sm:$0xff]  ;;  %v7277_v57 = vld [vmem:[#allocation2 + $0xf0] sm:$0xfe] }
 0x42c   : > { %11437 = vmatprep.subr.bf16.mxu0 %v14372_v10  ;;  %v7297_v42 = vrot.slane %v7277_v57, 1 }
 0x42d   : > { %11415 = vmatpush3.bf16.msra.mxu1 %v14373_v14 }
 0x42e   : > { %7182 = vmatmul.mubr.f32.gmra.mrb[36].mxu0 %v7092_v26  ;;  %11417 = vmatprep.subr.bf16.mxu1 %v14374_v56  ;;  %v7286_v26 = vld [vmem:[#allocation2 + $0x138] sm:$0x1] }
 0x42f   : > { %7186 = vmatprep.mubr.f32.mxu0 %v7098_v47  ;;  %11439 = vmatpush3.bf16.msra.mxu0 %v14375_v36 }
 0x430   : > { %11441 = vmatprep.subr.bf16.mxu0 %v14376_v53 }
 0x431   : > { %11419 = vmatpush3.bf16.msra.mxu1 %v14377_v63 }
 0x432   : > { %7187 = vmatmul.mubr.f32.gmra.mrb[38].mxu0 %v7096_v34  ;;  %11421 = vmatprep.subr.bf16.mxu1 %v14378_v45 }
 0x433   : > { %11443 = vmatpush3.bf16.msra.mxu0 %v14379_v25  ;;  %7387 = vmatprep.mubr.f32.mxu0 %v7302_v48 }
 0x434   : > { %11445 = vmatprep.subr.bf16.mxu0 %v14380_v39 }
 0x435   : > { %11423 = vmatpush3.bf16.msra.mxu1 %v14381_v58 }
 0x436   : > { %11425 = vmatprep.subr.bf16.mxu1 %v14382_v41 }
 0x437   : > { %11447 = vmatpush3.bf16.msra.mxu0 %v14383_v52 }
 0x438   : > { %11449 = vmatprep.subr.bf16.mxu0 %v14384_v4 }
 0x439   : > { %11427 = vmatpush3.bf16.msra.mxu1 %v14385_v61 }
 0x43a   : > { %11461 = vmatprep.subr.bf16.mxu1 %v14386_v21 }
 0x43b   : > { %11451 = vmatpush3.bf16.msra.mxu0 %v14387_v38 }
 0x43c   : > { %7257 = vmatmul.mubr.f32.vlgmr.msra.gmra.mrb[32].mxu1 %v7053_v1  ;;  %11453 = vmatprep.subr.bf16.mxu0 %v14388_v30 }
 0x43d   : > { %7261 = vmatprep.mubr.f32.mxu1 %v13739_v59  ;;  %11463 = vmatpush3.bf16.msra.mxu1 %v13699_v60  ;;  %v7298_v60 = vrot.slane %v13733_v28, 1  ;;  %v7413_v59 = vld [vmem:[#allocation2 + $0x58] sm:$0xfc] }
 0x43e   : > { %11465 = vmatprep.subr.bf16.mxu1 %v13704_v8  ;;  %v7424_v8 = vrot.slane %v13811_v24, 2 }
 0x43f   : > { %11455 = vmatpush3.bf16.msra.mxu0 %v14389_v32  ;;  %v7299_v10 = vsel %vm663_vm0, %v7297_v42, %v7298_v60 }
 0x440   : > { %7262 = vmatmul.mubr.f32.gmra.mrb[34].mxu1 %v13733_v28  ;;  %11457 = vmatprep.subr.bf16.mxu0 %v14390_v40  ;;  %v7423_v28 = vrot.slane %v7413_v59, 2 }
 0x441   : > { %7266 = vmatprep.mubr.f32.mxu1 %v13759_v5  ;;  %11467 = vmatpush3.bf16.msra.mxu1 %v13706_v18  ;;  %v7303_v18 = vrot.slane %v13749_v11, 1  ;;  %v7285_v5 = vld [vmem:[#allocation2 + $0x130] sm:$0x1] }
 0x442   : > { %11469 = vmatprep.subr.bf16.mxu1 %v13712_v3  ;;  %v7306_v3 = vsel %vm663_vm0, %v7301_v54, %v7305_v12  ;;  %v7425_v24 = vsel %vm4437_vm4, %v7423_v28, %v7424_v8  ;;  %v7311_v12 = vrot.slane %v7285_v5, 1  ;;  %v14009_v5 = vld [vmem:[%s14005_s28 + $0x20] sm:$0xff] }
 0x443   : > { %11459 = vmatpush3.bf16.msra.mxu0 %v14391_v35  ;;  %v7304_v14 = vsel %vm663_vm0, %v7298_v60, %v7303_v18 }
 0x444   : > { %7267 = vmatmul.mubr.f32.gmra.mrb[36].mxu1 %v13749_v11  ;;  %v7313_v11 = vrot.slane %v7286_v26, 1  ;;  %v14000_v26 = vld [vmem:[%s372_s22] ss:$0 sm:$0xff] }
 0x445   : > { %7271 = vmatprep.mubr.f32.mxu1 %v13787_v6  ;;  %11471 = vmatpush3.bf16.msra.mxu1 %v13714_v23  ;;  %v7307_v23 = vrot.slane %v13768_v20, 1  ;;  %v7428_v6 = vrot.slane %v13879_v7, 2 }
 0x446   : > { %7388 = vmatmul.mubr.f32.vlgmr.msra.gmra.mrb[40].mxu0 %v7299_v10  ;;  %11473 = vmatprep.subr.bf16.mxu1 %v13723_v37 }
 0x447   : > { %7392 = vmatprep.mubr.f32.mxu0 %v7306_v3  ;;  %v7308_v37 = vsel %vm663_vm0, %v7303_v18, %v7307_v23 }
 0x448   : > { %7272 = vmatmul.mubr.f32.gmra.mrb[38].mxu1 %v13768_v20  ;;  %v7312_v20 = vsel %vm663_vm0, %v7307_v23, %v7311_v12  ;;  %v14015_v12 = vld [vmem:[%s14005_s28 + $0xa0] sm:$0xff] }
 0x449   : > { %11475 = vmatpush3.bf16.msra.mxu1 %v13725_v17  ;;  %7510 = vmatprep.mubr.f32.mxu1 %v7425_v24  ;;  %v7314_v17 = vsel %vm663_vm0, %v7309_v46, %v7313_v11 }
 0x44a   : > { %7393 = vmatmul.mubr.f32.gmra.mrb[42].mxu0 %v7304_v14  ;;  %11477 = vmatprep.subr.bf16.mxu1 %v13796_v19  ;;  %v7412_v19 = vld [vmem:[#allocation2 + $0x50] sm:$0xfc] }
 0x44b   : > { %7397 = vmatprep.mubr.f32.mxu0 %v13820_v50  ;;  %v7420_v46 = vrot.slane %v7412_v19, 2  ;;  %v7426_v50 = vrot.slane %v13888_v49, 2  ;;  %v7434_v49 = vrot.slane %v7414_v13, 2 }
 0x44d   : > { %11479 = vmatpush3.bf16.msra.mxu1 %v13800_v55  ;;  %v7421_v55 = vrot.slane %v13876_v22, 2  ;;  %v7430_v22 = vrot.slane %v13904_v62, 2 }
 0x44e   : > { %7398 = vmatmul.mubr.f32.gmra.mrb[44].mxu0 %v7308_v37  ;;  %11481 = vmatprep.subr.bf16.mxu1 %v13805_v9  ;;  %v14012_v37 = vld [vmem:[%s14005_s28] sm:$0xff] }
 0x44f   : > { %7402 = vmatprep.mubr.f32.mxu0 %v7314_v17  ;;  %v7422_v9 = vsel %vm4437_vm4, %v7420_v46, %v7421_v55  ;;  %v7431_v47 = vsel %vm4437_vm4, %v7426_v50, %v7430_v22  ;;  %v14018_v17 = vld [vmem:[%s14005_s28 + $0x80] sm:$0xff] }
 0x450   : > { %v14027_v46 = vld [vmem:[%s14005_s28 + $0xe0] sm:$0xff] }
 0x451   : > { %11483 = vmatpush3.bf16.msra.mxu1 %v13827_v33  ;;  %v7429_v33 = vsel %vm4437_vm4, %v7424_v8, %v7428_v6 }
 0x452   : > { %7403 = vmatmul.mubr.f32.gmra.mrb[46].mxu0 %v7312_v20  ;;  %11485 = vmatprep.subr.bf16.mxu1 %v13831_v31  ;;  %v7432_v31 = vrot.slane %v13891_v0, 2  ;;  %v7435_v0 = vsel %vm4437_vm4, %v7430_v22, %v7434_v49  ;;  %v14021_v20 = vld [vmem:[%s14005_s28 + $0xc0] sm:$0xff]  ;;  %v14041_v22 = vld [vmem:[%s14005_s28 + $0xa8] sm:$0xff] }
 0x453   : > { %v14048_v49 = vld [vmem:[%s14005_s28 + $0x88] sm:$0xff] }
 0x454   : > { %v7433_v7 = vsel %vm4437_vm4, %v7428_v6, %v7432_v31  ;;  %v14024_v6 = vld [vmem:[%s14005_s28 + $0x40] sm:$0xff] }
 0x455   : > { %11487 = vmatpush3.bf16.msra.mxu1 %v13846_v29  ;;  %v7415_v29 = vld [vmem:[#allocation2 + $0x98] sm:$0x3] }
 0x456   : > { %11489 = vmatprep.subr.bf16.mxu1 %v13852_v51  ;;  %v7427_v51 = vsel %vm4437_vm4, %v7421_v55, %v7426_v50 }
 0x459   : > { %11491 = vmatpush3.bf16.msra.mxu1 %v13861_v27  ;;  %v7436_v27 = vrot.slane %v7415_v29, 2  ;;  %v14037_v29 = vld [vmem:[%s14005_s28 + $0x8] sm:$0xff] }
 0x45b   : > { %v7437_v56 = vsel %vm4437_vm4, %v7432_v31, %v7436_v27 }
 0x45c   : > { %7511 = vmatmul.mubr.f32.vlgmr.msra.gmra.mrb[40].mxu1 %v7422_v9  ;;  %v14030_v9 = vld [vmem:[%s14005_s28 + $0x60] sm:$0xff] }
 0x45d   : > { %7515 = vmatprep.mubr.f32.mxu1 %v7429_v33  ;;  %v14033_v33 = vld [vmem:[%s14005_s28 + $0x28] sm:$0xff] }
 0x460   : > { %7516 = vmatmul.mubr.f32.gmra.mrb[42].mxu1 %v7427_v51 }
 0x461   : > { %7520 = vmatprep.mubr.f32.mxu1 %v7433_v7 }
 0x464   : > { %7521 = vmatmul.mubr.f32.gmra.mrb[44].mxu1 %v7431_v47 }
 0x465   : > { %7525 = vmatprep.mubr.f32.mxu1 %v7437_v56 }
 0x468   : > { %7526 = vmatmul.mubr.f32.gmra.mrb[46].mxu1 %v7435_v0  ;;  %v14052_v0 = vld [vmem:[%s14005_s28 + $0xc8] sm:$0xff] }
 0x4ce   : > { %v9424_v15 = vpop.f32.mrb[16].mxu1 }
 0x4cf   : > { %v9425_v36 = vpop.f32.mrb[17].mxu1 }
 0x4d0   : > { %v9426_v53 = vadd.f32 %v9425_v36, %v9424_v15  ;;  %v14055_v15 = vld [vmem:[%s14005_s28 + $0x48] sm:$0xff] }
 0x4d2   : > { %v6500_v62 = vadd.f32 %v9426_v53, %v13822_v16  ;;  %v9427_v54 = vpop.f32.mrb[18].mxu1 }
 0x4d3   : > { %v9428_v34 = vpop.f32.mrb[19].mxu1 }
 0x4d4   : > { %v9429_v63 = vadd.f32 %v9428_v34, %v9427_v54 }
 0x4d6   : > { %v6505_v48 = vadd.f32 %v9429_v63, %v13839_v44  ;;  %v9430_v45 = vpop.f32.mrb[20].mxu1 }
 0x4d7   : > { %v9431_v25 = vpop.f32.mrb[21].mxu1 }
 0x4d8   : > { %v9432_v58 = vadd.f32 %v9431_v25, %v9430_v45 }
 0x4d9   : > { %v9468_v39 = vpop.f32.mrb[24].mxu0 }
 0x4da   : > { %v9469_v41 = vpop.f32.mrb[25].mxu0  ;;  %v6510_v4 = vadd.f32 %v9432_v58, %v13857_v2 }
 0x4db   : > { %v9470_v52 = vadd.f32 %v9469_v41, %v9468_v39  ;;  %v14072_v41 = vld [vmem:[%s14005_s28 + $0x30] sm:$0xff] }
 0x4dd   : > { %v6682_v61 = vadd.f32 %v9470_v52, %v6500_v62  ;;  %v9471_v21 = vpop.f32.mrb[26].mxu0  ;;  %v9433_v38 = vpop.f32.mrb[22].mxu1  ;;  %v14075_v52 = vld [vmem:[%s14005_s28 + $0x10] sm:$0xff] }
 0x4de   : > { %v9472_v1 = vpop.f32.mrb[27].mxu0  ;;  %v9434_v16 = vpop.f32.mrb[23].mxu1 }
 0x4df   : > { %v9473_v30 = vadd.f32 %v9472_v1, %v9471_v21  ;;  %v9435_v57 = vadd.f32 %v9434_v16, %v9433_v38 }
 0x4e1   : > { %v6683_v32 = vadd.f32 %v9473_v30, %v6505_v48  ;;  %v6515_v44 = vadd.f32 %v9435_v57, %v13865_v43  ;;  %v9474_v40 = vpop.f32.mrb[28].mxu0 }
 0x4e2   : > { %v9475_v42 = vpop.f32.mrb[29].mxu0 }
 0x4e3   : > { %v9476_v35 = vadd.f32 %v9475_v42, %v9474_v40  ;;  %v14092_v40 = vld [vmem:[%s14005_s28 + $0x90] sm:$0xff] }
 0x4e4   : > { %v14095_v42 = vld [vmem:[%s14005_s28 + $0xd0] sm:$0xff] }
 0x4e5   : > { %v6684_v60 = vadd.f32 %v9476_v35, %v6510_v4  ;;  %v9477_v59 = vpop.f32.mrb[30].mxu0  ;;  %v14078_v4 = vld [vmem:[%s14005_s28 + $0xb0] sm:$0xff] }
 0x4e6   : > { %v9478_v8 = vpop.f32.mrb[31].mxu0  ;;  %v14098_v35 = vld [vmem:[%s14005_s28 + $0x50] sm:$0xff] }
 0x4e7   : > { %v9479_v10 = vadd.f32 %v9478_v8, %v9477_v59 }
 0x4e9   : > { %v13993_v2 = vadd.f32 %v9479_v10, %v6515_v44 }
 0x4ef   : > { %v9512_v18 = vpop.f32.mrb[24].mxu1 }
 0x4f0   : > { %v9513_v3 = vpop.f32.mrb[25].mxu1 }
 0x4f1   : > { %v9514_v28 = vadd.f32 %v9513_v3, %v9512_v18  ;;  %v14101_v3 = vld [vmem:[%s14005_s28 + $0xe8] sm:$0xff] }
 0x4f3   : > { %v6838_v43 = vadd.f32 %v9514_v28, %v6682_v61  ;;  %v9515_v24 = vpop.f32.mrb[26].mxu1 }
 0x4f4   : > { %v9516_v14 = vpop.f32.mrb[27].mxu1 }
 0x4f5   : > { %v6849_v23 = vadd.f32 %v14000_v26, %v6838_v43  ;;  %v9517_v11 = vadd.f32 %v9516_v14, %v9515_v24  ;;  %v14107_v24 = vld [vmem:[%s14005_s28 + $0x38] sm:$0xff] }
 0x4f6   : > { %14392 = vst [vmem:[#allocation7_spill] sm:$0xff] %v14107_v24 }
 0x4f7   : > { %v6839_v19 = vadd.f32 %v9517_v11, %v6683_v32  ;;  %v9518_v55 = vpop.f32.mrb[28].mxu1  ;;  %v6910_v31 = vmul.f32 %v14009_v5, %v6849_v23  ;;  %v6860_v51 = vmul.f32 %v14012_v37, %v6849_v23  ;;  %v6934_v47 = vmul.f32 %v14015_v12, %v6849_v23  ;;  %v14114_v11 = vld [vmem:[%s14005_s28 + $0x18] sm:$0xff] }
 0x4f8   : > { %v9519_v50 = vpop.f32.mrb[29].mxu1  ;;  %v6884_v56 = vmul.f32 %v14018_v17, %v6849_v23  ;;  %v6984_v53 = vmul.f32 %v14021_v20, %v6849_v23  ;;  %v6960_v62 = vmul.f32 %v14024_v6, %v6849_v23  ;;  %v14060_v54 = vmul.f32 %v14027_v46, %v6849_v23 }
 0x4f9   : > { %v14044_v7 = vadd.f32 %v14000_v26, %v6839_v19  ;;  %v9556_v27 = vpop.f32.mrb[32].mxu0  ;;  %v9520_v13 = vadd.f32 %v9519_v50, %v9518_v55  ;;  %v14063_v34 = vmul.f32 %v14030_v9, %v6849_v23  ;;  %v14117_v19 = vld [vmem:[%s14005_s28 + $0xb8] sm:$0xff] }
 0x4fa   : > { %v9557_v36 = vpop.f32.mrb[33].mxu0  ;;  %v14122_v55 = vld [vmem:[%s14005_s28 + $0x98] sm:$0xff] }
 0x4fb   : > { %v6840_v63 = vadd.f32 %v9520_v13, %v6684_v60  ;;  %v14065_v48 = vadd.f32 %v9557_v36, %v9556_v27  ;;  %v9521_v45 = vpop.f32.mrb[30].mxu1  ;;  %v6911_v25 = vmul.f32 %v14033_v33, %v14044_v7  ;;  %v6861_v39 = vmul.f32 %v14037_v29, %v14044_v7  ;;  %v14132_v36 = vld [vmem:[%s14005_s28 + $0xd8] sm:$0xff] }
 0x4fc   : > { %v9522_v58 = vpop.f32.mrb[31].mxu1  ;;  %v6935_v61 = vmul.f32 %v14041_v22, %v14044_v7  ;;  %v6885_v21 = vmul.f32 %v14048_v49, %v14044_v7  ;;  %v6985_v38 = vmul.f32 %v14052_v0, %v14044_v7  ;;  %v6961_v1 = vmul.f32 %v14055_v15, %v14044_v7  ;;  %14393 = vst [vmem:[#allocation11_spill] sm:$0xff] %v14132_v36 }
 0x4fd   : > { %v14089_v16 = vadd.f32 %v14000_v26, %v6840_v63  ;;  %v9559_v30 = vpop.f32.mrb[34].mxu0  ;;  %v9523_v57 = vadd.f32 %v9522_v58, %v9521_v45  ;;  %v6914_v32 = vadd.f32 %v6911_v25, %v6910_v31  ;;  %v6864_v44 = vadd.f32 %v6861_v39, %v6860_v51 }
 0x4fe   : > { %v9560_v60 = vpop.f32.mrb[35].mxu0  ;;  %v6938_v59 = vadd.f32 %v6935_v61, %v6934_v47  ;;  %v6888_v8 = vadd.f32 %v6885_v21, %v6884_v56  ;;  %v6988_v10 = vadd.f32 %v6985_v38, %v6984_v53  ;;  %v6964_v18 = vadd.f32 %v6961_v1, %v6960_v62  ;;  %v14135_v53 = vld [vmem:[%s14005_s28 + $0x58] sm:$0xff]  ;;  %v14138_v62 = vld [vmem:[%s14005_s28 + $0xf0] sm:$0xff] }
 0x4ff   : > { %v6841_v28 = vadd.f32 %v9523_v57, %v13993_v2  ;;  %v14104_v43 = vadd.f32 %v9560_v60, %v9559_v30  ;;  %v6912_v14 = vmul.f32 %v14072_v41, %v14089_v16  ;;  %v6862_v23 = vmul.f32 %v14075_v52, %v14089_v16  ;;  %14394 = vst [vmem:[#allocation4_spill] sm:$0xff] %v14135_v53  ;;  %v14143_v21 = vld [vmem:[%s14005_s28 + $0xf8] sm:$0xff] }
 0x500   : > { %v6936_v2 = vmul.f32 %v14078_v4, %v14089_v16  ;;  %v6886_v50 = vmul.f32 %v14092_v40, %v14089_v16  ;;  %v6986_v31 = vmul.f32 %v14095_v42, %v14089_v16  ;;  %v6962_v51 = vmul.f32 %v14098_v35, %v14089_v16 }
 0x501   : > { %v6852_v27 = vadd.f32 %v14000_v26, %v6841_v28  ;;  %v9562_v13 = vpop.f32.mrb[36].mxu0  ;;  %v6915_v47 = vadd.f32 %v6914_v32, %v6912_v14  ;;  %v6865_v56 = vadd.f32 %v6864_v44, %v6862_v23  ;;  %v7035_v63 = vmul.f32 %v14101_v3, %v14044_v7 }
 0x502   : > { %v9563_v45 = vpop.f32.mrb[37].mxu0  ;;  %v6939_v25 = vadd.f32 %v6938_v59, %v6936_v2  ;;  %v6889_v39 = vadd.f32 %v6888_v8, %v6886_v50  ;;  %v6989_v58 = vadd.f32 %v6988_v10, %v6986_v31  ;;  %v6965_v61 = vadd.f32 %v6964_v18, %v6962_v51  ;;  %v14154_v8 = vld [vmem:[%s14005_s28 + $0x68] sm:$0xff]  ;;  %v14157_v10 = vld [vmem:[%s14005_s28 + $0x70] sm:$0xff] }
 0x503   : > { %v9564_v38 = vadd.f32 %v9563_v45, %v9562_v13  ;;  %v6913_v1 = vmul.f32 %v14107_v24, %v6852_v27  ;;  %v6863_v30 = vmul.f32 %v14114_v11, %v6852_v27  ;;  %v6937_v57 = vmul.f32 %v14117_v19, %v6852_v27 }
 0x504   : > { %v6887_v32 = vmul.f32 %v14122_v55, %v6852_v27  ;;  %v6987_v44 = vmul.f32 %v14132_v36, %v6852_v27  ;;  %v6963_v60 = vmul.f32 %v14135_v53, %v6852_v27  ;;  %v7036_v59 = vmul.f32 %v14138_v62, %v14089_v16  ;;  %v14162_v53 = vld [vmem:[%s14005_s28 + $0x78] sm:$0xff] }
 0x505   : > { %v9565_v18 = vpop.f32.mrb[38].mxu0  ;;  %v6916_v28 = vadd.f32 %v6915_v47, %v6913_v1  ;;  %v6866_v14 = vadd.f32 %v6865_v56, %v6863_v30  ;;  %v6940_v23 = vadd.f32 %v6939_v25, %v6937_v57  ;;  %v7037_v2 = vmul.f32 %v14143_v21, %v6852_v27 }
 0x506   : > { %v9566_v50 = vpop.f32.mrb[39].mxu0  ;;  %v6890_v31 = vadd.f32 %v6889_v39, %v6887_v32  ;;  %v6990_v51 = vadd.f32 %v6989_v58, %v6987_v44  ;;  %v6966_v13 = vadd.f32 %v6965_v61, %v6963_v60  ;;  %v7038_v45 = vadd.f32 %v7035_v63, %v14060_v54 }
 0x507   : > { %v9567_v36 = vadd.f32 %v9566_v50, %v9565_v18  ;;  %6917 = vadd.xlane.f32.xlu1 %v6916_v28  ;;  %6867 = vadd.xlane.f32.xlu0 %v6866_v14  ;;  %v7011_v24 = vmul.f32 %v14154_v8, %v14044_v7  ;;  %v7012_v47 = vmul.f32 %v14157_v10, %v14089_v16 }
 0x508   : > { %v7039_v56 = vadd.f32 %v7038_v45, %v7036_v59  ;;  %v7013_v25 = vmul.f32 %v14162_v53, %v6852_v27 }
 0x509   : > { %v7014_v39 = vadd.f32 %v7011_v24, %v14063_v34 }
 0x50a   : > { %v7040_v58 = vadd.f32 %v7039_v56, %v7037_v2 }
 0x50b   : > { %6941 = vadd.xlane.f32.xlu1 %v6940_v23  ;;  %6891 = vadd.xlane.f32.xlu0 %v6890_v31  ;;  %v7015_v54 = vadd.f32 %v7014_v39, %v7012_v47 }
 0x50d   : > { %v7016_v63 = vadd.f32 %v7015_v54, %v7013_v25 }
 0x50f   : > { %v9600_v61 = vpop.f32.mrb[32].mxu1  ;;  %6991 = vadd.xlane.f32.xlu1 %v6990_v51  ;;  %6967 = vadd.xlane.f32.xlu0 %v6966_v13 }
 0x510   : > { %v9601_v1 = vpop.f32.mrb[33].mxu1 }
 0x511   : > { %v9602_v30 = vadd.f32 %v9601_v1, %v9600_v61 }
 0x513   : > { %v7259_v7 = vadd.f32 %v9602_v30, %v14065_v48  ;;  %v9603_v57 = vpop.f32.mrb[34].mxu1  ;;  %7041 = vadd.xlane.f32.xlu1 %v7040_v58  ;;  %7017 = vadd.xlane.f32.xlu0 %v7016_v63 }
 0x514   : > { %v9604_v16 = vpop.f32.mrb[35].mxu1 }
 0x515   : > { %v9605_v32 = vadd.f32 %v9604_v16, %v9603_v57 }
 0x517   : > { %v7264_v27 = vadd.f32 %v9605_v32, %v14104_v43  ;;  %v9606_v34 = vpop.f32.mrb[36].mxu1 }
 0x518   : > { %v9607_v24 = vpop.f32.mrb[37].mxu1 }
 0x519   : > { %v9644_v44 = vpop.f32.mrb[40].mxu0  ;;  %v9608_v60 = vadd.f32 %v9607_v24, %v9606_v34 }
 0x51a   : > { %v9645_v59 = vpop.f32.mrb[41].mxu0 }
 0x51b   : > { %v7269_v18 = vadd.f32 %v9608_v60, %v9564_v38  ;;  %v9646_v28 = vadd.f32 %v9645_v59, %v9644_v44  ;;  %v9609_v14 = vpop.f32.mrb[38].mxu1 }
 0x51c   : > { %v9610_v23 = vpop.f32.mrb[39].mxu1 }
 0x51d   : > { %v7408_v2 = vadd.f32 %v9646_v28, %v7259_v7  ;;  %v9647_v50 = vpop.f32.mrb[42].mxu0  ;;  %v9611_v31 = vadd.f32 %v9610_v23, %v9609_v14 }
 0x51e   : > { %v9648_v48 = vpop.f32.mrb[43].mxu0 }
 0x51f   : > { %v7274_v51 = vadd.f32 %v9611_v31, %v9567_v36  ;;  %v9649_v13 = vadd.f32 %v9648_v48, %v9647_v50 }
 0x521   : > { %v7409_v45 = vadd.f32 %v9649_v13, %v7264_v27  ;;  %v9650_v47 = vpop.f32.mrb[44].mxu0 }
 0x522   : > { %v9651_v56 = vpop.f32.mrb[45].mxu0 }
 0x523   : > { %v9652_v25 = vadd.f32 %v9651_v56, %v9650_v47 }
 0x525   : > { %v7410_v43 = vadd.f32 %v9652_v25, %v7269_v18  ;;  %v9653_v39 = vpop.f32.mrb[46].mxu0 }
 0x526   : > { %v9654_v58 = vpop.f32.mrb[47].mxu0 }
 0x527   : > { %v9655_v54 = vadd.f32 %v9654_v58, %v9653_v39 }
 0x529   : > { %v7411_v63 = vadd.f32 %v9655_v54, %v7274_v51 }
 0x52f   : > { %v9688_v61 = vpop.f32.mrb[40].mxu1 }
 0x530   : > { %v9689_v38 = vpop.f32.mrb[41].mxu1 }
 0x531   : > { %v9690_v1 = vadd.f32 %v9689_v38, %v9688_v61 }
 0x533   : > { %v7531_v30 = vadd.f32 %v9690_v1, %v7408_v2  ;;  %v9691_v57 = vpop.f32.mrb[42].mxu1 }
 0x534   : > { %v9692_v7 = vpop.f32.mrb[43].mxu1 }
 0x535   : > { %v7535_v16 = vadd.f32 %v14000_v26, %v7531_v30  ;;  %v9693_v32 = vadd.f32 %v9692_v7, %v9691_v57 }
 0x537   : > { %v7532_v36 = vadd.f32 %v9693_v32, %v7409_v45  ;;  %v9694_v34 = vpop.f32.mrb[44].mxu1  ;;  %v7541_v27 = vmul.f32 %v7535_v16, %v14012_v37  ;;  %v7599_v24 = vmul.f32 %v14015_v12, %v7535_v16  ;;  %v7638_v60 = vmul.f32 %v14021_v20, %v7535_v16 }
 0x538   : > { %v9695_v44 = vpop.f32.mrb[45].mxu1  ;;  %v7619_v59 = vmul.f32 %v14024_v6, %v7535_v16  ;;  %v7677_v18 = vmul.f32 %v14027_v46, %v7535_v16  ;;  %v7658_v23 = vmul.f32 %v14030_v9, %v7535_v16  ;;  %v7560_v2 = vmul.f32 %v14018_v17, %v7535_v16 }
 0x539   : > { %v7536_v28 = vadd.f32 %v14000_v26, %v7532_v36  ;;  %v9696_v14 = vadd.f32 %v9695_v44, %v9694_v34  ;;  %v7580_v50 = vmul.f32 %v14009_v5, %v7535_v16 }
 0x53b   : > { %v7533_v31 = vadd.f32 %v9696_v14, %v7410_v43  ;;  %v9697_v37 = vpop.f32.mrb[46].mxu1  ;;  %v7561_v12 = vmul.f32 %v14048_v49, %v7536_v28  ;;  %v7542_v48 = vmul.f32 %v7536_v28, %v14037_v29  ;;  %v7600_v20 = vmul.f32 %v14041_v22, %v7536_v28 }
 0x53c   : > { %v9698_v6 = vpop.f32.mrb[47].mxu1  ;;  %v7581_v46 = vmul.f32 %v14033_v33, %v7536_v28  ;;  %v7639_v51 = vmul.f32 %v14052_v0, %v7536_v28  ;;  %v7620_v13 = vmul.f32 %v14055_v15, %v7536_v28  ;;  %v7678_v9 = vmul.f32 %v14101_v3, %v7536_v28 }
 0x53d   : > { %v7537_v17 = vadd.f32 %v14000_v26, %v7533_v31  ;;  %v9699_v5 = vadd.f32 %v9698_v6, %v9697_v37  ;;  %v7564_v45 = vadd.f32 %v7561_v12, %v7560_v2  ;;  %v7545_v47 = vadd.f32 %v7542_v48, %v7541_v27 }
 0x53e   : > { %v7603_v56 = vadd.f32 %v7600_v20, %v7599_v24  ;;  %v7584_v49 = vadd.f32 %v7581_v46, %v7580_v50  ;;  %v7642_v25 = vadd.f32 %v7639_v51, %v7638_v60  ;;  %v7623_v29 = vadd.f32 %v7620_v13, %v7619_v59 }
 0x53f   : > { %v7534_v43 = vadd.f32 %v9699_v5, %v7411_v63  ;;  %v7562_v22 = vmul.f32 %v14092_v40, %v7537_v17  ;;  %v7543_v33 = vmul.f32 %v7537_v17, %v14075_v52  ;;  %v7601_v0 = vmul.f32 %v14078_v4, %v7537_v17 }
 0x540   : > { %v7582_v15 = vmul.f32 %v14072_v41, %v7537_v17  ;;  %v7640_v3 = vmul.f32 %v14095_v42, %v7537_v17  ;;  %v7621_v39 = vmul.f32 %v14098_v35, %v7537_v17  ;;  %v7679_v58 = vmul.f32 %v14138_v62, %v7537_v17  ;;  %v14395_v42 = vld [vmem:[#allocation7_spill] sm:$0xff]  ;;  %v14397_v62 = vld [vmem:[#allocation4_spill] sm:$0xff] }
 0x541   : > { %v7538_v54 = vadd.f32 %v14000_v26, %v7534_v43  ;;  %v7565_v61 = vadd.f32 %v7564_v45, %v7562_v22  ;;  %v7546_v38 = vadd.f32 %v7545_v47, %v7543_v33  ;;  %v7604_v1 = vadd.f32 %v7603_v56, %v7601_v0  ;;  %v14396_v35 = vld [vmem:[#allocation11_spill] sm:$0xff] }
 0x542   : > { %v7585_v63 = vadd.f32 %v7584_v49, %v7582_v15  ;;  %v7643_v30 = vadd.f32 %v7642_v25, %v7640_v3  ;;  %v7624_v40 = vadd.f32 %v7623_v29, %v7621_v39  ;;  %v7681_v57 = vadd.f32 %v7678_v9, %v7677_v18 }
 0x543   : > { %v7563_v52 = vmul.f32 %v14122_v55, %v7538_v54  ;;  %v7544_v4 = vmul.f32 %v7538_v54, %v14114_v11  ;;  %v7602_v41 = vmul.f32 %v14117_v19, %v7538_v54  ;;  %v7583_v7 = vmul.f32 %v14395_v42, %v7538_v54 }
 0x544   : > { %v7641_v16 = vmul.f32 %v14396_v35, %v7538_v54  ;;  %v7622_v32 = vmul.f32 %v14397_v62, %v7538_v54  ;;  %v7680_v26 = vmul.f32 %v14143_v21, %v7538_v54  ;;  %v7682_v36 = vadd.f32 %v7681_v57, %v7679_v58 }
 0x545   : > { %v7566_v34 = vadd.f32 %v7565_v61, %v7563_v52  ;;  %v7547_v27 = vadd.f32 %v7546_v38, %v7544_v4  ;;  %v7605_v24 = vadd.f32 %v7604_v1, %v7602_v41  ;;  %v7586_v44 = vadd.f32 %v7585_v63, %v7583_v7 }
 0x546   : > { %v7644_v60 = vadd.f32 %v7643_v30, %v7641_v16  ;;  %v7625_v59 = vadd.f32 %v7624_v40, %v7622_v32  ;;  %v7683_v55 = vadd.f32 %v7682_v36, %v7680_v26  ;;  %v7659_v11 = vmul.f32 %v14154_v8, %v7536_v28 }
 0x547   : > { %7567 = vadd.xlane.f32.xlu1 %v7566_v34  ;;  %7548 = vadd.xlane.f32.xlu0 %v7547_v27  ;;  %v7660_v19 = vmul.f32 %v14157_v10, %v7537_v17  ;;  %v7661_v18 = vmul.f32 %v14162_v53, %v7538_v54 }
 0x548   : > { %v7662_v14 = vadd.f32 %v7659_v11, %v7658_v23 }
 0x54a   : > { %v7663_v2 = vadd.f32 %v7662_v14, %v7660_v19 }
 0x54b   : > { %7606 = vadd.xlane.f32.xlu1 %v7605_v24  ;;  %7587 = vadd.xlane.f32.xlu0 %v7586_v44 }
 0x54c   : > { %v7664_v21 = vadd.f32 %v7663_v2, %v7661_v18 }
 0x54f   : > { %7645 = vadd.xlane.f32.xlu1 %v7644_v60  ;;  %7626 = vadd.xlane.f32.xlu0 %v7625_v59 }
 0x553   : > { %7684 = vadd.xlane.f32.xlu1 %v7683_v55  ;;  %7665 = vadd.xlane.f32.xlu0 %v7664_v21 }
 0x594   : > { %v6918_v50 = vpop.xlane.xlu1 %6917  ;;  %v6868_v31 = vpop.xlane.xlu0 %6867 }
 0x595   : > { %v6919_v37 = vrot.slane %v6918_v50, 4  ;;  %v6869_v12 = vrot.slane %v6868_v31, 4 }
 0x597   : > { %v6920_v8 = vadd.f32 %v6919_v37, %v6918_v50  ;;  %v6870_v28 = vadd.f32 %v6869_v12, %v6868_v31 }
 0x598   : > { %v6942_v48 = vpop.xlane.xlu1 %6941  ;;  %v6892_v20 = vpop.xlane.xlu0 %6891 }
 0x599   : > { %v6921_v10 = vrot.slane %v6920_v8, 2  ;;  %v6871_v6 = vrot.slane %v6870_v28, 2  ;;  %v6943_v53 = vrot.slane %v6942_v48, 4  ;;  %v6893_v23 = vrot.slane %v6892_v20, 4 }
 0x59b   : > { %v6944_v46 = vadd.f32 %v6943_v53, %v6942_v48  ;;  %v6894_v51 = vadd.f32 %v6893_v23, %v6892_v20  ;;  %v6872_v13 = vadd.f32 %v6871_v6, %v6870_v28  ;;  %v6922_v5 = vadd.f32 %v6921_v10, %v6920_v8 }
 0x59c   : > { %v6992_v9 = vpop.xlane.xlu1 %6991  ;;  %v6968_v17 = vpop.xlane.xlu0 %6967 }
 0x59d   : > { %v6945_v45 = vrot.slane %v6944_v46, 2  ;;  %v6895_v47 = vrot.slane %v6894_v51, 2  ;;  %v6993_v56 = vrot.slane %v6992_v9, 4  ;;  %v6969_v49 = vrot.slane %v6968_v17, 4 }
 0x59e   : > { %v6873_v25 = vrot.slane %v6872_v13, 1  ;;  %v6923_v39 = vrot.slane %v6922_v5, 1 }
 0x59f   : > { %v6994_v29 = vadd.f32 %v6993_v56, %v6992_v9  ;;  %v6970_v43 = vadd.f32 %v6969_v49, %v6968_v17  ;;  %v6896_v22 = vadd.f32 %v6895_v47, %v6894_v51  ;;  %v6946_v33 = vadd.f32 %v6945_v45, %v6944_v46 }
 0x5a0   : > { %v7042_v0 = vpop.xlane.xlu1 %7041  ;;  %v7018_v15 = vpop.xlane.xlu0 %7017  ;;  %v6874_v3 = vadd.f32 %v6873_v25, %v6872_v13  ;;  %v6924_v41 = vadd.f32 %v6923_v39, %v6922_v5 }
 0x5a1   : > { %v6995_v58 = vrot.slane %v6994_v29, 2  ;;  %v6971_v54 = vrot.slane %v6970_v43, 2  ;;  %v7043_v61 = vrot.slane %v7042_v0, 4  ;;  %v7019_v38 = vrot.slane %v7018_v15, 4 }
 0x5a2   : > { %11718 = vpush %v6874_v3  ;;  %v6897_v1 = vrot.slane %v6896_v22, 1  ;;  %v6947_v63 = vrot.slane %v6946_v33, 1 }
 0x5a3   : > { %v7044_v30 = vadd.f32 %v7043_v61, %v7042_v0  ;;  %v7020_v40 = vadd.f32 %v7019_v38, %v7018_v15  ;;  %v6972_v57 = vadd.f32 %v6971_v54, %v6970_v43  ;;  %v6996_v52 = vadd.f32 %v6995_v58, %v6994_v29 }
 0x5a4   : > { %v6898_v4 = vadd.f32 %v6897_v1, %v6896_v22  ;;  %v6948_v42 = vadd.f32 %v6947_v63, %v6946_v33 }
 0x5a5   : > { %v7045_v7 = vrot.slane %v7044_v30, 2  ;;  %v7021_v35 = vrot.slane %v7020_v40, 2  ;;  %v6973_v16 = vrot.slane %v6972_v57, 1  ;;  %v6997_v62 = vrot.slane %v6996_v52, 1 }
 0x5a6   : > { %11720 = vpush %v6898_v4 }
 0x5a7   : > { %11722 = vpush %v6924_v41  ;;  %v6974_v32 = vadd.f32 %v6973_v16, %v6972_v57  ;;  %v6998_v26 = vadd.f32 %v6997_v62, %v6996_v52  ;;  %v7022_v36 = vadd.f32 %v7021_v35, %v7020_v40  ;;  %v7046_v34 = vadd.f32 %v7045_v7, %v7044_v30 }
 0x5a8   : > { %11724 = vpush %v6948_v42 }
 0x5a9   : > { %11726 = vpush %v6974_v32  ;;  %v7023_v27 = vrot.slane %v7022_v36, 1  ;;  %v7047_v24 = vrot.slane %v7046_v34, 1  ;;  %v14398_v32 = vlaneseq }
 0x5aa   : > { %11728 = vpush %v6998_v26 }
 0x5ab   : > { %v7024_v44 = vadd.f32 %v7023_v27, %v7022_v36  ;;  %v7048_v60 = vadd.f32 %v7047_v24, %v7046_v34  ;;  %v14211_v26 = vand.u32 127, %v14398_v32  ;;  %v14399_v36 = vld [vmem:[#allocation3_spill] sm:$0xff] }
 0x5ac   : > { %vm6853_vm3 = vcmp.eq.s32.totalorder %v14399_v36, 0  ;;  %vm7539_vm13 = vcmp.eq.s32.totalorder %v14399_v36, 1 }
 0x5ad   : > { %11730 = vpush %v7024_v44  ;;  %vm6903_vm0 = vcmp.eq.s32.totalorder %v14211_v26, 1  ;;  %vm6854_vm4 = vcmp.eq.s32.totalorder %v14211_v26, 0  ;;  %vm6953_vm8 = vcmp.eq.s32.totalorder %v14211_v26, 2  ;;  %vm7003_vm11 = vcmp.eq.s32.totalorder %v14211_v26, 3 }
 0x5ae   : > { %11732 = vpush %v7048_v60  ;;  %vm14221_vm9 = vmand %vm6853_vm3, %vm6903_vm0 }
 0x5af   : > { %vm14229_vm10 = vmand %vm6853_vm3, %vm6854_vm4 }
 0x5b0   : > { %vm6954_vm12 = vmand %vm6853_vm3, %vm6953_vm8 }
 0x5b1   : > { %vm7004_vm14 = vmand %vm6853_vm3, %vm7003_vm11 }
 0x5b2   : > { %vm7540_vm15 = vmand %vm7539_vm13, %vm6854_vm4 }
 0x5b3   : > { %vm7579_vm1 = vmand %vm7539_vm13, %vm6903_vm0 }
 0x5b4   : > { %vm7618_vm2 = vmand %vm7539_vm13, %vm6953_vm8 }
 0x5b5   : > { %vm7657_vm5 = vmand %vm7539_vm13, %vm7003_vm11 }
 0x5d3   : > { %s14208_s29 = spop %11718 }
 0x5d4   : > { %v7568_v59 = vpop.xlane.xlu1 %7567  ;;  %v7549_v55 = vpop.xlane.xlu0 %7548 }
 0x5d5   : > { %v7569_v11 = vrot.slane %v7568_v59, 4  ;;  %v7550_v19 = vrot.slane %v7549_v55, 4 }
 0x5d7   : > { %v7551_v18 = vadd.f32 %v7550_v19, %v7549_v55  ;;  %v7570_v14 = vadd.f32 %v7569_v11, %v7568_v59  ;;  %s11721_s30 = spop %11720  ;;  %v6876_v59 = vstv %s14208_s29 }
 0x5d8   : > { %v7607_v2 = vpop.xlane.xlu1 %7606  ;;  %v7588_v21 = vpop.xlane.xlu0 %7587  ;;  %s11723_s8 = spop %11722  ;;  %v6900_v44 = vstv %s11721_s30  ;;  %s386_s30 = scalar_lea.vmem %s14287_s7, %s9347_s12 }
 0x5d9   : > { %v7552_v50 = vrot.slane %v7551_v18, 2  ;;  %v7608_v31 = vrot.slane %v7607_v2, 4  ;;  %v7589_v37 = vrot.slane %v7588_v21, 4  ;;  %v7571_v8 = vrot.slane %v7570_v14, 2  ;;  %s11725_s9 = spop %11724 }
 0x5da   : > { %s11727_s10 = spop %11726  ;;  %v6926_v27 = vstv %s11723_s8  ;;  %v6950_v60 = vstv %s11725_s9 }
 0x5db   : > { %v7553_v12 = vadd.f32 %v7552_v50, %v7551_v18  ;;  %v7609_v28 = vadd.f32 %v7608_v31, %v7607_v2  ;;  %v7590_v48 = vadd.f32 %v7589_v37, %v7588_v21  ;;  %v7572_v47 = vadd.f32 %v7571_v8, %v7570_v14  ;;  %s11729_s11 = spop %11728 }
 0x5dc   : > { %v7646_v20 = vpop.xlane.xlu1 %7645  ;;  %v7627_v10 = vpop.xlane.xlu0 %7626  ;;  %v6976_v55 = vstv %s11727_s10  ;;  %v6927_v11 = vsel %vm14221_vm9, %v6926_v27, 0.0  ;;  %v7000_v19 = vstv %s11729_s11  ;;  %v6901_v18 = vsel %vm14229_vm10, %v6900_v44, 0.0 }
 0x5dd   : > { %v7647_v6 = vrot.slane %v7646_v20, 4  ;;  %v7628_v53 = vrot.slane %v7627_v10, 4  ;;  %v7554_v23 = vrot.slane %v7553_v12, 1  ;;  %v7610_v46 = vrot.slane %v7609_v28, 2 }
 0x5de   : > { %v7591_v51 = vrot.slane %v7590_v48, 2  ;;  %v7573_v43 = vrot.slane %v7572_v47, 1  ;;  %s11731_s13 = spop %11730  ;;  %v6951_v14 = vsel %vm14221_vm9, %v6950_v60, 0.0  ;;  %v6877_v21 = vsel %vm14229_vm10, %v6876_v59, 0.0 }
 0x5df   : > { %v7648_v13 = vadd.f32 %v7647_v6, %v7646_v20  ;;  %v7629_v9 = vadd.f32 %v7628_v53, %v7627_v10  ;;  %v7555_v45 = vadd.f32 %v7554_v23, %v7553_v12  ;;  %v7611_v33 = vadd.f32 %v7610_v46, %v7609_v28  ;;  %s11733_s14 = spop %11732 }
 0x5e0   : > { %v7685_v17 = vpop.xlane.xlu1 %7684  ;;  %v7666_v5 = vpop.xlane.xlu0 %7665  ;;  %v7592_v22 = vadd.f32 %v7591_v51, %v7590_v48  ;;  %v7574_v58 = vadd.f32 %v7573_v43, %v7572_v47  ;;  %v7026_v2 = vstv %s11731_s13  ;;  %v6977_v50 = vsel %vm6954_vm12, %v6976_v55, 0.0 }
 0x5e1   : > { %v7649_v56 = vrot.slane %v7648_v13, 2  ;;  %v7630_v49 = vrot.slane %v7629_v9, 2  ;;  %v7686_v25 = vrot.slane %v7685_v17, 4  ;;  %v7667_v29 = vrot.slane %v7666_v5, 4  ;;  %11734 = vpush %v7555_v45 }
 0x5e2   : > { %v7593_v54 = vrot.slane %v7592_v22, 1  ;;  %v7612_v61 = vrot.slane %v7611_v33, 1  ;;  %11736 = vpush %v7574_v58  ;;  %v7050_v31 = vstv %s11733_s14  ;;  %v6928_v37 = vadd.f32 %v6927_v11, %v6877_v21  ;;  %v9339_v58 = vld [vmem:[%s381_s23] ss:$0 sm:$0xff] }
 0x5e3   : > { %v7631_v0 = vadd.f32 %v7630_v49, %v7629_v9  ;;  %v7650_v15 = vadd.f32 %v7649_v56, %v7648_v13  ;;  %v7687_v3 = vadd.f32 %v7686_v25, %v7685_v17  ;;  %v7668_v39 = vadd.f32 %v7667_v29, %v7666_v5 }
 0x5e4   : > { %v7594_v40 = vadd.f32 %v7593_v54, %v7592_v22  ;;  %v7613_v57 = vadd.f32 %v7612_v61, %v7611_v33  ;;  %v7001_v12 = vsel %vm6954_vm12, %v7000_v19, 0.0  ;;  %v6952_v28 = vadd.f32 %v6951_v14, %v6901_v18 }
 0x5e5   : > { %v7632_v38 = vrot.slane %v7631_v0, 1  ;;  %v7651_v1 = vrot.slane %v7650_v15, 1  ;;  %v7688_v63 = vrot.slane %v7687_v3, 2  ;;  %v7669_v30 = vrot.slane %v7668_v39, 2 }
 0x5e6   : > { %11738 = vpush %v7594_v40  ;;  %v7027_v48 = vsel %vm7004_vm14, %v7026_v2, 0.0  ;;  %v6978_v20 = vadd.f32 %v6977_v50, %v6928_v37  ;;  %v7051_v10 = vsel %vm7004_vm14, %v7050_v31, 0.0  ;;  %v7002_v53 = vadd.f32 %v7001_v12, %v6952_v28 }
 0x5e7   : > { %v7633_v52 = vadd.f32 %v7632_v38, %v7631_v0  ;;  %v7689_v4 = vadd.f32 %v7688_v63, %v7687_v3  ;;  %v7670_v41 = vadd.f32 %v7669_v30, %v7668_v39  ;;  %v7652_v42 = vadd.f32 %v7651_v1, %v7650_v15  ;;  %11740 = vpush %v7613_v57  ;;  %v9341_v1 = vld [vmem:[%s381_s23 + $0x1] ss:$0 sm:$0xff] }
 0x5e8   : > { %v7028_v46 = vadd.f32 %v7027_v48, %v6978_v20  ;;  %v7052_v13 = vadd.f32 %v7051_v10, %v7002_v53 }
 0x5e9   : > { %v7671_v7 = vrot.slane %v7670_v41, 1  ;;  %v7690_v35 = vrot.slane %v7689_v4, 1  ;;  %11742 = vpush %v7633_v52 }
 0x5ea   : > { %11744 = vpush %v7652_v42 }
 0x5eb   : > { %v7672_v16 = vadd.f32 %v7671_v7, %v7670_v41  ;;  %v7691_v62 = vadd.f32 %v7690_v35, %v7689_v4 }
 0x5ed   : > { %11746 = vpush %v7672_v16 }
 0x5ee   : > { %11748 = vpush %v7691_v62 }
 0x612   : > { %s11735_s15 = spop %11734 }
 0x613   : > { %v7557_v8 = vstv %s11735_s15  ;;  %s11737_s16 = spop %11736 }
 0x614   : > { %v7576_v6 = vstv %s11737_s16  ;;  %v7558_v23 = vsel %vm7540_vm15, %v7557_v8, 0.0 }
 0x615   : > { %v7577_v51 = vsel %vm7540_vm15, %v7576_v6, 0.0  ;;  %v7559_v17 = vadd.f32 %v7558_v23, %v7028_v46 }
 0x616   : > { %v7578_v47 = vadd.f32 %v7577_v51, %v7052_v13 }
 0x617   : > { %s11739_s17 = spop %11738 }
 0x618   : > { %v7596_v9 = vstv %s11739_s17  ;;  %s11741_s18 = spop %11740 }
 0x619   : > { %v7597_v5 = vsel %vm7579_vm1, %v7596_v9, 0.0  ;;  %v7615_v45 = vstv %s11741_s18 }
 0x61a   : > { %s11743_s19 = spop %11742  ;;  %v7616_v56 = vsel %vm7579_vm1, %v7615_v45, 0.0  ;;  %v7598_v25 = vadd.f32 %v7597_v5, %v7559_v17 }
 0x61b   : > { %v7635_v49 = vstv %s11743_s19  ;;  %s11745_s20 = spop %11744  ;;  %v7617_v22 = vadd.f32 %v7616_v56, %v7578_v47 }
 0x61c   : > { %v7636_v29 = vsel %vm7618_vm2, %v7635_v49, 0.0  ;;  %v7654_v43 = vstv %s11745_s20 }
 0x61d   : > { %v7655_v33 = vsel %vm7618_vm2, %v7654_v43, 0.0  ;;  %v7637_v0 = vadd.f32 %v7636_v29, %v7598_v25 }
 0x61e   : > { %s11747_s26 = spop %11746  ;;  %v7656_v3 = vadd.f32 %v7655_v33, %v7617_v22 }
 0x61f   : > { %v7674_v15 = vstv %s11747_s26  ;;  %s11749_s27 = spop %11748 }
 0x620   : > { %v7675_v39 = vsel %vm7657_vm5, %v7674_v15, 0.0  ;;  %v7693_v54 = vstv %s11749_s27 }
 0x621   : > { %v7676_v61 = vadd.f32 %v7675_v39, %v7637_v0  ;;  %v7694_v38 = vsel %vm7657_vm5, %v7693_v54, 0.0 }
 0x622   : > { %v7695_v63 = vadd.f32 %v7694_v38, %v7656_v3 }
 0x623   : > { %v7703_v30 = vadd.f32 %v9339_v58, %v7676_v61 }
 0x624   : > { %v7715_v40 = vadd.f32 %v9341_v1, %v7695_v63 }
 0x625   : > { %11759 = vtanh.f32 %v7703_v30 }
 0x626   : > { %11761 = vtanh.f32 %v7715_v40 }
 0x62f   : > { %v11760_v57 = vpop.eup %11759 }
 0x630   : > { %v11762_v52 = vpop.eup %11761  ;;  %7706 = vst.msk [vmem:[%s386_s30] sm:$0x3] %vm7705_vm6, %v11760_v57 }
 0x631   : > { %9342 = vst.msk [vmem:[%s386_s30 + $0x2] sm:$0x3] %vm7705_vm6, %v11762_v52 }
 0x632 PF: > { %s17_s24 = sadd.s32 1, %s11779_s24  }
 0x633   : > { %p14_p4 = scmp.ge.s32.totalorder %s17_s24, 4  }
 0x635   :  { %16 = sbr.rel (!%p14_p4) target bundleno = 1 (0x1), region = 121 }

</bundles_post_ra>
